<compile_context>
chip_gen: v7x
topology: tpu7x:2x2x1
jax: 0.10.0
libtpu: 0.0.40
codegen_flags: <defaults>
</compile_context>

<pallas_src>
import math
import numpy as np
import jax
import jax.numpy as jnp
from jax import lax
from jax.experimental import pallas as pl
from jax.experimental.pallas import tpu as pltpu

# ----------------------------------------------------------------------------- config
CONFIG = {
    "input_dim": 3,
    "discriminators_channels": [8, 16, 32],   # 1x1 stem -> 2 DownBlocks
    "style_dim": 8,
    "tags": [
        {"name": "tag0", "attributes": ["a0", "a1", "a2"], "tag_irrelevant_conditions_dim": 4},
        {"name": "tag1", "attributes": ["b0", "b1"],       "tag_irrelevant_conditions_dim": 4},
    ],
}

SQRT2_INV = 1.0 / math.sqrt(2.0)
LRELU_SLOPE = 0.2          # matches nn.LeakyReLU(0.2) in the reference module


# ----------------------------------------------------------------------------- in-kernel helpers
def _lrelu(x):
    return jnp.where(x > 0, x, LRELU_SLOPE * x)


def _matmul2d(x4, w, b=None):
    """(B, H, W, C) x (C, O) -> (B, H, W, O) as ONE flat MXU matmul.

    W is always 16 here (lazy-W layout), i.e. a multiple of 8, so the flatten to
    (B*H*W, C) and the split back are layout-preserving."""
    B, H, W, C = x4.shape
    O = w.shape[-1]
    y = jnp.dot(x4.reshape(B * H * W, C), w, preferred_element_type=jnp.float32)
    if b is not None:
        y = y + b
    return y.reshape(B, H, W, O)


def _wshift(x4, d):
    """t[..., w, :] = x4[..., w + d, :]; exactly zero where w + d is out of range."""
    B, H, W, C = x4.shape
    pad = jnp.zeros((B, H, abs(d), C), x4.dtype)
    if d > 0:
        return jnp.concatenate([x4[:, :, d:, :], pad], axis=2)
    return jnp.concatenate([pad, x4[:, :, :W + d, :]], axis=2)


def _hshift(x4, d):
    """t[:, h, ...] = x4[:, h + d, ...]; exactly zero where h + d is out of range."""
    B, H, W, C = x4.shape
    pad = jnp.zeros((B, abs(d), W, C), x4.dtype)
    if d > 0:
        return jnp.concatenate([x4[:, d:, :, :], pad], axis=1)
    return jnp.concatenate([pad, x4[:, :H + d, :, :]], axis=1)


def _conv3x3(x4, w2d, b, wst):
    """3x3 conv, stride 1, pad 1 (PyTorch Conv2d semantics) on the logical grid.

    Lazy-W layout: logical columns live at every `wst`-th W position of x4 (H is
    fully compact).  The 9 zero-padded taps are concatenated along the channel/lane
    dim and contracted in a single (B*H*W, 9*Cin) @ (9*Cin, Cout) MXU matmul.
    w2d: (9*Cin, Cout) with row index (dy*3 + dx)*Cin + c."""
    # W-shifted copies for dx = -1, 0, +1 (logical neighbours are +-wst columns away).
    shifted_w = [_wshift(x4, -wst), x4, _wshift(x4, wst)]
    taps = []
    for dy in (-1, 0, 1):
        for sw in shifted_w:
            taps.append(sw if dy == 0 else _hshift(sw, dy))
    col = jnp.concatenate(taps, axis=-1)                      # (B, H, W, 9*Cin)
    return _matmul2d(col, w2d, b)


def _avgpool2(x4, wst):
    """2x2 average pool on the logical grid (lazy-W): H is halved for real, along W
    only the pair sum is formed; output columns are valid at every (2*wst)-th slot."""
    B, H, W, C = x4.shape
    Ho = H // 2
    xr = x4.reshape(B * Ho, 2, W, C)
    hsum = (xr[:, 0] + xr[:, 1]).reshape(B, Ho, W, C)         # fold H (VPU add)
    return (hsum + _wshift(hsum, wst)) * 0.25                 # pair-sum along W


def _downblock(x4, wst, w1, b1, w2, b2, sc):
    # shortcut: 1x1 conv (no bias) -> avg pool
    residual = _avgpool2(_matmul2d(x4, sc), wst)
    # main: lrelu -> conv3x3 -> avg pool -> lrelu -> conv3x3
    h = _conv3x3(_lrelu(x4), w1, b1, wst)
    h = _lrelu(_avgpool2(h, wst))
    h = _conv3x3(h, w2, b2, 2 * wst)
    return (residual + h) * SQRT2_INV, 2 * wst


def _make_fused_kernel(n_blocks):
    def kernel(*refs):
        it = iter(refs)
        x_ref, c0w_ref, c0b_ref = next(it), next(it), next(it)
        blocks = [tuple(next(it) for _ in range(5)) for _ in range(n_blocks)]
        s_ref, y_ref = next(it), next(it)
        wf_ref, ws_ref, wy_ref, fb_ref = next(it), next(it), next(it), next(it)
        o_ref = next(it)

        # stem: 1x1 conv
        h = _matmul2d(x_ref[...], c0w_ref[...], c0b_ref[...])

        # down blocks (lazy-W: valid column stride doubles after every block)
        wst = 1
        for (w1, b1, w2, b2, sc) in blocks:
            h, wst = _downblock(h, wst, w1[...], b1[...], w2[...], b2[...], sc[...])

        # global average pool (AdaptiveAvgPool2d(1)): mask the stale lazy-W columns,
        # then plain reductions (no matmuls).  wst is a power of two by construction.
        B, Hf, W, C = h.shape
        wmask = (lax.broadcasted_iota(jnp.int32, (W, 1), 0) & (wst - 1)) == 0
        hm = jnp.where(wmask, h, 0.0)
        f = jnp.sum(jnp.sum(hm, axis=1), axis=1) * (1.0 / (Hf * (W // wst)))   # (B, C)

        # per-tag fc (1x1 conv on the 1x1 map).  tile_like(s/y) on a 1x1 map is a
        # channel concat, realised by the pre-split fc weight -> three small dots.
        logits = (jnp.dot(f, wf_ref[...], preferred_element_type=jnp.float32) +
                  jnp.dot(s_ref[...], ws_ref[...], preferred_element_type=jnp.float32) +
                  jnp.dot(y_ref[...], wy_ref[...], preferred_element_type=jnp.float32) +
                  fb_ref[...])
        o_ref[...] = logits
    return kernel


# ----------------------------------------------------------------------------- pallas wrapper
def discriminator_forward_pallas(params, x_nchw, s, y, i):
    B = x_nchw.shape[0]
    n_blocks = len(params["blocks"])
    x = jnp.transpose(x_nchw, (0, 2, 3, 1)).astype(jnp.float32)       # NCHW -> NHWC
    _, H, W, _ = x.shape
    # lazy-W layout requirements (hold for the 16x16 config used here)
    assert W % 8 == 0 and W % (1 << n_blocks) == 0 and H % (1 << n_blocks) == 0

    c_feat = params["blocks"][-1]["w2"].shape[-1] if n_blocks else params["conv0_w"].shape[-1]
    c_style = s.shape[1]
    fc = params["fcs"][i]
    wf = fc["w"][:c_feat]
    ws = fc["w"][c_feat:c_feat + c_style]
    wy = fc["w"][c_feat + c_style:]
    n_out = fc["w"].shape[1]

    inputs = [x, params["conv0_w"], params["conv0_b"]]
    for blk in params["blocks"]:
        cin = blk["w1"].shape[1]
        cout = blk["w2"].shape[2]
        inputs += [
            blk["w1"].reshape(9 * cin, cin),      # (9*Cin, Cin), tap-major rows
            blk["b1"],
            blk["w2"].reshape(9 * cin, cout),     # (9*Cin, Cout)
            blk["b2"],
            blk["sc_w"],
        ]
    inputs += [s.astype(jnp.float32), y.astype(jnp.float32), wf, ws, wy, fc["b"]]

    out = pl.pallas_call(
        _make_fused_kernel(n_blocks),
        out_shape=jax.ShapeDtypeStruct((B, n_out), jnp.float32),
        in_specs=[pl.BlockSpec(memory_space=pltpu.MemorySpace.VMEM)] * len(inputs),
        out_specs=pl.BlockSpec(memory_space=pltpu.MemorySpace.VMEM),
        compiler_params=pltpu.CompilerParams(vmem_limit_bytes=32 * 1024 * 1024),
    )(*inputs)
    return out.reshape(B, 2, -1)                                       # .view(B, 2, -1)


# ----------------------------------------------------------------------------- pure-JAX reference
def _lrelu_ref(x):
    return jnp.where(x > 0, x, LRELU_SLOPE * x)


def _conv3x3_ref(x, w9, b):
    B, H, W, C = x.shape
    xp = jnp.pad(x, ((0, 0), (1, 1), (1, 1), (0, 0)))
    acc = jnp.zeros((B, H, W, w9.shape[-1]), jnp.float32)
    for dy in range(3):
        for dx in range(3):
            acc = acc + jnp.einsum("bhwc,co->bhwo", xp[:, dy:dy + H, dx:dx + W, :],
                                   w9[dy * 3 + dx], precision="highest")
    return acc + b


def _avgpool2_ref(x):
    B, H, W, C = x.shape
    return x.reshape(B, H // 2, 2, W // 2, 2, C).mean(axis=(2, 4))


def _downblock_ref(x, p):
    residual = _avgpool2_ref(jnp.einsum("bhwc,co->bhwo", x, p["sc_w"], precision="highest"))
    out = _conv3x3_ref(
        _lrelu_ref(_avgpool2_ref(_conv3x3_ref(_lrelu_ref(x), p["w1"], p["b1"]))),
        p["w2"], p["b2"])
    return (residual + out) * SQRT2_INV


def reference_forward(params, x_nchw, s, y, i):
    x = jnp.transpose(x_nchw, (0, 2, 3, 1)).astype(jnp.float32)
    h = jnp.einsum("bhwc,co->bhwo", x, params["conv0_w"], precision="highest") + params["conv0_b"]
    for blk in params["blocks"]:
        h = _downblock_ref(h, blk)
    f = jnp.mean(h, axis=(1, 2))
    fsy = jnp.concatenate([f, s, y], axis=1)
    fc = params["fcs"][i]
    out = jnp.einsum("bc,co->bo", fsy, fc["w"], precision="highest") + fc["b"]
    return out.reshape(x.shape[0], 2, -1)


# ----------------------------------------------------------------------------- deterministic params
def init_params(key):
    chans = CONFIG["discriminators_channels"]
    keys = iter(jax.random.split(key, 64))
    nk = lambda: next(keys)
    params = {
        "conv0_w": jax.random.normal(nk(), (CONFIG["input_dim"], chans[0]), jnp.float32) * 0.2,
        "conv0_b": jax.random.normal(nk(), (1, chans[0]), jnp.float32) * 0.05,
        "blocks": [],
        "fcs": [],
    }
    for l in range(len(chans) - 1):
        cin, cout = chans[l], chans[l + 1]
        scale = 0.2 / math.sqrt(cin)
        params["blocks"].append({
            "w1": jax.random.normal(nk(), (9, cin, cin), jnp.float32) * scale,   # tap = dy*3+dx
            "b1": jax.random.normal(nk(), (1, cin), jnp.float32) * 0.05,
            "w2": jax.random.normal(nk(), (9, cin, cout), jnp.float32) * scale,
            "b2": jax.random.normal(nk(), (1, cout), jnp.float32) * 0.05,
            "sc_w": jax.random.normal(nk(), (cin, cout), jnp.float32) * scale,
        })
    for t in CONFIG["tags"]:
        cin = chans[-1] + CONFIG["style_dim"] + t["tag_irrelevant_conditions_dim"]
        cout = len(t["attributes"]) * 2
        params["fcs"].append({
            "w": jax.random.normal(nk(), (cin, cout), jnp.float32) * 0.2,
            "b": jax.random.normal(nk(), (1, cout), jnp.float32) * 0.05,
        })
    return params


# TODO(synk): calc_dis_loss_* / compute_grad2 rely on torch.autograd.grad (gradient
# penalty) and are training-only helpers; only the forward pass is implemented here.

# ----------------------------------------------------------------------------- main
if __name__ == "__main__":
    key = jax.random.PRNGKey(0)
    kp, kx, ks, ky = jax.random.split(key, 4)
    params = init_params(kp)

    B, H, W = 2, 16, 16
    tag_i = 0
    x = jax.random.normal(kx, (B, CONFIG["input_dim"], H, W), jnp.float32)
    s = jax.random.normal(ks, (B, CONFIG["style_dim"]), jnp.float32)
    y = jax.random.normal(
        ky, (B, CONFIG["tags"][tag_i]["tag_irrelevant_conditions_dim"]), jnp.float32)

    out = jax.block_until_ready(discriminator_forward_pallas(params, x, s, y, tag_i))

    num_attrs = len(CONFIG["tags"][tag_i]["attributes"])
    assert out.shape == (B, 2, num_attrs), out.shape

    ref = jax.block_until_ready(reference_forward(params, x, s, y, tag_i))
    np.testing.assert_allclose(np.asarray(out), np.asarray(ref), rtol=2e-3, atol=2e-3)

    print("KERNEL_OK")
</pallas_src>

<mosaic_0001>
module attributes {stable_mosaic.version = 11 : i64} {
  func.func @kernel(%arg0: memref<2x16x16x3xf32, #tpu.memory_space<vmem>>, %arg1: memref<3x8xf32, #tpu.memory_space<vmem>>, %arg2: memref<1x8xf32, #tpu.memory_space<vmem>>, %arg3: memref<72x8xf32, #tpu.memory_space<vmem>>, %arg4: memref<1x8xf32, #tpu.memory_space<vmem>>, %arg5: memref<72x16xf32, #tpu.memory_space<vmem>>, %arg6: memref<1x16xf32, #tpu.memory_space<vmem>>, %arg7: memref<8x16xf32, #tpu.memory_space<vmem>>, %arg8: memref<144x16xf32, #tpu.memory_space<vmem>>, %arg9: memref<1x16xf32, #tpu.memory_space<vmem>>, %arg10: memref<144x32xf32, #tpu.memory_space<vmem>>, %arg11: memref<1x32xf32, #tpu.memory_space<vmem>>, %arg12: memref<16x32xf32, #tpu.memory_space<vmem>>, %arg13: memref<2x8xf32, #tpu.memory_space<vmem>>, %arg14: memref<2x4xf32, #tpu.memory_space<vmem>>, %arg15: memref<32x6xf32, #tpu.memory_space<vmem>>, %arg16: memref<8x6xf32, #tpu.memory_space<vmem>>, %arg17: memref<4x6xf32, #tpu.memory_space<vmem>>, %arg18: memref<1x6xf32, #tpu.memory_space<vmem>>, %arg19: memref<2x6xf32, #tpu.memory_space<vmem>>) attributes {dimension_semantics = [], scalar_prefetch = 0 : i64, scratch_operands = 0 : i64, tpu.core_type = #tpu.core_type<tc>} {
    %c0 = arith.constant 0 : index
    %c0_0 = arith.constant 0 : index
    %c0_1 = arith.constant 0 : index
    %c0_2 = arith.constant 0 : index
    %0 = vector.load %arg0[%c0, %c0_0, %c0_1, %c0_2] : memref<2x16x16x3xf32, #tpu.memory_space<vmem>>, vector<2x16x16x3xf32>
    %c0_3 = arith.constant 0 : index
    %c0_4 = arith.constant 0 : index
    %1 = vector.load %arg1[%c0_3, %c0_4] : memref<3x8xf32, #tpu.memory_space<vmem>>, vector<3x8xf32>
    %c0_5 = arith.constant 0 : index
    %c0_6 = arith.constant 0 : index
    %2 = vector.load %arg2[%c0_5, %c0_6] : memref<1x8xf32, #tpu.memory_space<vmem>>, vector<1x8xf32>
    %3 = vector.shape_cast %0 : vector<2x16x16x3xf32> to vector<512x3xf32>
    %cst = arith.constant dense<0.000000e+00> : vector<512x8xf32>
    %4 = tpu.matmul %3, %1, %cst {dimension_numbers = #tpu.dot_dimension_numbers<[1], [0], [0], [1], [0, 0, 1, 1], [], []>} : vector<512x3xf32>, vector<3x8xf32>, vector<512x8xf32> -> vector<512x8xf32>
    %5 = vector.broadcast %2 : vector<1x8xf32> to vector<512x8xf32>
    %6 = arith.addf %4, %5 : vector<512x8xf32>
    %7 = vector.shape_cast %6 : vector<512x8xf32> to vector<2x16x16x8xf32>
    %c0_7 = arith.constant 0 : index
    %c0_8 = arith.constant 0 : index
    %8 = vector.load %arg3[%c0_7, %c0_8] : memref<72x8xf32, #tpu.memory_space<vmem>>, vector<72x8xf32>
    %c0_9 = arith.constant 0 : index
    %c0_10 = arith.constant 0 : index
    %9 = vector.load %arg4[%c0_9, %c0_10] : memref<1x8xf32, #tpu.memory_space<vmem>>, vector<1x8xf32>
    %c0_11 = arith.constant 0 : index
    %c0_12 = arith.constant 0 : index
    %10 = vector.load %arg5[%c0_11, %c0_12] : memref<72x16xf32, #tpu.memory_space<vmem>>, vector<72x16xf32>
    %c0_13 = arith.constant 0 : index
    %c0_14 = arith.constant 0 : index
    %11 = vector.load %arg6[%c0_13, %c0_14] : memref<1x16xf32, #tpu.memory_space<vmem>>, vector<1x16xf32>
    %c0_15 = arith.constant 0 : index
    %c0_16 = arith.constant 0 : index
    %12 = vector.load %arg7[%c0_15, %c0_16] : memref<8x16xf32, #tpu.memory_space<vmem>>, vector<8x16xf32>
    %13 = vector.shape_cast %7 : vector<2x16x16x8xf32> to vector<512x8xf32>
    %cst_17 = arith.constant dense<0.000000e+00> : vector<512x16xf32>
    %14 = tpu.matmul %13, %12, %cst_17 {dimension_numbers = #tpu.dot_dimension_numbers<[1], [0], [0], [1], [0, 0, 1, 1], [], []>} : vector<512x8xf32>, vector<8x16xf32>, vector<512x16xf32> -> vector<512x16xf32>
    %15 = vector.shape_cast %14 : vector<512x16xf32> to vector<2x16x16x16xf32>
    %16 = vector.shape_cast %15 : vector<2x16x16x16xf32> to vector<16x2x16x16xf32>
    %17 = vector.extract_strided_slice %16 {offsets = [0, 0, 0, 0], sizes = [16, 1, 16, 16], strides = [1, 1, 1, 1]} : vector<16x2x16x16xf32> to vector<16x1x16x16xf32>
    %18 = vector.shape_cast %17 : vector<16x1x16x16xf32> to vector<16x16x16xf32>
    %19 = vector.extract_strided_slice %16 {offsets = [0, 1, 0, 0], sizes = [16, 1, 16, 16], strides = [1, 1, 1, 1]} : vector<16x2x16x16xf32> to vector<16x1x16x16xf32>
    %20 = vector.shape_cast %19 : vector<16x1x16x16xf32> to vector<16x16x16xf32>
    %21 = arith.addf %18, %20 : vector<16x16x16xf32>
    %22 = vector.shape_cast %21 : vector<16x16x16xf32> to vector<2x8x16x16xf32>
    %cst_18 = arith.constant 0.000000e+00 : f32
    %23 = vector.broadcast %cst_18 : f32 to vector<2x8x1x16xf32>
    %24 = vector.extract_strided_slice %22 {offsets = [0, 0, 1, 0], sizes = [2, 8, 15, 16], strides = [1, 1, 1, 1]} : vector<2x8x16x16xf32> to vector<2x8x15x16xf32>
    %25 = tpu.concatenate %24, %23 in 2 : vector<2x8x15x16xf32>, vector<2x8x1x16xf32> -> vector<2x8x16x16xf32>
    %26 = arith.addf %22, %25 : vector<2x8x16x16xf32>
    %cst_19 = arith.constant 2.500000e-01 : f32
    %27 = vector.broadcast %cst_19 : f32 to vector<2x8x16x16xf32>
    %28 = arith.mulf %26, %27 : vector<2x8x16x16xf32>
    %cst_20 = arith.constant 0.000000e+00 : f32
    %29 = vector.broadcast %cst_20 : f32 to vector<2x16x16x8xf32>
    %30 = arith.cmpf ogt, %7, %29 : vector<2x16x16x8xf32>
    %cst_21 = arith.constant 2.000000e-01 : f32
    %31 = vector.broadcast %cst_21 : f32 to vector<2x16x16x8xf32>
    %32 = arith.mulf %31, %7 : vector<2x16x16x8xf32>
    %33 = arith.select %30, %7, %32 : vector<2x16x16x8xi1>, vector<2x16x16x8xf32>
    %cst_22 = arith.constant 0.000000e+00 : f32
    %34 = vector.broadcast %cst_22 : f32 to vector<2x16x1x8xf32>
    %35 = vector.extract_strided_slice %33 {offsets = [0, 0, 0, 0], sizes = [2, 16, 15, 8], strides = [1, 1, 1, 1]} : vector<2x16x16x8xf32> to vector<2x16x15x8xf32>
    %36 = tpu.concatenate %34, %35 in 2 : vector<2x16x1x8xf32>, vector<2x16x15x8xf32> -> vector<2x16x16x8xf32>
    %cst_23 = arith.constant 0.000000e+00 : f32
    %37 = vector.broadcast %cst_23 : f32 to vector<2x16x1x8xf32>
    %38 = vector.extract_strided_slice %33 {offsets = [0, 0, 1, 0], sizes = [2, 16, 15, 8], strides = [1, 1, 1, 1]} : vector<2x16x16x8xf32> to vector<2x16x15x8xf32>
    %39 = tpu.concatenate %38, %37 in 2 : vector<2x16x15x8xf32>, vector<2x16x1x8xf32> -> vector<2x16x16x8xf32>
    %cst_24 = arith.constant 0.000000e+00 : f32
    %40 = vector.broadcast %cst_24 : f32 to vector<2x1x16x8xf32>
    %41 = vector.extract_strided_slice %36 {offsets = [0, 0, 0, 0], sizes = [2, 15, 16, 8], strides = [1, 1, 1, 1]} : vector<2x16x16x8xf32> to vector<2x15x16x8xf32>
    %42 = tpu.concatenate %40, %41 in 1 : vector<2x1x16x8xf32>, vector<2x15x16x8xf32> -> vector<2x16x16x8xf32>
    %cst_25 = arith.constant 0.000000e+00 : f32
    %43 = vector.broadcast %cst_25 : f32 to vector<2x1x16x8xf32>
    %44 = vector.extract_strided_slice %33 {offsets = [0, 0, 0, 0], sizes = [2, 15, 16, 8], strides = [1, 1, 1, 1]} : vector<2x16x16x8xf32> to vector<2x15x16x8xf32>
    %45 = tpu.concatenate %43, %44 in 1 : vector<2x1x16x8xf32>, vector<2x15x16x8xf32> -> vector<2x16x16x8xf32>
    %cst_26 = arith.constant 0.000000e+00 : f32
    %46 = vector.broadcast %cst_26 : f32 to vector<2x1x16x8xf32>
    %47 = vector.extract_strided_slice %39 {offsets = [0, 0, 0, 0], sizes = [2, 15, 16, 8], strides = [1, 1, 1, 1]} : vector<2x16x16x8xf32> to vector<2x15x16x8xf32>
    %48 = tpu.concatenate %46, %47 in 1 : vector<2x1x16x8xf32>, vector<2x15x16x8xf32> -> vector<2x16x16x8xf32>
    %cst_27 = arith.constant 0.000000e+00 : f32
    %49 = vector.broadcast %cst_27 : f32 to vector<2x1x16x8xf32>
    %50 = vector.extract_strided_slice %36 {offsets = [0, 1, 0, 0], sizes = [2, 15, 16, 8], strides = [1, 1, 1, 1]} : vector<2x16x16x8xf32> to vector<2x15x16x8xf32>
    %51 = tpu.concatenate %50, %49 in 1 : vector<2x15x16x8xf32>, vector<2x1x16x8xf32> -> vector<2x16x16x8xf32>
    %cst_28 = arith.constant 0.000000e+00 : f32
    %52 = vector.broadcast %cst_28 : f32 to vector<2x1x16x8xf32>
    %53 = vector.extract_strided_slice %33 {offsets = [0, 1, 0, 0], sizes = [2, 15, 16, 8], strides = [1, 1, 1, 1]} : vector<2x16x16x8xf32> to vector<2x15x16x8xf32>
    %54 = tpu.concatenate %53, %52 in 1 : vector<2x15x16x8xf32>, vector<2x1x16x8xf32> -> vector<2x16x16x8xf32>
    %cst_29 = arith.constant 0.000000e+00 : f32
    %55 = vector.broadcast %cst_29 : f32 to vector<2x1x16x8xf32>
    %56 = vector.extract_strided_slice %39 {offsets = [0, 1, 0, 0], sizes = [2, 15, 16, 8], strides = [1, 1, 1, 1]} : vector<2x16x16x8xf32> to vector<2x15x16x8xf32>
    %57 = tpu.concatenate %56, %55 in 1 : vector<2x15x16x8xf32>, vector<2x1x16x8xf32> -> vector<2x16x16x8xf32>
    %58 = tpu.concatenate %42, %45, %48, %36, %33, %39, %51, %54, %57 in 3 : vector<2x16x16x8xf32>, vector<2x16x16x8xf32>, vector<2x16x16x8xf32>, vector<2x16x16x8xf32>, vector<2x16x16x8xf32>, vector<2x16x16x8xf32>, vector<2x16x16x8xf32>, vector<2x16x16x8xf32>, vector<2x16x16x8xf32> -> vector<2x16x16x72xf32>
    %59 = vector.shape_cast %58 : vector<2x16x16x72xf32> to vector<512x72xf32>
    %cst_30 = arith.constant dense<0.000000e+00> : vector<512x8xf32>
    %60 = tpu.matmul %59, %8, %cst_30 {dimension_numbers = #tpu.dot_dimension_numbers<[1], [0], [0], [1], [0, 0, 1, 1], [], []>} : vector<512x72xf32>, vector<72x8xf32>, vector<512x8xf32> -> vector<512x8xf32>
    %61 = vector.broadcast %9 : vector<1x8xf32> to vector<512x8xf32>
    %62 = arith.addf %60, %61 : vector<512x8xf32>
    %63 = vector.shape_cast %62 : vector<512x8xf32> to vector<2x16x16x8xf32>
    %64 = vector.shape_cast %63 : vector<2x16x16x8xf32> to vector<16x2x16x8xf32>
    %65 = vector.extract_strided_slice %64 {offsets = [0, 0, 0, 0], sizes = [16, 1, 16, 8], strides = [1, 1, 1, 1]} : vector<16x2x16x8xf32> to vector<16x1x16x8xf32>
    %66 = vector.shape_cast %65 : vector<16x1x16x8xf32> to vector<16x16x8xf32>
    %67 = vector.extract_strided_slice %64 {offsets = [0, 1, 0, 0], sizes = [16, 1, 16, 8], strides = [1, 1, 1, 1]} : vector<16x2x16x8xf32> to vector<16x1x16x8xf32>
    %68 = vector.shape_cast %67 : vector<16x1x16x8xf32> to vector<16x16x8xf32>
    %69 = arith.addf %66, %68 : vector<16x16x8xf32>
    %70 = vector.shape_cast %69 : vector<16x16x8xf32> to vector<2x8x16x8xf32>
    %cst_31 = arith.constant 0.000000e+00 : f32
    %71 = vector.broadcast %cst_31 : f32 to vector<2x8x1x8xf32>
    %72 = vector.extract_strided_slice %70 {offsets = [0, 0, 1, 0], sizes = [2, 8, 15, 8], strides = [1, 1, 1, 1]} : vector<2x8x16x8xf32> to vector<2x8x15x8xf32>
    %73 = tpu.concatenate %72, %71 in 2 : vector<2x8x15x8xf32>, vector<2x8x1x8xf32> -> vector<2x8x16x8xf32>
    %74 = arith.addf %70, %73 : vector<2x8x16x8xf32>
    %cst_32 = arith.constant 2.500000e-01 : f32
    %75 = vector.broadcast %cst_32 : f32 to vector<2x8x16x8xf32>
    %76 = arith.mulf %74, %75 : vector<2x8x16x8xf32>
    %cst_33 = arith.constant 0.000000e+00 : f32
    %77 = vector.broadcast %cst_33 : f32 to vector<2x8x16x8xf32>
    %78 = arith.cmpf ogt, %76, %77 : vector<2x8x16x8xf32>
    %cst_34 = arith.constant 2.000000e-01 : f32
    %79 = vector.broadcast %cst_34 : f32 to vector<2x8x16x8xf32>
    %80 = arith.mulf %79, %76 : vector<2x8x16x8xf32>
    %81 = arith.select %78, %76, %80 : vector<2x8x16x8xi1>, vector<2x8x16x8xf32>
    %cst_35 = arith.constant 0.000000e+00 : f32
    %82 = vector.broadcast %cst_35 : f32 to vector<2x8x2x8xf32>
    %83 = vector.extract_strided_slice %81 {offsets = [0, 0, 0, 0], sizes = [2, 8, 14, 8], strides = [1, 1, 1, 1]} : vector<2x8x16x8xf32> to vector<2x8x14x8xf32>
    %84 = tpu.concatenate %82, %83 in 2 : vector<2x8x2x8xf32>, vector<2x8x14x8xf32> -> vector<2x8x16x8xf32>
    %cst_36 = arith.constant 0.000000e+00 : f32
    %85 = vector.broadcast %cst_36 : f32 to vector<2x8x2x8xf32>
    %86 = vector.extract_strided_slice %81 {offsets = [0, 0, 2, 0], sizes = [2, 8, 14, 8], strides = [1, 1, 1, 1]} : vector<2x8x16x8xf32> to vector<2x8x14x8xf32>
    %87 = tpu.concatenate %86, %85 in 2 : vector<2x8x14x8xf32>, vector<2x8x2x8xf32> -> vector<2x8x16x8xf32>
    %cst_37 = arith.constant 0.000000e+00 : f32
    %88 = vector.broadcast %cst_37 : f32 to vector<2x1x16x8xf32>
    %89 = vector.extract_strided_slice %84 {offsets = [0, 0, 0, 0], sizes = [2, 7, 16, 8], strides = [1, 1, 1, 1]} : vector<2x8x16x8xf32> to vector<2x7x16x8xf32>
    %90 = tpu.concatenate %88, %89 in 1 : vector<2x1x16x8xf32>, vector<2x7x16x8xf32> -> vector<2x8x16x8xf32>
    %cst_38 = arith.constant 0.000000e+00 : f32
    %91 = vector.broadcast %cst_38 : f32 to vector<2x1x16x8xf32>
    %92 = vector.extract_strided_slice %81 {offsets = [0, 0, 0, 0], sizes = [2, 7, 16, 8], strides = [1, 1, 1, 1]} : vector<2x8x16x8xf32> to vector<2x7x16x8xf32>
    %93 = tpu.concatenate %91, %92 in 1 : vector<2x1x16x8xf32>, vector<2x7x16x8xf32> -> vector<2x8x16x8xf32>
    %cst_39 = arith.constant 0.000000e+00 : f32
    %94 = vector.broadcast %cst_39 : f32 to vector<2x1x16x8xf32>
    %95 = vector.extract_strided_slice %87 {offsets = [0, 0, 0, 0], sizes = [2, 7, 16, 8], strides = [1, 1, 1, 1]} : vector<2x8x16x8xf32> to vector<2x7x16x8xf32>
    %96 = tpu.concatenate %94, %95 in 1 : vector<2x1x16x8xf32>, vector<2x7x16x8xf32> -> vector<2x8x16x8xf32>
    %cst_40 = arith.constant 0.000000e+00 : f32
    %97 = vector.broadcast %cst_40 : f32 to vector<2x1x16x8xf32>
    %98 = vector.extract_strided_slice %84 {offsets = [0, 1, 0, 0], sizes = [2, 7, 16, 8], strides = [1, 1, 1, 1]} : vector<2x8x16x8xf32> to vector<2x7x16x8xf32>
    %99 = tpu.concatenate %98, %97 in 1 : vector<2x7x16x8xf32>, vector<2x1x16x8xf32> -> vector<2x8x16x8xf32>
    %cst_41 = arith.constant 0.000000e+00 : f32
    %100 = vector.broadcast %cst_41 : f32 to vector<2x1x16x8xf32>
    %101 = vector.extract_strided_slice %81 {offsets = [0, 1, 0, 0], sizes = [2, 7, 16, 8], strides = [1, 1, 1, 1]} : vector<2x8x16x8xf32> to vector<2x7x16x8xf32>
    %102 = tpu.concatenate %101, %100 in 1 : vector<2x7x16x8xf32>, vector<2x1x16x8xf32> -> vector<2x8x16x8xf32>
    %cst_42 = arith.constant 0.000000e+00 : f32
    %103 = vector.broadcast %cst_42 : f32 to vector<2x1x16x8xf32>
    %104 = vector.extract_strided_slice %87 {offsets = [0, 1, 0, 0], sizes = [2, 7, 16, 8], strides = [1, 1, 1, 1]} : vector<2x8x16x8xf32> to vector<2x7x16x8xf32>
    %105 = tpu.concatenate %104, %103 in 1 : vector<2x7x16x8xf32>, vector<2x1x16x8xf32> -> vector<2x8x16x8xf32>
    %106 = tpu.concatenate %90, %93, %96, %84, %81, %87, %99, %102, %105 in 3 : vector<2x8x16x8xf32>, vector<2x8x16x8xf32>, vector<2x8x16x8xf32>, vector<2x8x16x8xf32>, vector<2x8x16x8xf32>, vector<2x8x16x8xf32>, vector<2x8x16x8xf32>, vector<2x8x16x8xf32>, vector<2x8x16x8xf32> -> vector<2x8x16x72xf32>
    %107 = vector.shape_cast %106 : vector<2x8x16x72xf32> to vector<256x72xf32>
    %cst_43 = arith.constant dense<0.000000e+00> : vector<256x16xf32>
    %108 = tpu.matmul %107, %10, %cst_43 {dimension_numbers = #tpu.dot_dimension_numbers<[1], [0], [0], [1], [0, 0, 1, 1], [], []>} : vector<256x72xf32>, vector<72x16xf32>, vector<256x16xf32> -> vector<256x16xf32>
    %109 = vector.broadcast %11 : vector<1x16xf32> to vector<256x16xf32>
    %110 = arith.addf %108, %109 : vector<256x16xf32>
    %111 = vector.shape_cast %110 : vector<256x16xf32> to vector<2x8x16x16xf32>
    %112 = arith.addf %28, %111 : vector<2x8x16x16xf32>
    %cst_44 = arith.constant 0.707106769 : f32
    %113 = vector.broadcast %cst_44 : f32 to vector<2x8x16x16xf32>
    %114 = arith.mulf %112, %113 : vector<2x8x16x16xf32>
    %c0_45 = arith.constant 0 : index
    %c0_46 = arith.constant 0 : index
    %115 = vector.load %arg8[%c0_45, %c0_46] : memref<144x16xf32, #tpu.memory_space<vmem>>, vector<144x16xf32>
    %c0_47 = arith.constant 0 : index
    %c0_48 = arith.constant 0 : index
    %116 = vector.load %arg9[%c0_47, %c0_48] : memref<1x16xf32, #tpu.memory_space<vmem>>, vector<1x16xf32>
    %c0_49 = arith.constant 0 : index
    %c0_50 = arith.constant 0 : index
    %117 = vector.load %arg10[%c0_49, %c0_50] : memref<144x32xf32, #tpu.memory_space<vmem>>, vector<144x32xf32>
    %c0_51 = arith.constant 0 : index
    %c0_52 = arith.constant 0 : index
    %118 = vector.load %arg11[%c0_51, %c0_52] : memref<1x32xf32, #tpu.memory_space<vmem>>, vector<1x32xf32>
    %c0_53 = arith.constant 0 : index
    %c0_54 = arith.constant 0 : index
    %119 = vector.load %arg12[%c0_53, %c0_54] : memref<16x32xf32, #tpu.memory_space<vmem>>, vector<16x32xf32>
    %120 = vector.shape_cast %114 : vector<2x8x16x16xf32> to vector<256x16xf32>
    %cst_55 = arith.constant dense<0.000000e+00> : vector<256x32xf32>
    %121 = tpu.matmul %120, %119, %cst_55 {dimension_numbers = #tpu.dot_dimension_numbers<[1], [0], [0], [1], [0, 0, 1, 1], [], []>} : vector<256x16xf32>, vector<16x32xf32>, vector<256x32xf32> -> vector<256x32xf32>
    %122 = vector.shape_cast %121 : vector<256x32xf32> to vector<2x8x16x32xf32>
    %123 = vector.shape_cast %122 : vector<2x8x16x32xf32> to vector<8x2x16x32xf32>
    %124 = vector.extract_strided_slice %123 {offsets = [0, 0, 0, 0], sizes = [8, 1, 16, 32], strides = [1, 1, 1, 1]} : vector<8x2x16x32xf32> to vector<8x1x16x32xf32>
    %125 = vector.shape_cast %124 : vector<8x1x16x32xf32> to vector<8x16x32xf32>
    %126 = vector.extract_strided_slice %123 {offsets = [0, 1, 0, 0], sizes = [8, 1, 16, 32], strides = [1, 1, 1, 1]} : vector<8x2x16x32xf32> to vector<8x1x16x32xf32>
    %127 = vector.shape_cast %126 : vector<8x1x16x32xf32> to vector<8x16x32xf32>
    %128 = arith.addf %125, %127 : vector<8x16x32xf32>
    %129 = vector.shape_cast %128 : vector<8x16x32xf32> to vector<2x4x16x32xf32>
    %cst_56 = arith.constant 0.000000e+00 : f32
    %130 = vector.broadcast %cst_56 : f32 to vector<2x4x2x32xf32>
    %131 = vector.extract_strided_slice %129 {offsets = [0, 0, 2, 0], sizes = [2, 4, 14, 32], strides = [1, 1, 1, 1]} : vector<2x4x16x32xf32> to vector<2x4x14x32xf32>
    %132 = tpu.concatenate %131, %130 in 2 : vector<2x4x14x32xf32>, vector<2x4x2x32xf32> -> vector<2x4x16x32xf32>
    %133 = arith.addf %129, %132 : vector<2x4x16x32xf32>
    %cst_57 = arith.constant 2.500000e-01 : f32
    %134 = vector.broadcast %cst_57 : f32 to vector<2x4x16x32xf32>
    %135 = arith.mulf %133, %134 : vector<2x4x16x32xf32>
    %cst_58 = arith.constant 0.000000e+00 : f32
    %136 = vector.broadcast %cst_58 : f32 to vector<2x8x16x16xf32>
    %137 = arith.cmpf ogt, %114, %136 : vector<2x8x16x16xf32>
    %cst_59 = arith.constant 2.000000e-01 : f32
    %138 = vector.broadcast %cst_59 : f32 to vector<2x8x16x16xf32>
    %139 = arith.mulf %138, %114 : vector<2x8x16x16xf32>
    %140 = arith.select %137, %114, %139 : vector<2x8x16x16xi1>, vector<2x8x16x16xf32>
    %cst_60 = arith.constant 0.000000e+00 : f32
    %141 = vector.broadcast %cst_60 : f32 to vector<2x8x2x16xf32>
    %142 = vector.extract_strided_slice %140 {offsets = [0, 0, 0, 0], sizes = [2, 8, 14, 16], strides = [1, 1, 1, 1]} : vector<2x8x16x16xf32> to vector<2x8x14x16xf32>
    %143 = tpu.concatenate %141, %142 in 2 : vector<2x8x2x16xf32>, vector<2x8x14x16xf32> -> vector<2x8x16x16xf32>
    %cst_61 = arith.constant 0.000000e+00 : f32
    %144 = vector.broadcast %cst_61 : f32 to vector<2x8x2x16xf32>
    %145 = vector.extract_strided_slice %140 {offsets = [0, 0, 2, 0], sizes = [2, 8, 14, 16], strides = [1, 1, 1, 1]} : vector<2x8x16x16xf32> to vector<2x8x14x16xf32>
    %146 = tpu.concatenate %145, %144 in 2 : vector<2x8x14x16xf32>, vector<2x8x2x16xf32> -> vector<2x8x16x16xf32>
    %cst_62 = arith.constant 0.000000e+00 : f32
    %147 = vector.broadcast %cst_62 : f32 to vector<2x1x16x16xf32>
    %148 = vector.extract_strided_slice %143 {offsets = [0, 0, 0, 0], sizes = [2, 7, 16, 16], strides = [1, 1, 1, 1]} : vector<2x8x16x16xf32> to vector<2x7x16x16xf32>
    %149 = tpu.concatenate %147, %148 in 1 : vector<2x1x16x16xf32>, vector<2x7x16x16xf32> -> vector<2x8x16x16xf32>
    %cst_63 = arith.constant 0.000000e+00 : f32
    %150 = vector.broadcast %cst_63 : f32 to vector<2x1x16x16xf32>
    %151 = vector.extract_strided_slice %140 {offsets = [0, 0, 0, 0], sizes = [2, 7, 16, 16], strides = [1, 1, 1, 1]} : vector<2x8x16x16xf32> to vector<2x7x16x16xf32>
    %152 = tpu.concatenate %150, %151 in 1 : vector<2x1x16x16xf32>, vector<2x7x16x16xf32> -> vector<2x8x16x16xf32>
    %cst_64 = arith.constant 0.000000e+00 : f32
    %153 = vector.broadcast %cst_64 : f32 to vector<2x1x16x16xf32>
    %154 = vector.extract_strided_slice %146 {offsets = [0, 0, 0, 0], sizes = [2, 7, 16, 16], strides = [1, 1, 1, 1]} : vector<2x8x16x16xf32> to vector<2x7x16x16xf32>
    %155 = tpu.concatenate %153, %154 in 1 : vector<2x1x16x16xf32>, vector<2x7x16x16xf32> -> vector<2x8x16x16xf32>
    %cst_65 = arith.constant 0.000000e+00 : f32
    %156 = vector.broadcast %cst_65 : f32 to vector<2x1x16x16xf32>
    %157 = vector.extract_strided_slice %143 {offsets = [0, 1, 0, 0], sizes = [2, 7, 16, 16], strides = [1, 1, 1, 1]} : vector<2x8x16x16xf32> to vector<2x7x16x16xf32>
    %158 = tpu.concatenate %157, %156 in 1 : vector<2x7x16x16xf32>, vector<2x1x16x16xf32> -> vector<2x8x16x16xf32>
    %cst_66 = arith.constant 0.000000e+00 : f32
    %159 = vector.broadcast %cst_66 : f32 to vector<2x1x16x16xf32>
    %160 = vector.extract_strided_slice %140 {offsets = [0, 1, 0, 0], sizes = [2, 7, 16, 16], strides = [1, 1, 1, 1]} : vector<2x8x16x16xf32> to vector<2x7x16x16xf32>
    %161 = tpu.concatenate %160, %159 in 1 : vector<2x7x16x16xf32>, vector<2x1x16x16xf32> -> vector<2x8x16x16xf32>
    %cst_67 = arith.constant 0.000000e+00 : f32
    %162 = vector.broadcast %cst_67 : f32 to vector<2x1x16x16xf32>
    %163 = vector.extract_strided_slice %146 {offsets = [0, 1, 0, 0], sizes = [2, 7, 16, 16], strides = [1, 1, 1, 1]} : vector<2x8x16x16xf32> to vector<2x7x16x16xf32>
    %164 = tpu.concatenate %163, %162 in 1 : vector<2x7x16x16xf32>, vector<2x1x16x16xf32> -> vector<2x8x16x16xf32>
    %165 = tpu.concatenate %149, %152, %155, %143, %140, %146, %158, %161, %164 in 3 : vector<2x8x16x16xf32>, vector<2x8x16x16xf32>, vector<2x8x16x16xf32>, vector<2x8x16x16xf32>, vector<2x8x16x16xf32>, vector<2x8x16x16xf32>, vector<2x8x16x16xf32>, vector<2x8x16x16xf32>, vector<2x8x16x16xf32> -> vector<2x8x16x144xf32>
    %166 = vector.shape_cast %165 : vector<2x8x16x144xf32> to vector<256x144xf32>
    %cst_68 = arith.constant dense<0.000000e+00> : vector<256x16xf32>
    %167 = tpu.matmul %166, %115, %cst_68 {dimension_numbers = #tpu.dot_dimension_numbers<[1], [0], [0], [1], [0, 0, 1, 1], [], []>} : vector<256x144xf32>, vector<144x16xf32>, vector<256x16xf32> -> vector<256x16xf32>
    %168 = vector.broadcast %116 : vector<1x16xf32> to vector<256x16xf32>
    %169 = arith.addf %167, %168 : vector<256x16xf32>
    %170 = vector.shape_cast %169 : vector<256x16xf32> to vector<2x8x16x16xf32>
    %171 = vector.shape_cast %170 : vector<2x8x16x16xf32> to vector<8x2x16x16xf32>
    %172 = vector.extract_strided_slice %171 {offsets = [0, 0, 0, 0], sizes = [8, 1, 16, 16], strides = [1, 1, 1, 1]} : vector<8x2x16x16xf32> to vector<8x1x16x16xf32>
    %173 = vector.shape_cast %172 : vector<8x1x16x16xf32> to vector<8x16x16xf32>
    %174 = vector.extract_strided_slice %171 {offsets = [0, 1, 0, 0], sizes = [8, 1, 16, 16], strides = [1, 1, 1, 1]} : vector<8x2x16x16xf32> to vector<8x1x16x16xf32>
    %175 = vector.shape_cast %174 : vector<8x1x16x16xf32> to vector<8x16x16xf32>
    %176 = arith.addf %173, %175 : vector<8x16x16xf32>
    %177 = vector.shape_cast %176 : vector<8x16x16xf32> to vector<2x4x16x16xf32>
    %cst_69 = arith.constant 0.000000e+00 : f32
    %178 = vector.broadcast %cst_69 : f32 to vector<2x4x2x16xf32>
    %179 = vector.extract_strided_slice %177 {offsets = [0, 0, 2, 0], sizes = [2, 4, 14, 16], strides = [1, 1, 1, 1]} : vector<2x4x16x16xf32> to vector<2x4x14x16xf32>
    %180 = tpu.concatenate %179, %178 in 2 : vector<2x4x14x16xf32>, vector<2x4x2x16xf32> -> vector<2x4x16x16xf32>
    %181 = arith.addf %177, %180 : vector<2x4x16x16xf32>
    %cst_70 = arith.constant 2.500000e-01 : f32
    %182 = vector.broadcast %cst_70 : f32 to vector<2x4x16x16xf32>
    %183 = arith.mulf %181, %182 : vector<2x4x16x16xf32>
    %cst_71 = arith.constant 0.000000e+00 : f32
    %184 = vector.broadcast %cst_71 : f32 to vector<2x4x16x16xf32>
    %185 = arith.cmpf ogt, %183, %184 : vector<2x4x16x16xf32>
    %cst_72 = arith.constant 2.000000e-01 : f32
    %186 = vector.broadcast %cst_72 : f32 to vector<2x4x16x16xf32>
    %187 = arith.mulf %186, %183 : vector<2x4x16x16xf32>
    %188 = arith.select %185, %183, %187 : vector<2x4x16x16xi1>, vector<2x4x16x16xf32>
    %cst_73 = arith.constant 0.000000e+00 : f32
    %189 = vector.broadcast %cst_73 : f32 to vector<2x4x4x16xf32>
    %190 = vector.extract_strided_slice %188 {offsets = [0, 0, 0, 0], sizes = [2, 4, 12, 16], strides = [1, 1, 1, 1]} : vector<2x4x16x16xf32> to vector<2x4x12x16xf32>
    %191 = tpu.concatenate %189, %190 in 2 : vector<2x4x4x16xf32>, vector<2x4x12x16xf32> -> vector<2x4x16x16xf32>
    %cst_74 = arith.constant 0.000000e+00 : f32
    %192 = vector.broadcast %cst_74 : f32 to vector<2x4x4x16xf32>
    %193 = vector.extract_strided_slice %188 {offsets = [0, 0, 4, 0], sizes = [2, 4, 12, 16], strides = [1, 1, 1, 1]} : vector<2x4x16x16xf32> to vector<2x4x12x16xf32>
    %194 = tpu.concatenate %193, %192 in 2 : vector<2x4x12x16xf32>, vector<2x4x4x16xf32> -> vector<2x4x16x16xf32>
    %cst_75 = arith.constant 0.000000e+00 : f32
    %195 = vector.broadcast %cst_75 : f32 to vector<2x1x16x16xf32>
    %196 = vector.extract_strided_slice %191 {offsets = [0, 0, 0, 0], sizes = [2, 3, 16, 16], strides = [1, 1, 1, 1]} : vector<2x4x16x16xf32> to vector<2x3x16x16xf32>
    %197 = tpu.concatenate %195, %196 in 1 : vector<2x1x16x16xf32>, vector<2x3x16x16xf32> -> vector<2x4x16x16xf32>
    %cst_76 = arith.constant 0.000000e+00 : f32
    %198 = vector.broadcast %cst_76 : f32 to vector<2x1x16x16xf32>
    %199 = vector.extract_strided_slice %188 {offsets = [0, 0, 0, 0], sizes = [2, 3, 16, 16], strides = [1, 1, 1, 1]} : vector<2x4x16x16xf32> to vector<2x3x16x16xf32>
    %200 = tpu.concatenate %198, %199 in 1 : vector<2x1x16x16xf32>, vector<2x3x16x16xf32> -> vector<2x4x16x16xf32>
    %cst_77 = arith.constant 0.000000e+00 : f32
    %201 = vector.broadcast %cst_77 : f32 to vector<2x1x16x16xf32>
    %202 = vector.extract_strided_slice %194 {offsets = [0, 0, 0, 0], sizes = [2, 3, 16, 16], strides = [1, 1, 1, 1]} : vector<2x4x16x16xf32> to vector<2x3x16x16xf32>
    %203 = tpu.concatenate %201, %202 in 1 : vector<2x1x16x16xf32>, vector<2x3x16x16xf32> -> vector<2x4x16x16xf32>
    %cst_78 = arith.constant 0.000000e+00 : f32
    %204 = vector.broadcast %cst_78 : f32 to vector<2x1x16x16xf32>
    %205 = vector.extract_strided_slice %191 {offsets = [0, 1, 0, 0], sizes = [2, 3, 16, 16], strides = [1, 1, 1, 1]} : vector<2x4x16x16xf32> to vector<2x3x16x16xf32>
    %206 = tpu.concatenate %205, %204 in 1 : vector<2x3x16x16xf32>, vector<2x1x16x16xf32> -> vector<2x4x16x16xf32>
    %cst_79 = arith.constant 0.000000e+00 : f32
    %207 = vector.broadcast %cst_79 : f32 to vector<2x1x16x16xf32>
    %208 = vector.extract_strided_slice %188 {offsets = [0, 1, 0, 0], sizes = [2, 3, 16, 16], strides = [1, 1, 1, 1]} : vector<2x4x16x16xf32> to vector<2x3x16x16xf32>
    %209 = tpu.concatenate %208, %207 in 1 : vector<2x3x16x16xf32>, vector<2x1x16x16xf32> -> vector<2x4x16x16xf32>
    %cst_80 = arith.constant 0.000000e+00 : f32
    %210 = vector.broadcast %cst_80 : f32 to vector<2x1x16x16xf32>
    %211 = vector.extract_strided_slice %194 {offsets = [0, 1, 0, 0], sizes = [2, 3, 16, 16], strides = [1, 1, 1, 1]} : vector<2x4x16x16xf32> to vector<2x3x16x16xf32>
    %212 = tpu.concatenate %211, %210 in 1 : vector<2x3x16x16xf32>, vector<2x1x16x16xf32> -> vector<2x4x16x16xf32>
    %213 = tpu.concatenate %197, %200, %203, %191, %188, %194, %206, %209, %212 in 3 : vector<2x4x16x16xf32>, vector<2x4x16x16xf32>, vector<2x4x16x16xf32>, vector<2x4x16x16xf32>, vector<2x4x16x16xf32>, vector<2x4x16x16xf32>, vector<2x4x16x16xf32>, vector<2x4x16x16xf32>, vector<2x4x16x16xf32> -> vector<2x4x16x144xf32>
    %214 = vector.shape_cast %213 : vector<2x4x16x144xf32> to vector<128x144xf32>
    %cst_81 = arith.constant dense<0.000000e+00> : vector<128x32xf32>
    %215 = tpu.matmul %214, %117, %cst_81 {dimension_numbers = #tpu.dot_dimension_numbers<[1], [0], [0], [1], [0, 0, 1, 1], [], []>} : vector<128x144xf32>, vector<144x32xf32>, vector<128x32xf32> -> vector<128x32xf32>
    %216 = vector.broadcast %118 : vector<1x32xf32> to vector<128x32xf32>
    %217 = arith.addf %215, %216 : vector<128x32xf32>
    %218 = vector.shape_cast %217 : vector<128x32xf32> to vector<2x4x16x32xf32>
    %219 = arith.addf %135, %218 : vector<2x4x16x32xf32>
    %cst_82 = arith.constant 0.707106769 : f32
    %220 = vector.broadcast %cst_82 : f32 to vector<2x4x16x32xf32>
    %221 = arith.mulf %219, %220 : vector<2x4x16x32xf32>
    %222 = tpu.iota {dimensions = array<i32: 0>} : vector<16x1xi32>
    %c3_i32 = arith.constant 3 : i32
    %223 = vector.broadcast %c3_i32 : i32 to vector<16x1xi32>
    %224 = arith.andi %222, %223 : vector<16x1xi32>
    %c0_i32 = arith.constant 0 : i32
    %225 = vector.broadcast %c0_i32 : i32 to vector<16x1xi32>
    %226 = arith.cmpi eq, %224, %225 : vector<16x1xi32>
    %cst_83 = arith.constant 0.000000e+00 : f32
    %227 = vector.shape_cast %226 : vector<16x1xi1> to vector<1x1x16x1xi1>
    %228 = vector.broadcast %227 : vector<1x1x16x1xi1> to vector<2x4x16x32xi1>
    %229 = vector.broadcast %cst_83 : f32 to vector<2x4x16x32xf32>
    %230 = arith.select %228, %221, %229 : vector<2x4x16x32xi1>, vector<2x4x16x32xf32>
    %cst_84 = arith.constant dense<0.000000e+00> : vector<2x16x32xf32>
    %231 = vector.multi_reduction <add>, %230, %cst_84 [1] : vector<2x4x16x32xf32> to vector<2x16x32xf32>
    %cst_85 = arith.constant dense<0.000000e+00> : vector<2x32xf32>
    %232 = vector.multi_reduction <add>, %231, %cst_85 [1] : vector<2x16x32xf32> to vector<2x32xf32>
    %cst_86 = arith.constant 6.250000e-02 : f32
    %233 = vector.broadcast %cst_86 : f32 to vector<2x32xf32>
    %234 = arith.mulf %232, %233 : vector<2x32xf32>
    %c0_87 = arith.constant 0 : index
    %c0_88 = arith.constant 0 : index
    %235 = vector.load %arg15[%c0_87, %c0_88] : memref<32x6xf32, #tpu.memory_space<vmem>>, vector<32x6xf32>
    %cst_89 = arith.constant dense<0.000000e+00> : vector<2x6xf32>
    %236 = tpu.matmul %234, %235, %cst_89 {dimension_numbers = #tpu.dot_dimension_numbers<[1], [0], [0], [1], [0, 0, 1, 1], [], []>} : vector<2x32xf32>, vector<32x6xf32>, vector<2x6xf32> -> vector<2x6xf32>
    %c0_90 = arith.constant 0 : index
    %c0_91 = arith.constant 0 : index
    %237 = vector.load %arg13[%c0_90, %c0_91] : memref<2x8xf32, #tpu.memory_space<vmem>>, vector<2x8xf32>
    %c0_92 = arith.constant 0 : index
    %c0_93 = arith.constant 0 : index
    %238 = vector.load %arg16[%c0_92, %c0_93] : memref<8x6xf32, #tpu.memory_space<vmem>>, vector<8x6xf32>
    %cst_94 = arith.constant dense<0.000000e+00> : vector<2x6xf32>
    %239 = tpu.matmul %237, %238, %cst_94 {dimension_numbers = #tpu.dot_dimension_numbers<[1], [0], [0], [1], [0, 0, 1, 1], [], []>} : vector<2x8xf32>, vector<8x6xf32>, vector<2x6xf32> -> vector<2x6xf32>
    %240 = arith.addf %236, %239 : vector<2x6xf32>
    %c0_95 = arith.constant 0 : index
    %c0_96 = arith.constant 0 : index
    %241 = vector.load %arg14[%c0_95, %c0_96] : memref<2x4xf32, #tpu.memory_space<vmem>>, vector<2x4xf32>
    %c0_97 = arith.constant 0 : index
    %c0_98 = arith.constant 0 : index
    %242 = vector.load %arg17[%c0_97, %c0_98] : memref<4x6xf32, #tpu.memory_space<vmem>>, vector<4x6xf32>
    %cst_99 = arith.constant dense<0.000000e+00> : vector<2x6xf32>
    %243 = tpu.matmul %241, %242, %cst_99 {dimension_numbers = #tpu.dot_dimension_numbers<[1], [0], [0], [1], [0, 0, 1, 1], [], []>} : vector<2x4xf32>, vector<4x6xf32>, vector<2x6xf32> -> vector<2x6xf32>
    %244 = arith.addf %240, %243 : vector<2x6xf32>
    %c0_100 = arith.constant 0 : index
    %c0_101 = arith.constant 0 : index
    %245 = vector.load %arg18[%c0_100, %c0_101] : memref<1x6xf32, #tpu.memory_space<vmem>>, vector<1x6xf32>
    %246 = vector.broadcast %245 : vector<1x6xf32> to vector<2x6xf32>
    %247 = arith.addf %244, %246 : vector<2x6xf32>
    %c0_102 = arith.constant 0 : index
    %c0_103 = arith.constant 0 : index
    %248 = vector.load %arg19[%c0_102, %c0_103] : memref<2x6xf32, #tpu.memory_space<vmem>>, vector<2x6xf32>
    tpu.vector_store %arg19[%c0_102, %c0_103], %247 {strides = array<i32>} : memref<2x6xf32, #tpu.memory_space<vmem>>, vector<2x6xf32>,
    return
  }
}

</mosaic_0001>

<bundles_post_ra>
// kernel: tpu_custom_call.1
= control target key start
LH: loop header
LB: loop body
LE: loop exit
PB: predicated region body
PF: predicated region fallthrough
CT: control target
= control target key end

     0   :  { %s19532_s0 = inlined_call_operand.vmem [shape: f32[2,16,16,3], index: 0, kind: input, shape index: {}]   ;;  %s19533_s1 = inlined_call_operand.vmem [shape: f32[3,8], index: 1, kind: input, shape index: {}]   ;;  %s19534_s2 = inlined_call_operand.vmem [shape: f32[1,8], index: 2, kind: input, shape index: {}]   ;;  %s19535_s3 = inlined_call_operand.vmem [shape: f32[72,8], index: 3, kind: input, shape index: {}]   ;;  %s19536_s4 = inlined_call_operand.vmem [shape: f32[1,8], index: 4, kind: input, shape index: {}]   ;;  %s19537_s5 = inlined_call_operand.vmem [shape: f32[72,16], index: 5, kind: input, shape index: {}]   ;;  %s19538_s6 = inlined_call_operand.vmem [shape: f32[1,16], index: 6, kind: input, shape index: {}]   ;;  %s19539_s7 = inlined_call_operand.vmem [shape: f32[8,16], index: 7, kind: input, shape index: {}]   ;;  %s19540_s8 = inlined_call_operand.vmem [shape: f32[144,16], index: 8, kind: input, shape index: {}]   ;;  %s19541_s9 = inlined_call_operand.vmem [shape: f32[1,16], index: 9, kind: input, shape index: {}]   ;;  %s19542_s10 = inlined_call_operand.vmem [shape: f32[144,32], index: 10, kind: input, shape index: {}]   ;;  %s19543_s11 = inlined_call_operand.vmem [shape: f32[1,32], index: 11, kind: input, shape index: {}]   ;;  %s19544_s12 = inlined_call_operand.vmem [shape: f32[16,32], index: 12, kind: input, shape index: {}]   ;;  %s19545_s13 = inlined_call_operand.vmem [shape: f32[2,8], index: 13, kind: input, shape index: {}]   ;;  %s19546_s14 = inlined_call_operand.vmem [shape: f32[2,4], index: 14, kind: input, shape index: {}]   ;;  %s19547_s15 = inlined_call_operand.vmem [shape: f32[32,6], index: 15, kind: input, shape index: {}]   ;;  %s19548_s16 = inlined_call_operand.vmem [shape: f32[8,6], index: 16, kind: input, shape index: {}]   ;;  %s19549_s17 = inlined_call_operand.vmem [shape: f32[4,6], index: 17, kind: input, shape index: {}]   ;;  %s19550_s18 = inlined_call_operand.vmem [shape: f32[1,6], index: 18, kind: input, shape index: {}]   ;;  %s19551_s19 = inlined_call_operand.hbm [shape: f32[2,6], index: 19, kind: output, shape index: {}]  }
   0x1   :  { %19936 = sst [smem:[#allocation378_spill]] %s19532_s0 }
   0x2   :  { %19937 = sst [smem:[#allocation379_spill]] %s19533_s1 }
   0x3   :  { %19938 = sst [smem:[#allocation380_spill]] %s19534_s2 }
   0x4   :  { %19939 = sst [smem:[#allocation381_spill]] %s19535_s3 }
   0x5   :  { %s19940_s20 = sld [smem:[#allocation379_spill]]  ;;  %vm328_vm0 = vcmask 1042432   ;;  %s19941_s22 = sld [smem:[#allocation378_spill]]  ;;  %vm135_vm1 = vcmask 23552  }
   0xb   :  { %v127_v0 = vld [vmem:[%s19940_s20] sm:$0x7]  ;;  %v64_v3 = vld [vmem:[%s19941_s22 + $0x8] sm:$0xff]  ;;  %v65_v5 = vld [vmem:[%s19941_s22 + $0x10] sm:$0xff] }
   0xc   :  { %v63_v1 = vld [vmem:[%s19941_s22] sm:$0xff]  ;;  %10440 = vmatprep.subr.msk.mxu0 %vm328_vm0, %v127_v0  ;;  %10985 = vmatprep.subr.msk.mxu1 %vm328_vm0, %v127_v0  ;;  %v116_v4 = vld [vmem:[%s19941_s22 + $0x1a8] sm:$0xff]  ;;  %v117_v6 = vld [vmem:[%s19941_s22 + $0x1b0] sm:$0xff] }
   0xd   :  { %v115_v2 = vld [vmem:[%s19941_s22 + $0x1a0] sm:$0xff]  ;;  %10441 = vmatpush3.msk.msra.mxu0 %vm328_vm0, %v127_v0  ;;  %10986 = vmatpush3.msk.msra.mxu1 %vm328_vm0, %v127_v0  ;;  %v66_v7 = vld [vmem:[%s19941_s22 + $0x18] sm:$0xff]  ;;  %v68_v11 = vld [vmem:[%s19941_s22 + $0x28] sm:$0xff] }
   0xe   :  { %10442 = vmatprep.mubr.msk.f32.mxu0 %vm135_vm1, %v63_v1  ;;  %10520 = vmatprep.mubr.msk.f32.mxu1 %vm135_vm1, %v115_v2  ;;  %v118_v8 = vld [vmem:[%s19941_s22 + $0x1b8] sm:$0xff]  ;;  %v67_v9 = vld [vmem:[%s19941_s22 + $0x20] sm:$0xff]  ;;  %v120_v12 = vld [vmem:[%s19941_s22 + $0x1c8] sm:$0xff] }
   0xf   :  { %10443 = vmatmul.mubr.msk.f32.vlgmr.msra.gmra.mrb[0].mxu0 %vm135_vm1, %v64_v3  ;;  %10521 = vmatmul.mubr.msk.f32.vlgmr.msra.gmra.mrb[0].mxu1 %vm135_vm1, %v116_v4  ;;  %v119_v10 = vld [vmem:[%s19941_s22 + $0x1c0] sm:$0xff]  ;;  %v69_v13 = vld [vmem:[%s19941_s22 + $0x30] sm:$0xff]  ;;  %v70_v15 = vld [vmem:[%s19941_s22 + $0x38] sm:$0xff] }
  0x10   :  { %10445 = vmatprep.mubr.msk.f32.mxu0 %vm135_vm1, %v65_v5  ;;  %10523 = vmatprep.mubr.msk.f32.mxu1 %vm135_vm1, %v117_v6  ;;  %v121_v14 = vld [vmem:[%s19941_s22 + $0x1d0] sm:$0xff]  ;;  %v122_v16 = vld [vmem:[%s19941_s22 + $0x1d8] sm:$0xff]  ;;  %v71_v17 = vld [vmem:[%s19941_s22 + $0x40] sm:$0xff] }
  0x11   :  { %v123_v18 = vld [vmem:[%s19941_s22 + $0x1e0] sm:$0xff]  ;;  %v72_v19 = vld [vmem:[%s19941_s22 + $0x48] sm:$0xff]  ;;  %v73_v21 = vld [vmem:[%s19941_s22 + $0x50] sm:$0xff] }
  0x12   :  { %v124_v20 = vld [vmem:[%s19941_s22 + $0x1e8] sm:$0xff]  ;;  %v74_v22 = vld [vmem:[%s19941_s22 + $0x58] sm:$0xff]  ;;  %v125_v23 = vld [vmem:[%s19941_s22 + $0x1f0] sm:$0xff] }
  0x13   :  { %10446 = vmatmul.mubr.msk.f32.gmra.mrb[2].mxu0 %vm135_vm1, %v66_v7  ;;  %10524 = vmatmul.mubr.msk.f32.gmra.mrb[2].mxu1 %vm135_vm1, %v118_v8  ;;  %v126_v24 = vld [vmem:[%s19941_s22 + $0x1f8] sm:$0xff] }
  0x14   :  { %10448 = vmatprep.mubr.msk.f32.mxu0 %vm135_vm1, %v67_v9  ;;  %10526 = vmatprep.mubr.msk.f32.mxu1 %vm135_vm1, %v119_v10 }
  0x17   :  { %10449 = vmatmul.mubr.msk.f32.gmra.mrb[4].mxu0 %vm135_vm1, %v68_v11  ;;  %10527 = vmatmul.mubr.msk.f32.gmra.mrb[4].mxu1 %vm135_vm1, %v120_v12 }
  0x18   :  { %10451 = vmatprep.mubr.msk.f32.mxu0 %vm135_vm1, %v69_v13  ;;  %10529 = vmatprep.mubr.msk.f32.mxu1 %vm135_vm1, %v121_v14 }
  0x1b   :  { %10452 = vmatmul.mubr.msk.f32.gmra.mrb[6].mxu0 %vm135_vm1, %v70_v15  ;;  %10530 = vmatmul.mubr.msk.f32.gmra.mrb[6].mxu1 %vm135_vm1, %v122_v16 }
  0x1c   :  { %10454 = vmatprep.mubr.msk.f32.mxu0 %vm135_vm1, %v71_v17  ;;  %10532 = vmatprep.mubr.msk.f32.mxu1 %vm135_vm1, %v123_v18 }
  0x1f   :  { %10455 = vmatmul.mubr.msk.f32.gmra.mrb[8].mxu0 %vm135_vm1, %v72_v19  ;;  %10533 = vmatmul.mubr.msk.f32.gmra.mrb[8].mxu1 %vm135_vm1, %v124_v20 }
  0x20   :  { %10457 = vmatprep.mubr.msk.f32.mxu0 %vm135_vm1, %v73_v21 }
  0x21   :  { %24 = vsyncpa [#allocation3], 0  ;;  %v75_v25 = vld [vmem:[%s19941_s22 + $0x60] sm:$0xff]  ;;  %10535 = vmatprep.mubr.msk.f32.mxu1 %vm135_vm1, %v125_v23  ;;  %v76_v26 = vld [vmem:[%s19941_s22 + $0x68] sm:$0xff]  ;;  %v19555_v59 = vmov 0.0   ;;  %s11968_s24 = smov 16  }
  0x22   :  { %v77_v27 = vld [vmem:[%s19941_s22 + $0x70] sm:$0xff]  ;;  %v78_v28 = vld [vmem:[%s19941_s22 + $0x78] sm:$0xff]  ;;  %v79_v29 = vld [vmem:[%s19941_s22 + $0x80] sm:$0xff]  ;;  %2362 = vrot.lane.b32.xlu1 %v19555_v59, %s11968_s24  ;;  %s11969_s28 = smov 8   ;;  %s19942_s27 = sld [smem:[#allocation380_spill]]  ;;  %vm738_vm2 = vcmask 64512  }
  0x23   :  { %10458 = vmatmul.mubr.msk.f32.gmra.mrb[10].mxu0 %vm135_vm1, %v74_v22  ;;  %10536 = vmatmul.mubr.msk.f32.gmra.mrb[10].mxu1 %vm135_vm1, %v126_v24  ;;  %v80_v30 = vld [vmem:[%s19941_s22 + $0x88] sm:$0xff]  ;;  %v81_v31 = vld [vmem:[%s19941_s22 + $0x90] sm:$0xff]  ;;  %v82_v32 = vld [vmem:[%s19941_s22 + $0x98] sm:$0xff]  ;;  %vm1380_vm7 = vcmask 1046528   ;;  %vm1797_vm10 = vcmask 1040384   ;;  %s11971_s30 = smov 32  }
  0x24   :  { %10460 = vmatprep.mubr.msk.f32.mxu0 %vm135_vm1, %v75_v25  ;;  %v83_v33 = vld [vmem:[%s19941_s22 + $0xa0] sm:$0xff]  ;;  %v84_v34 = vld [vmem:[%s19941_s22 + $0xa8] sm:$0xff]  ;;  %v85_v35 = vld [vmem:[%s19941_s22 + $0xb0] sm:$0xff]  ;;  %2149 = vrot.lane.b32.xlu0 %v19555_v59, %s11969_s28  ;;  %s20333_s21 = sld [smem:[#allocation381_spill]]  ;;  %s11972_s25 = smov 40  }
  0x25   :  { %v86_v36 = vld [vmem:[%s19941_s22 + $0xb8] sm:$0xff]  ;;  %v87_v37 = vld [vmem:[%s19941_s22 + $0xc0] sm:$0xff]  ;;  %v88_v38 = vld [vmem:[%s19941_s22 + $0xc8] sm:$0xff]  ;;  %s11975_s29 = smov 64   ;;  %s11977_s2 = smov 96  }
  0x26   :  { %v89_v39 = vld [vmem:[%s19941_s22 + $0xd0] sm:$0xff]  ;;  %v90_v40 = vld [vmem:[%s19941_s22 + $0xd8] sm:$0xff]  ;;  %v91_v41 = vld [vmem:[%s19941_s22 + $0xe0] sm:$0xff] }
  0x27   :  { %10461 = vmatmul.mubr.msk.f32.gmra.mrb[12].mxu0 %vm135_vm1, %v76_v26  ;;  %v92_v42 = vld [vmem:[%s19941_s22 + $0xe8] sm:$0xff]  ;;  %v93_v43 = vld [vmem:[%s19941_s22 + $0xf0] sm:$0xff]  ;;  %v94_v44 = vld [vmem:[%s19941_s22 + $0xf8] sm:$0xff] }
  0x28   :  { %10463 = vmatprep.mubr.msk.f32.mxu0 %vm135_vm1, %v77_v27  ;;  %v95_v45 = vld [vmem:[%s19941_s22 + $0x100] sm:$0xff]  ;;  %v96_v46 = vld [vmem:[%s19941_s22 + $0x108] sm:$0xff]  ;;  %v97_v47 = vld [vmem:[%s19941_s22 + $0x110] sm:$0xff] }
  0x29   :  { %v98_v48 = vld [vmem:[%s19941_s22 + $0x118] sm:$0xff]  ;;  %v99_v49 = vld [vmem:[%s19941_s22 + $0x120] sm:$0xff]  ;;  %v100_v50 = vld [vmem:[%s19941_s22 + $0x128] sm:$0xff] }
  0x2a   :  { %v101_v51 = vld [vmem:[%s19941_s22 + $0x130] sm:$0xff]  ;;  %v102_v52 = vld [vmem:[%s19941_s22 + $0x138] sm:$0xff]  ;;  %v103_v53 = vld [vmem:[%s19941_s22 + $0x140] sm:$0xff] }
  0x2b   :  { %10464 = vmatmul.mubr.msk.f32.gmra.mrb[14].mxu0 %vm135_vm1, %v78_v28  ;;  %v104_v54 = vld [vmem:[%s19941_s22 + $0x148] sm:$0xff]  ;;  %v105_v55 = vld [vmem:[%s19941_s22 + $0x150] sm:$0xff]  ;;  %v106_v56 = vld [vmem:[%s19941_s22 + $0x158] sm:$0xff] }
  0x2c   :  { %10466 = vmatprep.mubr.msk.f32.mxu0 %vm135_vm1, %v79_v29  ;;  %v107_v57 = vld [vmem:[%s19941_s22 + $0x160] sm:$0xff]  ;;  %v108_v58 = vld [vmem:[%s19941_s22 + $0x168] sm:$0xff]  ;;  %v109_v61 = vld [vmem:[%s19941_s22 + $0x170] sm:$0xff] }
  0x2d   :  { %v737_v60 = vld [vmem:[%s19539_s7] sm:$0xff]  ;;  %v110_v62 = vld [vmem:[%s19941_s22 + $0x178] sm:$0xff]  ;;  %v112_v0 = vld [vmem:[%s19941_s22 + $0x188] sm:$0xff] }
  0x2e   :  { %10538 = vmatprep.subr.mxu1 %v737_v60  ;;  %v111_v63 = vld [vmem:[%s19941_s22 + $0x180] sm:$0xff]  ;;  %v113_v1 = vld [vmem:[%s19941_s22 + $0x190] sm:$0xff]  ;;  %v114_v2 = vld [vmem:[%s19941_s22 + $0x198] sm:$0xff]  ;;  %s11970_s22 = smov 24  }
  0x2f   :  { %10467 = vmatmul.mubr.msk.f32.gmra.mrb[16].mxu0 %vm135_vm1, %v80_v30  ;;  %10539 = vmatpush3.msra.mxu1 %v737_v60  ;;  %v12351_v3 = vld [vmem:[%s19942_s27] ss:$0 sm:$0xff] }
  0x30   :  { %10469 = vmatprep.mubr.msk.f32.mxu0 %vm135_vm1, %v81_v31 }
  0x33   :  { %10470 = vmatmul.mubr.msk.f32.gmra.mrb[18].mxu0 %vm135_vm1, %v82_v32 }
  0x34   :  { %10472 = vmatprep.mubr.msk.f32.mxu0 %vm135_vm1, %v83_v33 }
  0x37   :  { %10473 = vmatmul.mubr.msk.f32.gmra.mrb[20].mxu0 %vm135_vm1, %v84_v34 }
  0x38   :  { %10475 = vmatprep.mubr.msk.f32.mxu0 %vm135_vm1, %v85_v35 }
  0x3b   :  { %10476 = vmatmul.mubr.msk.f32.gmra.mrb[22].mxu0 %vm135_vm1, %v86_v36 }
  0x3c   :  { %10478 = vmatprep.mubr.msk.f32.mxu0 %vm135_vm1, %v87_v37 }
  0x3f   :  { %10479 = vmatmul.mubr.msk.f32.gmra.mrb[24].mxu0 %vm135_vm1, %v88_v38 }
  0x40   :  { %10481 = vmatprep.mubr.msk.f32.mxu0 %vm135_vm1, %v89_v39 }
  0x43   :  { %10482 = vmatmul.mubr.msk.f32.gmra.mrb[26].mxu0 %vm135_vm1, %v90_v40 }
  0x44   :  { %10484 = vmatprep.mubr.msk.f32.mxu0 %vm135_vm1, %v91_v41 }
  0x47   :  { %10485 = vmatmul.mubr.msk.f32.gmra.mrb[28].mxu0 %vm135_vm1, %v92_v42 }
  0x48   :  { %10487 = vmatprep.mubr.msk.f32.mxu0 %vm135_vm1, %v93_v43 }
  0x4b   :  { %10488 = vmatmul.mubr.msk.f32.gmra.mrb[30].mxu0 %vm135_vm1, %v94_v44 }
  0x4c   :  { %10490 = vmatprep.mubr.msk.f32.mxu0 %vm135_vm1, %v95_v45 }
  0x4f   :  { %10491 = vmatmul.mubr.msk.f32.gmra.mrb[32].mxu0 %vm135_vm1, %v96_v46 }
  0x50   :  { %10493 = vmatprep.mubr.msk.f32.mxu0 %vm135_vm1, %v97_v47 }
  0x53   :  { %10494 = vmatmul.mubr.msk.f32.gmra.mrb[34].mxu0 %vm135_vm1, %v98_v48 }
  0x54   :  { %10496 = vmatprep.mubr.msk.f32.mxu0 %vm135_vm1, %v99_v49 }
  0x57   :  { %10497 = vmatmul.mubr.msk.f32.gmra.mrb[36].mxu0 %vm135_vm1, %v100_v50 }
  0x58   :  { %10499 = vmatprep.mubr.msk.f32.mxu0 %vm135_vm1, %v101_v51 }
  0x5b   :  { %10500 = vmatmul.mubr.msk.f32.gmra.mrb[38].mxu0 %vm135_vm1, %v102_v52 }
  0x5c   :  { %10502 = vmatprep.mubr.msk.f32.mxu0 %vm135_vm1, %v103_v53 }
  0x5f   :  { %10503 = vmatmul.mubr.msk.f32.gmra.mrb[40].mxu0 %vm135_vm1, %v104_v54 }
  0x60   :  { %10505 = vmatprep.mubr.msk.f32.mxu0 %vm135_vm1, %v105_v55 }
  0x63   :  { %10506 = vmatmul.mubr.msk.f32.gmra.mrb[42].mxu0 %vm135_vm1, %v106_v56 }
  0x64   :  { %10508 = vmatprep.mubr.msk.f32.mxu0 %vm135_vm1, %v107_v57 }
  0x67   :  { %10509 = vmatmul.mubr.msk.f32.gmra.mrb[44].mxu0 %vm135_vm1, %v108_v58 }
  0x68   :  { %10511 = vmatprep.mubr.msk.f32.mxu0 %vm135_vm1, %v109_v61 }
  0x6b   :  { %10512 = vmatmul.mubr.msk.f32.gmra.mrb[46].mxu0 %vm135_vm1, %v110_v62 }
  0x6c   :  { %10514 = vmatprep.mubr.msk.f32.mxu0 %vm135_vm1, %v111_v63 }
  0x6f   :  { %10515 = vmatmul.mubr.msk.f32.gmra.mrb[48].mxu0 %vm135_vm1, %v112_v0 }
  0x70   :  { %10517 = vmatprep.mubr.msk.f32.mxu0 %vm135_vm1, %v113_v1 }
  0x73   :  { %10518 = vmatmul.mubr.msk.f32.gmra.mrb[50].mxu0 %vm135_vm1, %v114_v2 }
  0xe2   :  { %v10444_v4 = vpop.f32.mrb[0].mxu0  ;;  %v10522_v5 = vpop.f32.mrb[0].mxu1 }
  0xe3   :  { %v404_v6 = vadd.f32 %v10444_v4, %v12351_v3  ;;  %v12355_v7 = vadd.f32 %v10522_v5, %v12351_v3  ;;  %v398_v8 = vpop.f32.mrb[1].mxu0  ;;  %v658_v9 = vpop.f32.mrb[1].mxu1 }
  0xe4   :  { %v399_v10 = vadd.f32 %v12351_v3, %v398_v8  ;;  %v12359_v11 = vadd.f32 %v12351_v3, %v658_v9 }
  0xe5   :  { %v1658_v12 = vmul.f32 0.2, %v12355_v7  ;;  %vm1594_vm3 = vcmp.gt.f32.partialorder %v12355_v7, 0.0  ;;  %vm1542_vm4 = vcmp.gt.f32.partialorder %v404_v6, 0.0  ;;  %v1606_v13 = vmul.f32 0.2, %v404_v6 }
  0xe6   :  { %10540 = vmatprep.mubr.msk.f32.mxu1 %vm738_vm2, %v399_v10  ;;  %v10447_v14 = vpop.f32.mrb[2].mxu0  ;;  %v10525_v15 = vpop.f32.mrb[2].mxu1  ;;  %v1657_v16 = vmul.f32 0.2, %v12359_v11  ;;  %vm1593_vm5 = vcmp.gt.f32.partialorder %v12359_v11, 0.0  ;;  %vm1541_vm6 = vcmp.gt.f32.partialorder %v399_v10, 0.0 }
  0xe7   :  { %v414_v17 = vadd.f32 %v10447_v14, %v12351_v3  ;;  %10541 = vmatmul.mubr.msk.f32.vlgmr.msra.gmra.mrb[12].mxu1 %vm738_vm2, %v404_v6  ;;  %v12368_v18 = vsel %vm1594_vm3, %v12355_v7, %v1658_v12  ;;  %v12370_v19 = vsel %vm1542_vm4, %v404_v6, %v1606_v13  ;;  %v408_v20 = vpop.f32.mrb[3].mxu0  ;;  %v668_v21 = vpop.f32.mrb[3].mxu1  ;;  %v1605_v23 = vmul.f32 0.2, %v399_v10 }
  0xe8   :  { %19943 = vst [vmem:[#allocation5_spill] sm:$0xff] %v12368_v18  ;;  %19944 = vst [vmem:[#allocation6_spill] sm:$0xff] %v12370_v19  ;;  %2253 = vrot.lane.b32.xlu0 %v12368_v18, %s11969_s28  ;;  %2153 = vrot.lane.b32.xlu1 %v12370_v19, %s11969_s28  ;;  %v12377_v22 = vadd.f32 %v12351_v3, %v408_v20  ;;  %v12381_v24 = vadd.f32 %v10525_v15, %v12351_v3  ;;  %v1989_v30 = vrot.slane %v12370_v19, 1 }
  0xe9   :  { %v1608_v26 = vmul.f32 0.2, %v414_v17  ;;  %v12386_v27 = vsel %vm1593_vm5, %v12359_v11, %v1657_v16  ;;  %v12388_v28 = vsel %vm1541_vm6, %v399_v10, %v1605_v23  ;;  %vm1544_vm8 = vcmp.gt.f32.partialorder %v414_v17, 0.0 }
  0xea   :  { %10543 = vmatprep.mubr.msk.f32.mxu1 %vm738_vm2, %v12377_v22  ;;  %v10450_v25 = vpop.f32.mrb[4].mxu0  ;;  %19945 = vst [vmem:[#allocation7_spill] sm:$0xff] %v12386_v27  ;;  %19946 = vst [vmem:[#allocation8_spill] sm:$0xff] %v12388_v28  ;;  %v10528_v31 = vpop.f32.mrb[4].mxu1  ;;  %v2067_v34 = vrot.slane %v12368_v18, 1  ;;  %v12409_v39 = vsel %vm1380_vm7, %v1989_v30, 0.0  ;;  %v12448_v54 = vadd.f32 %v12351_v3, %v668_v21 }
  0xeb   :  { %v418_v29 = vpop.f32.mrb[5].mxu0  ;;  %v12395_v32 = vpop.f32.mrb[5].mxu1  ;;  %v1660_v37 = vmul.f32 0.2, %v12381_v24  ;;  %v12405_v38 = vadd.f32 %v10450_v25, %v12351_v3  ;;  %19947 = vst [vmem:[#allocation9_spill] sm:$0xff] %v12409_v39  ;;  %v12411_v40 = vsel %vm1544_vm8, %v414_v17, %v1608_v26  ;;  %vm1596_vm9 = vcmp.gt.f32.partialorder %v12381_v24, 0.0 }
  0xec   :  { %2251 = vrot.lane.b32.xlu1 %v12386_v27, %s11969_s28  ;;  %2151 = vrot.lane.b32.xlu0 %v12388_v28, %s11969_s28  ;;  %v12398_v33 = vadd.f32 %v12351_v3, %v418_v29  ;;  %19948 = vst [vmem:[#allocation10_spill] sm:$0xff] %v12411_v40  ;;  %v12426_v44 = vsel %vm1380_vm7, %v2067_v34, 0.0  ;;  %v1988_v48 = vrot.slane %v12388_v28, 1  ;;  %v1798_v49 = vrot.slane %v12388_v28, 7 }
  0xed   :  { %19949 = vst [vmem:[#allocation11_spill] sm:$0xff] %v12426_v44  ;;  %v12433_v47 = vsel %vm1596_vm9, %v12381_v24, %v1660_v37  ;;  %v1799_v50 = vrot.slane %v12370_v19, 7  ;;  %v1607_v53 = vmul.f32 0.2, %v12377_v22  ;;  %v2066_v60 = vrot.slane %v12386_v27, 1 }
  0xee   :  { %v10453_v35 = vpop.f32.mrb[6].mxu0  ;;  %v12401_v36 = vpop.f32.mrb[6].mxu1  ;;  %19950 = vst [vmem:[#allocation12_spill] sm:$0xff] %v12433_v47  ;;  %v12454_v57 = vsel %vm1380_vm7, %v1988_v48, %v1989_v30  ;;  %vm1543_vm11 = vcmp.gt.f32.partialorder %v12377_v22, 0.0  ;;  %v1659_v0 = vmul.f32 0.2, %v12448_v54  ;;  %v12492_v9 = vadd.f32 %v10528_v31, %v12351_v3 }
  0xef   :  { %10544 = vmatmul.mubr.msk.f32.gmra.mrb[12].mxu1 %vm738_vm2, %v414_v17  ;;  %v428_v41 = vpop.f32.mrb[7].mxu0  ;;  %v12413_v42 = vpop.f32.mrb[7].mxu1  ;;  %v12451_v56 = vadd.f32 %v10453_v35, %v12351_v3  ;;  %19951 = vst [vmem:[#allocation13_spill] sm:$0xff] %v12454_v57  ;;  %v12457_v58 = vsel %vm1797_vm10, %v1798_v49, %v1799_v50  ;;  %v12475_v2 = vsel %vm1380_vm7, %v2066_v60, %v2067_v34  ;;  %vm1595_vm12 = vcmp.gt.f32.partialorder %v12448_v54, 0.0 }
  0xf0   :  { %2366 = vrot.lane.b32.xlu1 %v12409_v39, %s11968_s24  ;;  %2157 = vrot.lane.b32.xlu0 %v12411_v40, %s11969_s28  ;;  %v12423_v43 = vadd.f32 %v12351_v3, %v428_v41  ;;  %19952 = vst [vmem:[#allocation14_spill] sm:$0xff] %v12457_v58  ;;  %19953 = vst [vmem:[#allocation15_spill] sm:$0xff] %v12475_v2  ;;  %v12478_v4 = vsel %vm1543_vm11, %v12377_v22, %v1607_v53  ;;  %v1610_v8 = vmul.f32 0.2, %v12405_v38 }
  0xf1   :  { %10546 = vmatprep.mubr.msk.f32.mxu1 %vm738_vm2, %v12398_v33  ;;  %19954 = vst [vmem:[#allocation16_spill] sm:$0xff] %v12478_v4  ;;  %v12497_v12 = vsel %vm1797_vm10, 0.0, %v1798_v49  ;;  %v12500_v13 = vsel %vm1595_vm12, %v12448_v54, %v1659_v0  ;;  %vm1546_vm13 = vcmp.gt.f32.partialorder %v12405_v38, 0.0  ;;  %v1992_v14 = vrot.slane %v12411_v40, 1 }
  0xf2   :  { %v10456_v45 = vpop.f32.mrb[8].mxu0  ;;  %v12428_v46 = vpop.f32.mrb[8].mxu1  ;;  %19955 = vst [vmem:[#allocation17_spill] sm:$0xff] %v12497_v12  ;;  %19956 = vst [vmem:[#allocation18_spill] sm:$0xff] %v12500_v13  ;;  %v1662_v16 = vmul.f32 0.2, %v12492_v9  ;;  %v12512_v17 = vsel %vm1546_vm13, %v12405_v38, %v1610_v8  ;;  %v12555_v50 = vadd.f32 %v12351_v3, %v12395_v32 }
  0xf3   :  { %10547 = vmatmul.mubr.msk.f32.gmra.mrb[14].mxu1 %vm738_vm2, %v12405_v38  ;;  %v438_v51 = vpop.f32.mrb[9].mxu0  ;;  %v12438_v52 = vpop.f32.mrb[9].mxu1  ;;  %v12470_v1 = vadd.f32 %v10456_v45, %v12351_v3  ;;  %19957 = vst [vmem:[#allocation19_spill] sm:$0xff] %v12512_v17  ;;  %v12518_v22 = vsel %vm1380_vm7, %v1992_v14, 0.0  ;;  %vm1598_vm14 = vcmp.gt.f32.partialorder %v12492_v9, 0.0  ;;  %v2070_v23 = vrot.slane %v12433_v47, 1 }
  0xf4   :  { %2466 = vrot.lane.b32.xlu1 %v12426_v44, %s11968_s24  ;;  %2257 = vrot.lane.b32.xlu0 %v12433_v47, %s11969_s28  ;;  %v12466_v62 = vadd.f32 %v12351_v3, %v438_v51  ;;  %19958 = vst [vmem:[#allocation20_spill] sm:$0xff] %v12518_v22  ;;  %v12530_v29 = vsel %vm1598_vm14, %v12492_v9, %v1662_v16  ;;  %v1991_v30 = vrot.slane %v12478_v4, 1  ;;  %v1801_v37 = vrot.slane %v12478_v4, 7 }
  0xf5   :  { %10549 = vmatprep.mubr.msk.f32.mxu1 %vm738_vm2, %v12423_v43  ;;  %19959 = vst [vmem:[#allocation21_spill] sm:$0xff] %v12530_v29  ;;  %v12539_v35 = vsel %vm1380_vm7, %v2070_v23, 0.0  ;;  %v1802_v38 = vrot.slane %v12411_v40, 7  ;;  %v1609_v48 = vmul.f32 0.2, %v12398_v33  ;;  %vm1545_vm15 = vcmp.gt.f32.partialorder %v12398_v33, 0.0 }
  0xf6   :  { %v10459_v55 = vpop.f32.mrb[10].mxu0  ;;  %19960 = vst [vmem:[#allocation22_spill] sm:$0xff] %v12539_v35  ;;  %v12560_v51 = vsel %vm1380_vm7, %v1991_v30, %v1992_v14  ;;  %vm1597_vm0 = vcmp.gt.f32.partialorder %v12555_v50, 0.0  ;;  %v1995_v30 = vrot.slane %v12512_v17, 1  ;;  %vm1548_vm1 = vcmp.gt.f32.partialorder %v12451_v56, 0.0 }
  0xf7   :  { %v448_v61 = vpop.f32.mrb[11].mxu0  ;;  %v12515_v21 = vadd.f32 %v10459_v55, %v12351_v3  ;;  %19961 = vst [vmem:[#allocation23_spill] sm:$0xff] %v12560_v51  ;;  %v12563_v53 = vsel %vm1797_vm10, %v1801_v37, %v1802_v38  ;;  %v2069_v55 = vrot.slane %v12500_v13, 1  ;;  %vm1547_vm4 = vcmp.gt.f32.partialorder %v12423_v43, 0.0 }
  0xf8   :  { %2364 = vrot.lane.b32.xlu0 %v12454_v57, %s11968_s24  ;;  %2579 = vrot.lane.b32.xlu1 %v12457_v58, %s11970_s22  ;;  %v12488_v6 = vadd.f32 %v12351_v3, %v448_v61  ;;  %19962 = vst [vmem:[#allocation24_spill] sm:$0xff] %v12563_v53  ;;  %v1661_v61 = vmul.f32 0.2, %v12555_v50  ;;  %vm1550_vm6 = vcmp.gt.f32.partialorder %v12470_v1, 0.0  ;;  %vm1549_vm9 = vcmp.gt.f32.partialorder %v12466_v62, 0.0 }
  0xf9   :  { %v12580_v0 = vsel %vm1380_vm7, %v2069_v55, %v2070_v23  ;;  %v12606_v23 = vsel %vm1797_vm10, 0.0, %v1801_v37  ;;  %v12633_v55 = vsel %vm1380_vm7, %v1995_v30, 0.0  ;;  %vm1552_vm12 = vcmp.gt.f32.partialorder %v12515_v21, 0.0 }
  0xfa   :  { %v10462_v63 = vpop.f32.mrb[12].mxu0  ;;  %19963 = vst [vmem:[#allocation25_spill] sm:$0xff] %v12580_v0  ;;  %19965 = vst [vmem:[#allocation27_spill] sm:$0xff] %v12606_v23  ;;  %vm1551_vm13 = vcmp.gt.f32.partialorder %v12488_v6, 0.0 }
  0xfb   :  { %10550 = vmatmul.mubr.msk.f32.gmra.mrb[14].mxu1 %vm738_vm2, %v12451_v56  ;;  %v458_v5 = vpop.f32.mrb[13].mxu0  ;;  %v12534_v34 = vadd.f32 %v10462_v63, %v12351_v3  ;;  %19968 = vst [vmem:[#allocation30_spill] sm:$0xff] %v12633_v55 }
  0xfc   :  { %2464 = vrot.lane.b32.xlu0 %v12475_v2, %s11968_s24  ;;  %2155 = vrot.lane.b32.xlu1 %v12478_v4, %s11969_s28  ;;  %v12527_v26 = vadd.f32 %v12351_v3, %v458_v5  ;;  %v12583_v5 = vsel %vm1545_vm15, %v12398_v33, %v1609_v48  ;;  %v1805_v2 = vrot.slane %v12512_v17, 7 }
  0xfd   :  { %10552 = vmatprep.mubr.msk.f32.mxu1 %vm738_vm2, %v12466_v62  ;;  %19964 = vst [vmem:[#allocation26_spill] sm:$0xff] %v12583_v5  ;;  %v1804_v44 = vrot.slane %v12583_v5, 7  ;;  %vm1554_vm14 = vcmp.gt.f32.partialorder %v12534_v34, 0.0 }
  0xfe   :  { %v10465_v10 = vpop.f32.mrb[14].mxu0  ;;  %vm1553_vm15 = vcmp.gt.f32.partialorder %v12527_v26, 0.0 }
  0xff   :  { %10553 = vmatmul.mubr.msk.f32.gmra.mrb[16].mxu1 %vm738_vm2, %v12470_v1  ;;  %v468_v15 = vpop.f32.mrb[15].mxu0  ;;  %v12577_v63 = vadd.f32 %v10465_v10, %v12351_v3  ;;  %v1612_v10 = vmul.f32 0.2, %v12451_v56 }
 0x100   :  { %2577 = vrot.lane.b32.xlu0 %v12497_v12, %s11970_s22  ;;  %2255 = vrot.lane.b32.xlu1 %v12500_v13, %s11969_s28  ;;  %v12550_v45 = vadd.f32 %v12351_v3, %v468_v15  ;;  %v12596_v15 = vadd.f32 %v12401_v36, %v12351_v3  ;;  %v1611_v12 = vmul.f32 0.2, %v12423_v43 }
 0x101   :  { %10555 = vmatprep.mubr.msk.f32.mxu1 %vm738_vm2, %v12488_v6  ;;  %v12630_v48 = vsel %vm1548_vm1, %v12451_v56, %v1612_v10 }
 0x102   :  { %v10468_v20 = vpop.f32.mrb[16].mxu0  ;;  %19967 = vst [vmem:[#allocation29_spill] sm:$0xff] %v12630_v48  ;;  %vm1600_vm3 = vcmp.gt.f32.partialorder %v12596_v15, 0.0  ;;  %v1998_v39 = vrot.slane %v12630_v48, 1  ;;  %v1808_v19 = vrot.slane %v12630_v48, 7  ;;  %vm1555_vm1 = vcmp.gt.f32.partialorder %v12550_v45, 0.0 }
 0x103   :  { %v478_v25 = vpop.f32.mrb[17].mxu0  ;;  %v12601_v16 = vadd.f32 %v10468_v20, %v12351_v3  ;;  %v1664_v20 = vmul.f32 0.2, %v12596_v15 }
 0x104   :  { %2161 = vrot.lane.b32.xlu0 %v12512_v17, %s11969_s28  ;;  %2370 = vrot.lane.b32.xlu1 %v12518_v22, %s11968_s24  ;;  %v12591_v14 = vadd.f32 %v12351_v3, %v478_v25  ;;  %v12609_v25 = vsel %vm1597_vm0, %v12555_v50, %v1661_v61  ;;  %v2073_v61 = vrot.slane %v12530_v29, 1  ;;  %vm1556_vm0 = vcmp.gt.f32.partialorder %v12577_v63, 0.0 }
 0x105   :  { %19966 = vst [vmem:[#allocation28_spill] sm:$0xff] %v12609_v25  ;;  %v12646_v56 = vsel %vm1600_vm3, %v12596_v15, %v1664_v20  ;;  %v12665_v20 = vpop.f32.mrb[10].mxu1  ;;  %vm1558_vm3 = vcmp.gt.f32.partialorder %v12601_v16, 0.0 }
 0x106   :  { %v10471_v31 = vpop.f32.mrb[18].mxu0  ;;  %19969 = vst [vmem:[#allocation31_spill] sm:$0xff] %v12646_v56 }
 0x107   :  { %10556 = vmatmul.mubr.msk.f32.gmra.mrb[16].mxu1 %vm738_vm2, %v12515_v21  ;;  %v488_v41 = vpop.f32.mrb[19].mxu0 }
 0x108   :  { %2261 = vrot.lane.b32.xlu0 %v12530_v29, %s11969_s28  ;;  %2470 = vrot.lane.b32.xlu1 %v12539_v35, %s11968_s24  ;;  %v12622_v36 = vadd.f32 %v12351_v3, %v488_v41  ;;  %v1994_v41 = vrot.slane %v12583_v5, 1  ;;  %v12652_v35 = vadd.f32 %v10471_v31, %v12351_v3 }
 0x109   :  { %10558 = vmatprep.mubr.msk.f32.mxu1 %vm738_vm2, %v12527_v26 }
 0x10a   :  { %v10474_v49 = vpop.f32.mrb[20].mxu0 }
 0x10b   :  { %10559 = vmatmul.mubr.msk.f32.gmra.mrb[18].mxu1 %vm738_vm2, %v12534_v34  ;;  %v498_v60 = vpop.f32.mrb[21].mxu0 }
 0x10c   :  { %2368 = vrot.lane.b32.xlu0 %v12560_v51, %s11968_s24  ;;  %2583 = vrot.lane.b32.xlu1 %v12563_v53, %s11970_s22  ;;  %v12668_v31 = vadd.f32 %v12351_v3, %v498_v60  ;;  %v12678_v51 = vadd.f32 %v10474_v49, %v12351_v3  ;;  %v12686_v60 = vsel %vm1797_vm10, %v1804_v44, %v1805_v2  ;;  %v2072_v53 = vrot.slane %v12609_v25, 1 }
 0x10d   :  { %10561 = vmatprep.mubr.msk.f32.mxu1 %vm738_vm2, %v12550_v45  ;;  %19972 = vst [vmem:[#allocation34_spill] sm:$0xff] %v12686_v60 }
 0x10e   :  { %v12573_v32 = vpop.f32.mrb[22].mxu0 }
 0x10f   :  { %v508_v8 = vpop.f32.mrb[23].mxu0 }
 0x110   :  { %2468 = vrot.lane.b32.xlu0 %v12580_v0, %s11968_s24  ;;  %2159 = vrot.lane.b32.xlu1 %v12583_v5, %s11969_s28  ;;  %v12655_v0 = vsel %vm1380_vm7, %v2073_v61, 0.0  ;;  %v12701_v2 = vadd.f32 %v12351_v3, %v508_v8  ;;  %v1614_v8 = vmul.f32 0.2, %v12470_v1 }
 0x111   :  { %19970 = vst [vmem:[#allocation32_spill] sm:$0xff] %v12655_v0 }
 0x112   :  { %v12598_v33 = vpop.f32.mrb[24].mxu0 }
 0x113   :  { %10562 = vmatmul.mubr.msk.f32.gmra.mrb[18].mxu1 %vm738_vm2, %v12577_v63  ;;  %v12612_v38 = vpop.f32.mrb[25].mxu0  ;;  %v12760_v17 = vadd.f32 %v12598_v33, %v12351_v3 }
 0x114   :  { %2581 = vrot.lane.b32.xlu0 %v12606_v23, %s11970_s22  ;;  %2259 = vrot.lane.b32.xlu1 %v12609_v25, %s11969_s28 }
 0x115   :  { %10564 = vmatprep.mubr.msk.f32.mxu1 %vm738_vm2, %v12591_v14 }
 0x116   :  { %v12625_v37 = vpop.f32.mrb[26].mxu0 }
 0x117   :  { %10565 = vmatmul.mubr.msk.f32.gmra.mrb[20].mxu1 %vm738_vm2, %v12601_v16  ;;  %v12637_v59 = vpop.f32.mrb[27].mxu0 }
 0x118   :  { %2165 = vrot.lane.b32.xlu0 %v12630_v48, %s11969_s28  ;;  %2374 = vrot.lane.b32.xlu1 %v12633_v55, %s11968_s24  ;;  %v12673_v55 = vadd.f32 %v12351_v3, %v12413_v42  ;;  %v12691_v42 = vpop.f32.mrb[11].mxu1  ;;  %v12811_v48 = vadd.f32 %v12625_v37, %v12351_v3 }
 0x119   :  { %10567 = vmatprep.mubr.msk.f32.mxu1 %vm738_vm2, %v12622_v36 }
 0x11a   :  { %v12649_v10 = vpop.f32.mrb[28].mxu0  ;;  %vm1599_vm5 = vcmp.gt.f32.partialorder %v12673_v55, 0.0 }
 0x11b   :  { %v12659_v58 = vpop.f32.mrb[29].mxu0  ;;  %v12836_v37 = vadd.f32 %v12649_v10, %v12351_v3 }
 0x11c   :  { %2265 = vrot.lane.b32.xlu0 %v12646_v56, %s11969_s28  ;;  %2474 = vrot.lane.b32.xlu1 %v12655_v0, %s11968_s24  ;;  %v12683_v0 = vsel %vm1380_vm7, %v1994_v41, %v1995_v30  ;;  %v1663_v30 = vmul.f32 0.2, %v12673_v55  ;;  %v12709_v41 = vsel %vm1380_vm7, %v2072_v53, %v2073_v61  ;;  %v12726_v53 = vadd.f32 %v12428_v46, %v12351_v3 }
 0x11d   :  { %19971 = vst [vmem:[#allocation33_spill] sm:$0xff] %v12683_v0  ;;  %19973 = vst [vmem:[#allocation35_spill] sm:$0xff] %v12709_v41  ;;  %v12735_v61 = vadd.f32 %v12573_v32, %v12351_v3  ;;  %v12754_v32 = vsel %vm1550_vm6, %v12470_v1, %v1614_v8  ;;  %v12779_v1 = vadd.f32 %v12351_v3, %v12637_v59  ;;  %v1613_v59 = vmul.f32 0.2, %v12466_v62 }
 0x11e   :  { %v12675_v22 = vpop.f32.mrb[30].mxu0  ;;  %v1666_v46 = vmul.f32 0.2, %v12726_v53  ;;  %19977 = vst [vmem:[#allocation39_spill] sm:$0xff] %v12754_v32  ;;  %vm1602_vm8 = vcmp.gt.f32.partialorder %v12726_v53, 0.0  ;;  %v1811_v27 = vrot.slane %v12754_v32, 7 }
 0x11f   :  { %10568 = vmatmul.mubr.msk.f32.gmra.mrb[20].mxu1 %vm738_vm2, %v12652_v35  ;;  %v12689_v23 = vpop.f32.mrb[31].mxu0  ;;  %vm1559_vm6 = vcmp.gt.f32.partialorder %v12622_v36, 0.0 }
 0x120   :  { %2372 = vrot.lane.b32.xlu0 %v12683_v0, %s11968_s24  ;;  %2587 = vrot.lane.b32.xlu1 %v12686_v60, %s11970_s22  ;;  %v12712_v0 = vsel %vm1547_vm4, %v12423_v43, %v1611_v12  ;;  %v12729_v43 = vsel %vm1797_vm10, 0.0, %v1804_v44  ;;  %v12750_v44 = vadd.f32 %v12351_v3, %v12612_v38  ;;  %v2076_v38 = vrot.slane %v12646_v56, 1 }
 0x121   :  { %10570 = vmatprep.mubr.msk.f32.mxu1 %vm738_vm2, %v12668_v31  ;;  %19974 = vst [vmem:[#allocation36_spill] sm:$0xff] %v12712_v0  ;;  %19975 = vst [vmem:[#allocation37_spill] sm:$0xff] %v12729_v43  ;;  %v12782_v33 = vsel %vm1602_vm8, %v12726_v53, %v1666_v46  ;;  %v1807_v4 = vrot.slane %v12712_v0, 7  ;;  %v12805_v46 = vadd.f32 %v12351_v3, %v12438_v52  ;;  %vm1557_vm4 = vcmp.gt.f32.partialorder %v12591_v14, 0.0 }
 0x122   :  { %v12703_v49 = vpop.f32.mrb[32].mxu0  ;;  %19979 = vst [vmem:[#allocation41_spill] sm:$0xff] %v12782_v33  ;;  %v12789_v40 = vsel %vm1380_vm7, %v2076_v38, 0.0  ;;  %v12829_v52 = vadd.f32 %v12351_v3, %v12659_v58  ;;  %v12857_v58 = vadd.f32 %v12351_v3, %v12689_v23  ;;  %v2079_v47 = vrot.slane %v12782_v33, 1 }
 0x123   :  { %10571 = vmatmul.mubr.msk.f32.gmra.mrb[22].mxu1 %vm738_vm2, %v12678_v51  ;;  %v12714_v60 = vpop.f32.mrb[33].mxu0  ;;  %19980 = vst [vmem:[#allocation42_spill] sm:$0xff] %v12789_v40  ;;  %vm1601_vm11 = vcmp.gt.f32.partialorder %v12805_v46, 0.0  ;;  %v12865_v10 = vsel %vm1797_vm10, 0.0, %v1807_v4  ;;  %vm1562_vm8 = vcmp.gt.f32.partialorder %v12678_v51, 0.0 }
 0x124   :  { %2472 = vrot.lane.b32.xlu0 %v12709_v41, %s11968_s24  ;;  %2163 = vrot.lane.b32.xlu1 %v12712_v0, %s11969_s28  ;;  %v12738_v41 = vsel %vm1599_vm5, %v12673_v55, %v1663_v30  ;;  %19985 = vst [vmem:[#allocation47_spill] sm:$0xff] %v12865_v10  ;;  %vm1560_vm5 = vcmp.gt.f32.partialorder %v12652_v35, 0.0 }
 0x125   :  { %10573 = vmatprep.mubr.msk.f32.mxu1 %vm738_vm2, %v12701_v2  ;;  %19976 = vst [vmem:[#allocation38_spill] sm:$0xff] %v12738_v41  ;;  %v2075_v29 = vrot.slane %v12738_v41, 1 }
 0x126   :  { %v12731_v12 = vpop.f32.mrb[34].mxu0 }
 0x127   :  { %v12742_v57 = vpop.f32.mrb[35].mxu0 }
 0x128   :  { %2585 = vrot.lane.b32.xlu0 %v12729_v43, %s11970_s22  ;;  %2263 = vrot.lane.b32.xlu1 %v12738_v41, %s11969_s28  ;;  %v12765_v43 = vsel %vm1380_vm7, %v1998_v39, 0.0 }
 0x129   :  { %19978 = vst [vmem:[#allocation40_spill] sm:$0xff] %v12765_v43 }
 0x12a   :  { %v12756_v30 = vpop.f32.mrb[36].mxu0 }
 0x12b   :  { %10574 = vmatmul.mubr.msk.f32.gmra.mrb[22].mxu1 %vm738_vm2, %v12735_v61  ;;  %v12769_v5 = vpop.f32.mrb[37].mxu0 }
 0x12c   :  { %2169 = vrot.lane.b32.xlu0 %v12754_v32, %s11969_s28  ;;  %2378 = vrot.lane.b32.xlu1 %v12765_v43, %s11968_s24  ;;  %v1997_v43 = vrot.slane %v12712_v0, 1 }
 0x12d   :  { %10576 = vmatprep.mubr.msk.f32.mxu1 %vm738_vm2, %v12750_v44 }
 0x12e   :  { %v12784_v8 = vpop.f32.mrb[38].mxu0  ;;  %v12814_v56 = vsel %vm1380_vm7, %v1997_v43, %v1998_v39  ;;  %v12841_v43 = vsel %vm1380_vm7, %v2075_v29, %v2076_v38 }
 0x12f   :  { %10577 = vmatmul.mubr.msk.f32.gmra.mrb[24].mxu1 %vm738_vm2, %v12760_v17  ;;  %v12794_v28 = vpop.f32.mrb[39].mxu0  ;;  %19981 = vst [vmem:[#allocation43_spill] sm:$0xff] %v12814_v56  ;;  %19983 = vst [vmem:[#allocation45_spill] sm:$0xff] %v12841_v43 }
 0x130   :  { %2269 = vrot.lane.b32.xlu0 %v12782_v33, %s11969_s28  ;;  %2478 = vrot.lane.b32.xlu1 %v12789_v40, %s11968_s24  ;;  %v12817_v40 = vsel %vm1797_vm10, %v1807_v4, %v1808_v19  ;;  %v1665_v19 = vmul.f32 0.2, %v12805_v46  ;;  %v12912_v33 = vadd.f32 %v12703_v49, %v12351_v3  ;;  %v12931_v49 = vadd.f32 %v12351_v3, %v12742_v57 }
 0x131   :  { %10579 = vmatprep.mubr.msk.f32.mxu1 %vm738_vm2, %v12779_v1  ;;  %19982 = vst [vmem:[#allocation44_spill] sm:$0xff] %v12817_v40  ;;  %v1618_v57 = vmul.f32 0.2, %v12534_v34 }
 0x132   :  { %v12807_v0 = vpop.f32.mrb[40].mxu0  ;;  %v12868_v38 = vsel %vm1601_vm11, %v12805_v46, %v1665_v19  ;;  %v12885_v19 = vadd.f32 %v12675_v22, %v12351_v3  ;;  %v12902_v22 = vadd.f32 %v12351_v3, %v12714_v60  ;;  %vm1564_vm11 = vcmp.gt.f32.partialorder %v12735_v61, 0.0 }
 0x133   :  { %v12820_v25 = vpop.f32.mrb[41].mxu0  ;;  %19986 = vst [vmem:[#allocation48_spill] sm:$0xff] %v12868_v38 }
 0x134   :  { %2376 = vrot.lane.b32.xlu0 %v12814_v56, %s11968_s24  ;;  %2591 = vrot.lane.b32.xlu1 %v12817_v40, %s11970_s22  ;;  %v12844_v56 = vsel %vm1549_vm9, %v12466_v62, %v1613_v59  ;;  %v1616_v62 = vmul.f32 0.2, %v12515_v21  ;;  %v2001_v59 = vrot.slane %v12754_v32, 1  ;;  %vm1561_vm9 = vcmp.gt.f32.partialorder %v12668_v31, 0.0 }
 0x135   :  { %19984 = vst [vmem:[#allocation46_spill] sm:$0xff] %v12844_v56  ;;  %v2000_v4 = vrot.slane %v12844_v56, 1  ;;  %v1810_v60 = vrot.slane %v12844_v56, 7 }
 0x136   :  { %v12831_v39 = vpop.f32.mrb[42].mxu0  ;;  %v12888_v41 = vsel %vm1552_vm12, %v12515_v21, %v1616_v62  ;;  %v2078_v62 = vrot.slane %v12868_v38, 1  ;;  %vm1563_vm12 = vcmp.gt.f32.partialorder %v12701_v2, 0.0 }
 0x137   :  { %10580 = vmatmul.mubr.msk.f32.gmra.mrb[24].mxu1 %vm738_vm2, %v12811_v48  ;;  %v12846_v40 = vpop.f32.mrb[43].mxu0  ;;  %19987 = vst [vmem:[#allocation49_spill] sm:$0xff] %v12888_v41  ;;  %v12905_v21 = vsel %vm1380_vm7, %v2000_v4, %v2001_v59 }
 0x138   :  { %2476 = vrot.lane.b32.xlu0 %v12841_v43, %s11968_s24  ;;  %2167 = vrot.lane.b32.xlu1 %v12844_v56, %s11969_s28  ;;  %19989 = vst [vmem:[#allocation51_spill] sm:$0xff] %v12905_v21  ;;  %v1615_v56 = vmul.f32 0.2, %v12488_v6  ;;  %v12939_v32 = vsel %vm1380_vm7, %v2078_v62, %v2079_v47 }
 0x139   :  { %10582 = vmatprep.mubr.msk.f32.mxu1 %vm738_vm2, %v12829_v52  ;;  %19991 = vst [vmem:[#allocation53_spill] sm:$0xff] %v12939_v32 }
 0x13a   :  { %v12859_v29 = vpop.f32.mrb[44].mxu0  ;;  %v12962_v62 = vsel %vm1551_vm13, %v12488_v6, %v1615_v56  ;;  %v12980_v56 = vadd.f32 %v12756_v30, %v12351_v3  ;;  %v1617_v30 = vmul.f32 0.2, %v12527_v26  ;;  %vm1566_vm13 = vcmp.gt.f32.partialorder %v12760_v17, 0.0 }
 0x13b   :  { %10583 = vmatmul.mubr.msk.f32.gmra.mrb[26].mxu1 %vm738_vm2, %v12836_v37  ;;  %v12871_v43 = vpop.f32.mrb[45].mxu0  ;;  %v2003_v6 = vrot.slane %v12962_v62, 1 }
 0x13c   :  { %2589 = vrot.lane.b32.xlu0 %v12865_v10, %s11970_s22  ;;  %2267 = vrot.lane.b32.xlu1 %v12868_v38, %s11969_s28  ;;  %v12891_v10 = vsel %vm1380_vm7, %v2001_v59, 0.0 }
 0x13d   :  { %10585 = vmatprep.mubr.msk.f32.mxu1 %vm738_vm2, %v12857_v58  ;;  %19988 = vst [vmem:[#allocation50_spill] sm:$0xff] %v12891_v10 }
 0x13e   :  { %v12881_v23 = vpop.f32.mrb[46].mxu0 }
 0x13f   :  { %v12894_v13 = vpop.f32.mrb[47].mxu0 }
 0x140   :  { %2173 = vrot.lane.b32.xlu0 %v12888_v41, %s11969_s28  ;;  %2382 = vrot.lane.b32.xlu1 %v12891_v10, %s11968_s24  ;;  %v12917_v10 = vsel %vm1380_vm7, %v2079_v47, 0.0  ;;  %v12955_v47 = vsel %vm1797_vm10, 0.0, %v1810_v60 }
 0x141   :  { %19990 = vst [vmem:[#allocation52_spill] sm:$0xff] %v12917_v10  ;;  %19993 = vst [vmem:[#allocation55_spill] sm:$0xff] %v12955_v47 }
 0x142   :  { %v12908_v18 = vpop.f32.mrb[48].mxu0 }
 0x143   :  { %10586 = vmatmul.mubr.msk.f32.gmra.mrb[26].mxu1 %vm738_vm2, %v12885_v19  ;;  %v12921_v59 = vpop.f32.mrb[49].mxu0 }
 0x144   :  { %2380 = vrot.lane.b32.xlu0 %v12905_v21, %s11968_s24  ;;  %2482 = vrot.lane.b32.xlu1 %v12917_v10, %s11968_s24  ;;  %v12942_v21 = vsel %vm1797_vm10, %v1810_v60, %v1811_v27  ;;  %v12959_v27 = vadd.f32 %v12731_v12, %v12351_v3  ;;  %v12972_v60 = vadd.f32 %v12351_v3, %v12769_v5  ;;  %v1814_v5 = vrot.slane %v12888_v41, 7 }
 0x145   :  { %10588 = vmatprep.mubr.msk.f32.mxu1 %vm738_vm2, %v12902_v22  ;;  %19992 = vst [vmem:[#allocation54_spill] sm:$0xff] %v12942_v21  ;;  %v12975_v12 = vsel %vm1554_vm14, %v12534_v34, %v1618_v57  ;;  %v12997_v34 = vadd.f32 %v12351_v3, %v12794_v28  ;;  %v13014_v28 = vpop.permute.xlu0 %2149  ;;  %vm1565_vm14 = vcmp.gt.f32.partialorder %v12750_v44, 0.0 }
 0x146   :  { %v12933_v4 = vpop.f32.mrb[50].mxu0  ;;  %19994 = vst [vmem:[#allocation56_spill] sm:$0xff] %v12975_v12  ;;  %19999 = vst [vmem:[#allocation61_spill] sm:$0xff] %v13014_v28 }
 0x147   :  { %10589 = vmatmul.mubr.msk.f32.gmra.mrb[28].mxu1 %vm738_vm2, %v12912_v33  ;;  %v12944_v10 = vpop.f32.mrb[51].mxu0 }
 0x148   :  { %2480 = vrot.lane.b32.xlu0 %v12939_v32, %s11968_s24  ;;  %2595 = vrot.lane.b32.xlu1 %v12942_v21, %s11970_s22  ;;  %v2004_v32 = vrot.slane %v12888_v41, 1 }
 0x149   :  { %10591 = vmatprep.mubr.msk.f32.mxu1 %vm738_vm2, %v12931_v49 }
 0x14a   :  { %v12985_v21 = vsel %vm1380_vm7, %v2004_v32, 0.0  ;;  %v13003_v57 = vsel %vm1380_vm7, %v2003_v6, %v2004_v32  ;;  %v1620_v32 = vmul.f32 0.2, %v12577_v63 }
 0x14b   :  { %19995 = vst [vmem:[#allocation57_spill] sm:$0xff] %v12985_v21  ;;  %19996 = vst [vmem:[#allocation58_spill] sm:$0xff] %v13003_v57 }
 0x14c   :  { %2593 = vrot.lane.b32.xlu0 %v12955_v47, %s11970_s22  ;;  %2171 = vrot.lane.b32.xlu1 %v12962_v62, %s11969_s28  ;;  %v1813_v47 = vrot.slane %v12962_v62, 7 }
 0x14e   :  { %v13006_v41 = vsel %vm1797_vm10, %v1813_v47, %v1814_v5  ;;  %v13021_v6 = vsel %vm1797_vm10, 0.0, %v1813_v47  ;;  %v13025_v5 = vadd.f32 %v12784_v8, %v12351_v3  ;;  %v13038_v47 = vadd.f32 %v12351_v3, %v12820_v25 }
 0x14f   :  { %10592 = vmatmul.mubr.msk.f32.gmra.mrb[28].mxu1 %vm738_vm2, %v12959_v27  ;;  %19997 = vst [vmem:[#allocation59_spill] sm:$0xff] %v13006_v41  ;;  %20000 = vst [vmem:[#allocation62_spill] sm:$0xff] %v13021_v6 }
 0x150   :  { %2177 = vrot.lane.b32.xlu0 %v12975_v12, %s11969_s28  ;;  %2386 = vrot.lane.b32.xlu1 %v12985_v21, %s11968_s24  ;;  %v13012_v21 = vpop.permute.xlu1 %2362 }
 0x151   :  { %10594 = vmatprep.mubr.msk.f32.mxu1 %vm738_vm2, %v12972_v60  ;;  %19998 = vst [vmem:[#allocation60_spill] sm:$0xff] %v13012_v21  ;;  %v2007_v21 = vrot.slane %v12975_v12, 1 }
 0x153   :  { %10595 = vmatmul.mubr.msk.f32.gmra.mrb[30].mxu1 %vm738_vm2, %v12980_v56 }
 0x154   :  { %2384 = vrot.lane.b32.xlu0 %v13003_v57, %s11968_s24  ;;  %2599 = vrot.lane.b32.xlu1 %v13006_v41, %s11970_s22  ;;  %v13028_v57 = vsel %vm1553_vm15, %v12527_v26, %v1617_v30  ;;  %v13045_v26 = vsel %vm1556_vm0, %v12577_v63, %v1620_v32  ;;  %v13050_v41 = vadd.f32 %v12807_v0, %v12351_v3  ;;  %vm1568_vm15 = vcmp.gt.f32.partialorder %v12811_v48, 0.0 }
 0x155   :  { %10597 = vmatprep.mubr.msk.f32.mxu1 %vm738_vm2, %v12997_v34  ;;  %v2006_v30 = vrot.slane %v13028_v57, 1  ;;  %v1816_v25 = vrot.slane %v13028_v57, 7  ;;  %v13067_v63 = vadd.f32 %v12351_v3, %v12846_v40  ;;  %v1622_v40 = vmul.f32 0.2, %v12601_v16 }
 0x156   :  { %vm1567_vm0 = vcmp.gt.f32.partialorder %v12779_v1, 0.0 }
 0x158   :  { %2597 = vrot.lane.b32.xlu0 %v13021_v6, %s11970_s22  ;;  %2175 = vrot.lane.b32.xlu1 %v13028_v57, %s11969_s28  ;;  %v13055_v6 = vsel %vm1380_vm7, %v2007_v21, 0.0 }
 0x159   :  { %20003 = vst [vmem:[#allocation65_spill] sm:$0xff] %v13055_v6 }
 0x15a   :  { %v13040_v28 = vpop.permute.xlu0 %2253  ;;  %v13042_v8 = vpop.permute.xlu1 %2153 }
 0x15b   :  { %20001 = vst [vmem:[#allocation63_spill] sm:$0xff] %v13040_v28  ;;  %20002 = vst [vmem:[#allocation64_spill] sm:$0xff] %v13042_v8  ;;  %10598 = vmatmul.mubr.msk.f32.gmra.mrb[30].mxu1 %vm738_vm2, %v13025_v5  ;;  %v1817_v28 = vrot.slane %v12975_v12, 7  ;;  %v1619_v8 = vmul.f32 0.2, %v12550_v45  ;;  %v13077_v12 = vsel %vm1380_vm7, %v2006_v30, %v2007_v21  ;;  %v13099_v30 = vadd.f32 %v12831_v39, %v12351_v3 }
 0x15c   :  { %2181 = vrot.lane.b32.xlu0 %v13045_v26, %s11969_s28  ;;  %2390 = vrot.lane.b32.xlu1 %v13055_v6, %s11968_s24  ;;  %20006 = vst [vmem:[#allocation68_spill] sm:$0xff] %v13077_v12 }
 0x15d   :  { %10600 = vmatprep.mubr.msk.f32.mxu1 %vm738_vm2, %v13038_v47  ;;  %v13080_v6 = vsel %vm1797_vm10, %v1816_v25, %v1817_v28  ;;  %v13095_v28 = vsel %vm1797_vm10, 0.0, %v1816_v25  ;;  %v13112_v25 = vadd.f32 %v12351_v3, %v12871_v43 }
 0x15e   :  { %v13069_v0 = vpop.permute.xlu1 %2251  ;;  %v13071_v32 = vpop.permute.xlu0 %2151  ;;  %20007 = vst [vmem:[#allocation69_spill] sm:$0xff] %v13080_v6  ;;  %20010 = vst [vmem:[#allocation72_spill] sm:$0xff] %v13095_v28 }
 0x15f   :  { %20004 = vst [vmem:[#allocation66_spill] sm:$0xff] %v13069_v0  ;;  %20005 = vst [vmem:[#allocation67_spill] sm:$0xff] %v13071_v32  ;;  %10601 = vmatmul.mubr.msk.f32.gmra.mrb[32].mxu1 %vm738_vm2, %v13050_v41  ;;  %v13102_v32 = vsel %vm1555_vm1, %v12550_v45, %v1619_v8  ;;  %v13119_v45 = vsel %vm1558_vm3, %v12601_v16, %v1622_v40  ;;  %v13141_v16 = vadd.f32 %v12351_v3, %v12894_v13 }
 0x160   :  { %2388 = vrot.lane.b32.xlu0 %v13077_v12, %s11968_s24  ;;  %2603 = vrot.lane.b32.xlu1 %v13080_v6, %s11970_s22  ;;  %v2010_v12 = vrot.slane %v13045_v26, 1  ;;  %v2009_v8 = vrot.slane %v13102_v32, 1  ;;  %v1819_v43 = vrot.slane %v13102_v32, 7  ;;  %v1624_v13 = vmul.f32 0.2, %v12652_v35 }
 0x161   :  { %10603 = vmatprep.mubr.msk.f32.mxu1 %vm738_vm2, %v13067_v63  ;;  %vm1570_vm1 = vcmp.gt.f32.partialorder %v12836_v37, 0.0  ;;  %vm1569_vm3 = vcmp.gt.f32.partialorder %v12829_v52, 0.0 }
 0x162   :  { %v13090_v0 = vpop.permute.xlu1 %2366  ;;  %v13092_v21 = vpop.permute.xlu0 %2157  ;;  %v13129_v6 = vsel %vm1380_vm7, %v2010_v12, 0.0 }
 0x163   :  { %20008 = vst [vmem:[#allocation70_spill] sm:$0xff] %v13090_v0  ;;  %20009 = vst [vmem:[#allocation71_spill] sm:$0xff] %v13092_v21  ;;  %v13124_v0 = vadd.f32 %v12859_v29, %v12351_v3 }
 0x164   :  { %2601 = vrot.lane.b32.xlu0 %v13095_v28, %s11970_s22  ;;  %2179 = vrot.lane.b32.xlu1 %v13102_v32, %s11969_s28  ;;  %20013 = vst [vmem:[#allocation75_spill] sm:$0xff] %v13129_v6  ;;  %v13151_v28 = vsel %vm1380_vm7, %v2009_v8, %v2010_v12  ;;  %v13173_v8 = vadd.f32 %v12881_v23, %v12351_v3 }
 0x165   :  { %20016 = vst [vmem:[#allocation78_spill] sm:$0xff] %v13151_v28 }
 0x166   :  { %v13114_v21 = vpop.permute.xlu1 %2466  ;;  %v13116_v39 = vpop.permute.xlu0 %2257 }
 0x167   :  { %20011 = vst [vmem:[#allocation73_spill] sm:$0xff] %v13114_v21  ;;  %20012 = vst [vmem:[#allocation74_spill] sm:$0xff] %v13116_v39  ;;  %10604 = vmatmul.mubr.msk.f32.gmra.mrb[32].mxu1 %vm738_vm2, %v13099_v30  ;;  %v1820_v21 = vrot.slane %v13045_v26, 7  ;;  %v1621_v39 = vmul.f32 0.2, %v12591_v14 }
 0x168   :  { %2185 = vrot.lane.b32.xlu0 %v13119_v45, %s11969_s28  ;;  %2394 = vrot.lane.b32.xlu1 %v13129_v6, %s11968_s24 }
 0x169   :  { %10606 = vmatprep.mubr.msk.f32.mxu1 %vm738_vm2, %v13112_v25  ;;  %v13154_v6 = vsel %vm1797_vm10, %v1819_v43, %v1820_v21  ;;  %v13169_v21 = vsel %vm1797_vm10, 0.0, %v1819_v43  ;;  %v13186_v43 = vadd.f32 %v12351_v3, %v12921_v59 }
 0x16a   :  { %v13143_v29 = vpop.permute.xlu0 %2364  ;;  %v13145_v40 = vpop.permute.xlu1 %2579  ;;  %20017 = vst [vmem:[#allocation79_spill] sm:$0xff] %v13154_v6  ;;  %20020 = vst [vmem:[#allocation82_spill] sm:$0xff] %v13169_v21 }
 0x16b   :  { %20014 = vst [vmem:[#allocation76_spill] sm:$0xff] %v13143_v29  ;;  %20015 = vst [vmem:[#allocation77_spill] sm:$0xff] %v13145_v40  ;;  %10607 = vmatmul.mubr.msk.f32.gmra.mrb[34].mxu1 %vm738_vm2, %v13124_v0  ;;  %v13176_v40 = vsel %vm1557_vm4, %v12591_v14, %v1621_v39  ;;  %v13193_v14 = vsel %vm1560_vm5, %v12652_v35, %v1624_v13  ;;  %vm1572_vm4 = vcmp.gt.f32.partialorder %v12885_v19, 0.0  ;;  %vm1571_vm5 = vcmp.gt.f32.partialorder %v12857_v58, 0.0 }
 0x16c   :  { %2392 = vrot.lane.b32.xlu0 %v13151_v28, %s11968_s24  ;;  %2607 = vrot.lane.b32.xlu1 %v13154_v6, %s11970_s22  ;;  %v2013_v28 = vrot.slane %v13119_v45, 1  ;;  %v2012_v39 = vrot.slane %v13176_v40, 1  ;;  %v1822_v59 = vrot.slane %v13176_v40, 7 }
 0x16d   :  { %10609 = vmatprep.mubr.msk.f32.mxu1 %vm738_vm2, %v13141_v16 }
 0x16e   :  { %v13164_v29 = vpop.permute.xlu0 %2464  ;;  %v13166_v12 = vpop.permute.xlu1 %2155  ;;  %v13203_v6 = vsel %vm1380_vm7, %v2013_v28, 0.0 }
 0x16f   :  { %20018 = vst [vmem:[#allocation80_spill] sm:$0xff] %v13164_v29  ;;  %20019 = vst [vmem:[#allocation81_spill] sm:$0xff] %v13166_v12  ;;  %v13198_v12 = vadd.f32 %v12908_v18, %v12351_v3  ;;  %v13215_v18 = vadd.f32 %v12351_v3, %v12944_v10  ;;  %v1626_v10 = vmul.f32 0.2, %v12678_v51 }
 0x170   :  { %2605 = vrot.lane.b32.xlu0 %v13169_v21, %s11970_s22  ;;  %2183 = vrot.lane.b32.xlu1 %v13176_v40, %s11969_s28  ;;  %20023 = vst [vmem:[#allocation85_spill] sm:$0xff] %v13203_v6  ;;  %v13225_v21 = vsel %vm1380_vm7, %v2012_v39, %v2013_v28  ;;  %v13247_v39 = vadd.f32 %v12933_v4, %v12351_v3 }
 0x171   :  { %20026 = vst [vmem:[#allocation88_spill] sm:$0xff] %v13225_v21  ;;  %v13263_v3 = vsel %vm1562_vm8, %v12678_v51, %v1626_v10  ;;  %vm1573_vm8 = vcmp.gt.f32.partialorder %v12902_v22, 0.0 }
 0x172   :  { %v13188_v29 = vpop.permute.xlu0 %2577  ;;  %v13190_v23 = vpop.permute.xlu1 %2255 }
 0x173   :  { %20021 = vst [vmem:[#allocation83_spill] sm:$0xff] %v13188_v29  ;;  %20022 = vst [vmem:[#allocation84_spill] sm:$0xff] %v13190_v23  ;;  %10610 = vmatmul.mubr.msk.f32.gmra.mrb[34].mxu1 %vm738_vm2, %v13173_v8  ;;  %v1823_v29 = vrot.slane %v13119_v45, 7  ;;  %v1623_v23 = vmul.f32 0.2, %v12622_v36 }
 0x174   :  { %2189 = vrot.lane.b32.xlu0 %v13193_v14, %s11969_s28  ;;  %2398 = vrot.lane.b32.xlu1 %v13203_v6, %s11968_s24 }
 0x175   :  { %10612 = vmatprep.mubr.msk.f32.mxu1 %vm738_vm2, %v13186_v43  ;;  %v13228_v6 = vsel %vm1797_vm10, %v1822_v59, %v1823_v29  ;;  %v13243_v29 = vsel %vm1797_vm10, 0.0, %v1822_v59 }
 0x176   :  { %v13217_v35 = vpop.permute.xlu0 %2161  ;;  %v13219_v13 = vpop.permute.xlu1 %2370  ;;  %20027 = vst [vmem:[#allocation89_spill] sm:$0xff] %v13228_v6  ;;  %20030 = vst [vmem:[#allocation92_spill] sm:$0xff] %v13243_v29 }
 0x177   :  { %20024 = vst [vmem:[#allocation86_spill] sm:$0xff] %v13217_v35  ;;  %20025 = vst [vmem:[#allocation87_spill] sm:$0xff] %v13219_v13  ;;  %10613 = vmatmul.mubr.msk.f32.gmra.mrb[36].mxu1 %vm738_vm2, %v13198_v12  ;;  %v13250_v13 = vsel %vm1559_vm6, %v12622_v36, %v1623_v23  ;;  %vm1574_vm6 = vcmp.gt.f32.partialorder %v12912_v33, 0.0 }
 0x178   :  { %2396 = vrot.lane.b32.xlu0 %v13225_v21, %s11968_s24  ;;  %2611 = vrot.lane.b32.xlu1 %v13228_v6, %s11970_s22  ;;  %v2016_v21 = vrot.slane %v13193_v14, 1  ;;  %v2015_v4 = vrot.slane %v13250_v13, 1  ;;  %v1825_v23 = vrot.slane %v13250_v13, 7 }
 0x179   :  { %10615 = vmatprep.mubr.msk.f32.mxu1 %vm738_vm2, %v13215_v18 }
 0x17a   :  { %v13238_v35 = vpop.permute.xlu0 %2261  ;;  %v13240_v28 = vpop.permute.xlu1 %2470  ;;  %v13268_v36 = vsel %vm1380_vm7, %v2016_v21, 0.0 }
 0x17b   :  { %20028 = vst [vmem:[#allocation90_spill] sm:$0xff] %v13238_v35  ;;  %20029 = vst [vmem:[#allocation91_spill] sm:$0xff] %v13240_v28  ;;  %v1826_v28 = vrot.slane %v13193_v14, 7 }
 0x17c   :  { %2609 = vrot.lane.b32.xlu0 %v13243_v29, %s11970_s22  ;;  %2187 = vrot.lane.b32.xlu1 %v13250_v13, %s11969_s28  ;;  %20033 = vst [vmem:[#allocation95_spill] sm:$0xff] %v13268_v36 }
 0x17d   :  { %v13290_v6 = vsel %vm1797_vm10, %v1825_v23, %v1826_v28  ;;  %v13305_v28 = vsel %vm1797_vm10, 0.0, %v1825_v23 }
 0x17e   :  { %v13258_v35 = vpop.permute.xlu0 %2368  ;;  %v13260_v59 = vpop.permute.xlu1 %2583 }
 0x17f   :  { %20031 = vst [vmem:[#allocation93_spill] sm:$0xff] %v13258_v35  ;;  %20032 = vst [vmem:[#allocation94_spill] sm:$0xff] %v13260_v59  ;;  %10616 = vmatmul.mubr.msk.f32.gmra.mrb[36].mxu1 %vm738_vm2, %v13247_v39  ;;  %v1625_v35 = vmul.f32 0.2, %v12668_v31  ;;  %v13287_v59 = vsel %vm1380_vm7, %v2015_v4, %v2016_v21 }
 0x180   :  { %2193 = vrot.lane.b32.xlu0 %v13263_v3, %s11969_s28  ;;  %2402 = vrot.lane.b32.xlu1 %v13268_v36, %s11968_s24  ;;  %v1829_v36 = vrot.slane %v13263_v3, 7 }
 0x181   :  { %10618 = vmatprep.mubr.msk.f32.mxu1 %vm738_vm2, %v12359_v11  ;;  %v1628_v11 = vmul.f32 0.2, %v12735_v61  ;;  %v13308_v4 = vsel %vm1561_vm9, %v12668_v31, %v1625_v35  ;;  %vm1576_vm9 = vcmp.gt.f32.partialorder %v12959_v27, 0.0 }
 0x182   :  { %v13279_v51 = vpop.permute.xlu0 %2468  ;;  %v13281_v10 = vpop.permute.xlu1 %2159  ;;  %v2018_v35 = vrot.slane %v13308_v4, 1 }
 0x183   :  { %20034 = vst [vmem:[#allocation96_spill] sm:$0xff] %v13279_v51  ;;  %20035 = vst [vmem:[#allocation97_spill] sm:$0xff] %v13281_v10  ;;  %10619 = vmatmul.mubr.msk.f32.gmra.mrb[38].mxu1 %vm738_vm2, %v12355_v7  ;;  %v2019_v51 = vrot.slane %v13263_v3, 1  ;;  %v13321_v23 = vsel %vm1564_vm11, %v12735_v61, %v1628_v11  ;;  %v1627_v11 = vmul.f32 0.2, %v12701_v2  ;;  %vm1575_vm11 = vcmp.gt.f32.partialorder %v12931_v49, 0.0 }
 0x184   :  { %2400 = vrot.lane.b32.xlu0 %v13287_v59, %s11968_s24  ;;  %2615 = vrot.lane.b32.xlu1 %v13290_v6, %s11970_s22 }
 0x185   :  { %10621 = vmatprep.mubr.msk.f32.mxu1 %vm738_vm2, %v12448_v54  ;;  %v13326_v31 = vsel %vm1380_vm7, %v2019_v51, 0.0 }
 0x186   :  { %v13300_v7 = vpop.permute.xlu0 %2581  ;;  %v13302_v21 = vpop.permute.xlu1 %2259  ;;  %20039 = vst [vmem:[#allocation101_spill] sm:$0xff] %v13326_v31 }
 0x187   :  { %20036 = vst [vmem:[#allocation98_spill] sm:$0xff] %v13302_v21  ;;  %v1828_v21 = vrot.slane %v13308_v4, 7 }
 0x188   :  { %2613 = vrot.lane.b32.xlu0 %v13305_v28, %s11970_s22  ;;  %2191 = vrot.lane.b32.xlu1 %v13308_v4, %s11969_s28 }
 0x18a   :  { %v13316_v54 = vpop.permute.xlu0 %2165  ;;  %v13318_v10 = vpop.permute.xlu1 %2374 }
 0x18b   :  { %20037 = vst [vmem:[#allocation99_spill] sm:$0xff] %v13316_v54  ;;  %20038 = vst [vmem:[#allocation100_spill] sm:$0xff] %v13318_v10  ;;  %10622 = vmatmul.mubr.msk.f32.gmra.mrb[38].mxu1 %vm738_vm2, %v12381_v24  ;;  %v13345_v54 = vsel %vm1380_vm7, %v2018_v35, %v2019_v51  ;;  %v13348_v10 = vsel %vm1797_vm10, %v1828_v21, %v1829_v36  ;;  %v13363_v36 = vsel %vm1797_vm10, 0.0, %v1828_v21 }
 0x18c   :  { %2197 = vrot.lane.b32.xlu0 %v13321_v23, %s11969_s28  ;;  %2406 = vrot.lane.b32.xlu1 %v13326_v31, %s11968_s24  ;;  %20042 = vst [vmem:[#allocation104_spill] sm:$0xff] %v13345_v54  ;;  %20043 = vst [vmem:[#allocation105_spill] sm:$0xff] %v13348_v10  ;;  %v13366_v35 = vsel %vm1563_vm12, %v12701_v2, %v1627_v11  ;;  %v1832_v31 = vrot.slane %v13321_v23, 7  ;;  %vm1578_vm12 = vcmp.gt.f32.partialorder %v12980_v56, 0.0 }
 0x18d   :  { %10624 = vmatprep.mubr.msk.f32.mxu1 %vm738_vm2, %v12555_v50  ;;  %v1630_v50 = vmul.f32 0.2, %v12760_v17  ;;  %20046 = vst [vmem:[#allocation108_spill] sm:$0xff] %v13363_v36  ;;  %v2021_v11 = vrot.slane %v13366_v35, 1 }
 0x18e   :  { %v13337_v61 = vpop.permute.xlu0 %2265  ;;  %v13339_v24 = vpop.permute.xlu1 %2474 }
 0x18f   :  { %20040 = vst [vmem:[#allocation102_spill] sm:$0xff] %v13337_v61  ;;  %20041 = vst [vmem:[#allocation103_spill] sm:$0xff] %v13339_v24  ;;  %10625 = vmatmul.mubr.msk.f32.gmra.mrb[40].mxu1 %vm738_vm2, %v12492_v9  ;;  %v2022_v61 = vrot.slane %v13321_v23, 1  ;;  %v13379_v21 = vsel %vm1566_vm13, %v12760_v17, %v1630_v50  ;;  %v11940_v17 = vld [vmem:[%s19942_s27] ss:$0 sm:$0xff]  ;;  %vm1577_vm13 = vcmp.gt.f32.partialorder %v12972_v60, 0.0 }
 0x190   :  { %2404 = vrot.lane.b32.xlu0 %v13345_v54, %s11968_s24  ;;  %2619 = vrot.lane.b32.xlu1 %v13348_v10, %s11970_s22  ;;  %s11973_s27 = smov 48  }
 0x191   :  { %10627 = vmatprep.mubr.msk.f32.mxu1 %vm738_vm2, %v12673_v55  ;;  %v13384_v2 = vsel %vm1380_vm7, %v2022_v61, 0.0 }
 0x192   :  { %v13358_v9 = vpop.permute.xlu0 %2372  ;;  %v13360_v51 = vpop.permute.xlu1 %2587  ;;  %20049 = vst [vmem:[#allocation111_spill] sm:$0xff] %v13384_v2 }
 0x193   :  { %20044 = vst [vmem:[#allocation106_spill] sm:$0xff] %v13358_v9  ;;  %20045 = vst [vmem:[#allocation107_spill] sm:$0xff] %v13360_v51  ;;  %v1831_v9 = vrot.slane %v13366_v35, 7 }
 0x194   :  { %2617 = vrot.lane.b32.xlu0 %v13363_v36, %s11970_s22  ;;  %2195 = vrot.lane.b32.xlu1 %v13366_v35, %s11969_s28 }
 0x196   :  { %v13374_v55 = vpop.permute.xlu0 %2472  ;;  %v13376_v24 = vpop.permute.xlu1 %2163 }
 0x197   :  { %20047 = vst [vmem:[#allocation109_spill] sm:$0xff] %v13374_v55  ;;  %20048 = vst [vmem:[#allocation110_spill] sm:$0xff] %v13376_v24  ;;  %10628 = vmatmul.mubr.msk.f32.gmra.mrb[40].mxu1 %vm738_vm2, %v12596_v15  ;;  %v13399_v15 = vadd.f32 %v11940_v17, %v12691_v42  ;;  %v1629_v24 = vmul.f32 0.2, %v12750_v44  ;;  %v1632_v42 = vmul.f32 0.2, %v12811_v48 }
 0x198   :  { %2201 = vrot.lane.b32.xlu0 %v13379_v21, %s11969_s28  ;;  %2410 = vrot.lane.b32.xlu1 %v13384_v2, %s11968_s24  ;;  %v13409_v2 = vsel %vm1380_vm7, %v2021_v11, %v2022_v61  ;;  %v13430_v11 = vsel %vm1797_vm10, 0.0, %v1831_v9 }
 0x199   :  { %10630 = vmatprep.mubr.msk.f32.mxu1 %vm738_vm2, %v12805_v46  ;;  %20052 = vst [vmem:[#allocation114_spill] sm:$0xff] %v13409_v2  ;;  %v13412_v46 = vsel %vm1797_vm10, %v1831_v9, %v1832_v31  ;;  %20056 = vst [vmem:[#allocation118_spill] sm:$0xff] %v13430_v11  ;;  %v13446_v9 = vsel %vm1568_vm15, %v12811_v48, %v1632_v42  ;;  %vm1579_vm15 = vcmp.gt.f32.partialorder %v12997_v34, 0.0 }
 0x19a   :  { %v13401_v50 = vpop.permute.xlu0 %2585  ;;  %v13403_v55 = vpop.permute.xlu1 %2263  ;;  %20053 = vst [vmem:[#allocation115_spill] sm:$0xff] %v13412_v46 }
 0x19b   :  { %20050 = vst [vmem:[#allocation112_spill] sm:$0xff] %v13401_v50  ;;  %20051 = vst [vmem:[#allocation113_spill] sm:$0xff] %v13403_v55  ;;  %10631 = vmatmul.mubr.msk.f32.gmra.mrb[42].mxu1 %vm738_vm2, %v12726_v53  ;;  %v13423_v53 = vadd.f32 %v11940_v17, %v12665_v20  ;;  %v13433_v55 = vsel %vm1565_vm14, %v12750_v44, %v1629_v24  ;;  %vm1580_vm14 = vcmp.gt.f32.partialorder %v13025_v5, 0.0 }
 0x19c   :  { %2408 = vrot.lane.b32.xlu0 %v13409_v2, %s11968_s24  ;;  %2623 = vrot.lane.b32.xlu1 %v13412_v46, %s11970_s22  ;;  %v2025_v2 = vrot.slane %v13379_v21, 1  ;;  %v2024_v24 = vrot.slane %v13433_v55, 1 }
 0x19d   :  { %10633 = vmatprep.mubr.msk.f32.mxu1 %vm738_vm2, %v13399_v15 }
 0x19e   :  { %v13425_v61 = vpop.permute.xlu0 %2169  ;;  %v13427_v31 = vpop.permute.xlu1 %2378  ;;  %v13451_v44 = vsel %vm1380_vm7, %v2025_v2, 0.0 }
 0x19f   :  { %20054 = vst [vmem:[#allocation116_spill] sm:$0xff] %v13425_v61  ;;  %20055 = vst [vmem:[#allocation117_spill] sm:$0xff] %v13427_v31  ;;  %v1834_v61 = vrot.slane %v13433_v55, 7  ;;  %v1835_v31 = vrot.slane %v13379_v21, 7 }
 0x1a0   :  { %2621 = vrot.lane.b32.xlu0 %v13430_v11, %s11970_s22  ;;  %2199 = vrot.lane.b32.xlu1 %v13433_v55, %s11969_s28  ;;  %20059 = vst [vmem:[#allocation121_spill] sm:$0xff] %v13451_v44 }
 0x1a1   :  { %v13469_v46 = vsel %vm1797_vm10, %v1834_v61, %v1835_v31 }
 0x1a2   :  { %v13441_v20 = vpop.permute.xlu0 %2269  ;;  %v13443_v17 = vpop.permute.xlu1 %2478  ;;  %20063 = vst [vmem:[#allocation125_spill] sm:$0xff] %v13469_v46 }
 0x1a3   :  { %20057 = vst [vmem:[#allocation119_spill] sm:$0xff] %v13441_v20  ;;  %20058 = vst [vmem:[#allocation120_spill] sm:$0xff] %v13443_v17  ;;  %10634 = vmatmul.mubr.msk.f32.gmra.mrb[42].mxu1 %vm738_vm2, %v13423_v53  ;;  %v1631_v20 = vmul.f32 0.2, %v12779_v1  ;;  %v13466_v17 = vsel %vm1380_vm7, %v2024_v24, %v2025_v2  ;;  %v13482_v2 = vsel %vm1797_vm10, 0.0, %v1834_v61  ;;  %v2028_v24 = vrot.slane %v13446_v9, 1 }
 0x1a4   :  { %2205 = vrot.lane.b32.xlu0 %v13446_v9, %s11969_s28  ;;  %2414 = vrot.lane.b32.xlu1 %v13451_v44, %s11968_s24  ;;  %20062 = vst [vmem:[#allocation124_spill] sm:$0xff] %v13466_v17  ;;  %v1634_v44 = vmul.f32 0.2, %v12836_v37  ;;  %20066 = vst [vmem:[#allocation128_spill] sm:$0xff] %v13482_v2 }
 0x1a5   :  { %v13485_v31 = vsel %vm1567_vm0, %v12779_v1, %v1631_v20  ;;  %v13501_v1 = vsel %vm1380_vm7, %v2028_v24, 0.0  ;;  %vm1582_vm0 = vcmp.gt.f32.partialorder %v13050_v41, 0.0 }
 0x1a6   :  { %v13460_v48 = vpop.permute.xlu0 %2376  ;;  %v13462_v42 = vpop.permute.xlu1 %2591  ;;  %v13498_v61 = vsel %vm1570_vm1, %v12836_v37, %v1634_v44  ;;  %20069 = vst [vmem:[#allocation131_spill] sm:$0xff] %v13501_v1  ;;  %v2027_v20 = vrot.slane %v13485_v31, 1  ;;  %vm1581_vm1 = vcmp.gt.f32.partialorder %v13038_v47, 0.0 }
 0x1a7   :  { %20060 = vst [vmem:[#allocation122_spill] sm:$0xff] %v13460_v48  ;;  %20061 = vst [vmem:[#allocation123_spill] sm:$0xff] %v13462_v42 }
 0x1a8   :  { %2412 = vrot.lane.b32.xlu0 %v13466_v17, %s11968_s24  ;;  %2627 = vrot.lane.b32.xlu1 %v13469_v46, %s11970_s22  ;;  %v1838_v46 = vrot.slane %v13446_v9, 7 }
 0x1aa   :  { %v13477_v48 = vpop.permute.xlu0 %2476  ;;  %v13479_v42 = vpop.permute.xlu1 %2167 }
 0x1ab   :  { %20064 = vst [vmem:[#allocation126_spill] sm:$0xff] %v13477_v48  ;;  %20065 = vst [vmem:[#allocation127_spill] sm:$0xff] %v13479_v42  ;;  %v1837_v42 = vrot.slane %v13485_v31, 7 }
 0x1ac   :  { %2625 = vrot.lane.b32.xlu0 %v13482_v2, %s11970_s22  ;;  %2203 = vrot.lane.b32.xlu1 %v13485_v31, %s11969_s28  ;;  %v1633_v2 = vmul.f32 0.2, %v12829_v52 }
 0x1ae   :  { %v13493_v17 = vpop.permute.xlu0 %2589  ;;  %v13495_v48 = vpop.permute.xlu1 %2267 }
 0x1af   :  { %20067 = vst [vmem:[#allocation129_spill] sm:$0xff] %v13493_v17  ;;  %20068 = vst [vmem:[#allocation130_spill] sm:$0xff] %v13495_v48  ;;  %v13517_v48 = vsel %vm1380_vm7, %v2027_v20, %v2028_v24  ;;  %v13520_v17 = vsel %vm1797_vm10, %v1837_v42, %v1838_v46  ;;  %v2031_v46 = vrot.slane %v13498_v61, 1  ;;  %v1636_v20 = vmul.f32 0.2, %v12885_v19 }
 0x1b0   :  { %2209 = vrot.lane.b32.xlu0 %v13498_v61, %s11969_s28  ;;  %2418 = vrot.lane.b32.xlu1 %v13501_v1, %s11968_s24  ;;  %20072 = vst [vmem:[#allocation134_spill] sm:$0xff] %v13517_v48  ;;  %20073 = vst [vmem:[#allocation135_spill] sm:$0xff] %v13520_v17  ;;  %v13527_v1 = vsel %vm1569_vm3, %v12829_v52, %v1633_v2  ;;  %vm1584_vm3 = vcmp.gt.f32.partialorder %v13099_v30, 0.0 }
 0x1b1   :  { %v2030_v24 = vrot.slane %v13527_v1, 1  ;;  %v1840_v2 = vrot.slane %v13527_v1, 7 }
 0x1b2   :  { %v13512_v37 = vpop.permute.xlu0 %2173  ;;  %v13514_v44 = vpop.permute.xlu1 %2382 }
 0x1b3   :  { %20070 = vst [vmem:[#allocation132_spill] sm:$0xff] %v13512_v37  ;;  %20071 = vst [vmem:[#allocation133_spill] sm:$0xff] %v13514_v44  ;;  %v13534_v44 = vsel %vm1797_vm10, 0.0, %v1837_v42 }
 0x1b4   :  { %2416 = vrot.lane.b32.xlu0 %v13517_v48, %s11968_s24  ;;  %2631 = vrot.lane.b32.xlu1 %v13520_v17, %s11970_s22  ;;  %20076 = vst [vmem:[#allocation138_spill] sm:$0xff] %v13534_v44  ;;  %v1635_v48 = vmul.f32 0.2, %v12857_v58  ;;  %v1841_v17 = vrot.slane %v13498_v61, 7 }
 0x1b6   :  { %v13529_v11 = vpop.permute.xlu0 %2380  ;;  %v13531_v37 = vpop.permute.xlu1 %2482  ;;  %v13562_v51 = vsel %vm1571_vm5, %v12857_v58, %v1635_v48  ;;  %vm1586_vm5 = vcmp.gt.f32.partialorder %v13124_v0, 0.0 }
 0x1b7   :  { %20074 = vst [vmem:[#allocation136_spill] sm:$0xff] %v13529_v11  ;;  %20075 = vst [vmem:[#allocation137_spill] sm:$0xff] %v13531_v37  ;;  %v13552_v37 = vsel %vm1380_vm7, %v2030_v24, %v2031_v46  ;;  %v13555_v11 = vsel %vm1380_vm7, %v2031_v46, 0.0  ;;  %v13573_v46 = vsel %vm1797_vm10, 0.0, %v1840_v2  ;;  %v1843_v58 = vrot.slane %v13562_v51, 7 }
 0x1b8   :  { %2629 = vrot.lane.b32.xlu0 %v13534_v44, %s11970_s22  ;;  %2207 = vrot.lane.b32.xlu1 %v13527_v1, %s11969_s28  ;;  %20079 = vst [vmem:[#allocation141_spill] sm:$0xff] %v13552_v37  ;;  %20080 = vst [vmem:[#allocation142_spill] sm:$0xff] %v13555_v11  ;;  %v13559_v44 = vsel %vm1572_vm4, %v12885_v19, %v1636_v20  ;;  %v1638_v19 = vmul.f32 0.2, %v12912_v33  ;;  %vm1583_vm4 = vcmp.gt.f32.partialorder %v13067_v63, 0.0 }
 0x1b9   :  { %20083 = vst [vmem:[#allocation145_spill] sm:$0xff] %v13573_v46  ;;  %v1844_v48 = vrot.slane %v13559_v44, 7 }
 0x1ba   :  { %v13546_v52 = vpop.permute.xlu0 %2480  ;;  %v13548_v42 = vpop.permute.xlu1 %2595 }
 0x1bb   :  { %20077 = vst [vmem:[#allocation139_spill] sm:$0xff] %v13546_v52  ;;  %20078 = vst [vmem:[#allocation140_spill] sm:$0xff] %v13548_v42  ;;  %v13576_v42 = vsel %vm1797_vm10, %v1840_v2, %v1841_v17  ;;  %v13593_v2 = vsel %vm1574_vm6, %v12912_v33, %v1638_v19  ;;  %v1640_v33 = vmul.f32 0.2, %v12959_v27  ;;  %vm1585_vm6 = vcmp.gt.f32.partialorder %v13112_v25, 0.0 }
 0x1bc   :  { %2420 = vrot.lane.b32.xlu0 %v13552_v37, %s11968_s24  ;;  %2422 = vrot.lane.b32.xlu1 %v13555_v11, %s11968_s24  ;;  %20084 = vst [vmem:[#allocation146_spill] sm:$0xff] %v13576_v42  ;;  %v13596_v37 = vsel %vm1797_vm10, %v1843_v58, %v1844_v48  ;;  %v2037_v54 = vrot.slane %v13593_v2, 1 }
 0x1bd   :  { %20088 = vst [vmem:[#allocation150_spill] sm:$0xff] %v13596_v37 }
 0x1be   :  { %v13568_v52 = vpop.permute.xlu0 %2593  ;;  %v13570_v24 = vpop.permute.xlu1 %2171 }
 0x1bf   :  { %20081 = vst [vmem:[#allocation143_spill] sm:$0xff] %v13568_v52  ;;  %20082 = vst [vmem:[#allocation144_spill] sm:$0xff] %v13570_v24  ;;  %v1637_v24 = vmul.f32 0.2, %v12902_v22 }
 0x1c0   :  { %2633 = vrot.lane.b32.xlu0 %v13573_v46, %s11970_s22  ;;  %2635 = vrot.lane.b32.xlu1 %v13576_v42, %s11970_s22  ;;  %v13615_v42 = vsel %vm1797_vm10, 0.0, %v1843_v58  ;;  %v13632_v58 = vsel %vm1576_vm9, %v12959_v27, %v1640_v33  ;;  %v1639_v27 = vmul.f32 0.2, %v12931_v49  ;;  %vm1587_vm9 = vcmp.gt.f32.partialorder %v13141_v16, 0.0 }
 0x1c1   :  { %20091 = vst [vmem:[#allocation153_spill] sm:$0xff] %v13615_v42  ;;  %20095 = vst [vmem:[#allocation157_spill] sm:$0xff] %v13632_v58 }
 0x1c2   :  { %v13586_v20 = vpop.permute.xlu0 %2177  ;;  %v13588_v11 = vpop.permute.xlu1 %2386 }
 0x1c3   :  { %20085 = vst [vmem:[#allocation147_spill] sm:$0xff] %v13586_v20  ;;  %20086 = vst [vmem:[#allocation148_spill] sm:$0xff] %v13588_v11  ;;  %v13590_v17 = vpop.f32.mrb[12].mxu1 }
 0x1c4   :  { %20087 = vst [vmem:[#allocation149_spill] sm:$0xff] %v13590_v17  ;;  %v19725_v46 = vrot.slane %v13590_v17, 1  ;;  %v1007_v52 = vpop.f32.mrb[13].mxu1  ;;  %2213 = vrot.lane.b32.xlu0 %v13593_v2, %s11969_s28  ;;  %2639 = vrot.lane.b32.xlu1 %v13596_v37, %s11970_s22  ;;  %v13618_v37 = vsel %vm1573_vm8, %v12902_v22, %v1637_v24  ;;  %v1847_v22 = vrot.slane %v13593_v2, 7  ;;  %vm1588_vm8 = vcmp.gt.f32.partialorder %v13173_v8, 0.0 }
 0x1c5   :  { %v1381_v20 = vrot.slane %v1007_v52, 1  ;;  %v1846_v24 = vrot.slane %v13618_v37, 7 }
 0x1c6   :  { %v13606_v19 = vpop.permute.xlu0 %2384  ;;  %v13608_v48 = vpop.permute.xlu1 %2599 }
 0x1c7   :  { %20089 = vst [vmem:[#allocation151_spill] sm:$0xff] %v13606_v19  ;;  %20090 = vst [vmem:[#allocation152_spill] sm:$0xff] %v13608_v48  ;;  %v1383_v11 = vsel %vm1380_vm7, %v1381_v20, %v19725_v46  ;;  %v2040_v48 = vrot.slane %v13632_v58, 1 }
 0x1c8   :  { %v13621_v50 = vadd.f32 %v1383_v11, %v1007_v52  ;;  %2637 = vrot.lane.b32.xlu0 %v13615_v42, %s11970_s22  ;;  %2211 = vrot.lane.b32.xlu1 %v13618_v37, %s11969_s28  ;;  %v2036_v11 = vrot.slane %v13618_v37, 1  ;;  %v13638_v52 = vsel %vm1380_vm7, %v2037_v54, 0.0  ;;  %v13669_v42 = vsel %vm1797_vm10, 0.0, %v1846_v24 }
 0x1c9   :  { %20096 = vst [vmem:[#allocation158_spill] sm:$0xff] %v13638_v52  ;;  %20104 = vst [vmem:[#allocation166_spill] sm:$0xff] %v13669_v42 }
 0x1ca   :  { %20092 = vst [vmem:[#allocation154_spill] sm:$0xff] %v13621_v50  ;;  %v13627_v19 = vpop.permute.xlu0 %2597  ;;  %v13629_v17 = vpop.permute.xlu1 %2175  ;;  %v13650_v33 = vsel %vm1380_vm7, %v2036_v11, %v2037_v54  ;;  %v13653_v50 = vsel %vm1797_vm10, %v1846_v24, %v1847_v22  ;;  %v1642_v54 = vmul.f32 0.2, %v12980_v56 }
 0x1cb   :  { %20093 = vst [vmem:[#allocation155_spill] sm:$0xff] %v13627_v19  ;;  %20094 = vst [vmem:[#allocation156_spill] sm:$0xff] %v13629_v17 }
 0x1cc   :  { %2217 = vrot.lane.b32.xlu0 %v13632_v58, %s11969_s28  ;;  %2426 = vrot.lane.b32.xlu1 %v13638_v52, %s11968_s24  ;;  %20099 = vst [vmem:[#allocation161_spill] sm:$0xff] %v13650_v33  ;;  %20100 = vst [vmem:[#allocation162_spill] sm:$0xff] %v13653_v50 }
 0x1ce   :  { %v13644_v20 = vpop.permute.xlu0 %2181  ;;  %v13646_v46 = vpop.permute.xlu1 %2390 }
 0x1cf   :  { %20097 = vst [vmem:[#allocation159_spill] sm:$0xff] %v13644_v20  ;;  %20098 = vst [vmem:[#allocation160_spill] sm:$0xff] %v13646_v46  ;;  %v13655_v17 = vpop.f32.mrb[14].mxu1 }
 0x1d0   :  { %20101 = vst [vmem:[#allocation163_spill] sm:$0xff] %v13655_v17  ;;  %2424 = vrot.lane.b32.xlu0 %v13650_v33, %s11968_s24  ;;  %2643 = vrot.lane.b32.xlu1 %v13653_v50, %s11970_s22  ;;  %v19732_v52 = vrot.slane %v13655_v17, 1  ;;  %v1027_v20 = vpop.f32.mrb[15].mxu1  ;;  %v13675_v50 = vsel %vm1575_vm11, %v12931_v49, %v1639_v27  ;;  %v13693_v49 = vsel %vm1380_vm7, %v2040_v48, 0.0  ;;  %vm1590_vm11 = vcmp.gt.f32.partialorder %v13198_v12, 0.0 }
 0x1d1   :  { %v1384_v46 = vrot.slane %v1027_v20, 1  ;;  %20105 = vst [vmem:[#allocation167_spill] sm:$0xff] %v13675_v50  ;;  %20110 = vst [vmem:[#allocation172_spill] sm:$0xff] %v13693_v49  ;;  %v2039_v27 = vrot.slane %v13675_v50, 1 }
 0x1d2   :  { %v13664_v11 = vpop.permute.xlu0 %2388  ;;  %v13666_v22 = vpop.permute.xlu1 %2603 }
 0x1d3   :  { %20102 = vst [vmem:[#allocation164_spill] sm:$0xff] %v13664_v11  ;;  %20103 = vst [vmem:[#allocation165_spill] sm:$0xff] %v13666_v22  ;;  %v1386_v33 = vsel %vm1380_vm7, %v1384_v46, %v19732_v52  ;;  %v13690_v46 = vsel %vm1578_vm12, %v12980_v56, %v1642_v54  ;;  %v1641_v56 = vmul.f32 0.2, %v12972_v60  ;;  %v13708_v54 = vsel %vm1380_vm7, %v2039_v27, %v2040_v48 }
 0x1d4   :  { %v13679_v19 = vadd.f32 %v1386_v33, %v1027_v20  ;;  %2641 = vrot.lane.b32.xlu0 %v13669_v42, %s11970_s22  ;;  %2215 = vrot.lane.b32.xlu1 %v13675_v50, %s11969_s28  ;;  %20109 = vst [vmem:[#allocation171_spill] sm:$0xff] %v13690_v46  ;;  %v1849_v20 = vrot.slane %v13675_v50, 7  ;;  %v1850_v33 = vrot.slane %v13632_v58, 7  ;;  %20113 = vst [vmem:[#allocation175_spill] sm:$0xff] %v13708_v54  ;;  %v1644_v48 = vmul.f32 0.2, %v13025_v5 }
 0x1d5   :  { %vm1589_vm12 = vcmp.gt.f32.partialorder %v13186_v43, 0.0 }
 0x1d6   :  { %20106 = vst [vmem:[#allocation168_spill] sm:$0xff] %v13679_v19  ;;  %v13685_v24 = vpop.permute.xlu0 %2601  ;;  %v13687_v17 = vpop.permute.xlu1 %2179  ;;  %v13711_v42 = vsel %vm1797_vm10, %v1849_v20, %v1850_v33  ;;  %v13727_v11 = vsel %vm1797_vm10, 0.0, %v1849_v20 }
 0x1d7   :  { %20107 = vst [vmem:[#allocation169_spill] sm:$0xff] %v13685_v24  ;;  %20108 = vst [vmem:[#allocation170_spill] sm:$0xff] %v13687_v17 }
 0x1d8   :  { %2221 = vrot.lane.b32.xlu0 %v13690_v46, %s11969_s28  ;;  %2430 = vrot.lane.b32.xlu1 %v13693_v49, %s11968_s24  ;;  %20114 = vst [vmem:[#allocation176_spill] sm:$0xff] %v13711_v42  ;;  %20118 = vst [vmem:[#allocation180_spill] sm:$0xff] %v13727_v11 }
 0x1da   :  { %v13702_v52 = vpop.permute.xlu0 %2185  ;;  %v13704_v19 = vpop.permute.xlu1 %2394 }
 0x1db   :  { %20111 = vst [vmem:[#allocation173_spill] sm:$0xff] %v13702_v52  ;;  %20112 = vst [vmem:[#allocation174_spill] sm:$0xff] %v13704_v19  ;;  %v13713_v17 = vpop.f32.mrb[16].mxu1 }
 0x1dc   :  { %20115 = vst [vmem:[#allocation177_spill] sm:$0xff] %v13713_v17  ;;  %2428 = vrot.lane.b32.xlu0 %v13708_v54, %s11968_s24  ;;  %2647 = vrot.lane.b32.xlu1 %v13711_v42, %s11970_s22  ;;  %v19740_v52 = vrot.slane %v13713_v17, 1  ;;  %v1047_v49 = vpop.f32.mrb[17].mxu1  ;;  %v13730_v54 = vsel %vm1577_vm13, %v12972_v60, %v1641_v56  ;;  %v2043_v42 = vrot.slane %v13690_v46, 1  ;;  %v13748_v56 = vsel %vm1580_vm14, %v13025_v5, %v1644_v48 }
 0x1dd   :  { %v1387_v19 = vrot.slane %v1047_v49, 1  ;;  %20119 = vst [vmem:[#allocation181_spill] sm:$0xff] %v13730_v54  ;;  %20123 = vst [vmem:[#allocation185_spill] sm:$0xff] %v13748_v56  ;;  %v1853_v17 = vrot.slane %v13690_v46, 7  ;;  %v1643_v5 = vmul.f32 0.2, %v12997_v34 }
 0x1de   :  { %v13722_v27 = vpop.permute.xlu0 %2392  ;;  %v13724_v33 = vpop.permute.xlu1 %2607  ;;  %vm1592_vm13 = vcmp.gt.f32.partialorder %v13247_v39, 0.0  ;;  %vm1591_vm14 = vcmp.gt.f32.partialorder %v13215_v18, 0.0 }
 0x1df   :  { %20116 = vst [vmem:[#allocation178_spill] sm:$0xff] %v13722_v27  ;;  %20117 = vst [vmem:[#allocation179_spill] sm:$0xff] %v13724_v33  ;;  %v1389_v22 = vsel %vm1380_vm7, %v1387_v19, %v19740_v52  ;;  %v13751_v33 = vsel %vm1380_vm7, %v2043_v42, 0.0  ;;  %v2042_v19 = vrot.slane %v13730_v54, 1  ;;  %v1852_v52 = vrot.slane %v13730_v54, 7 }
 0x1e0   :  { %2645 = vrot.lane.b32.xlu0 %v13727_v11, %s11970_s22  ;;  %2219 = vrot.lane.b32.xlu1 %v13730_v54, %s11969_s28  ;;  %v13741_v27 = vadd.f32 %v1389_v22, %v1047_v49  ;;  %20124 = vst [vmem:[#allocation186_spill] sm:$0xff] %v13751_v33 }
 0x1e1   :  { %v13766_v48 = vsel %vm1380_vm7, %v2042_v19, %v2043_v42  ;;  %v1646_v42 = vmul.f32 0.2, %v13050_v41  ;;  %v13785_v11 = vsel %vm1797_vm10, 0.0, %v1852_v52 }
 0x1e2   :  { %20120 = vst [vmem:[#allocation182_spill] sm:$0xff] %v13741_v27  ;;  %v13743_v20 = vpop.permute.xlu0 %2605  ;;  %v13745_v60 = vpop.permute.xlu1 %2183  ;;  %20127 = vst [vmem:[#allocation189_spill] sm:$0xff] %v13766_v48  ;;  %v13769_v27 = vsel %vm1797_vm10, %v1852_v52, %v1853_v17 }
 0x1e3   :  { %20121 = vst [vmem:[#allocation183_spill] sm:$0xff] %v13743_v20  ;;  %20122 = vst [vmem:[#allocation184_spill] sm:$0xff] %v13745_v60 }
 0x1e4   :  { %2225 = vrot.lane.b32.xlu0 %v13748_v56, %s11969_s28  ;;  %2434 = vrot.lane.b32.xlu1 %v13751_v33, %s11968_s24  ;;  %20128 = vst [vmem:[#allocation190_spill] sm:$0xff] %v13769_v27  ;;  %20132 = vst [vmem:[#allocation194_spill] sm:$0xff] %v13785_v11 }
 0x1e6   :  { %v13760_v22 = vpop.permute.xlu0 %2189  ;;  %v13762_v49 = vpop.permute.xlu1 %2398 }
 0x1e7   :  { %20125 = vst [vmem:[#allocation187_spill] sm:$0xff] %v13760_v22  ;;  %20126 = vst [vmem:[#allocation188_spill] sm:$0xff] %v13762_v49  ;;  %v13771_v60 = vpop.f32.mrb[18].mxu1 }
 0x1e8   :  { %20129 = vst [vmem:[#allocation191_spill] sm:$0xff] %v13771_v60  ;;  %2432 = vrot.lane.b32.xlu0 %v13766_v48, %s11968_s24  ;;  %2651 = vrot.lane.b32.xlu1 %v13769_v27, %s11970_s22  ;;  %v19751_v33 = vrot.slane %v13771_v60, 1  ;;  %v1067_v22 = vpop.f32.mrb[19].mxu1  ;;  %v13788_v48 = vsel %vm1579_vm15, %v12997_v34, %v1643_v5  ;;  %v2046_v27 = vrot.slane %v13748_v56, 1  ;;  %v13806_v5 = vsel %vm1582_vm0, %v13050_v41, %v1646_v42 }
 0x1e9   :  { %v1390_v49 = vrot.slane %v1067_v22, 1  ;;  %20133 = vst [vmem:[#allocation195_spill] sm:$0xff] %v13788_v48  ;;  %20137 = vst [vmem:[#allocation199_spill] sm:$0xff] %v13806_v5  ;;  %v1856_v60 = vrot.slane %v13748_v56, 7  ;;  %v1645_v41 = vmul.f32 0.2, %v13038_v47 }
 0x1ea   :  { %v13780_v19 = vpop.permute.xlu0 %2396  ;;  %v13782_v17 = vpop.permute.xlu1 %2611  ;;  %vm1604_vm15 = vcmp.gt.f32.partialorder %v13423_v53, 0.0  ;;  %vm1603_vm0 = vcmp.gt.f32.partialorder %v13399_v15, 0.0 }
 0x1eb   :  { %20130 = vst [vmem:[#allocation192_spill] sm:$0xff] %v13780_v19  ;;  %20131 = vst [vmem:[#allocation193_spill] sm:$0xff] %v13782_v17  ;;  %v1392_v20 = vsel %vm1380_vm7, %v1390_v49, %v19751_v33  ;;  %v13809_v17 = vsel %vm1380_vm7, %v2046_v27, 0.0  ;;  %v2045_v49 = vrot.slane %v13788_v48, 1  ;;  %v1855_v33 = vrot.slane %v13788_v48, 7 }
 0x1ec   :  { %2649 = vrot.lane.b32.xlu0 %v13785_v11, %s11970_s22  ;;  %2223 = vrot.lane.b32.xlu1 %v13788_v48, %s11969_s28  ;;  %v13799_v19 = vadd.f32 %v1392_v20, %v1067_v22  ;;  %20138 = vst [vmem:[#allocation200_spill] sm:$0xff] %v13809_v17 }
 0x1ed   :  { %v13824_v42 = vsel %vm1380_vm7, %v2045_v49, %v2046_v27  ;;  %v1648_v27 = vmul.f32 0.2, %v13099_v30  ;;  %v13843_v11 = vsel %vm1797_vm10, 0.0, %v1855_v33 }
 0x1ee   :  { %20134 = vst [vmem:[#allocation196_spill] sm:$0xff] %v13799_v19  ;;  %v13801_v52 = vpop.permute.xlu0 %2609  ;;  %v13803_v34 = vpop.permute.xlu1 %2187  ;;  %20141 = vst [vmem:[#allocation203_spill] sm:$0xff] %v13824_v42  ;;  %v13827_v19 = vsel %vm1797_vm10, %v1855_v33, %v1856_v60 }
 0x1ef   :  { %20135 = vst [vmem:[#allocation197_spill] sm:$0xff] %v13801_v52  ;;  %20136 = vst [vmem:[#allocation198_spill] sm:$0xff] %v13803_v34 }
 0x1f0   :  { %2229 = vrot.lane.b32.xlu0 %v13806_v5, %s11969_s28  ;;  %2438 = vrot.lane.b32.xlu1 %v13809_v17, %s11968_s24  ;;  %20142 = vst [vmem:[#allocation204_spill] sm:$0xff] %v13827_v19  ;;  %20146 = vst [vmem:[#allocation208_spill] sm:$0xff] %v13843_v11 }
 0x1f2   :  { %v13818_v20 = vpop.permute.xlu0 %2193  ;;  %v13820_v22 = vpop.permute.xlu1 %2402 }
 0x1f3   :  { %20139 = vst [vmem:[#allocation201_spill] sm:$0xff] %v13818_v20  ;;  %20140 = vst [vmem:[#allocation202_spill] sm:$0xff] %v13820_v22  ;;  %v13829_v34 = vpop.f32.mrb[20].mxu1 }
 0x1f4   :  { %20143 = vst [vmem:[#allocation205_spill] sm:$0xff] %v13829_v34  ;;  %2436 = vrot.lane.b32.xlu0 %v13824_v42, %s11968_s24  ;;  %2655 = vrot.lane.b32.xlu1 %v13827_v19, %s11970_s22  ;;  %v19764_v20 = vrot.slane %v13829_v34, 1  ;;  %v1087_v17 = vpop.f32.mrb[21].mxu1  ;;  %v13846_v42 = vsel %vm1581_vm1, %v13038_v47, %v1645_v41  ;;  %v2049_v19 = vrot.slane %v13806_v5, 1  ;;  %v1647_v41 = vmul.f32 0.2, %v13067_v63 }
 0x1f5   :  { %v1393_v22 = vrot.slane %v1087_v17, 1  ;;  %20147 = vst [vmem:[#allocation209_spill] sm:$0xff] %v13846_v42  ;;  %v13865_v34 = vsel %vm1584_vm3, %v13099_v30, %v1648_v27  ;;  %vm3892_vm1 = vcmask 261120   ;;  %vm3827_vm3 = vcmask 195584  }
 0x1f6   :  { %v13838_v49 = vpop.permute.xlu0 %2400  ;;  %v13840_v60 = vpop.permute.xlu1 %2615  ;;  %20151 = vst [vmem:[#allocation213_spill] sm:$0xff] %v13865_v34  ;;  %v13884_v27 = vsel %vm1583_vm4, %v13067_v63, %v1647_v41  ;;  %vm3957_vm4 = vcmask 326656  }
 0x1f7   :  { %20144 = vst [vmem:[#allocation206_spill] sm:$0xff] %v13838_v49  ;;  %20145 = vst [vmem:[#allocation207_spill] sm:$0xff] %v13840_v60  ;;  %v1395_v52 = vsel %vm1380_vm7, %v1393_v22, %v19764_v20  ;;  %v13868_v22 = vsel %vm1380_vm7, %v2049_v19, 0.0  ;;  %v2048_v20 = vrot.slane %v13846_v42, 1 }
 0x1f8   :  { %2653 = vrot.lane.b32.xlu0 %v13843_v11, %s11970_s22  ;;  %2227 = vrot.lane.b32.xlu1 %v13846_v42, %s11969_s28  ;;  %v13857_v49 = vadd.f32 %v1395_v52, %v1087_v17  ;;  %20152 = vst [vmem:[#allocation214_spill] sm:$0xff] %v13868_v22  ;;  %20156 = vst [vmem:[#allocation218_spill] sm:$0xff] %v13884_v27 }
 0x1f9   :  { %v13881_v30 = vsel %vm1380_vm7, %v2048_v20, %v2049_v19 }
 0x1fa   :  { %20148 = vst [vmem:[#allocation210_spill] sm:$0xff] %v13857_v49  ;;  %v13859_v33 = vpop.permute.xlu0 %2613  ;;  %v13861_v47 = vpop.permute.xlu1 %2191  ;;  %20155 = vst [vmem:[#allocation217_spill] sm:$0xff] %v13881_v30 }
 0x1fb   :  { %20149 = vst [vmem:[#allocation211_spill] sm:$0xff] %v13859_v33  ;;  %20150 = vst [vmem:[#allocation212_spill] sm:$0xff] %v13861_v47  ;;  %v2052_v47 = vrot.slane %v13865_v34, 1 }
 0x1fc   :  { %2233 = vrot.lane.b32.xlu0 %v13865_v34, %s11969_s28  ;;  %2442 = vrot.lane.b32.xlu1 %v13868_v22, %s11968_s24  ;;  %v1650_v22 = vmul.f32 0.2, %v13124_v0 }
 0x1fe   :  { %v13876_v17 = vpop.permute.xlu0 %2197  ;;  %v13878_v52 = vpop.permute.xlu1 %2406 }
 0x1ff   :  { %20153 = vst [vmem:[#allocation215_spill] sm:$0xff] %v13876_v17  ;;  %20154 = vst [vmem:[#allocation216_spill] sm:$0xff] %v13878_v52  ;;  %v13888_v11 = vpop.f32.mrb[22].mxu1  ;;  %v1649_v17 = vmul.f32 0.2, %v13112_v25  ;;  %v20160_v52 = vrot.slane %v13846_v42, 7 }
 0x200   :  { %20157 = vst [vmem:[#allocation219_spill] sm:$0xff] %v13888_v11  ;;  %2440 = vrot.lane.b32.xlu0 %v13881_v30, %s11968_s24  ;;  %2231 = vrot.lane.b32.xlu1 %v13884_v27, %s11969_s28  ;;  %v19773_v19 = vrot.slane %v13888_v11, 1  ;;  %v1107_v20 = vpop.f32.mrb[23].mxu1  ;;  %v13908_v30 = vsel %vm1380_vm7, %v2052_v47, 0.0 }
 0x201   :  { %v1396_v63 = vrot.slane %v1107_v20, 1  ;;  %v13905_v60 = vsel %vm1797_vm10, 0.0, %v20160_v52  ;;  %20162 = vst [vmem:[#allocation223_spill] sm:$0xff] %v13908_v30  ;;  %v13928_v11 = vsel %vm1585_vm6, %v13112_v25, %v1649_v17  ;;  %v1651_v25 = vmul.f32 0.2, %v13141_v16 }
 0x202   :  { %v13897_v41 = vpop.permute.xlu0 %2404  ;;  %v13899_v49 = vpop.permute.xlu1 %2619  ;;  %20161 = vst [vmem:[#allocation222_spill] sm:$0xff] %v13905_v60  ;;  %20167 = vst [vmem:[#allocation228_spill] sm:$0xff] %v13928_v11  ;;  %vm4087_vm6 = vcmask 457728  }
 0x203   :  { %20158 = vst [vmem:[#allocation220_spill] sm:$0xff] %v13897_v41  ;;  %20159 = vst [vmem:[#allocation221_spill] sm:$0xff] %v13899_v49  ;;  %v1398_v33 = vsel %vm1380_vm7, %v1396_v63, %v19773_v19  ;;  %v13918_v41 = vsel %vm1586_vm5, %v13124_v0, %v1650_v22  ;;  %v2051_v63 = vrot.slane %v13884_v27, 1  ;;  %vm4022_vm5 = vcmask 392192  }
 0x204   :  { %2657 = vrot.lane.b32.xlu0 %v13905_v60, %s11970_s22  ;;  %2446 = vrot.lane.b32.xlu1 %v13908_v30, %s11968_s24  ;;  %20163 = vst [vmem:[#allocation224_spill] sm:$0xff] %v13918_v41  ;;  %v13921_v52 = vadd.f32 %v1398_v33, %v1107_v20  ;;  %v2055_v19 = vrot.slane %v13918_v41, 1  ;;  %v1652_v30 = vmul.f32 0.2, %v13173_v8  ;;  %v13965_v60 = vsel %vm1587_vm9, %v13141_v16, %v1651_v25 }
 0x205   :  { %v13944_v22 = vsel %vm1380_vm7, %v2051_v63, %v2052_v47  ;;  %20176 = vst [vmem:[#allocation237_spill] sm:$0xff] %v13965_v60  ;;  %vm4223_vm9 = vcmask 588800  }
 0x206   :  { %20164 = vst [vmem:[#allocation225_spill] sm:$0xff] %v13921_v52  ;;  %v13923_v49 = vpop.permute.xlu0 %2617  ;;  %v13925_v24 = vpop.permute.xlu1 %2195  ;;  %20170 = vst [vmem:[#allocation231_spill] sm:$0xff] %v13944_v22  ;;  %v13947_v17 = vsel %vm1380_vm7, %v2055_v19, 0.0  ;;  %v13956_v52 = vsel %vm1588_vm8, %v13173_v8, %v1652_v30  ;;  %v1654_v30 = vmul.f32 0.2, %v13198_v12  ;;  %vm4152_vm8 = vcmask 523264  }
 0x207   :  { %20165 = vst [vmem:[#allocation226_spill] sm:$0xff] %v13923_v49  ;;  %20166 = vst [vmem:[#allocation227_spill] sm:$0xff] %v13925_v24 }
 0x208   :  { %2237 = vrot.lane.b32.xlu0 %v13918_v41, %s11969_s28  ;;  %2235 = vrot.lane.b32.xlu1 %v13928_v11, %s11969_s28  ;;  %20171 = vst [vmem:[#allocation232_spill] sm:$0xff] %v13947_v17  ;;  %20173 = vst [vmem:[#allocation234_spill] sm:$0xff] %v13956_v52 }
 0x20a   :  { %v13938_v0 = vpop.permute.xlu0 %2201  ;;  %v13940_v33 = vpop.permute.xlu1 %2410 }
 0x20b   :  { %20168 = vst [vmem:[#allocation229_spill] sm:$0xff] %v13938_v0  ;;  %20169 = vst [vmem:[#allocation230_spill] sm:$0xff] %v13940_v33  ;;  %v13949_v20 = vpop.f32.mrb[24].mxu1 }
 0x20c   :  { %20172 = vst [vmem:[#allocation233_spill] sm:$0xff] %v13949_v20  ;;  %2444 = vrot.lane.b32.xlu0 %v13944_v22, %s11968_s24  ;;  %2450 = vrot.lane.b32.xlu1 %v13947_v17, %s11968_s24  ;;  %v19784_v0 = vrot.slane %v13949_v20, 1  ;;  %v1127_v47 = vpop.f32.mrb[25].mxu1  ;;  %v2054_v22 = vrot.slane %v13928_v11, 1  ;;  %v2058_v17 = vrot.slane %v13956_v52, 1 }
 0x20d   :  { %v1399_v63 = vrot.slane %v1127_v47, 1  ;;  %v1653_v20 = vmul.f32 0.2, %v13186_v43 }
 0x20e   :  { %v13960_v33 = vpop.permute.xlu0 %2408  ;;  %v13962_v24 = vpop.permute.xlu1 %2623 }
 0x20f   :  { %20174 = vst [vmem:[#allocation235_spill] sm:$0xff] %v13960_v33  ;;  %20175 = vst [vmem:[#allocation236_spill] sm:$0xff] %v13962_v24  ;;  %v1401_v8 = vsel %vm1380_vm7, %v1399_v63, %v19784_v0  ;;  %v13986_v63 = vsel %vm1380_vm7, %v2054_v22, %v2055_v19  ;;  %v13989_v0 = vsel %vm1380_vm7, %v2058_v17, 0.0  ;;  %v14004_v19 = vsel %vm1589_vm12, %v13186_v43, %v1653_v20 }
 0x210   :  { %2241 = vrot.lane.b32.xlu0 %v13956_v52, %s11969_s28  ;;  %2239 = vrot.lane.b32.xlu1 %v13965_v60, %s11969_s28  ;;  %v13977_v33 = vadd.f32 %v1401_v8, %v1127_v47  ;;  %20180 = vst [vmem:[#allocation241_spill] sm:$0xff] %v13986_v63  ;;  %20181 = vst [vmem:[#allocation242_spill] sm:$0xff] %v13989_v0  ;;  %v13996_v47 = vsel %vm1590_vm11, %v13198_v12, %v1654_v30  ;;  %v2057_v22 = vrot.slane %v13965_v60, 1 }
 0x211   :  { %20182 = vst [vmem:[#allocation243_spill] sm:$0xff] %v13996_v47  ;;  %20185 = vst [vmem:[#allocation246_spill] sm:$0xff] %v14004_v19 }
 0x212   :  { %20177 = vst [vmem:[#allocation238_spill] sm:$0xff] %v13977_v33  ;;  %v13980_v16 = vpop.permute.xlu0 %2621  ;;  %v13982_v25 = vpop.permute.xlu1 %2199  ;;  %v14023_v24 = vsel %vm1380_vm7, %v2057_v22, %v2058_v17 }
 0x213   :  { %20178 = vst [vmem:[#allocation239_spill] sm:$0xff] %v13980_v16  ;;  %20179 = vst [vmem:[#allocation240_spill] sm:$0xff] %v13982_v25  ;;  %v2061_v25 = vrot.slane %v13996_v47, 1 }
 0x214   :  { %2448 = vrot.lane.b32.xlu0 %v13986_v63, %s11968_s24  ;;  %2454 = vrot.lane.b32.xlu1 %v13989_v0, %s11968_s24  ;;  %v1656_v0 = vmul.f32 0.2, %v13247_v39  ;;  %20189 = vst [vmem:[#allocation250_spill] sm:$0xff] %v14023_v24 }
 0x215   :  { %v14026_v16 = vsel %vm1380_vm7, %v2061_v25, 0.0 }
 0x216   :  { %v13999_v8 = vpop.permute.xlu0 %2205  ;;  %v14001_v33 = vpop.permute.xlu1 %2414  ;;  %20190 = vst [vmem:[#allocation251_spill] sm:$0xff] %v14026_v16 }
 0x217   :  { %20183 = vst [vmem:[#allocation244_spill] sm:$0xff] %v13999_v8  ;;  %20184 = vst [vmem:[#allocation245_spill] sm:$0xff] %v14001_v33  ;;  %v14008_v63 = vpop.f32.mrb[26].mxu1  ;;  %v1655_v33 = vmul.f32 0.2, %v13215_v18 }
 0x218   :  { %20186 = vst [vmem:[#allocation247_spill] sm:$0xff] %v14008_v63  ;;  %2245 = vrot.lane.b32.xlu0 %v13996_v47, %s11969_s28  ;;  %2243 = vrot.lane.b32.xlu1 %v14004_v19, %s11969_s28  ;;  %v19791_v12 = vrot.slane %v14008_v63, 1  ;;  %v1147_v30 = vpop.f32.mrb[27].mxu1 }
 0x219   :  { %v1402_v43 = vrot.slane %v1147_v30, 1  ;;  %v14046_v63 = vsel %vm1591_vm14, %v13215_v18, %v1655_v33  ;;  %vm5153_vm14 = vcmask 1041408  }
 0x21a   :  { %v14017_v20 = vpop.permute.xlu0 %2412  ;;  %v14019_v8 = vpop.permute.xlu1 %2627  ;;  %20195 = vst [vmem:[#allocation256_spill] sm:$0xff] %v14046_v63  ;;  %v2063_v33 = vrot.slane %v14046_v63, 1 }
 0x21b   :  { %20187 = vst [vmem:[#allocation248_spill] sm:$0xff] %v14017_v20  ;;  %20188 = vst [vmem:[#allocation249_spill] sm:$0xff] %v14019_v8  ;;  %v1404_v49 = vsel %vm1380_vm7, %v1402_v43, %v19791_v12  ;;  %v14036_v20 = vsel %vm1592_vm13, %v13247_v39, %v1656_v0  ;;  %v2060_v43 = vrot.slane %v14004_v19, 1  ;;  %v1859_v0 = vrot.slane %v13806_v5, 7 }
 0x21c   :  { %2452 = vrot.lane.b32.xlu0 %v14023_v24, %s11968_s24  ;;  %2458 = vrot.lane.b32.xlu1 %v14026_v16, %s11968_s24  ;;  %20191 = vst [vmem:[#allocation252_spill] sm:$0xff] %v14036_v20  ;;  %v14039_v17 = vadd.f32 %v1404_v49, %v1147_v30  ;;  %v2064_v12 = vrot.slane %v14036_v20, 1  ;;  %vm5248_vm13 = vcmask 1045504  }
 0x21d   :  { %v14060_v30 = vsel %vm1380_vm7, %v2060_v43, %v2061_v25  ;;  %v20203_v43 = vrot.slane %v13846_v42, 7 }
 0x21e   :  { %20192 = vst [vmem:[#allocation253_spill] sm:$0xff] %v14039_v17  ;;  %v14041_v22 = vpop.permute.xlu0 %2625  ;;  %v14043_v8 = vpop.permute.xlu1 %2203  ;;  %20198 = vst [vmem:[#allocation259_spill] sm:$0xff] %v14060_v30  ;;  %v14063_v18 = vsel %vm1380_vm7, %v2064_v12, 0.0 }
 0x21f   :  { %20193 = vst [vmem:[#allocation254_spill] sm:$0xff] %v14041_v22  ;;  %20194 = vst [vmem:[#allocation255_spill] sm:$0xff] %v14043_v8  ;;  %v14080_v8 = vsel %vm1797_vm10, %v20203_v43, %v1859_v0  ;;  %v14083_v22 = vsel %vm1380_vm7, %v2063_v33, %v2064_v12 }
 0x220   :  { %2249 = vrot.lane.b32.xlu0 %v14036_v20, %s11969_s28  ;;  %2247 = vrot.lane.b32.xlu1 %v14046_v63, %s11969_s28  ;;  %20199 = vst [vmem:[#allocation260_spill] sm:$0xff] %v14063_v18  ;;  %20204 = vst [vmem:[#allocation264_spill] sm:$0xff] %v14080_v8 }
 0x221   :  { %20205 = vst [vmem:[#allocation265_spill] sm:$0xff] %v14083_v22 }
 0x222   :  { %v14054_v39 = vpop.permute.xlu0 %2209  ;;  %v14056_v49 = vpop.permute.xlu1 %2418 }
 0x223   :  { %20196 = vst [vmem:[#allocation257_spill] sm:$0xff] %v14054_v39  ;;  %20197 = vst [vmem:[#allocation258_spill] sm:$0xff] %v14056_v49  ;;  %v14066_v17 = vpop.f32.mrb[28].mxu1 }
 0x224   :  { %20200 = vst [vmem:[#allocation261_spill] sm:$0xff] %v14066_v17  ;;  %2456 = vrot.lane.b32.xlu0 %v14060_v30, %s11968_s24  ;;  %2462 = vrot.lane.b32.xlu1 %v14063_v18, %s11968_s24  ;;  %v19802_v16 = vrot.slane %v14066_v17, 1  ;;  %v1167_v24 = vpop.f32.mrb[29].mxu1  ;;  %v1861_v30 = vrot.slane %v13884_v27, 7  ;;  %v1862_v18 = vrot.slane %v13865_v34, 7 }
 0x225   :  { %v1405_v39 = vrot.slane %v1167_v24, 1 }
 0x226   :  { %v14073_v49 = vpop.permute.xlu0 %2416  ;;  %v14075_v25 = vpop.permute.xlu1 %2631  ;;  %v14101_v33 = vsel %vm1797_vm10, 0.0, %v1861_v30  ;;  %v14104_v43 = vsel %vm1797_vm10, %v1861_v30, %v1862_v18  ;;  %v1868_v18 = vrot.slane %v13956_v52, 7 }
 0x227   :  { %20201 = vst [vmem:[#allocation262_spill] sm:$0xff] %v14073_v49  ;;  %20202 = vst [vmem:[#allocation263_spill] sm:$0xff] %v14075_v25  ;;  %v1407_v10 = vsel %vm1380_vm7, %v1405_v39, %v19802_v16  ;;  %v1864_v39 = vrot.slane %v13928_v11, 7  ;;  %v1865_v16 = vrot.slane %v13918_v41, 7 }
 0x228   :  { %2460 = vrot.lane.b32.xlu0 %v14083_v22, %s11968_s24  ;;  %2659 = vrot.lane.b32.xlu1 %v14080_v8, %s11970_s22  ;;  %v14094_v49 = vadd.f32 %v1407_v10, %v1167_v24  ;;  %20209 = vst [vmem:[#allocation269_spill] sm:$0xff] %v14101_v33  ;;  %20210 = vst [vmem:[#allocation270_spill] sm:$0xff] %v14104_v43 }
 0x229   :  { %v14118_v17 = vsel %vm1797_vm10, 0.0, %v1864_v39  ;;  %v14121_v30 = vsel %vm1797_vm10, %v1864_v39, %v1865_v16 }
 0x22a   :  { %20206 = vst [vmem:[#allocation266_spill] sm:$0xff] %v14094_v49  ;;  %v14096_v0 = vpop.permute.xlu0 %2629  ;;  %v14098_v12 = vpop.permute.xlu1 %2207  ;;  %v1867_v49 = vrot.slane %v13965_v60, 7  ;;  %20213 = vst [vmem:[#allocation273_spill] sm:$0xff] %v14118_v17 }
 0x22b   :  { %20207 = vst [vmem:[#allocation267_spill] sm:$0xff] %v14096_v0  ;;  %20208 = vst [vmem:[#allocation268_spill] sm:$0xff] %v14098_v12 }
 0x22c   :  { %2661 = vrot.lane.b32.xlu0 %v14101_v33, %s11970_s22  ;;  %2663 = vrot.lane.b32.xlu1 %v14104_v43, %s11970_s22  ;;  %20214 = vst [vmem:[#allocation274_spill] sm:$0xff] %v14121_v30  ;;  %v14136_v16 = vsel %vm1797_vm10, 0.0, %v1867_v49  ;;  %v14139_v39 = vsel %vm1797_vm10, %v1867_v49, %v1868_v18  ;;  %v1870_v43 = vrot.slane %v14004_v19, 7 }
 0x22d   :  { %20218 = vst [vmem:[#allocation278_spill] sm:$0xff] %v14136_v16  ;;  %20219 = vst [vmem:[#allocation279_spill] sm:$0xff] %v14139_v39 }
 0x22e   :  { %v14112_v10 = vpop.permute.xlu0 %2420  ;;  %v14114_v24 = vpop.permute.xlu1 %2422  ;;  %v14157_v18 = vsel %vm1797_vm10, 0.0, %v1870_v43 }
 0x22f   :  { %20211 = vst [vmem:[#allocation271_spill] sm:$0xff] %v14112_v10  ;;  %20212 = vst [vmem:[#allocation272_spill] sm:$0xff] %v14114_v24  ;;  %v14124_v22 = vpop.f32.mrb[30].mxu1 }
 0x230   :  { %20215 = vst [vmem:[#allocation275_spill] sm:$0xff] %v14124_v22  ;;  %2665 = vrot.lane.b32.xlu0 %v14118_v17, %s11970_s22  ;;  %2667 = vrot.lane.b32.xlu1 %v14121_v30, %s11970_s22  ;;  %v19815_v10 = vrot.slane %v14124_v22, 1  ;;  %v1187_v12 = vpop.f32.mrb[31].mxu1  ;;  %v1871_v17 = vrot.slane %v13996_v47, 7  ;;  %20223 = vst [vmem:[#allocation283_spill] sm:$0xff] %v14157_v18 }
 0x231   :  { %v1408_v24 = vrot.slane %v1187_v12, 1 }
 0x232   :  { %v14131_v25 = vpop.permute.xlu0 %2633  ;;  %v14133_v0 = vpop.permute.xlu1 %2635  ;;  %v14160_v33 = vsel %vm1797_vm10, %v1870_v43, %v1871_v17 }
 0x233   :  { %20216 = vst [vmem:[#allocation276_spill] sm:$0xff] %v14131_v25  ;;  %20217 = vst [vmem:[#allocation277_spill] sm:$0xff] %v14133_v0  ;;  %v1410_v30 = vsel %vm1380_vm7, %v1408_v24, %v19815_v10  ;;  %v1873_v24 = vrot.slane %v14046_v63, 7  ;;  %v1874_v10 = vrot.slane %v14036_v20, 7 }
 0x234   :  { %2669 = vrot.lane.b32.xlu0 %v14136_v16, %s11970_s22  ;;  %2671 = vrot.lane.b32.xlu1 %v14139_v39, %s11970_s22  ;;  %v14150_v0 = vadd.f32 %v1410_v30, %v1187_v12  ;;  %20224 = vst [vmem:[#allocation284_spill] sm:$0xff] %v14160_v33  ;;  %v20225_v12 = vld [vmem:[#allocation7_spill] sm:$0xff] }
 0x235   :  { %v1876_v30 = vrot.slane %v20225_v12, 7  ;;  %v14175_v17 = vsel %vm1797_vm10, 0.0, %v1873_v24  ;;  %v14178_v43 = vsel %vm1797_vm10, %v1873_v24, %v1874_v10  ;;  %v20236_v24 = vld [vmem:[#allocation18_spill] sm:$0xff] }
 0x236   :  { %20220 = vst [vmem:[#allocation280_spill] sm:$0xff] %v14150_v0  ;;  %v14152_v25 = vpop.permute.xlu0 %2213  ;;  %v14154_v49 = vpop.permute.xlu1 %2639  ;;  %v20226_v0 = vld [vmem:[#allocation5_spill] sm:$0xff]  ;;  %20229 = vst [vmem:[#allocation287_spill] sm:$0xff] %v14175_v17  ;;  %v1879_v39 = vrot.slane %v20236_v24, 7 }
 0x237   :  { %20221 = vst [vmem:[#allocation281_spill] sm:$0xff] %v14152_v25  ;;  %20222 = vst [vmem:[#allocation282_spill] sm:$0xff] %v14154_v49  ;;  %v1877_v22 = vrot.slane %v20226_v0, 7  ;;  %v14195_v10 = vsel %vm1797_vm10, 0.0, %v1876_v30 }
 0x238   :  { %2673 = vrot.lane.b32.xlu0 %v14157_v18, %s11970_s22  ;;  %2675 = vrot.lane.b32.xlu1 %v14160_v33, %s11970_s22  ;;  %20230 = vst [vmem:[#allocation288_spill] sm:$0xff] %v14178_v43  ;;  %20235 = vst [vmem:[#allocation293_spill] sm:$0xff] %v14195_v10 }
 0x23a   :  { %v14170_v25 = vpop.permute.xlu0 %2637  ;;  %v14172_v49 = vpop.permute.xlu1 %2211 }
 0x23b   :  { %20227 = vst [vmem:[#allocation285_spill] sm:$0xff] %v14170_v25  ;;  %20228 = vst [vmem:[#allocation286_spill] sm:$0xff] %v14172_v49  ;;  %v14180_v20 = vpop.f32.mrb[32].mxu1  ;;  %v14188_v49 = vsel %vm1797_vm10, %v1876_v30, %v1877_v22 }
 0x23c   :  { %20231 = vst [vmem:[#allocation289_spill] sm:$0xff] %v14180_v20  ;;  %2677 = vrot.lane.b32.xlu0 %v14175_v17, %s11970_s22  ;;  %2679 = vrot.lane.b32.xlu1 %v14178_v43, %s11970_s22  ;;  %v19834_v0 = vrot.slane %v14180_v20, 1  ;;  %v1207_v12 = vpop.f32.mrb[33].mxu1  ;;  %20232 = vst [vmem:[#allocation290_spill] sm:$0xff] %v14188_v49  ;;  %v20237_v17 = vld [vmem:[#allocation12_spill] sm:$0xff] }
 0x23d   :  { %v1411_v33 = vrot.slane %v1207_v12, 1  ;;  %v1880_v16 = vrot.slane %v20237_v17, 7  ;;  %v14216_v17 = vsel %vm1797_vm10, 0.0, %v1879_v39  ;;  %v20243_v20 = vld [vmem:[#allocation28_spill] sm:$0xff] }
 0x23e   :  { %v14190_v18 = vpop.permute.xlu0 %2217  ;;  %v14192_v25 = vpop.permute.xlu1 %2426  ;;  %20242 = vst [vmem:[#allocation298_spill] sm:$0xff] %v14216_v17 }
 0x23f   :  { %20233 = vst [vmem:[#allocation291_spill] sm:$0xff] %v14190_v18  ;;  %20234 = vst [vmem:[#allocation292_spill] sm:$0xff] %v14192_v25  ;;  %v1413_v43 = vsel %vm1380_vm7, %v1411_v33, %v19834_v0  ;;  %v14213_v24 = vsel %vm1797_vm10, %v1879_v39, %v1880_v16  ;;  %v1882_v33 = vrot.slane %v20243_v20, 7  ;;  %v20244_v0 = vld [vmem:[#allocation21_spill] sm:$0xff] }
 0x240   :  { %2681 = vrot.lane.b32.xlu0 %v14195_v10, %s11970_s22  ;;  %2683 = vrot.lane.b32.xlu1 %v14188_v49, %s11970_s22  ;;  %v14206_v22 = vadd.f32 %v1413_v43, %v1207_v12  ;;  %20241 = vst [vmem:[#allocation297_spill] sm:$0xff] %v14213_v24  ;;  %v1883_v25 = vrot.slane %v20244_v0, 7  ;;  %v20245_v12 = vld [vmem:[#allocation38_spill] sm:$0xff] }
 0x241   :  { %v1885_v43 = vrot.slane %v20245_v12, 7  ;;  %v14234_v20 = vsel %vm1797_vm10, 0.0, %v1882_v33 }
 0x242   :  { %20238 = vst [vmem:[#allocation294_spill] sm:$0xff] %v14206_v22  ;;  %v14208_v18 = vpop.permute.xlu0 %2424  ;;  %v14210_v30 = vpop.permute.xlu1 %2643  ;;  %v20246_v22 = vld [vmem:[#allocation31_spill] sm:$0xff]  ;;  %v14231_v39 = vsel %vm1797_vm10, %v1882_v33, %v1883_v25  ;;  %20250 = vst [vmem:[#allocation302_spill] sm:$0xff] %v14234_v20 }
 0x243   :  { %20239 = vst [vmem:[#allocation295_spill] sm:$0xff] %v14208_v18  ;;  %20240 = vst [vmem:[#allocation296_spill] sm:$0xff] %v14210_v30  ;;  %v1886_v49 = vrot.slane %v20246_v22, 7  ;;  %v20256_v30 = vld [vmem:[#allocation41_spill] sm:$0xff] }
 0x244   :  { %2685 = vrot.lane.b32.xlu0 %v14216_v17, %s11970_s22  ;;  %2687 = vrot.lane.b32.xlu1 %v14213_v24, %s11970_s22  ;;  %20249 = vst [vmem:[#allocation301_spill] sm:$0xff] %v14231_v39  ;;  %v1668_v17 = vmul.f32 0.2, %v13423_v53  ;;  %v1667_v24 = vmul.f32 0.2, %v13399_v15  ;;  %v1889_v22 = vrot.slane %v20256_v30, 7 }
 0x245   :  { %v14248_v33 = vsel %vm1797_vm10, %v1885_v43, %v1886_v49 }
 0x246   :  { %v14226_v10 = vpop.permute.xlu0 %2641  ;;  %v14228_v16 = vpop.permute.xlu1 %2215  ;;  %20252 = vst [vmem:[#allocation304_spill] sm:$0xff] %v14248_v33  ;;  %v14263_v36 = vsel %vm1604_vm15, %v13423_v53, %v1668_v17  ;;  %v14266_v49 = vsel %vm1603_vm0, %v13399_v15, %v1667_v24 }
 0x247   :  { %20247 = vst [vmem:[#allocation299_spill] sm:$0xff] %v14226_v10  ;;  %20248 = vst [vmem:[#allocation300_spill] sm:$0xff] %v14228_v16  ;;  %v14236_v0 = vpop.f32.mrb[34].mxu1  ;;  %v1891_v15 = vrot.slane %v14266_v49, 7  ;;  %v1892_v17 = vrot.slane %v14263_v36, 7 }
 0x248   :  { %20251 = vst [vmem:[#allocation303_spill] sm:$0xff] %v14236_v0  ;;  %2689 = vrot.lane.b32.xlu0 %v14234_v20, %s11970_s22  ;;  %2691 = vrot.lane.b32.xlu1 %v14231_v39, %s11970_s22  ;;  %v1227_v12 = vpop.f32.mrb[35].mxu1  ;;  %v14255_v20 = vsel %vm1797_vm10, 0.0, %v1885_v43  ;;  %v1888_v39 = vrot.slane %v12868_v38, 7  ;;  %v20257_v10 = vrot.slane %v14236_v0, 1  ;;  %20258 = vst [vmem:[#allocation308_spill] sm:$0xff] %v14263_v36 }
 0x249   :  { %v1414_v25 = vrot.slane %v1227_v12, 1  ;;  %20255 = vst [vmem:[#allocation307_spill] sm:$0xff] %v14255_v20  ;;  %20259 = vst [vmem:[#allocation309_spill] sm:$0xff] %v14266_v49 }
 0x24a   :  { %v14250_v16 = vpop.permute.xlu0 %2221  ;;  %v14252_v18 = vpop.permute.xlu1 %2430  ;;  %v14282_v53 = vsel %vm1797_vm10, 0.0, %v1888_v39 }
 0x24b   :  { %20253 = vst [vmem:[#allocation305_spill] sm:$0xff] %v14250_v16  ;;  %20254 = vst [vmem:[#allocation306_spill] sm:$0xff] %v14252_v18  ;;  %v1416_v8 = vsel %vm1380_vm7, %v1414_v25, %v20257_v10  ;;  %v14279_v10 = vsel %vm1797_vm10, %v1888_v39, %v1889_v22  ;;  %v14295_v22 = vsel %vm1797_vm10, 0.0, %v1891_v15  ;;  %v20300_v18 = vld [vmem:[#allocation56_spill] sm:$0xff] }
 0x24c   :  { %2693 = vrot.lane.b32.xlu0 %v14255_v20, %s11970_s22  ;;  %2695 = vrot.lane.b32.xlu1 %v14248_v33, %s11970_s22  ;;  %v14272_v43 = vadd.f32 %v1416_v8, %v1227_v12  ;;  %20263 = vst [vmem:[#allocation313_spill] sm:$0xff] %v14279_v10  ;;  %20264 = vst [vmem:[#allocation314_spill] sm:$0xff] %v14282_v53  ;;  %v14298_v12 = vsel %vm1797_vm10, %v1891_v15, %v1892_v17  ;;  %v20272_v17 = vld [vmem:[#allocation8_spill] sm:$0xff]  ;;  %vm3765_vm10 = vcmask 130048  }
 0x24d   :  { %20267 = vst [vmem:[#allocation317_spill] sm:$0xff] %v14295_v22  ;;  %20268 = vst [vmem:[#allocation318_spill] sm:$0xff] %v14298_v12  ;;  %v20277_v33 = vld [vmem:[#allocation16_spill] sm:$0xff] }
 0x24e   :  { %20260 = vst [vmem:[#allocation310_spill] sm:$0xff] %v14272_v43  ;;  %v14274_v38 = vpop.permute.xlu0 %2428  ;;  %v14276_v30 = vpop.permute.xlu1 %2647 }
 0x24f   :  { %20261 = vst [vmem:[#allocation311_spill] sm:$0xff] %v14274_v38  ;;  %20262 = vst [vmem:[#allocation312_spill] sm:$0xff] %v14276_v30 }
 0x250   :  { %2697 = vrot.lane.b32.xlu0 %v14282_v53, %s11970_s22  ;;  %2699 = vrot.lane.b32.xlu1 %v14279_v10, %s11970_s22 }
 0x252   :  { %v14290_v8 = vpop.permute.xlu0 %2645  ;;  %v14292_v24 = vpop.permute.xlu1 %2219 }
 0x253   :  { %20265 = vst [vmem:[#allocation315_spill] sm:$0xff] %v14290_v8  ;;  %20266 = vst [vmem:[#allocation316_spill] sm:$0xff] %v14292_v24  ;;  %v14300_v39 = vpop.f32.mrb[36].mxu1  ;;  %v20288_v24 = vld [vmem:[#allocation29_spill] sm:$0xff] }
 0x254   :  { %20269 = vst [vmem:[#allocation319_spill] sm:$0xff] %v14300_v39  ;;  %2701 = vrot.lane.b32.xlu0 %v14295_v22, %s11970_s22  ;;  %2703 = vrot.lane.b32.xlu1 %v14298_v12, %s11970_s22  ;;  %v19869_v25 = vrot.slane %v14300_v39, 1  ;;  %v1247_v43 = vpop.f32.mrb[37].mxu1  ;;  %v20273_v22 = vld [vmem:[#allocation6_spill] sm:$0xff] }
 0x255   :  { %v1417_v0 = vrot.slane %v1247_v43, 1  ;;  %v20278_v39 = vld [vmem:[#allocation10_spill] sm:$0xff] }
 0x256   :  { %v14307_v36 = vpop.permute.xlu0 %2225  ;;  %v14309_v49 = vpop.permute.xlu1 %2434 }
 0x257   :  { %20270 = vst [vmem:[#allocation320_spill] sm:$0xff] %v14307_v36  ;;  %20271 = vst [vmem:[#allocation321_spill] sm:$0xff] %v14309_v49  ;;  %v1419_v15 = vsel %vm1380_vm7, %v1417_v0, %v19869_v25 }
 0x258   :  { %2769 = vrot.lane.b32.xlu0 %v20272_v17, %s11971_s30  ;;  %2771 = vrot.lane.b32.xlu1 %v20273_v22, %s11971_s30  ;;  %v14318_v12 = vadd.f32 %v1419_v15, %v1247_v43  ;;  %v20282_v15 = vld [vmem:[#allocation26_spill] sm:$0xff] }
 0x25a   :  { %20274 = vst [vmem:[#allocation8_spill] sm:$0xff] %v14318_v12  ;;  %v14320_v10 = vpop.permute.xlu0 %2432  ;;  %v14322_v53 = vpop.permute.xlu1 %2651  ;;  %v20283_v12 = vld [vmem:[#allocation19_spill] sm:$0xff] }
 0x25b   :  { %20275 = vst [vmem:[#allocation6_spill] sm:$0xff] %v14320_v10  ;;  %20276 = vst [vmem:[#allocation322_spill] sm:$0xff] %v14322_v53  ;;  %v20287_v10 = vld [vmem:[#allocation36_spill] sm:$0xff] }
 0x25c   :  { %2773 = vrot.lane.b32.xlu0 %v20277_v33, %s11971_s30  ;;  %2775 = vrot.lane.b32.xlu1 %v20278_v39, %s11971_s30 }
 0x25e   :  { %v14328_v0 = vpop.permute.xlu0 %2649  ;;  %v14330_v25 = vpop.permute.xlu1 %2223 }
 0x25f   :  { %20279 = vst [vmem:[#allocation16_spill] sm:$0xff] %v14328_v0  ;;  %20280 = vst [vmem:[#allocation10_spill] sm:$0xff] %v14330_v25  ;;  %v14332_v17 = vpop.f32.mrb[38].mxu1 }
 0x260   :  { %20281 = vst [vmem:[#allocation323_spill] sm:$0xff] %v14332_v17  ;;  %v19874_v22 = vrot.slane %v14332_v17, 1  ;;  %v1267_v43 = vpop.f32.mrb[39].mxu1  ;;  %2777 = vrot.lane.b32.xlu0 %v20282_v15, %s11971_s30  ;;  %2779 = vrot.lane.b32.xlu1 %v20283_v12, %s11971_s30 }
 0x261   :  { %v1420_v20 = vrot.slane %v1267_v43, 1 }
 0x262   :  { %v14339_v36 = vpop.permute.xlu0 %2229  ;;  %v14341_v49 = vpop.permute.xlu1 %2438 }
 0x263   :  { %20284 = vst [vmem:[#allocation26_spill] sm:$0xff] %v14339_v36  ;;  %20285 = vst [vmem:[#allocation19_spill] sm:$0xff] %v14341_v49  ;;  %v1422_v25 = vsel %vm1380_vm7, %v1420_v20, %v19874_v22  ;;  %v20291_v36 = vld [vmem:[#allocation46_spill] sm:$0xff]  ;;  %v20292_v49 = vld [vmem:[#allocation39_spill] sm:$0xff] }
 0x264   :  { %v14346_v16 = vadd.f32 %v1422_v25, %v1267_v43  ;;  %2781 = vrot.lane.b32.xlu0 %v20287_v10, %s11971_s30  ;;  %2783 = vrot.lane.b32.xlu1 %v20288_v24, %s11971_s30 }
 0x266   :  { %20286 = vst [vmem:[#allocation324_spill] sm:$0xff] %v14346_v16  ;;  %v14352_v53 = vpop.permute.xlu0 %2436  ;;  %v14354_v0 = vpop.permute.xlu1 %2655  ;;  %v20296_v16 = vld [vmem:[#allocation49_spill] sm:$0xff] }
 0x267   :  { %20289 = vst [vmem:[#allocation36_spill] sm:$0xff] %v14352_v53  ;;  %20290 = vst [vmem:[#allocation29_spill] sm:$0xff] %v14354_v0 }
 0x268   :  { %2785 = vrot.lane.b32.xlu0 %v20291_v36, %s11971_s30  ;;  %2787 = vrot.lane.b32.xlu1 %v20292_v49, %s11971_s30 }
 0x26a   :  { %v14360_v17 = vpop.permute.xlu0 %2653  ;;  %v14362_v20 = vpop.permute.xlu1 %2227 }
 0x26b   :  { %20293 = vst [vmem:[#allocation46_spill] sm:$0xff] %v14360_v17  ;;  %20294 = vst [vmem:[#allocation39_spill] sm:$0xff] %v14362_v20  ;;  %v14364_v25 = vpop.f32.mrb[40].mxu1 }
 0x26c   :  { %20295 = vst [vmem:[#allocation325_spill] sm:$0xff] %v14364_v25  ;;  %v19877_v43 = vrot.slane %v14364_v25, 1  ;;  %v1287_v22 = vpop.f32.mrb[41].mxu1  ;;  %2789 = vrot.lane.b32.xlu0 %v12962_v62, %s11971_s30  ;;  %2791 = vrot.lane.b32.xlu1 %v20296_v16, %s11971_s30 }
 0x26d   :  { %v1423_v53 = vrot.slane %v1287_v22, 1 }
 0x26e   :  { %v14371_v0 = vpop.permute.xlu0 %2233  ;;  %v14373_v38 = vpop.permute.xlu1 %2442 }
 0x26f   :  { %20297 = vst [vmem:[#allocation49_spill] sm:$0xff] %v14371_v0  ;;  %20298 = vst [vmem:[#allocation326_spill] sm:$0xff] %v14373_v38  ;;  %v1425_v20 = vsel %vm1380_vm7, %v1423_v53, %v19877_v43 }
 0x270   :  { %v14378_v17 = vadd.f32 %v1425_v20, %v1287_v22  ;;  %2793 = vrot.lane.b32.xlu0 %v13028_v57, %s11971_s30  ;;  %2795 = vrot.lane.b32.xlu1 %v20300_v18, %s11971_s30 }
 0x272   :  { %20299 = vst [vmem:[#allocation327_spill] sm:$0xff] %v14378_v17  ;;  %v14384_v30 = vpop.permute.xlu0 %2440  ;;  %v14386_v8 = vpop.permute.xlu1 %2231 }
 0x273   :  { %20301 = vst [vmem:[#allocation56_spill] sm:$0xff] %v14384_v30  ;;  %20302 = vst [vmem:[#allocation328_spill] sm:$0xff] %v14386_v8 }
 0x274   :  { %2797 = vrot.lane.b32.xlu0 %v13102_v32, %s11971_s30  ;;  %2799 = vrot.lane.b32.xlu1 %v13045_v26, %s11971_s30 }
 0x276   :  { %v14392_v25 = vpop.permute.xlu0 %2657  ;;  %v14394_v53 = vpop.permute.xlu1 %2446 }
 0x277   :  { %20303 = vst [vmem:[#allocation329_spill] sm:$0xff] %v14392_v25  ;;  %20304 = vst [vmem:[#allocation330_spill] sm:$0xff] %v14394_v53  ;;  %v14396_v22 = vpop.f32.mrb[42].mxu1 }
 0x278   :  { %20305 = vst [vmem:[#allocation331_spill] sm:$0xff] %v14396_v22  ;;  %v19880_v20 = vrot.slane %v14396_v22, 1  ;;  %v1307_v43 = vpop.f32.mrb[43].mxu1  ;;  %2801 = vrot.lane.b32.xlu0 %v13176_v40, %s11971_s30  ;;  %2803 = vrot.lane.b32.xlu1 %v13119_v45, %s11971_s30 }
 0x279   :  { %v1426_v17 = vrot.slane %v1307_v43, 1 }
 0x27a   :  { %v14403_v8 = vpop.permute.xlu0 %2237  ;;  %v14405_v0 = vpop.permute.xlu1 %2235 }
 0x27b   :  { %20306 = vst [vmem:[#allocation332_spill] sm:$0xff] %v14403_v8  ;;  %20307 = vst [vmem:[#allocation333_spill] sm:$0xff] %v14405_v0  ;;  %v1428_v53 = vsel %vm1380_vm7, %v1426_v17, %v19880_v20 }
 0x27c   :  { %v14410_v38 = vadd.f32 %v1428_v53, %v1307_v43  ;;  %2805 = vrot.lane.b32.xlu0 %v13250_v13, %s11971_s30  ;;  %2807 = vrot.lane.b32.xlu1 %v13193_v14, %s11971_s30 }
 0x27e   :  { %20308 = vst [vmem:[#allocation334_spill] sm:$0xff] %v14410_v38  ;;  %v14416_v30 = vpop.permute.xlu0 %2444  ;;  %v14418_v25 = vpop.permute.xlu1 %2450 }
 0x27f   :  { %20309 = vst [vmem:[#allocation335_spill] sm:$0xff] %v14416_v30  ;;  %20310 = vst [vmem:[#allocation336_spill] sm:$0xff] %v14418_v25 }
 0x280   :  { %2809 = vrot.lane.b32.xlu0 %v13308_v4, %s11971_s30  ;;  %2811 = vrot.lane.b32.xlu1 %v13263_v3, %s11971_s30 }
 0x282   :  { %v14424_v22 = vpop.permute.xlu0 %2241  ;;  %v14426_v17 = vpop.permute.xlu1 %2239 }
 0x283   :  { %20311 = vst [vmem:[#allocation337_spill] sm:$0xff] %v14424_v22  ;;  %20312 = vst [vmem:[#allocation338_spill] sm:$0xff] %v14426_v17 }
 0x284   :  { %2813 = vrot.lane.b32.xlu0 %v13366_v35, %s11971_s30  ;;  %2815 = vrot.lane.b32.xlu1 %v13321_v23, %s11971_s30 }
 0x286   :  { %v14432_v43 = vpop.permute.xlu0 %2448  ;;  %v14434_v53 = vpop.permute.xlu1 %2454 }
 0x287   :  { %20313 = vst [vmem:[#allocation339_spill] sm:$0xff] %v14432_v43  ;;  %20314 = vst [vmem:[#allocation340_spill] sm:$0xff] %v14434_v53 }
 0x288   :  { %2817 = vrot.lane.b32.xlu0 %v13433_v55, %s11971_s30  ;;  %2819 = vrot.lane.b32.xlu1 %v13379_v21, %s11971_s30 }
 0x28a   :  { %v14440_v20 = vpop.permute.xlu0 %2245  ;;  %v14442_v38 = vpop.permute.xlu1 %2243 }
 0x28b   :  { %20315 = vst [vmem:[#allocation341_spill] sm:$0xff] %v14440_v20  ;;  %20316 = vst [vmem:[#allocation342_spill] sm:$0xff] %v14442_v38 }
 0x28c   :  { %2821 = vrot.lane.b32.xlu0 %v13485_v31, %s11971_s30  ;;  %2823 = vrot.lane.b32.xlu1 %v13446_v9, %s11971_s30 }
 0x28e   :  { %v14448_v17 = vpop.permute.xlu0 %2452  ;;  %v14450_v22 = vpop.permute.xlu1 %2458 }
 0x28f   :  { %20317 = vst [vmem:[#allocation343_spill] sm:$0xff] %v14448_v17  ;;  %20318 = vst [vmem:[#allocation344_spill] sm:$0xff] %v14450_v22 }
 0x290   :  { %2825 = vrot.lane.b32.xlu0 %v13527_v1, %s11971_s30  ;;  %2827 = vrot.lane.b32.xlu1 %v13498_v61, %s11971_s30 }
 0x292   :  { %v14456_v53 = vpop.permute.xlu0 %2249  ;;  %v14458_v20 = vpop.permute.xlu1 %2247 }
 0x293   :  { %20319 = vst [vmem:[#allocation345_spill] sm:$0xff] %v14456_v53  ;;  %20320 = vst [vmem:[#allocation346_spill] sm:$0xff] %v14458_v20 }
 0x294   :  { %2829 = vrot.lane.b32.xlu0 %v13562_v51, %s11971_s30  ;;  %2831 = vrot.lane.b32.xlu1 %v13559_v44, %s11971_s30 }
 0x296   :  { %v14464_v38 = vpop.permute.xlu0 %2456  ;;  %v14466_v17 = vpop.permute.xlu1 %2462 }
 0x297   :  { %20321 = vst [vmem:[#allocation347_spill] sm:$0xff] %v14464_v38  ;;  %20322 = vst [vmem:[#allocation348_spill] sm:$0xff] %v14466_v17 }
 0x298   :  { %2833 = vrot.lane.b32.xlu0 %v13618_v37, %s11971_s30  ;;  %2835 = vrot.lane.b32.xlu1 %v13593_v2, %s11971_s30 }
 0x29a   :  { %v14472_v22 = vpop.permute.xlu0 %2460  ;;  %v14474_v53 = vpop.permute.xlu1 %2659 }
 0x29b   :  { %20323 = vst [vmem:[#allocation349_spill] sm:$0xff] %v14472_v22  ;;  %20324 = vst [vmem:[#allocation350_spill] sm:$0xff] %v14474_v53 }
 0x29c   :  { %2837 = vrot.lane.b32.xlu0 %v13675_v50, %s11971_s30  ;;  %2839 = vrot.lane.b32.xlu1 %v13632_v58, %s11971_s30 }
 0x29e   :  { %v14480_v20 = vpop.permute.xlu0 %2661  ;;  %v14482_v38 = vpop.permute.xlu1 %2663 }
 0x29f   :  { %20325 = vst [vmem:[#allocation351_spill] sm:$0xff] %v14480_v20  ;;  %20326 = vst [vmem:[#allocation352_spill] sm:$0xff] %v14482_v38  ;;  %v20355_v38 = vld [vmem:[#allocation34_spill] sm:$0xff] }
 0x2a0   :  { %2841 = vrot.lane.b32.xlu0 %v13730_v54, %s11971_s30  ;;  %2843 = vrot.lane.b32.xlu1 %v13690_v46, %s11971_s30  ;;  %v20368_v46 = vld [vmem:[#allocation54_spill] sm:$0xff] }
 0x2a2   :  { %v14488_v37 = vpop.permute.xlu0 %2665  ;;  %v14490_v2 = vpop.permute.xlu1 %2667 }
 0x2a3   :  { %20327 = vst [vmem:[#allocation353_spill] sm:$0xff] %v14488_v37  ;;  %20328 = vst [vmem:[#allocation354_spill] sm:$0xff] %v14490_v2  ;;  %v720_v2 = vld [vmem:[%s20333_s21 + $0x18] sm:$0xff]  ;;  %v725_v37 = vld [vmem:[%s20333_s21 + $0x40] sm:$0xff] }
 0x2a4   :  { %2845 = vrot.lane.b32.xlu0 %v13788_v48, %s11971_s30  ;;  %2847 = vrot.lane.b32.xlu1 %v13748_v56, %s11971_s30 }
 0x2a6   :  { %v14496_v17 = vpop.permute.xlu0 %2669  ;;  %v14498_v22 = vpop.permute.xlu1 %2671 }
 0x2a7   :  { %20329 = vst [vmem:[#allocation355_spill] sm:$0xff] %v14496_v17  ;;  %20330 = vst [vmem:[#allocation356_spill] sm:$0xff] %v14498_v22  ;;  %v717_v22 = vld [vmem:[%s20333_s21] sm:$0xff]  ;;  %v718_v17 = vld [vmem:[%s20333_s21 + $0x8] sm:$0xff] }
 0x2a8   :  { %2849 = vrot.lane.b32.xlu0 %v13846_v42, %s11971_s30  ;;  %2851 = vrot.lane.b32.xlu1 %v13806_v5, %s11971_s30  ;;  %v10889_v43 = vpack.c.bf16 %v718_v17, %v717_v22  ;;  %v20362_v5 = vld [vmem:[#allocation40_spill] sm:$0xff] }
 0x2aa   :  { %v14504_v25 = vpop.permute.xlu0 %2673  ;;  %v14506_v8 = vpop.permute.xlu1 %2675  ;;  %10890 = vmatprep.subr.bf16.mxu0 %v10889_v43 }
 0x2ab   :  { %20331 = vst [vmem:[#allocation357_spill] sm:$0xff] %v14504_v25  ;;  %20332 = vst [vmem:[#allocation358_spill] sm:$0xff] %v14506_v8  ;;  %v719_v8 = vld [vmem:[%s20333_s21 + $0x10] sm:$0xff]  ;;  %10892 = vmatpush3.bf16.msra.mxu0 %v10889_v43  ;;  %v722_v43 = vld [vmem:[%s20333_s21 + $0x28] sm:$0xff] }
 0x2ac   :  { %2853 = vrot.lane.b32.xlu0 %v13884_v27, %s11971_s30  ;;  %2855 = vrot.lane.b32.xlu1 %v13865_v34, %s11971_s30  ;;  %v10893_v22 = vpack.c.bf16 %v720_v2, %v719_v8 }
 0x2ae   :  { %v14518_v0 = vpop.permute.xlu0 %2677  ;;  %v14520_v25 = vpop.permute.xlu1 %2679  ;;  %10894 = vmatprep.subr.bf16.mxu0 %v10893_v22 }
 0x2af   :  { %20334 = vst [vmem:[#allocation359_spill] sm:$0xff] %v14518_v0  ;;  %20335 = vst [vmem:[#allocation360_spill] sm:$0xff] %v14520_v25  ;;  %v721_v0 = vld [vmem:[%s20333_s21 + $0x20] sm:$0xff]  ;;  %10896 = vmatpush3.bf16.msra.mxu0 %v10893_v22  ;;  %v724_v22 = vld [vmem:[%s20333_s21 + $0x38] sm:$0xff] }
 0x2b0   :  { %2857 = vrot.lane.b32.xlu0 %v13928_v11, %s11971_s30  ;;  %2859 = vrot.lane.b32.xlu1 %v13918_v41, %s11971_s30  ;;  %v10897_v8 = vpack.c.bf16 %v722_v43, %v721_v0  ;;  %v20359_v41 = vld [vmem:[#allocation44_spill] sm:$0xff] }
 0x2b2   :  { %v14532_v17 = vpop.permute.xlu0 %2681  ;;  %v14534_v25 = vpop.permute.xlu1 %2683  ;;  %10898 = vmatprep.subr.bf16.mxu0 %v10897_v8 }
 0x2b3   :  { %20336 = vst [vmem:[#allocation361_spill] sm:$0xff] %v14532_v17  ;;  %20337 = vst [vmem:[#allocation362_spill] sm:$0xff] %v14534_v25  ;;  %v723_v17 = vld [vmem:[%s20333_s21 + $0x30] sm:$0xff]  ;;  %10900 = vmatpush3.bf16.msra.mxu0 %v10897_v8  ;;  %v20345_v8 = vld [vmem:[#allocation9_spill] sm:$0xff]  ;;  %s11974_s21 = smov 56  }
 0x2b4   :  { %2861 = vrot.lane.b32.xlu0 %v13965_v60, %s11971_s30  ;;  %2863 = vrot.lane.b32.xlu1 %v13956_v52, %s11971_s30  ;;  %v10901_v0 = vpack.c.bf16 %v724_v22, %v723_v17  ;;  %v20346_v22 = vld [vmem:[#allocation27_spill] sm:$0xff] }
 0x2b6   :  { %v14546_v2 = vpop.permute.xlu0 %2685  ;;  %v14548_v25 = vpop.permute.xlu1 %2687  ;;  %10902 = vmatprep.subr.bf16.mxu0 %v10901_v0 }
 0x2b7   :  { %20338 = vst [vmem:[#allocation363_spill] sm:$0xff] %v14546_v2  ;;  %20339 = vst [vmem:[#allocation364_spill] sm:$0xff] %v14548_v25  ;;  %v20342_v2 = vld [vmem:[#allocation13_spill] sm:$0xff]  ;;  %10904 = vmatpush3.bf16.msra.mxu0 %v10901_v0  ;;  %v20349_v0 = vld [vmem:[#allocation24_spill] sm:$0xff] }
 0x2b8   :  { %2865 = vrot.lane.b32.xlu0 %v14004_v19, %s11971_s30  ;;  %2867 = vrot.lane.b32.xlu1 %v13996_v47, %s11971_s30  ;;  %v20357_v47 = vld [vmem:[#allocation30_spill] sm:$0xff] }
 0x2b9   :  { %10652 = vmatprep.subr.mxu0 %v725_v37 }
 0x2ba   :  { %v14560_v43 = vpop.permute.xlu0 %2689  ;;  %v14562_v25 = vpop.permute.xlu1 %2691 }
 0x2bb   :  { %20340 = vst [vmem:[#allocation365_spill] sm:$0xff] %v14560_v43  ;;  %20341 = vst [vmem:[#allocation366_spill] sm:$0xff] %v14562_v25  ;;  %10653 = vmatpush3.msra.mxu0 %v725_v37  ;;  %v20352_v37 = vld [vmem:[#allocation23_spill] sm:$0xff] }
 0x2bc   :  { %2869 = vrot.lane.b32.xlu0 %v14046_v63, %s11971_s30  ;;  %2963 = vrot.lane.b32.xlu1 %v20342_v2, %s11972_s25 }
 0x2be   :  { %v14571_v30 = vpop.permute.xlu0 %2693  ;;  %v14573_v17 = vpop.permute.xlu1 %2695 }
 0x2bf   :  { %20343 = vst [vmem:[#allocation13_spill] sm:$0xff] %v14571_v30  ;;  %20344 = vst [vmem:[#allocation367_spill] sm:$0xff] %v14573_v17 }
 0x2c0   :  { %2965 = vrot.lane.b32.xlu0 %v20345_v8, %s11972_s25  ;;  %3155 = vrot.lane.b32.xlu1 %v20346_v22, %s11973_s27 }
 0x2c2   :  { %v14579_v25 = vpop.permute.xlu0 %2697  ;;  %v14581_v2 = vpop.permute.xlu1 %2699 }
 0x2c3   :  { %20347 = vst [vmem:[#allocation9_spill] sm:$0xff] %v14579_v25  ;;  %20348 = vst [vmem:[#allocation27_spill] sm:$0xff] %v14581_v2  ;;  %v20353_v25 = vld [vmem:[#allocation20_spill] sm:$0xff] }
 0x2c4   :  { %3157 = vrot.lane.b32.xlu0 %v20349_v0, %s11973_s27  ;;  %3338 = vrot.lane.b32.xlu1 %v20277_v33, %s11974_s21 }
 0x2c6   :  { %v14587_v17 = vpop.permute.xlu0 %2701  ;;  %v14589_v30 = vpop.permute.xlu1 %2703 }
 0x2c7   :  { %20350 = vst [vmem:[#allocation24_spill] sm:$0xff] %v14587_v17  ;;  %20351 = vst [vmem:[#allocation368_spill] sm:$0xff] %v14589_v30 }
 0x2c8   :  { %3340 = vrot.lane.b32.xlu0 %v20278_v39, %s11974_s21  ;;  %3521 = vrot.lane.b32.xlu1 %v20352_v37, %s11975_s29  ;;  %v20354_v39 = vld [vmem:[#allocation37_spill] sm:$0xff] }
 0x2ca   :  { %v14595_v8 = vpop.permute.xlu0 %2769  ;;  %v14597_v2 = vpop.permute.xlu1 %2771 }
 0x2cc   :  { %3523 = vrot.lane.b32.xlu0 %v20353_v25, %s11975_s29  ;;  %2967 = vrot.lane.b32.xlu1 %v20352_v37, %s11972_s25 }
 0x2ce   :  { %v14603_v33 = vpop.permute.xlu0 %2773  ;;  %v14605_v30 = vpop.permute.xlu1 %2775 }
 0x2d0   :  { %2969 = vrot.lane.b32.xlu0 %v20353_v25, %s11972_s25  ;;  %3159 = vrot.lane.b32.xlu1 %v20354_v39, %s11973_s27  ;;  %v20356_v25 = vld [vmem:[#allocation33_spill] sm:$0xff] }
 0x2d2   :  { %v14611_v17 = vpop.permute.xlu0 %2777  ;;  %v14613_v43 = vpop.permute.xlu1 %2779 }
 0x2d4   :  { %3161 = vrot.lane.b32.xlu0 %v20355_v38, %s11973_s27  ;;  %3342 = vrot.lane.b32.xlu1 %v20282_v15, %s11974_s21 }
 0x2d6   :  { %v14619_v37 = vpop.permute.xlu0 %2781  ;;  %v14621_v20 = vpop.permute.xlu1 %2783 }
 0x2d8   :  { %3344 = vrot.lane.b32.xlu0 %v20283_v12, %s11974_s21  ;;  %3525 = vrot.lane.b32.xlu1 %v20356_v25, %s11975_s29  ;;  %v20358_v12 = vld [vmem:[#allocation47_spill] sm:$0xff] }
 0x2da   :  { %v14627_v53 = vpop.permute.xlu0 %2785  ;;  %v14629_v63 = vpop.permute.xlu1 %2787 }
 0x2dc   :  { %2971 = vrot.lane.b32.xlu0 %v20356_v25, %s11972_s25  ;;  %3527 = vrot.lane.b32.xlu1 %v20357_v47, %s11975_s29 }
 0x2de   :  { %v14635_v15 = vpop.permute.xlu0 %2789  ;;  %v14637_v19 = vpop.permute.xlu1 %2791 }
 0x2e0   :  { %2973 = vrot.lane.b32.xlu0 %v20357_v47, %s11972_s25  ;;  %3163 = vrot.lane.b32.xlu1 %v20358_v12, %s11973_s27  ;;  %v20360_v47 = vld [vmem:[#allocation43_spill] sm:$0xff] }
 0x2e2   :  { %v14643_v52 = vpop.permute.xlu0 %2793  ;;  %v14645_v60 = vpop.permute.xlu1 %2795 }
 0x2e4   :  { %3165 = vrot.lane.b32.xlu0 %v20359_v41, %s11973_s27  ;;  %3346 = vrot.lane.b32.xlu1 %v20287_v10, %s11974_s21 }
 0x2e6   :  { %v14651_v25 = vpop.permute.xlu0 %2797  ;;  %v14653_v11 = vpop.permute.xlu1 %2799 }
 0x2e8   :  { %3348 = vrot.lane.b32.xlu0 %v20288_v24, %s11974_s21  ;;  %3529 = vrot.lane.b32.xlu1 %v20360_v47, %s11975_s29  ;;  %v20365_v24 = vld [vmem:[#allocation55_spill] sm:$0xff] }
 0x2ea   :  { %v14659_v34 = vpop.permute.xlu0 %2801  ;;  %v14661_v27 = vpop.permute.xlu1 %2803 }
 0x2eb   :  { %20361 = vst [vmem:[#allocation23_spill] sm:$0xff] %v14661_v27 }
 0x2ec   :  { %3531 = vrot.lane.b32.xlu0 %v20362_v5, %s11975_s29  ;;  %2975 = vrot.lane.b32.xlu1 %v20360_v47, %s11972_s25 }
 0x2ee   :  { %v14667_v10 = vpop.permute.xlu0 %2805  ;;  %v14669_v42 = vpop.permute.xlu1 %2807 }
 0x2ef   :  { %20363 = vst [vmem:[#allocation20_spill] sm:$0xff] %v14667_v10  ;;  %20364 = vst [vmem:[#allocation37_spill] sm:$0xff] %v14669_v42  ;;  %v20413_v10 = vld [vmem:[#allocation89_spill] sm:$0xff] }
 0x2f0   :  { %2977 = vrot.lane.b32.xlu0 %v20362_v5, %s11972_s25  ;;  %3167 = vrot.lane.b32.xlu1 %v20365_v24, %s11973_s27  ;;  %v20371_v5 = vld [vmem:[#allocation51_spill] sm:$0xff] }
 0x2f2   :  { %v14675_v56 = vpop.permute.xlu0 %2809  ;;  %v14677_v48 = vpop.permute.xlu1 %2811 }
 0x2f3   :  { %20366 = vst [vmem:[#allocation34_spill] sm:$0xff] %v14675_v56  ;;  %20367 = vst [vmem:[#allocation33_spill] sm:$0xff] %v14677_v48  ;;  %v20374_v48 = vld [vmem:[#allocation50_spill] sm:$0xff] }
 0x2f4   :  { %3169 = vrot.lane.b32.xlu0 %v20368_v46, %s11973_s27  ;;  %3350 = vrot.lane.b32.xlu1 %v20291_v36, %s11974_s21 }
 0x2f6   :  { %v14683_v47 = vpop.permute.xlu0 %2813  ;;  %v14685_v54 = vpop.permute.xlu1 %2815 }
 0x2f7   :  { %20369 = vst [vmem:[#allocation30_spill] sm:$0xff] %v14683_v47  ;;  %20370 = vst [vmem:[#allocation47_spill] sm:$0xff] %v14685_v54 }
 0x2f8   :  { %3352 = vrot.lane.b32.xlu0 %v20292_v49, %s11974_s21  ;;  %3533 = vrot.lane.b32.xlu1 %v20371_v5, %s11975_s29  ;;  %v20377_v49 = vld [vmem:[#allocation62_spill] sm:$0xff] }
 0x2fa   :  { %v14691_v42 = vpop.permute.xlu0 %2817  ;;  %v14693_v56 = vpop.permute.xlu1 %2819 }
 0x2fb   :  { %20372 = vst [vmem:[#allocation44_spill] sm:$0xff] %v14691_v42  ;;  %20373 = vst [vmem:[#allocation43_spill] sm:$0xff] %v14693_v56  ;;  %v20380_v56 = vld [vmem:[#allocation59_spill] sm:$0xff] }
 0x2fc   :  { %2979 = vrot.lane.b32.xlu0 %v20371_v5, %s11972_s25  ;;  %3535 = vrot.lane.b32.xlu1 %v20374_v48, %s11975_s29 }
 0x2fe   :  { %v14699_v36 = vpop.permute.xlu0 %2821  ;;  %v14701_v47 = vpop.permute.xlu1 %2823 }
 0x2ff   :  { %20375 = vst [vmem:[#allocation40_spill] sm:$0xff] %v14699_v36  ;;  %20376 = vst [vmem:[#allocation55_spill] sm:$0xff] %v14701_v47 }
 0x300   :  { %2981 = vrot.lane.b32.xlu0 %v20374_v48, %s11972_s25  ;;  %3171 = vrot.lane.b32.xlu1 %v20377_v49, %s11973_s27  ;;  %v20383_v48 = vld [vmem:[#allocation58_spill] sm:$0xff] }
 0x302   :  { %v14707_v54 = vpop.permute.xlu0 %2825  ;;  %v14709_v42 = vpop.permute.xlu1 %2827 }
 0x303   :  { %20378 = vst [vmem:[#allocation54_spill] sm:$0xff] %v14707_v54  ;;  %20379 = vst [vmem:[#allocation51_spill] sm:$0xff] %v14709_v42  ;;  %v20386_v42 = vld [vmem:[#allocation57_spill] sm:$0xff] }
 0x304   :  { %3173 = vrot.lane.b32.xlu0 %v20380_v56, %s11973_s27  ;;  %3354 = vrot.lane.b32.xlu1 %v12962_v62, %s11974_s21 }
 0x306   :  { %v14715_v5 = vpop.permute.xlu0 %2829  ;;  %v14717_v36 = vpop.permute.xlu1 %2831 }
 0x307   :  { %20381 = vst [vmem:[#allocation50_spill] sm:$0xff] %v14715_v5  ;;  %20382 = vst [vmem:[#allocation62_spill] sm:$0xff] %v14717_v36 }
 0x308   :  { %3356 = vrot.lane.b32.xlu0 %v20296_v16, %s11974_s21  ;;  %3537 = vrot.lane.b32.xlu1 %v20383_v48, %s11975_s29  ;;  %v20389_v16 = vld [vmem:[#allocation72_spill] sm:$0xff] }
 0x30a   :  { %v14723_v47 = vpop.permute.xlu0 %2833  ;;  %v14725_v54 = vpop.permute.xlu1 %2835 }
 0x30b   :  { %20384 = vst [vmem:[#allocation59_spill] sm:$0xff] %v14723_v47  ;;  %20385 = vst [vmem:[#allocation58_spill] sm:$0xff] %v14725_v54  ;;  %v20392_v54 = vld [vmem:[#allocation69_spill] sm:$0xff] }
 0x30c   :  { %3539 = vrot.lane.b32.xlu0 %v20386_v42, %s11975_s29  ;;  %2983 = vrot.lane.b32.xlu1 %v20383_v48, %s11972_s25 }
 0x30e   :  { %v14731_v62 = vpop.permute.xlu0 %2837  ;;  %v14733_v5 = vpop.permute.xlu1 %2839 }
 0x30f   :  { %20387 = vst [vmem:[#allocation57_spill] sm:$0xff] %v14731_v62  ;;  %20388 = vst [vmem:[#allocation369_spill] sm:$0xff] %v14733_v5 }
 0x310   :  { %2985 = vrot.lane.b32.xlu0 %v20386_v42, %s11972_s25  ;;  %3175 = vrot.lane.b32.xlu1 %v20389_v16, %s11973_s27  ;;  %v20395_v42 = vld [vmem:[#allocation68_spill] sm:$0xff] }
 0x312   :  { %v14739_v36 = vpop.permute.xlu0 %2841  ;;  %v14741_v47 = vpop.permute.xlu1 %2843 }
 0x313   :  { %20390 = vst [vmem:[#allocation72_spill] sm:$0xff] %v14739_v36  ;;  %20391 = vst [vmem:[#allocation370_spill] sm:$0xff] %v14741_v47  ;;  %v20398_v47 = vld [vmem:[#allocation65_spill] sm:$0xff] }
 0x314   :  { %3177 = vrot.lane.b32.xlu0 %v20392_v54, %s11973_s27  ;;  %3358 = vrot.lane.b32.xlu1 %v13028_v57, %s11974_s21 }
 0x316   :  { %v14747_v48 = vpop.permute.xlu0 %2845  ;;  %v14749_v62 = vpop.permute.xlu1 %2847 }
 0x317   :  { %20393 = vst [vmem:[#allocation69_spill] sm:$0xff] %v14747_v48  ;;  %20394 = vst [vmem:[#allocation371_spill] sm:$0xff] %v14749_v62 }
 0x318   :  { %3360 = vrot.lane.b32.xlu0 %v20300_v18, %s11974_s21  ;;  %3541 = vrot.lane.b32.xlu1 %v20395_v42, %s11975_s29  ;;  %v20401_v18 = vld [vmem:[#allocation82_spill] sm:$0xff] }
 0x31a   :  { %v14755_v5 = vpop.permute.xlu0 %2849  ;;  %v14757_v36 = vpop.permute.xlu1 %2851 }
 0x31b   :  { %20396 = vst [vmem:[#allocation68_spill] sm:$0xff] %v14755_v5  ;;  %20397 = vst [vmem:[#allocation372_spill] sm:$0xff] %v14757_v36  ;;  %v20404_v36 = vld [vmem:[#allocation79_spill] sm:$0xff] }
 0x31c   :  { %2987 = vrot.lane.b32.xlu0 %v20395_v42, %s11972_s25  ;;  %3543 = vrot.lane.b32.xlu1 %v20398_v47, %s11975_s29 }
 0x31e   :  { %v14763_v57 = vpop.permute.xlu0 %2853  ;;  %v14765_v48 = vpop.permute.xlu1 %2855 }
 0x31f   :  { %20399 = vst [vmem:[#allocation65_spill] sm:$0xff] %v14763_v57  ;;  %20400 = vst [vmem:[#allocation373_spill] sm:$0xff] %v14765_v48 }
 0x320   :  { %2989 = vrot.lane.b32.xlu0 %v20398_v47, %s11972_s25  ;;  %3179 = vrot.lane.b32.xlu1 %v20401_v18, %s11973_s27  ;;  %v20407_v47 = vld [vmem:[#allocation78_spill] sm:$0xff] }
 0x322   :  { %v14771_v62 = vpop.permute.xlu0 %2857  ;;  %v14773_v5 = vpop.permute.xlu1 %2859 }
 0x323   :  { %20402 = vst [vmem:[#allocation82_spill] sm:$0xff] %v14771_v62  ;;  %20403 = vst [vmem:[#allocation374_spill] sm:$0xff] %v14773_v5  ;;  %v20410_v5 = vld [vmem:[#allocation75_spill] sm:$0xff] }
 0x324   :  { %3181 = vrot.lane.b32.xlu0 %v20404_v36, %s11973_s27  ;;  %3362 = vrot.lane.b32.xlu1 %v13102_v32, %s11974_s21 }
 0x326   :  { %v14779_v42 = vpop.permute.xlu0 %2861  ;;  %v14781_v57 = vpop.permute.xlu1 %2863 }
 0x327   :  { %20405 = vst [vmem:[#allocation375_spill] sm:$0xff] %v14779_v42  ;;  %20406 = vst [vmem:[#allocation376_spill] sm:$0xff] %v14781_v57 }
 0x328   :  { %3364 = vrot.lane.b32.xlu0 %v13045_v26, %s11974_s21  ;;  %3545 = vrot.lane.b32.xlu1 %v20407_v47, %s11975_s29  ;;  %v20412_v26 = vld [vmem:[#allocation61_spill] sm:$0xff] }
 0x32a   :  { %v14787_v48 = vpop.permute.xlu0 %2865  ;;  %v14789_v62 = vpop.permute.xlu1 %2867 }
 0x32b   :  { %20408 = vst [vmem:[#allocation78_spill] sm:$0xff] %v14787_v48  ;;  %20409 = vst [vmem:[#allocation377_spill] sm:$0xff] %v14789_v62  ;;  %v3704_v48 = vsel %vm738_vm2, 0.0, %v20412_v26 }
 0x32c   :  { %3547 = vrot.lane.b32.xlu0 %v20410_v5, %s11975_s29  ;;  %2991 = vrot.lane.b32.xlu1 %v20407_v47, %s11972_s25  ;;  %v20414_v47 = vld [vmem:[#allocation60_spill] sm:$0xff] }
 0x32e   :  { %v14795_v32 = vpop.permute.xlu0 %2869  ;;  %v2964_v42 = vpop.permute.xlu1 %2963 }
 0x32f   :  { %20411 = vst [vmem:[#allocation75_spill] sm:$0xff] %v14795_v32  ;;  %v14809_v32 = vsel %vm3765_vm10, %v3704_v48, %v20414_v47  ;;  %v20417_v47 = vld [vmem:[#allocation77_spill] sm:$0xff] }
 0x330   :  { %2993 = vrot.lane.b32.xlu0 %v20410_v5, %s11972_s25  ;;  %3183 = vrot.lane.b32.xlu1 %v13243_v29, %s11973_s27  ;;  %v20415_v5 = vld [vmem:[#allocation83_spill] sm:$0xff] }
 0x331   :  { %v3828_v29 = vsel %vm3827_vm3, %v14809_v32, %v20415_v5  ;;  %v3829_v5 = vsel %vm3827_vm3, %v14809_v32, %v20417_v47 }
 0x332   :  { %v2966_v62 = vpop.permute.xlu0 %2965  ;;  %v3156_v57 = vpop.permute.xlu1 %3155  ;;  %v3893_v50 = vsel %vm3892_vm1, %v3828_v29, %v14595_v8 }
 0x334   :  { %3185 = vrot.lane.b32.xlu0 %v20413_v10, %s11973_s27  ;;  %3366 = vrot.lane.b32.xlu1 %v13176_v40, %s11974_s21  ;;  %v3958_v10 = vsel %vm3957_vm4, %v3893_v50, %v2964_v42  ;;  %v20416_v40 = vld [vmem:[#allocation88_spill] sm:$0xff]  ;;  %v3894_v50 = vsel %vm3892_vm1, %v3829_v5, %v14597_v2 }
 0x335   :  { %v4023_v48 = vsel %vm4022_vm5, %v3958_v10, %v3156_v57  ;;  %v3959_v8 = vsel %vm3957_vm4, %v3894_v50, %v2966_v62  ;;  %v20418_v10 = vld [vmem:[#allocation85_spill] sm:$0xff] }
 0x336   :  { %v3158_v26 = vpop.permute.xlu0 %3157  ;;  %v3339_v58 = vpop.permute.xlu1 %3338 }
 0x337   :  { %v4088_v27 = vsel %vm4087_vm6, %v4023_v48, %v3339_v58  ;;  %v4024_v57 = vsel %vm4022_vm5, %v3959_v8, %v3158_v26  ;;  %v20420_v26 = vld [vmem:[#allocation17_spill] sm:$0xff] }
 0x338   :  { %3368 = vrot.lane.b32.xlu0 %v13119_v45, %s11974_s21  ;;  %3549 = vrot.lane.b32.xlu1 %v20416_v40, %s11975_s29 }
 0x33a   :  { %v3341_v36 = vpop.permute.xlu0 %3340  ;;  %v3522_v29 = vpop.permute.xlu1 %3521 }
 0x33b   :  { %v4153_v45 = vsel %vm4152_vm8, %v4088_v27, %v3522_v29  ;;  %v4089_v58 = vsel %vm4087_vm6, %v4024_v57, %v3341_v36  ;;  %v20421_v36 = vld [vmem:[#allocation76_spill] sm:$0xff]  ;;  %v20423_v57 = vld [vmem:[#allocation14_spill] sm:$0xff] }
 0x33c   :  { %2995 = vrot.lane.b32.xlu0 %v20416_v40, %s11972_s25  ;;  %3551 = vrot.lane.b32.xlu1 %v20418_v10, %s11975_s29  ;;  %v20419_v40 = vld [vmem:[#allocation67_spill] sm:$0xff] }
 0x33d   :  { %10654 = vmatprep.mubr.msk.f32.mxu0 %vm4223_vm9, %v4153_v45  ;;  %v3705_v48 = vsel %vm738_vm2, %v20420_v26, %v20419_v40  ;;  %v20425_v40 = vld [vmem:[#allocation94_spill] sm:$0xff] }
 0x33e   :  { %v3524_v42 = vpop.permute.xlu0 %3523  ;;  %v2968_v47 = vpop.permute.xlu1 %2967  ;;  %v3767_v5 = vsel %vm3765_vm10, %v3705_v48, %v20421_v36 }
 0x33f   :  { %v4154_v2 = vsel %vm4152_vm8, %v4089_v58, %v3524_v42  ;;  %v3830_v29 = vsel %vm3827_vm3, %v3767_v5, %v13300_v7 }
 0x340   :  { %2997 = vrot.lane.b32.xlu0 %v20418_v10, %s11972_s25  ;;  %3187 = vrot.lane.b32.xlu1 %v13305_v28, %s11973_s27  ;;  %v3895_v8 = vsel %vm3892_vm1, %v3830_v29, %v14603_v33  ;;  %v20422_v10 = vld [vmem:[#allocation64_spill] sm:$0xff]  ;;  %v20426_v29 = vld [vmem:[#allocation95_spill] sm:$0xff] }
 0x341   :  { %10655 = vmatmul.mubr.msk.f32.vlgmr.msra.gmra.mrb[52].mxu0 %vm4223_vm9, %v4154_v2  ;;  %v3706_v58 = vsel %vm738_vm2, %v20423_v57, %v20422_v10  ;;  %v3960_v42 = vsel %vm3957_vm4, %v3895_v8, %v2968_v47 }
 0x342   :  { %v2970_v27 = vpop.permute.xlu0 %2969  ;;  %v3160_v62 = vpop.permute.xlu1 %3159 }
 0x343   :  { %v4025_v2 = vsel %vm4022_vm5, %v3960_v42, %v3160_v62  ;;  %v20429_v42 = vld [vmem:[#allocation105_spill] sm:$0xff] }
 0x344   :  { %3189 = vrot.lane.b32.xlu0 %v13290_v6, %s11973_s27  ;;  %3370 = vrot.lane.b32.xlu1 %v13250_v13, %s11974_s21  ;;  %v20424_v13 = vld [vmem:[#allocation70_spill] sm:$0xff] }
 0x345   :  { %v3768_v7 = vsel %vm3765_vm10, %v3706_v58, %v20424_v13  ;;  %v20428_v58 = vld [vmem:[#allocation81_spill] sm:$0xff] }
 0x346   :  { %v3162_v50 = vpop.permute.xlu0 %3161  ;;  %v3343_v45 = vpop.permute.xlu1 %3342  ;;  %v3831_v33 = vsel %vm3827_vm3, %v3768_v7, %v20425_v40  ;;  %v20430_v13 = vld [vmem:[#allocation93_spill] sm:$0xff] }
 0x347   :  { %v4090_v26 = vsel %vm4087_vm6, %v4025_v2, %v3343_v45  ;;  %v3896_v47 = vsel %vm3892_vm1, %v3831_v33, %v14605_v30  ;;  %v20431_v2 = vld [vmem:[#allocation112_spill] sm:$0xff] }
 0x348   :  { %3372 = vrot.lane.b32.xlu0 %v13193_v14, %s11974_s21  ;;  %3553 = vrot.lane.b32.xlu1 %v13287_v59, %s11975_s29  ;;  %v3961_v5 = vsel %vm3957_vm4, %v3896_v47, %v2970_v27  ;;  %v20427_v27 = vld [vmem:[#allocation108_spill] sm:$0xff] }
 0x349   :  { %v4026_v62 = vsel %vm4022_vm5, %v3961_v5, %v3162_v50  ;;  %v3707_v50 = vsel %vm738_vm2, %v20346_v22, %v20428_v58  ;;  %v20436_v58 = vld [vmem:[#allocation101_spill] sm:$0xff] }
 0x34a   :  { %v3345_v48 = vpop.permute.xlu0 %3344  ;;  %v3526_v36 = vpop.permute.xlu1 %3525  ;;  %v3769_v7 = vsel %vm3765_vm10, %v3707_v50, %v20430_v13 }
 0x34b   :  { %v4155_v14 = vsel %vm4152_vm8, %v4090_v26, %v3526_v36  ;;  %v4091_v45 = vsel %vm4087_vm6, %v4026_v62, %v3345_v48  ;;  %v3832_v40 = vsel %vm3827_vm3, %v3769_v7, %v20431_v2  ;;  %v20432_v36 = vld [vmem:[#allocation71_spill] sm:$0xff] }
 0x34c   :  { %3555 = vrot.lane.b32.xlu0 %v20426_v29, %s11975_s29  ;;  %2999 = vrot.lane.b32.xlu1 %v13287_v59, %s11972_s25  ;;  %v3897_v48 = vsel %vm3892_vm1, %v3832_v40, %v14611_v17  ;;  %v3708_v22 = vsel %vm738_vm2, %v20349_v0, %v20432_v36  ;;  %v20435_v62 = vld [vmem:[#allocation107_spill] sm:$0xff]  ;;  %v20440_v36 = vld [vmem:[#allocation106_spill] sm:$0xff] }
 0x34d   :  { %10657 = vmatprep.mubr.msk.f32.mxu0 %vm4223_vm9, %v4155_v14  ;;  %v20434_v14 = vld [vmem:[#allocation87_spill] sm:$0xff] }
 0x34e   :  { %v2972_v8 = vpop.permute.xlu0 %2971  ;;  %v3528_v10 = vpop.permute.xlu1 %3527  ;;  %v3770_v5 = vsel %vm3765_vm10, %v3708_v22, %v20434_v14 }
 0x34f   :  { %v4156_v30 = vsel %vm4152_vm8, %v4091_v45, %v3528_v10  ;;  %v3962_v47 = vsel %vm3957_vm4, %v3897_v48, %v2972_v8  ;;  %v3833_v17 = vsel %vm3827_vm3, %v3770_v5, %v20435_v62  ;;  %v20439_v48 = vld [vmem:[#allocation115_spill] sm:$0xff]  ;;  %v20442_v62 = vld [vmem:[#allocation86_spill] sm:$0xff] }
 0x350   :  { %3001 = vrot.lane.b32.xlu0 %v20426_v29, %s11972_s25  ;;  %3191 = vrot.lane.b32.xlu1 %v20427_v27, %s11973_s27  ;;  %v3898_v8 = vsel %vm3892_vm1, %v3833_v17, %v14613_v43 }
 0x351   :  { %10658 = vmatmul.mubr.msk.f32.gmra.mrb[52].mxu0 %vm4223_vm9, %v4156_v30 }
 0x352   :  { %v2974_v57 = vpop.permute.xlu0 %2973  ;;  %v3164_v59 = vpop.permute.xlu1 %3163 }
 0x353   :  { %v4027_v29 = vsel %vm4022_vm5, %v3962_v47, %v3164_v59  ;;  %v3963_v30 = vsel %vm3957_vm4, %v3898_v8, %v2974_v57  ;;  %v20437_v57 = vld [vmem:[#allocation118_spill] sm:$0xff]  ;;  %v20441_v47 = vld [vmem:[#allocation129_spill] sm:$0xff]  ;;  %v20445_v8 = vld [vmem:[#allocation123_spill] sm:$0xff] }
 0x354   :  { %3193 = vrot.lane.b32.xlu0 %v20429_v42, %s11973_s27  ;;  %3374 = vrot.lane.b32.xlu1 %v13308_v4, %s11974_s21  ;;  %v20433_v4 = vld [vmem:[#allocation104_spill] sm:$0xff] }
 0x356   :  { %v3166_v33 = vpop.permute.xlu0 %3165  ;;  %v3347_v26 = vpop.permute.xlu1 %3346 }
 0x357   :  { %v4092_v45 = vsel %vm4087_vm6, %v4027_v29, %v3347_v26  ;;  %v4028_v59 = vsel %vm4022_vm5, %v3963_v30, %v3166_v33  ;;  %v20438_v26 = vld [vmem:[#allocation97_spill] sm:$0xff] }
 0x358   :  { %3376 = vrot.lane.b32.xlu0 %v13263_v3, %s11974_s21  ;;  %3557 = vrot.lane.b32.xlu1 %v20433_v4, %s11975_s29  ;;  %v3709_v33 = vsel %vm738_vm2, %v20354_v39, %v20438_v26  ;;  %v3710_v39 = vsel %vm738_vm2, %v20355_v38, %v20442_v62 }
 0x359   :  { %v3771_v22 = vsel %vm3765_vm10, %v3709_v33, %v20440_v36  ;;  %v20448_v36 = vld [vmem:[#allocation110_spill] sm:$0xff] }
 0x35a   :  { %v3349_v10 = vpop.permute.xlu0 %3348  ;;  %v3530_v0 = vpop.permute.xlu1 %3529 }
 0x35b   :  { %v4157_v3 = vsel %vm4152_vm8, %v4092_v45, %v3530_v0  ;;  %v4093_v50 = vsel %vm4087_vm6, %v4028_v59, %v3349_v10  ;;  %v20444_v45 = vld [vmem:[#allocation100_spill] sm:$0xff] }
 0x35c   :  { %3003 = vrot.lane.b32.xlu0 %v20433_v4, %s11972_s25  ;;  %3559 = vrot.lane.b32.xlu1 %v20436_v58, %s11975_s29  ;;  %v3834_v4 = vsel %vm3827_vm3, %v3771_v22, %v20441_v47  ;;  %v3772_v10 = vsel %vm3765_vm10, %v3710_v39, %v20444_v45  ;;  %v3711_v22 = vsel %vm738_vm2, %v20358_v12, %v20448_v36  ;;  %v20449_v47 = vld [vmem:[#allocation125_spill] sm:$0xff]  ;;  %v20459_v36 = vld [vmem:[#allocation135_spill] sm:$0xff] }
 0x35d   :  { %10660 = vmatprep.mubr.msk.f32.mxu0 %vm4223_vm9, %v4157_v3  ;;  %v3899_v29 = vsel %vm3892_vm1, %v3834_v4, %v14619_v37  ;;  %v3835_v37 = vsel %vm3827_vm3, %v3772_v10, %v20445_v8  ;;  %v20450_v4 = vld [vmem:[#allocation122_spill] sm:$0xff]  ;;  %v20454_v10 = vld [vmem:[#allocation117_spill] sm:$0xff] }
 0x35e   :  { %v3532_v13 = vpop.permute.xlu0 %3531  ;;  %v2976_v7 = vpop.permute.xlu1 %2975 }
 0x35f   :  { %v4158_v43 = vsel %vm4152_vm8, %v4093_v50, %v3532_v13  ;;  %v3964_v17 = vsel %vm3957_vm4, %v3899_v29, %v2976_v7  ;;  %v20446_v50 = vld [vmem:[#allocation111_spill] sm:$0xff] }
 0x360   :  { %3005 = vrot.lane.b32.xlu0 %v20436_v58, %s11972_s25  ;;  %3195 = vrot.lane.b32.xlu1 %v20437_v57, %s11973_s27  ;;  %v3900_v58 = vsel %vm3892_vm1, %v3835_v37, %v14621_v20  ;;  %v20455_v37 = vld [vmem:[#allocation140_spill] sm:$0xff] }
 0x361   :  { %10661 = vmatmul.mubr.msk.f32.gmra.mrb[54].mxu0 %vm4223_vm9, %v4158_v43 }
 0x362   :  { %v2978_v2 = vpop.permute.xlu0 %2977  ;;  %v3168_v40 = vpop.permute.xlu1 %3167 }
 0x363   :  { %v4029_v0 = vsel %vm4022_vm5, %v3964_v17, %v3168_v40  ;;  %v3965_v59 = vsel %vm3957_vm4, %v3900_v58, %v2978_v2  ;;  %v20447_v2 = vld [vmem:[#allocation128_spill] sm:$0xff] }
 0x364   :  { %3197 = vrot.lane.b32.xlu0 %v20439_v48, %s11973_s27  ;;  %3378 = vrot.lane.b32.xlu1 %v13366_v35, %s11974_s21  ;;  %v20443_v35 = vld [vmem:[#allocation114_spill] sm:$0xff] }
 0x366   :  { %v3170_v14 = vpop.permute.xlu0 %3169  ;;  %v3351_v5 = vpop.permute.xlu1 %3350 }
 0x367   :  { %v4094_v3 = vsel %vm4087_vm6, %v4029_v0, %v3351_v5  ;;  %v4030_v13 = vsel %vm4022_vm5, %v3965_v59, %v3170_v14  ;;  %v3773_v14 = vsel %vm3765_vm10, %v3711_v22, %v20450_v4  ;;  %v20451_v5 = vld [vmem:[#allocation143_spill] sm:$0xff]  ;;  %v20460_v22 = vld [vmem:[#allocation136_spill] sm:$0xff] }
 0x368   :  { %3380 = vrot.lane.b32.xlu0 %v13321_v23, %s11974_s21  ;;  %3561 = vrot.lane.b32.xlu1 %v20443_v35, %s11975_s29  ;;  %v3836_v29 = vsel %vm3827_vm3, %v3773_v14, %v20451_v5  ;;  %v20461_v14 = vld [vmem:[#allocation155_spill] sm:$0xff] }
 0x369   :  { %v3901_v17 = vsel %vm3892_vm1, %v3836_v29, %v14627_v53 }
 0x36a   :  { %v3353_v30 = vpop.permute.xlu0 %3352  ;;  %v3534_v38 = vpop.permute.xlu1 %3533 }
 0x36b   :  { %v4159_v23 = vsel %vm4152_vm8, %v4094_v3, %v3534_v38  ;;  %v4095_v7 = vsel %vm4087_vm6, %v4030_v13, %v3353_v30 }
 0x36c   :  { %3563 = vrot.lane.b32.xlu0 %v20446_v50, %s11975_s29  ;;  %3007 = vrot.lane.b32.xlu1 %v20443_v35, %s11972_s25  ;;  %v20452_v35 = vld [vmem:[#allocation99_spill] sm:$0xff] }
 0x36d   :  { %10663 = vmatprep.mubr.msk.f32.mxu0 %vm4223_vm9, %v4159_v23  ;;  %v3712_v12 = vsel %vm738_vm2, %v20359_v41, %v20452_v35  ;;  %v20456_v23 = vld [vmem:[#allocation121_spill] sm:$0xff] }
 0x36e   :  { %v2980_v43 = vpop.permute.xlu0 %2979  ;;  %v3536_v40 = vpop.permute.xlu1 %3535  ;;  %v3774_v0 = vsel %vm3765_vm10, %v3712_v12, %v20454_v10  ;;  %v20464_v12 = vld [vmem:[#allocation133_spill] sm:$0xff]  ;;  %v20465_v10 = vld [vmem:[#allocation152_spill] sm:$0xff] }
 0x36f   :  { %v4160_v20 = vsel %vm4152_vm8, %v4095_v7, %v3536_v40  ;;  %v3966_v45 = vsel %vm3957_vm4, %v3901_v17, %v2980_v43  ;;  %v3837_v53 = vsel %vm3827_vm3, %v3774_v0, %v20455_v37  ;;  %v20457_v43 = vld [vmem:[#allocation138_spill] sm:$0xff]  ;;  %v20462_v17 = vld [vmem:[#allocation116_spill] sm:$0xff] }
 0x370   :  { %3009 = vrot.lane.b32.xlu0 %v20446_v50, %s11972_s25  ;;  %3199 = vrot.lane.b32.xlu1 %v20447_v2, %s11973_s27  ;;  %v3902_v38 = vsel %vm3892_vm1, %v3837_v53, %v14629_v63 }
 0x371   :  { %10664 = vmatmul.mubr.msk.f32.gmra.mrb[54].mxu0 %vm4223_vm9, %v4160_v20 }
 0x372   :  { %v2982_v26 = vpop.permute.xlu0 %2981  ;;  %v3172_v33 = vpop.permute.xlu1 %3171 }
 0x373   :  { %v4031_v8 = vsel %vm4022_vm5, %v3966_v45, %v3172_v33  ;;  %v3967_v58 = vsel %vm3957_vm4, %v3902_v38, %v2982_v26  ;;  %v20458_v26 = vld [vmem:[#allocation127_spill] sm:$0xff] }
 0x374   :  { %3201 = vrot.lane.b32.xlu0 %v20449_v47, %s11973_s27  ;;  %3382 = vrot.lane.b32.xlu1 %v13433_v55, %s11974_s21  ;;  %v20453_v55 = vld [vmem:[#allocation124_spill] sm:$0xff]  ;;  %v3713_v33 = vsel %vm738_vm2, %v20365_v24, %v20458_v26  ;;  %v3714_v24 = vsel %vm738_vm2, %v20368_v46, %v20462_v17  ;;  %v20475_v17 = vld [vmem:[#allocation165_spill] sm:$0xff] }
 0x375   :  { %v3775_v4 = vsel %vm3765_vm10, %v3713_v33, %v20460_v22  ;;  %v3776_v45 = vsel %vm3765_vm10, %v3714_v24, %v20464_v12 }
 0x376   :  { %v3174_v62 = vpop.permute.xlu0 %3173  ;;  %v3355_v39 = vpop.permute.xlu1 %3354  ;;  %v3838_v5 = vsel %vm3827_vm3, %v3775_v4, %v20461_v14  ;;  %v20472_v14 = vld [vmem:[#allocation132_spill] sm:$0xff] }
 0x377   :  { %v4096_v3 = vsel %vm4087_vm6, %v4031_v8, %v3355_v39  ;;  %v4032_v59 = vsel %vm4022_vm5, %v3967_v58, %v3174_v62  ;;  %v3903_v39 = vsel %vm3892_vm1, %v3838_v5, %v14635_v15  ;;  %v3839_v15 = vsel %vm3827_vm3, %v3776_v45, %v20465_v10  ;;  %v20467_v58 = vld [vmem:[#allocation145_spill] sm:$0xff]  ;;  %v20476_v45 = vld [vmem:[#allocation142_spill] sm:$0xff] }
 0x378   :  { %3384 = vrot.lane.b32.xlu0 %v13379_v21, %s11974_s21  ;;  %3565 = vrot.lane.b32.xlu1 %v20453_v55, %s11975_s29  ;;  %v3904_v37 = vsel %vm3892_vm1, %v3839_v15, %v14637_v19 }
 0x37a   :  { %v3357_v30 = vpop.permute.xlu0 %3356  ;;  %v3538_v41 = vpop.permute.xlu1 %3537 }
 0x37b   :  { %v4161_v21 = vsel %vm4152_vm8, %v4096_v3, %v3538_v41  ;;  %v4097_v50 = vsel %vm4087_vm6, %v4032_v59, %v3357_v30  ;;  %v20466_v3 = vld [vmem:[#allocation131_spill] sm:$0xff] }
 0x37c   :  { %3011 = vrot.lane.b32.xlu0 %v20453_v55, %s11972_s25  ;;  %3567 = vrot.lane.b32.xlu1 %v20456_v23, %s11975_s29 }
 0x37d   :  { %10666 = vmatprep.mubr.msk.f32.mxu0 %vm4223_vm9, %v4161_v21 }
 0x37e   :  { %v3540_v13 = vpop.permute.xlu0 %3539  ;;  %v2984_v7 = vpop.permute.xlu1 %2983 }
 0x37f   :  { %v4162_v63 = vsel %vm4152_vm8, %v4097_v50, %v3540_v13  ;;  %v3968_v35 = vsel %vm3957_vm4, %v3903_v39, %v2984_v7  ;;  %v20468_v50 = vld [vmem:[#allocation144_spill] sm:$0xff]  ;;  %v20469_v7 = vld [vmem:[#allocation146_spill] sm:$0xff] }
 0x380   :  { %3013 = vrot.lane.b32.xlu0 %v20456_v23, %s11972_s25  ;;  %3203 = vrot.lane.b32.xlu1 %v20457_v43, %s11973_s27  ;;  %v3715_v13 = vsel %vm738_vm2, %v20377_v49, %v20468_v50  ;;  %v3716_v49 = vsel %vm738_vm2, %v20380_v56, %v20472_v14 }
 0x381   :  { %10667 = vmatmul.mubr.msk.f32.gmra.mrb[56].mxu0 %vm4223_vm9, %v4162_v63  ;;  %v20470_v63 = vld [vmem:[#allocation151_spill] sm:$0xff] }
 0x382   :  { %v2986_v40 = vpop.permute.xlu0 %2985  ;;  %v3176_v20 = vpop.permute.xlu1 %3175 }
 0x383   :  { %v4033_v55 = vsel %vm4022_vm5, %v3968_v35, %v3176_v20  ;;  %v3969_v53 = vsel %vm3957_vm4, %v3904_v37, %v2986_v40  ;;  %v3777_v40 = vsel %vm3765_vm10, %v3715_v13, %v20470_v63  ;;  %v20471_v20 = vld [vmem:[#allocation169_spill] sm:$0xff] }
 0x384   :  { %3205 = vrot.lane.b32.xlu0 %v20459_v36, %s11973_s27  ;;  %3386 = vrot.lane.b32.xlu1 %v13485_v31, %s11974_s21  ;;  %v20463_v31 = vld [vmem:[#allocation134_spill] sm:$0xff]  ;;  %v3840_v26 = vsel %vm3827_vm3, %v3777_v40, %v20471_v20 }
 0x385   :  { %v3905_v4 = vsel %vm3892_vm1, %v3840_v26, %v14643_v52 }
 0x386   :  { %v3178_v29 = vpop.permute.xlu0 %3177  ;;  %v3359_v62 = vpop.permute.xlu1 %3358 }
 0x387   :  { %v4098_v0 = vsel %vm4087_vm6, %v4033_v55, %v3359_v62  ;;  %v4034_v30 = vsel %vm4022_vm5, %v3969_v53, %v3178_v29  ;;  %v20474_v29 = vld [vmem:[#allocation148_spill] sm:$0xff]  ;;  %v2034_v53 = vrot.slane %v13559_v44, 1 }
 0x388   :  { %3388 = vrot.lane.b32.xlu0 %v13446_v9, %s11974_s21  ;;  %3569 = vrot.lane.b32.xlu1 %v20463_v31, %s11975_s29  ;;  %v3778_v62 = vsel %vm3765_vm10, %v3716_v49, %v20474_v29 }
 0x389   :  { %v3841_v52 = vsel %vm3827_vm3, %v3778_v62, %v20475_v17 }
 0x38a   :  { %v3361_v8 = vpop.permute.xlu0 %3360  ;;  %v3542_v46 = vpop.permute.xlu1 %3541 }
 0x38b   :  { %v4163_v9 = vsel %vm4152_vm8, %v4098_v0, %v3542_v46  ;;  %v4099_v41 = vsel %vm4087_vm6, %v4034_v30, %v3361_v8  ;;  %v20477_v8 = vld [vmem:[#allocation153_spill] sm:$0xff] }
 0x38c   :  { %3571 = vrot.lane.b32.xlu0 %v20466_v3, %s11975_s29  ;;  %3015 = vrot.lane.b32.xlu1 %v20463_v31, %s11972_s25  ;;  %v3906_v31 = vsel %vm3892_vm1, %v3841_v52, %v14645_v60  ;;  %v20485_v52 = vmov 0.0  }
 0x38d   :  { %10669 = vmatprep.mubr.msk.f32.mxu0 %vm4223_vm9, %v4163_v9  ;;  %v2033_v9 = vrot.slane %v13562_v51, 1 }
 0x38e   :  { %v2988_v38 = vpop.permute.xlu0 %2987  ;;  %v3544_v21 = vpop.permute.xlu1 %3543 }
 0x38f   :  { %v4164_v19 = vsel %vm4152_vm8, %v4099_v41, %v3544_v21  ;;  %v3970_v5 = vsel %vm3957_vm4, %v3905_v4, %v2988_v38  ;;  %v20479_v41 = vld [vmem:[#allocation150_spill] sm:$0xff]  ;;  %v20480_v38 = vld [vmem:[#allocation164_spill] sm:$0xff]  ;;  %v2035_v63 = vsel %vm1380_vm7, %v2033_v9, %v2034_v53 }
 0x390   :  { %3017 = vrot.lane.b32.xlu0 %v20466_v3, %s11972_s25  ;;  %3207 = vrot.lane.b32.xlu1 %v20467_v58, %s11973_s27  ;;  %v20478_v3 = vld [vmem:[#allocation156_spill] sm:$0xff]  ;;  %v20492_v9 = vld [vmem:[#allocation158_spill] sm:$0xff] }
 0x391   :  { %10670 = vmatmul.mubr.msk.f32.gmra.mrb[56].mxu0 %vm4223_vm9, %v4164_v19  ;;  %v3717_v30 = vsel %vm738_vm2, %v20389_v16, %v20478_v3  ;;  %v20481_v19 = vld [vmem:[#allocation183_spill] sm:$0xff] }
 0x392   :  { %v2990_v23 = vpop.permute.xlu0 %2989  ;;  %v3180_v59 = vpop.permute.xlu1 %3179  ;;  %v3779_v21 = vsel %vm3765_vm10, %v3717_v30, %v20480_v38  ;;  %v20482_v16 = vld [vmem:[#allocation147_spill] sm:$0xff] }
 0x393   :  { %v4035_v39 = vsel %vm4022_vm5, %v3970_v5, %v3180_v59  ;;  %v3971_v12 = vsel %vm3957_vm4, %v3906_v31, %v2990_v23  ;;  %v3842_v23 = vsel %vm3827_vm3, %v3779_v21, %v20481_v19  ;;  %v3718_v40 = vsel %vm738_vm2, %v20392_v54, %v20482_v16  ;;  %v20497_v16 = vld [vmem:[#allocation176_spill] sm:$0xff] }
 0x394   :  { %3209 = vrot.lane.b32.xlu0 %v20469_v7, %s11973_s27  ;;  %3390 = vrot.lane.b32.xlu1 %v13527_v1, %s11974_s21  ;;  %v20473_v1 = vld [vmem:[#allocation141_spill] sm:$0xff]  ;;  %v3907_v13 = vsel %vm3892_vm1, %v3842_v23, %v14651_v25  ;;  %v20495_v23 = vld [vmem:[#allocation23_spill] sm:$0xff] }
 0x396   :  { %v3182_v33 = vpop.permute.xlu0 %3181  ;;  %v3363_v22 = vpop.permute.xlu1 %3362 }
 0x397   :  { %v4100_v24 = vsel %vm4087_vm6, %v4035_v39, %v3363_v22  ;;  %v4036_v55 = vsel %vm4022_vm5, %v3971_v12, %v3182_v33  ;;  %v20484_v22 = vld [vmem:[#allocation179_spill] sm:$0xff] }
 0x398   :  { %3392 = vrot.lane.b32.xlu0 %v13498_v61, %s11974_s21  ;;  %3573 = vrot.lane.b32.xlu1 %v20473_v1, %s11975_s29 }
 0x39a   :  { %v3365_v35 = vpop.permute.xlu0 %3364  ;;  %v3546_v56 = vpop.permute.xlu1 %3545 }
 0x39b   :  { %v4165_v61 = vsel %vm4152_vm8, %v4100_v24, %v3546_v56  ;;  %v4101_v10 = vsel %vm4087_vm6, %v4036_v55, %v3365_v35  ;;  %v20486_v56 = vld [vmem:[#allocation170_spill] sm:$0xff] }
 0x39c   :  { %3019 = vrot.lane.b32.xlu0 %v20473_v1, %s11972_s25  ;;  %3575 = vrot.lane.b32.xlu1 %v20476_v45, %s11975_s29  ;;  %v3719_v31 = vsel %vm738_vm2, %v20401_v18, %v20486_v56 }
 0x39d   :  { %10672 = vmatprep.mubr.msk.f32.mxu0 %vm4223_vm9, %v4165_v61  ;;  %v20487_v61 = vld [vmem:[#allocation178_spill] sm:$0xff] }
 0x39e   :  { %v3548_v15 = vpop.permute.xlu0 %3547  ;;  %v2992_v0 = vpop.permute.xlu1 %2991  ;;  %v3781_v12 = vsel %vm3765_vm10, %v3719_v31, %v20487_v61  ;;  %v20507_v31 = vld [vmem:[#allocation173_spill] sm:$0xff] }
 0x39f   :  { %v4166_v60 = vsel %vm4152_vm8, %v4101_v10, %v3548_v15  ;;  %v3972_v20 = vsel %vm3957_vm4, %v3907_v13, %v2992_v0  ;;  %v20508_v61 = vld [vmem:[#allocation89_spill] sm:$0xff] }
 0x3a0   :  { %3021 = vrot.lane.b32.xlu0 %v20476_v45, %s11972_s25  ;;  %3211 = vrot.lane.b32.xlu1 %v20477_v8, %s11973_s27  ;;  %v20488_v45 = vld [vmem:[#allocation197_spill] sm:$0xff]  ;;  %v20490_v8 = vld [vmem:[#allocation79_spill] sm:$0xff] }
 0x3a1   :  { %10673 = vmatmul.mubr.msk.f32.gmra.mrb[58].mxu0 %vm4223_vm9, %v4166_v60  ;;  %v3844_v55 = vsel %vm3827_vm3, %v3781_v12, %v20488_v45  ;;  %v20489_v60 = vld [vmem:[#allocation159_spill] sm:$0xff]  ;;  %v3722_v12 = vsel %vm738_vm2, %v20508_v61, %v20507_v31  ;;  %v20525_v31 = vld [vmem:[#allocation33_spill] sm:$0xff] }
 0x3a2   :  { %v2994_v46 = vpop.permute.xlu0 %2993  ;;  %v3184_v37 = vpop.permute.xlu1 %3183  ;;  %v3909_v0 = vsel %vm3892_vm1, %v3844_v55, %v14659_v34  ;;  %v3720_v18 = vsel %vm738_vm2, %v20490_v8, %v20489_v60  ;;  %v20509_v55 = vld [vmem:[#allocation188_spill] sm:$0xff] }
 0x3a3   :  { %v4037_v33 = vsel %vm4022_vm5, %v3972_v20, %v3184_v37  ;;  %v20491_v37 = vld [vmem:[#allocation161_spill] sm:$0xff] }
 0x3a4   :  { %3213 = vrot.lane.b32.xlu0 %v20479_v41, %s11973_s27  ;;  %3394 = vrot.lane.b32.xlu1 %v13562_v51, %s11974_s21  ;;  %v20483_v51 = vld [vmem:[#allocation160_spill] sm:$0xff]  ;;  %v20494_v41 = vld [vmem:[#allocation193_spill] sm:$0xff] }
 0x3a5   :  { %v3780_v26 = vsel %vm3765_vm10, %v3718_v40, %v20483_v51 }
 0x3a6   :  { %v3186_v59 = vpop.permute.xlu0 %3185  ;;  %v3367_v50 = vpop.permute.xlu1 %3366  ;;  %v3843_v25 = vsel %vm3827_vm3, %v3780_v26, %v20484_v22  ;;  %v20498_v22 = vld [vmem:[#allocation167_spill] sm:$0xff] }
 0x3a7   :  { %v4102_v4 = vsel %vm4087_vm6, %v4037_v33, %v3367_v50  ;;  %v3908_v54 = vsel %vm3892_vm1, %v3843_v25, %v14653_v11  ;;  %v20499_v25 = vld [vmem:[#allocation157_spill] sm:$0xff] }
 0x3a8   :  { %3396 = vrot.lane.b32.xlu0 %v13559_v44, %s11974_s21  ;;  %3577 = vrot.lane.b32.xlu1 %v2035_v63, %s11975_s29  ;;  %v2131_v44 = vsel %vm1380_vm7, %v2034_v53, 0.0  ;;  %v3973_v1 = vsel %vm3957_vm4, %v3908_v54, %v2994_v46  ;;  %v20493_v53 = vld [vmem:[#allocation174_spill] sm:$0xff]  ;;  %v20501_v54 = vld [vmem:[#allocation92_spill] sm:$0xff] }
 0x3a9   :  { %v4038_v29 = vsel %vm4022_vm5, %v3973_v1, %v3186_v59  ;;  %v3782_v3 = vsel %vm3765_vm10, %v3720_v18, %v20493_v53  ;;  %v20503_v1 = vld [vmem:[#allocation172_spill] sm:$0xff] }
 0x3aa   :  { %v3369_v14 = vpop.permute.xlu0 %3368  ;;  %v3550_v49 = vpop.permute.xlu1 %3549  ;;  %v3845_v34 = vsel %vm3827_vm3, %v3782_v3, %v20494_v41  ;;  %v20513_v41 = vld [vmem:[#allocation190_spill] sm:$0xff] }
 0x3ab   :  { %v4167_v5 = vsel %vm4152_vm8, %v4102_v4, %v3550_v49  ;;  %v4103_v62 = vsel %vm4087_vm6, %v4038_v29, %v3369_v14  ;;  %v3910_v59 = vsel %vm3892_vm1, %v3845_v34, %v20495_v23  ;;  %v20500_v49 = vld [vmem:[#allocation184_spill] sm:$0xff] }
 0x3ac   :  { %3579 = vrot.lane.b32.xlu0 %v2131_v44, %s11975_s29  ;;  %3023 = vrot.lane.b32.xlu1 %v2035_v63, %s11972_s25  ;;  %v20496_v63 = vld [vmem:[#allocation180_spill] sm:$0xff] }
 0x3ad   :  { %10675 = vmatprep.mubr.msk.f32.mxu0 %vm4223_vm9, %v4167_v5  ;;  %v3721_v5 = vsel %vm738_vm2, %v20501_v54, %v20500_v49  ;;  %v20504_v29 = vld [vmem:[#allocation192_spill] sm:$0xff]  ;;  %v20520_v54 = vld [vmem:[#allocation34_spill] sm:$0xff] }
 0x3ae   :  { %v2996_v39 = vpop.permute.xlu0 %2995  ;;  %v3552_v17 = vpop.permute.xlu1 %3551 }
 0x3af   :  { %v4168_v11 = vsel %vm4152_vm8, %v4103_v62, %v3552_v17  ;;  %v3974_v46 = vsel %vm3957_vm4, %v3909_v0, %v2996_v39  ;;  %v3783_v62 = vsel %vm3765_vm10, %v3721_v5, %v20504_v29  ;;  %v20505_v39 = vld [vmem:[#allocation211_spill] sm:$0xff]  ;;  %v20522_v29 = vld [vmem:[#allocation186_spill] sm:$0xff] }
 0x3b0   :  { %3025 = vrot.lane.b32.xlu0 %v2131_v44, %s11972_s25  ;;  %3215 = vrot.lane.b32.xlu1 %v20485_v52, %s11973_s27  ;;  %v20502_v44 = vld [vmem:[#allocation175_spill] sm:$0xff]  ;;  %v3846_v17 = vsel %vm3827_vm3, %v3783_v62, %v20505_v39  ;;  %v20523_v62 = vld [vmem:[#allocation202_spill] sm:$0xff] }
 0x3b1   :  { %10676 = vmatmul.mubr.msk.f32.gmra.mrb[58].mxu0 %vm4223_vm9, %v4168_v11  ;;  %v20510_v0 = vld [vmem:[#allocation207_spill] sm:$0xff] }
 0x3b2   :  { %v2998_v24 = vpop.permute.xlu0 %2997  ;;  %v3188_v35 = vpop.permute.xlu1 %3187 }
 0x3b3   :  { %v4039_v30 = vsel %vm4022_vm5, %v3974_v46, %v3188_v35  ;;  %v3975_v13 = vsel %vm3957_vm4, %v3910_v59, %v2998_v24  ;;  %v20506_v35 = vld [vmem:[#allocation20_spill] sm:$0xff]  ;;  %v20514_v59 = vld [vmem:[#allocation181_spill] sm:$0xff] }
 0x3b4   :  { %3398 = vrot.lane.b32.xlu0 %v20485_v52, %s11974_s21  ;;  %3581 = vrot.lane.b32.xlu1 %v20485_v52, %s11975_s29  ;;  %v3911_v56 = vsel %vm3892_vm1, %v3846_v17, %v20506_v35 }
 0x3b6   :  { %v3190_v10 = vpop.permute.xlu0 %3189  ;;  %v3371_v15 = vpop.permute.xlu1 %3370 }
 0x3b7   :  { %v4104_v38 = vsel %vm4087_vm6, %v4039_v30, %v3371_v15  ;;  %v4040_v40 = vsel %vm4022_vm5, %v3975_v13, %v3190_v10  ;;  %v3784_v10 = vsel %vm3765_vm10, %v3722_v12, %v20509_v55  ;;  %v20512_v30 = vld [vmem:[#allocation194_spill] sm:$0xff]  ;;  %v20526_v55 = vld [vmem:[#allocation208_spill] sm:$0xff] }
 0x3b8   :  { %3027 = vrot.lane.b32.xlu0 %v20491_v37, %s11972_s25  ;;  %3029 = vrot.lane.b32.xlu1 %v20492_v9, %s11972_s25  ;;  %v3847_v60 = vsel %vm3827_vm3, %v3784_v10, %v20510_v0  ;;  %v20511_v37 = vld [vmem:[#allocation37_spill] sm:$0xff]  ;;  %v20527_v10 = vld [vmem:[#allocation204_spill] sm:$0xff] }
 0x3b9   :  { %v3912_v9 = vsel %vm3892_vm1, %v3847_v60, %v20511_v37  ;;  %v20529_v37 = vld [vmem:[#allocation185_spill] sm:$0xff] }
 0x3ba   :  { %v3373_v21 = vpop.permute.xlu0 %3372  ;;  %v3554_v19 = vpop.permute.xlu1 %3553 }
 0x3bb   :  { %v4169_v50 = vsel %vm4152_vm8, %v4104_v38, %v3554_v19  ;;  %v4105_v20 = vsel %vm4087_vm6, %v4040_v40, %v3373_v21 }
 0x3bc   :  { %3217 = vrot.lane.b32.xlu0 %v20496_v63, %s11973_s27  ;;  %3219 = vrot.lane.b32.xlu1 %v20497_v16, %s11973_s27 }
 0x3bd   :  { %10678 = vmatprep.mubr.msk.f32.mxu0 %vm4223_vm9, %v4169_v50  ;;  %v20515_v50 = vld [vmem:[#allocation171_spill] sm:$0xff] }
 0x3be   :  { %v3556_v51 = vpop.permute.xlu0 %3555  ;;  %v3000_v26 = vpop.permute.xlu1 %2999 }
 0x3bf   :  { %v4170_v33 = vsel %vm4152_vm8, %v4105_v20, %v3556_v51  ;;  %v3976_v45 = vsel %vm3957_vm4, %v3911_v56, %v3000_v26  ;;  %v20516_v20 = vld [vmem:[#allocation198_spill] sm:$0xff]  ;;  %v20517_v26 = vld [vmem:[#allocation189_spill] sm:$0xff] }
 0x3c0   :  { %3400 = vrot.lane.b32.xlu0 %v20498_v22, %s11974_s21  ;;  %3402 = vrot.lane.b32.xlu1 %v20499_v25, %s11974_s21  ;;  %v3723_v51 = vsel %vm738_vm2, %v13305_v28, %v20516_v20  ;;  %v20519_v25 = vld [vmem:[#allocation226_spill] sm:$0xff] }
 0x3c1   :  { %10679 = vmatmul.mubr.msk.f32.gmra.mrb[60].mxu0 %vm4223_vm9, %v4170_v33  ;;  %v20518_v33 = vld [vmem:[#allocation206_spill] sm:$0xff] }
 0x3c2   :  { %v3002_v4 = vpop.permute.xlu0 %3001  ;;  %v3192_v14 = vpop.permute.xlu1 %3191  ;;  %v3785_v22 = vsel %vm3765_vm10, %v3723_v51, %v20518_v33  ;;  %v20535_v20 = vld [vmem:[#allocation30_spill] sm:$0xff] }
 0x3c3   :  { %v4041_v15 = vsel %vm4022_vm5, %v3976_v45, %v3192_v14  ;;  %v3977_v3 = vsel %vm3957_vm4, %v3912_v9, %v3002_v4  ;;  %v3848_v4 = vsel %vm3827_vm3, %v3785_v22, %v20519_v25  ;;  %v20537_v22 = vld [vmem:[#allocation216_spill] sm:$0xff] }
 0x3c4   :  { %3583 = vrot.lane.b32.xlu0 %v20502_v44, %s11975_s29  ;;  %3585 = vrot.lane.b32.xlu1 %v20503_v1, %s11975_s29  ;;  %v3913_v5 = vsel %vm3892_vm1, %v3848_v4, %v20520_v54 }
 0x3c6   :  { %v3194_v11 = vpop.permute.xlu0 %3193  ;;  %v3375_v24 = vpop.permute.xlu1 %3374 }
 0x3c7   :  { %v4106_v8 = vsel %vm4087_vm6, %v4041_v15, %v3375_v24  ;;  %v4042_v34 = vsel %vm4022_vm5, %v3977_v3, %v3194_v11  ;;  %v20524_v11 = vld [vmem:[#allocation221_spill] sm:$0xff]  ;;  %v20530_v3 = vld [vmem:[#allocation212_spill] sm:$0xff] }
 0x3c8   :  { %3031 = vrot.lane.b32.xlu0 %v20502_v44, %s11972_s25  ;;  %3033 = vrot.lane.b32.xlu1 %v20503_v1, %s11972_s25  ;;  %v20521_v44 = vld [vmem:[#allocation187_spill] sm:$0xff] }
 0x3c9   :  { %v3724_v28 = vsel %vm738_vm2, %v13290_v6, %v20521_v44  ;;  %v20539_v44 = vld [vmem:[#allocation47_spill] sm:$0xff] }
 0x3ca   :  { %v3377_v18 = vpop.permute.xlu0 %3376  ;;  %v3558_v46 = vpop.permute.xlu1 %3557  ;;  %v3786_v39 = vsel %vm3765_vm10, %v3724_v28, %v20523_v62  ;;  %v20540_v62 = vld [vmem:[#allocation222_spill] sm:$0xff] }
 0x3cb   :  { %v4171_v53 = vsel %vm4152_vm8, %v4106_v8, %v3558_v46  ;;  %v4107_v38 = vsel %vm4087_vm6, %v4042_v34, %v3377_v18  ;;  %v3849_v24 = vsel %vm3827_vm3, %v3786_v39, %v20524_v11  ;;  %v20528_v46 = vld [vmem:[#allocation195_spill] sm:$0xff]  ;;  %v3725_v34 = vsel %vm738_vm2, %v20427_v27, %v20530_v3  ;;  %v20541_v39 = vld [vmem:[#allocation264_spill] sm:$0xff] }
 0x3cc   :  { %3221 = vrot.lane.b32.xlu0 %v20512_v30, %s11973_s27  ;;  %3223 = vrot.lane.b32.xlu1 %v20513_v41, %s11973_s27  ;;  %v3914_v61 = vsel %vm3892_vm1, %v3849_v24, %v20525_v31  ;;  %v20543_v31 = vld [vmem:[#allocation199_spill] sm:$0xff] }
 0x3cd   :  { %10681 = vmatprep.mubr.msk.f32.mxu0 %vm4223_vm9, %v4171_v53 }
 0x3ce   :  { %v3004_v21 = vpop.permute.xlu0 %3003  ;;  %v3560_v19 = vpop.permute.xlu1 %3559 }
 0x3cf   :  { %v4172_v23 = vsel %vm4152_vm8, %v4107_v38, %v3560_v19  ;;  %v3978_v1 = vsel %vm3957_vm4, %v3913_v5, %v3004_v21  ;;  %v20531_v38 = vld [vmem:[#allocation203_spill] sm:$0xff]  ;;  %v20532_v21 = vld [vmem:[#allocation200_spill] sm:$0xff] }
 0x3d0   :  { %3404 = vrot.lane.b32.xlu0 %v20514_v59, %s11974_s21  ;;  %3406 = vrot.lane.b32.xlu1 %v20515_v50, %s11974_s21  ;;  %v20533_v19 = vld [vmem:[#allocation220_spill] sm:$0xff]  ;;  %v20534_v59 = vld [vmem:[#allocation239_spill] sm:$0xff] }
 0x3d1   :  { %10682 = vmatmul.mubr.msk.f32.gmra.mrb[60].mxu0 %vm4223_vm9, %v4172_v23  ;;  %v3787_v23 = vsel %vm3765_vm10, %v3725_v34, %v20533_v19  ;;  %v20549_v34 = vld [vmem:[#allocation215_spill] sm:$0xff]  ;;  %v20551_v19 = vld [vmem:[#allocation230_spill] sm:$0xff] }
 0x3d2   :  { %v3006_v13 = vpop.permute.xlu0 %3005  ;;  %v3196_v40 = vpop.permute.xlu1 %3195  ;;  %v3850_v50 = vsel %vm3827_vm3, %v3787_v23, %v20534_v59 }
 0x3d3   :  { %v4043_v17 = vsel %vm4022_vm5, %v3978_v1, %v3196_v40  ;;  %v3979_v45 = vsel %vm3957_vm4, %v3914_v61, %v3006_v13  ;;  %v3915_v51 = vsel %vm3892_vm1, %v3850_v50, %v20535_v20  ;;  %v20552_v50 = vld [vmem:[#allocation249_spill] sm:$0xff] }
 0x3d4   :  { %3587 = vrot.lane.b32.xlu0 %v20517_v26, %s11975_s29  ;;  %3035 = vrot.lane.b32.xlu1 %v20517_v26, %s11972_s25  ;;  %v20536_v26 = vld [vmem:[#allocation201_spill] sm:$0xff] }
 0x3d5   :  { %v3726_v27 = vsel %vm738_vm2, %v20429_v42, %v20536_v26 }
 0x3d6   :  { %v3198_v14 = vpop.permute.xlu0 %3197  ;;  %v3379_v49 = vpop.permute.xlu1 %3378  ;;  %v3788_v25 = vsel %vm3765_vm10, %v3726_v27, %v20537_v22  ;;  %v20554_v22 = vld [vmem:[#allocation269_spill] sm:$0xff] }
 0x3d7   :  { %v4108_v35 = vsel %vm4087_vm6, %v4043_v17, %v3379_v49  ;;  %v4044_v15 = vsel %vm4022_vm5, %v3979_v45, %v3198_v14  ;;  %v20538_v14 = vld [vmem:[#allocation236_spill] sm:$0xff]  ;;  %v20544_v45 = vld [vmem:[#allocation227_spill] sm:$0xff] }
 0x3d8   :  { %3589 = vrot.lane.b32.xlu0 %v20522_v29, %s11975_s29  ;;  %3037 = vrot.lane.b32.xlu1 %v20522_v29, %s11972_s25  ;;  %v3851_v49 = vsel %vm3827_vm3, %v3788_v25, %v20538_v14  ;;  %v20555_v25 = vld [vmem:[#allocation270_spill] sm:$0xff] }
 0x3d9   :  { %v3916_v28 = vsel %vm3892_vm1, %v3851_v49, %v20539_v44  ;;  %v20557_v44 = vld [vmem:[#allocation213_spill] sm:$0xff] }
 0x3da   :  { %v3381_v56 = vpop.permute.xlu0 %3380  ;;  %v3562_v6 = vpop.permute.xlu1 %3561 }
 0x3db   :  { %v4173_v12 = vsel %vm4152_vm8, %v4108_v35, %v3562_v6  ;;  %v4109_v0 = vsel %vm4087_vm6, %v4044_v15, %v3381_v56  ;;  %v20542_v6 = vld [vmem:[#allocation209_spill] sm:$0xff]  ;;  %v3727_v15 = vsel %vm738_vm2, %v20437_v57, %v20544_v45  ;;  %v3728_v57 = vsel %vm738_vm2, %v20439_v48, %v20549_v34  ;;  %v20563_v45 = vld [vmem:[#allocation40_spill] sm:$0xff]  ;;  %v20567_v34 = vld [vmem:[#allocation55_spill] sm:$0xff] }
 0x3dc   :  { %3225 = vrot.lane.b32.xlu0 %v20526_v55, %s11973_s27  ;;  %3227 = vrot.lane.b32.xlu1 %v20527_v10, %s11973_s27  ;;  %v3790_v23 = vsel %vm3765_vm10, %v3728_v57, %v20551_v19  ;;  %v20568_v19 = vld [vmem:[#allocation273_spill] sm:$0xff] }
 0x3dd   :  { %10684 = vmatprep.mubr.msk.f32.mxu0 %vm4223_vm9, %v4173_v12 }
 0x3de   :  { %v3564_v60 = vpop.permute.xlu0 %3563  ;;  %v3008_v8 = vpop.permute.xlu1 %3007 }
 0x3df   :  { %v4174_v18 = vsel %vm4152_vm8, %v4109_v0, %v3564_v60  ;;  %v3980_v33 = vsel %vm3957_vm4, %v3915_v51, %v3008_v8  ;;  %v20545_v0 = vld [vmem:[#allocation217_spill] sm:$0xff]  ;;  %v20546_v60 = vld [vmem:[#allocation235_spill] sm:$0xff] }
 0x3e0   :  { %3408 = vrot.lane.b32.xlu0 %v20528_v46, %s11974_s21  ;;  %3410 = vrot.lane.b32.xlu1 %v20529_v37, %s11974_s21  ;;  %v3789_v8 = vsel %vm3765_vm10, %v3727_v15, %v20546_v60  ;;  %v20553_v51 = vld [vmem:[#allocation43_spill] sm:$0xff] }
 0x3e1   :  { %10685 = vmatmul.mubr.msk.f32.gmra.mrb[62].mxu0 %vm4223_vm9, %v4174_v18  ;;  %v20547_v18 = vld [vmem:[#allocation254_spill] sm:$0xff] }
 0x3e2   :  { %v3010_v9 = vpop.permute.xlu0 %3009  ;;  %v3200_v53 = vpop.permute.xlu1 %3199  ;;  %v3852_v46 = vsel %vm3827_vm3, %v3789_v8, %v20547_v18  ;;  %v20565_v8 = vld [vmem:[#allocation245_spill] sm:$0xff] }
 0x3e3   :  { %v4045_v4 = vsel %vm4022_vm5, %v3980_v33, %v3200_v53  ;;  %v3981_v29 = vsel %vm3957_vm4, %v3916_v28, %v3010_v9  ;;  %v20548_v53 = vld [vmem:[#allocation44_spill] sm:$0xff] }
 0x3e4   :  { %3591 = vrot.lane.b32.xlu0 %v20531_v38, %s11975_s29  ;;  %3593 = vrot.lane.b32.xlu1 %v20532_v21, %s11975_s29  ;;  %v3917_v3 = vsel %vm3892_vm1, %v3852_v46, %v20548_v53 }
 0x3e6   :  { %v3202_v13 = vpop.permute.xlu0 %3201  ;;  %v3383_v40 = vpop.permute.xlu1 %3382 }
 0x3e7   :  { %v4110_v54 = vsel %vm4087_vm6, %v4045_v4, %v3383_v40  ;;  %v4046_v17 = vsel %vm4022_vm5, %v3981_v29, %v3202_v13  ;;  %v3853_v13 = vsel %vm3827_vm3, %v3790_v23, %v20552_v50  ;;  %v20558_v29 = vld [vmem:[#allocation240_spill] sm:$0xff]  ;;  %v20569_v23 = vld [vmem:[#allocation274_spill] sm:$0xff] }
 0x3e8   :  { %3039 = vrot.lane.b32.xlu0 %v20531_v38, %s11972_s25  ;;  %3041 = vrot.lane.b32.xlu1 %v20532_v21, %s11972_s25  ;;  %v20550_v21 = vld [vmem:[#allocation214_spill] sm:$0xff]  ;;  %v3918_v26 = vsel %vm3892_vm1, %v3853_v13, %v20553_v51  ;;  %v20571_v51 = vld [vmem:[#allocation224_spill] sm:$0xff] }
 0x3ea   :  { %v3385_v5 = vpop.permute.xlu0 %3384  ;;  %v3566_v42 = vpop.permute.xlu1 %3565 }
 0x3eb   :  { %v4175_v1 = vsel %vm4152_vm8, %v4110_v54, %v3566_v42  ;;  %v4111_v11 = vsel %vm4087_vm6, %v4046_v17, %v3385_v5  ;;  %v20556_v42 = vld [vmem:[#allocation218_spill] sm:$0xff]  ;;  %v3729_v17 = vsel %vm738_vm2, %v20447_v2, %v20558_v29 }
 0x3ec   :  { %3229 = vrot.lane.b32.xlu0 %v20540_v62, %s11973_s27  ;;  %3231 = vrot.lane.b32.xlu1 %v20541_v39, %s11973_s27 }
 0x3ed   :  { %10687 = vmatprep.mubr.msk.f32.mxu0 %vm4223_vm9, %v4175_v1 }
 0x3ee   :  { %v3012_v24 = vpop.permute.xlu0 %3011  ;;  %v3568_v35 = vpop.permute.xlu1 %3567 }
 0x3ef   :  { %v4176_v56 = vsel %vm4152_vm8, %v4111_v11, %v3568_v35  ;;  %v3982_v38 = vsel %vm3957_vm4, %v3917_v3, %v3012_v24  ;;  %v20559_v11 = vld [vmem:[#allocation231_spill] sm:$0xff]  ;;  %v20561_v35 = vld [vmem:[#allocation248_spill] sm:$0xff] }
 0x3f0   :  { %3412 = vrot.lane.b32.xlu0 %v20542_v6, %s11974_s21  ;;  %3414 = vrot.lane.b32.xlu1 %v20543_v31, %s11974_s21  ;;  %v20560_v24 = vld [vmem:[#allocation223_spill] sm:$0xff] }
 0x3f1   :  { %10688 = vmatmul.mubr.msk.f32.gmra.mrb[62].mxu0 %vm4223_vm9, %v4176_v56  ;;  %v3791_v56 = vsel %vm3765_vm10, %v3729_v17, %v20561_v35  ;;  %v20562_v6 = vld [vmem:[#allocation267_spill] sm:$0xff]  ;;  %v20577_v17 = vld [vmem:[#allocation244_spill] sm:$0xff]  ;;  %v20579_v35 = vld [vmem:[#allocation258_spill] sm:$0xff] }
 0x3f2   :  { %v3014_v61 = vpop.permute.xlu0 %3013  ;;  %v3204_v12 = vpop.permute.xlu1 %3203  ;;  %v3854_v31 = vsel %vm3827_vm3, %v3791_v56, %v20562_v6 }
 0x3f3   :  { %v4047_v59 = vsel %vm4022_vm5, %v3982_v38, %v3204_v12  ;;  %v3983_v33 = vsel %vm3957_vm4, %v3918_v26, %v3014_v61  ;;  %v3919_v15 = vsel %vm3892_vm1, %v3854_v31, %v20563_v45  ;;  %v20580_v31 = vld [vmem:[#allocation277_spill] sm:$0xff] }
 0x3f4   :  { %3595 = vrot.lane.b32.xlu0 %v20545_v0, %s11975_s29  ;;  %3043 = vrot.lane.b32.xlu1 %v20545_v0, %s11972_s25  ;;  %v20564_v0 = vld [vmem:[#allocation229_spill] sm:$0xff] }
 0x3f5   :  { %v3730_v2 = vsel %vm738_vm2, %v20449_v47, %v20564_v0 }
 0x3f6   :  { %v3206_v37 = vpop.permute.xlu0 %3205  ;;  %v3387_v9 = vpop.permute.xlu1 %3386  ;;  %v3792_v18 = vsel %vm3765_vm10, %v3730_v2, %v20565_v8  ;;  %v20582_v8 = vld [vmem:[#allocation278_spill] sm:$0xff] }
 0x3f7   :  { %v4112_v40 = vsel %vm4087_vm6, %v4047_v59, %v3387_v9  ;;  %v4048_v4 = vsel %vm4022_vm5, %v3983_v33, %v3206_v37  ;;  %v20566_v37 = vld [vmem:[#allocation263_spill] sm:$0xff] }
 0x3f8   :  { %3597 = vrot.lane.b32.xlu0 %v20550_v21, %s11975_s29  ;;  %3045 = vrot.lane.b32.xlu1 %v20550_v21, %s11972_s25  ;;  %v3855_v9 = vsel %vm3827_vm3, %v3792_v18, %v20566_v37  ;;  %v20572_v33 = vld [vmem:[#allocation255_spill] sm:$0xff] }
 0x3f9   :  { %v3920_v57 = vsel %vm3892_vm1, %v3855_v9, %v20567_v34  ;;  %v20583_v18 = vld [vmem:[#allocation279_spill] sm:$0xff] }
 0x3fa   :  { %v3389_v20 = vpop.permute.xlu0 %3388  ;;  %v3570_v48 = vpop.permute.xlu1 %3569 }
 0x3fb   :  { %v4177_v27 = vsel %vm4152_vm8, %v4112_v40, %v3570_v48  ;;  %v4113_v14 = vsel %vm4087_vm6, %v4048_v4, %v3389_v20  ;;  %v20570_v48 = vld [vmem:[#allocation228_spill] sm:$0xff]  ;;  %v3731_v4 = vsel %vm738_vm2, %v20457_v43, %v20572_v33  ;;  %v3732_v43 = vsel %vm738_vm2, %v20459_v36, %v20577_v17 }
 0x3fc   :  { %3233 = vrot.lane.b32.xlu0 %v20554_v22, %s11973_s27  ;;  %3235 = vrot.lane.b32.xlu1 %v20555_v25, %s11973_s27  ;;  %v3794_v56 = vsel %vm3765_vm10, %v3732_v43, %v20579_v35 }
 0x3fd   :  { %10690 = vmatprep.mubr.msk.f32.mxu0 %vm4223_vm9, %v4177_v27 }
 0x3fe   :  { %v3572_v49 = vpop.permute.xlu0 %3571  ;;  %v3016_v54 = vpop.permute.xlu1 %3015 }
 0x3ff   :  { %v4178_v5 = vsel %vm4152_vm8, %v4113_v14, %v3572_v49  ;;  %v3984_v60 = vsel %vm3957_vm4, %v3919_v15, %v3016_v54  ;;  %v20573_v14 = vld [vmem:[#allocation241_spill] sm:$0xff]  ;;  %v20574_v49 = vld [vmem:[#allocation262_spill] sm:$0xff]  ;;  %v20581_v15 = vld [vmem:[#allocation51_spill] sm:$0xff] }
 0x400   :  { %3416 = vrot.lane.b32.xlu0 %v20556_v42, %s11974_s21  ;;  %3418 = vrot.lane.b32.xlu1 %v20557_v44, %s11974_s21  ;;  %v3793_v54 = vsel %vm3765_vm10, %v3731_v4, %v20574_v49  ;;  %v20592_v49 = vld [vmem:[#allocation285_spill] sm:$0xff] }
 0x401   :  { %10691 = vmatmul.mubr.msk.f32.gmra.mrb[64].mxu0 %vm4223_vm9, %v4178_v5  ;;  %v20575_v5 = vld [vmem:[#allocation276_spill] sm:$0xff] }
 0x402   :  { %v3018_v28 = vpop.permute.xlu0 %3017  ;;  %v3208_v1 = vpop.permute.xlu1 %3207  ;;  %v3856_v42 = vsel %vm3827_vm3, %v3793_v54, %v20575_v5  ;;  %v20593_v5 = vld [vmem:[#allocation50_spill] sm:$0xff] }
 0x403   :  { %v4049_v46 = vsel %vm4022_vm5, %v3984_v60, %v3208_v1  ;;  %v3985_v21 = vsel %vm3957_vm4, %v3920_v57, %v3018_v28  ;;  %v20576_v1 = vld [vmem:[#allocation54_spill] sm:$0xff] }
 0x404   :  { %3599 = vrot.lane.b32.xlu0 %v20559_v11, %s11975_s29  ;;  %3601 = vrot.lane.b32.xlu1 %v20560_v24, %s11975_s29  ;;  %v3921_v29 = vsel %vm3892_vm1, %v3856_v42, %v20576_v1  ;;  %v20595_v1 = vld [vmem:[#allocation242_spill] sm:$0xff] }
 0x406   :  { %v3210_v61 = vpop.permute.xlu0 %3209  ;;  %v3391_v12 = vpop.permute.xlu1 %3390 }
 0x407   :  { %v4114_v53 = vsel %vm4087_vm6, %v4049_v46, %v3391_v12  ;;  %v4050_v59 = vsel %vm4022_vm5, %v3985_v21, %v3210_v61  ;;  %v3857_v61 = vsel %vm3827_vm3, %v3794_v56, %v20580_v31 }
 0x408   :  { %3047 = vrot.lane.b32.xlu0 %v20559_v11, %s11972_s25  ;;  %3049 = vrot.lane.b32.xlu1 %v20560_v24, %s11972_s25  ;;  %v20578_v24 = vld [vmem:[#allocation232_spill] sm:$0xff]  ;;  %v3922_v0 = vsel %vm3892_vm1, %v3857_v61, %v20581_v15 }
 0x40a   :  { %v3393_v3 = vpop.permute.xlu0 %3392  ;;  %v3574_v47 = vpop.permute.xlu1 %3573 }
 0x40b   :  { %v4179_v38 = vsel %vm4152_vm8, %v4114_v53, %v3574_v47  ;;  %v4115_v50 = vsel %vm4087_vm6, %v4050_v59, %v3393_v3  ;;  %v9976_v3 = vld [vmem:[%s19536_s4] ss:$0 sm:$0xff]  ;;  %v20584_v47 = vld [vmem:[#allocation257_spill] sm:$0xff] }
 0x40c   :  { %3237 = vrot.lane.b32.xlu0 %v20568_v19, %s11973_s27  ;;  %3239 = vrot.lane.b32.xlu1 %v20569_v23, %s11973_s27  ;;  %v3734_v34 = vsel %vm738_vm2, %v20469_v7, %v20584_v47  ;;  %v20586_v59 = vld [vmem:[#allocation237_spill] sm:$0xff]  ;;  %v15472_v7 = vadd.f32 %v9976_v3, %v9976_v3  ;;  %v20597_v3 = vld [vmem:[#allocation283_spill] sm:$0xff]  ;;  %v20598_v47 = vld [vmem:[#allocation284_spill] sm:$0xff] }
 0x40d   :  { %10693 = vmatprep.mubr.msk.f32.mxu0 %vm4223_vm9, %v4179_v38  ;;  %v20585_v38 = vld [vmem:[#allocation272_spill] sm:$0xff] }
 0x40e   :  { %v3020_v13 = vpop.permute.xlu0 %3019  ;;  %v3576_v40 = vpop.permute.xlu1 %3575  ;;  %v3796_v21 = vsel %vm3765_vm10, %v3734_v34, %v20585_v38 }
 0x40f   :  { %v4180_v20 = vsel %vm4152_vm8, %v4115_v50, %v3576_v40  ;;  %v3986_v11 = vsel %vm3957_vm4, %v3921_v29, %v3020_v13  ;;  %v20587_v50 = vld [vmem:[#allocation234_spill] sm:$0xff]  ;;  %v20588_v13 = vld [vmem:[#allocation268_spill] sm:$0xff] }
 0x410   :  { %3420 = vrot.lane.b32.xlu0 %v20570_v48, %s11974_s21  ;;  %3422 = vrot.lane.b32.xlu1 %v20571_v51, %s11974_s21  ;;  %v3733_v40 = vsel %vm738_vm2, %v20467_v58, %v20588_v13  ;;  %v20590_v51 = vld [vmem:[#allocation271_spill] sm:$0xff] }
 0x411   :  { %10694 = vmatmul.mubr.msk.f32.gmra.mrb[64].mxu0 %vm4223_vm9, %v4180_v20  ;;  %v20589_v20 = vld [vmem:[#allocation282_spill] sm:$0xff] }
 0x412   :  { %v3022_v26 = vpop.permute.xlu0 %3021  ;;  %v3212_v27 = vpop.permute.xlu1 %3211  ;;  %v3859_v48 = vsel %vm3827_vm3, %v3796_v21, %v20589_v20  ;;  %v20600_v20 = vld [vmem:[#allocation246_spill] sm:$0xff] }
 0x413   :  { %v4051_v6 = vsel %vm4022_vm5, %v3986_v11, %v3212_v27  ;;  %v3987_v60 = vsel %vm3957_vm4, %v3922_v0, %v3022_v26  ;;  %v3795_v26 = vsel %vm3765_vm10, %v3733_v40, %v20590_v51  ;;  %v20591_v27 = vld [vmem:[#allocation62_spill] sm:$0xff] }
 0x414   :  { %3603 = vrot.lane.b32.xlu0 %v20573_v14, %s11975_s29  ;;  %3051 = vrot.lane.b32.xlu1 %v20573_v14, %s11972_s25  ;;  %v3924_v33 = vsel %vm3892_vm1, %v3859_v48, %v20591_v27  ;;  %v3858_v54 = vsel %vm3827_vm3, %v3795_v26, %v20592_v49  ;;  %v20601_v48 = vld [vmem:[#allocation243_spill] sm:$0xff] }
 0x415   :  { %v3923_v42 = vsel %vm3892_vm1, %v3858_v54, %v20593_v5  ;;  %v20603_v49 = vld [vmem:[#allocation59_spill] sm:$0xff] }
 0x416   :  { %v3214_v44 = vpop.permute.xlu0 %3213  ;;  %v3395_v28 = vpop.permute.xlu1 %3394 }
 0x417   :  { %v4116_v12 = vsel %vm4087_vm6, %v4051_v6, %v3395_v28  ;;  %v4052_v46 = vsel %vm4022_vm5, %v3987_v60, %v3214_v44  ;;  %v20594_v28 = vld [vmem:[#allocation250_spill] sm:$0xff] }
 0x418   :  { %3605 = vrot.lane.b32.xlu0 %v20578_v24, %s11975_s29  ;;  %3053 = vrot.lane.b32.xlu1 %v20578_v24, %s11972_s25 }
 0x41a   :  { %v3397_v45 = vpop.permute.xlu0 %3396  ;;  %v3578_v36 = vpop.permute.xlu1 %3577 }
 0x41b   :  { %v4181_v2 = vsel %vm4152_vm8, %v4116_v12, %v3578_v36  ;;  %v4117_v37 = vsel %vm4087_vm6, %v4052_v46, %v3397_v45 }
 0x41c   :  { %3241 = vrot.lane.b32.xlu0 %v20582_v8, %s11973_s27  ;;  %3243 = vrot.lane.b32.xlu1 %v20583_v18, %s11973_s27 }
 0x41d   :  { %10696 = vmatprep.mubr.msk.f32.mxu0 %vm4223_vm9, %v4181_v2 }
 0x41e   :  { %v3580_v9 = vpop.permute.xlu0 %3579  ;;  %v3024_v53 = vpop.permute.xlu1 %3023 }
 0x41f   :  { %v4182_v57 = vsel %vm4152_vm8, %v4117_v37, %v3580_v9  ;;  %v3988_v29 = vsel %vm3957_vm4, %v3923_v42, %v3024_v53 }
 0x420   :  { %3424 = vrot.lane.b32.xlu0 %v20586_v59, %s11974_s21  ;;  %3426 = vrot.lane.b32.xlu1 %v20587_v50, %s11974_s21  ;;  %v20599_v50 = vld [vmem:[#allocation299_spill] sm:$0xff] }
 0x421   :  { %10697 = vmatmul.mubr.msk.f32.gmra.mrb[66].mxu0 %vm4223_vm9, %v4182_v57  ;;  %v3860_v13 = vsel %vm3827_vm3, %v14809_v32, %v20599_v50  ;;  %v20612_v50 = vld [vmem:[#allocation252_spill] sm:$0xff] }
 0x422   :  { %v3026_v4 = vpop.permute.xlu0 %3025  ;;  %v15478_v14 = vpop.permute.xlu1 %3215  ;;  %v3925_v54 = vsel %vm3892_vm1, %v3860_v13, %v20603_v49  ;;  %v20613_v13 = vld [vmem:[#allocation295_spill] sm:$0xff]  ;;  %v20615_v49 = vld [vmem:[#allocation57_spill] sm:$0xff] }
 0x423   :  { %v3989_v58 = vsel %vm3957_vm4, %v3924_v33, %v3026_v4  ;;  %v4053_v56 = vsel %vm4022_vm5, %v3988_v29, %v15478_v14  ;;  %v20602_v33 = vld [vmem:[#allocation296_spill] sm:$0xff] }
 0x424   :  { %v10659_v44 = vpop.f32.mrb[52].mxu0  ;;  %3607 = vrot.lane.b32.xlu0 %v20594_v28, %s11975_s29  ;;  %3609 = vrot.lane.b32.xlu1 %v20595_v1, %s11975_s29  ;;  %v4054_v6 = vsel %vm4022_vm5, %v3989_v58, %v15478_v14  ;;  %v3861_v4 = vsel %vm3827_vm3, %v14809_v32, %v20602_v33 }
 0x425   :  { %v10988_v17 = vadd.f32 %v15472_v7, %v10659_v44  ;;  %v4492_v43 = vpop.f32.mrb[53].mxu0 }
 0x426   :  { %v10990_v11 = vadd.f32 %v15472_v7, %v4492_v43  ;;  %v15492_v24 = vpop.permute.xlu0 %3398  ;;  %v15494_v35 = vpop.permute.xlu1 %3581  ;;  %v20605_v43 = vld [vmem:[#allocation259_spill] sm:$0xff] }
 0x427   :  { %20596 = vst [vmem:[#allocation61_spill] sm:$0xff] %v15494_v35  ;;  %v4866_v31 = vrot.slane %v10988_v17, 1  ;;  %v4118_v61 = vsel %vm4087_vm6, %v4053_v56, %v15492_v24  ;;  %v4119_v12 = vsel %vm4087_vm6, %v4054_v6, %v15492_v24 }
 0x428   :  { %v4865_v45 = vrot.slane %v10990_v11, 1  ;;  %3055 = vrot.lane.b32.xlu0 %v20594_v28, %s11972_s25  ;;  %3057 = vrot.lane.b32.xlu1 %v20595_v1, %s11972_s25  ;;  %v4183_v36 = vsel %vm4152_vm8, %v4118_v61, %v15494_v35  ;;  %v4184_v15 = vsel %vm4152_vm8, %v4119_v12, %v15494_v35  ;;  %v20604_v28 = vld [vmem:[#allocation58_spill] sm:$0xff] }
 0x429   :  { %v4945_v0 = vsel %vm1380_vm7, %v4866_v31, 0.0  ;;  %10699 = vmatprep.mubr.msk.f32.mxu0 %vm4223_vm9, %v4183_v36  ;;  %v3926_v1 = vsel %vm3892_vm1, %v3861_v4, %v20604_v28 }
 0x42a   :  { %v4962_v2 = vadd.f32 %v10988_v17, %v4945_v0  ;;  %v4867_v60 = vsel %vm1380_vm7, %v4865_v45, %v4866_v31  ;;  %v3028_v46 = vpop.permute.xlu0 %3027  ;;  %v3030_v37 = vpop.permute.xlu1 %3029  ;;  %10700 = vmatmul.mubr.msk.f32.gmra.mrb[66].mxu0 %vm4223_vm9, %v4184_v15 }
 0x42b   :  { %v4961_v9 = vadd.f32 %v10990_v11, %v4867_v60  ;;  %v3990_v29 = vsel %vm3957_vm4, %v3925_v54, %v3028_v46  ;;  %v3991_v17 = vsel %vm3957_vm4, %v3926_v1, %v3030_v37  ;;  %v20607_v37 = vld [vmem:[#allocation287_spill] sm:$0xff] }
 0x42c   :  { %v4994_v53 = vmul.f32 0.25, %v4962_v2  ;;  %3245 = vrot.lane.b32.xlu0 %v20597_v3, %s11973_s27  ;;  %3247 = vrot.lane.b32.xlu1 %v20598_v47, %s11973_s27  ;;  %v20606_v2 = vld [vmem:[#allocation251_spill] sm:$0xff] }
 0x42d   :  { %v4993_v34 = vmul.f32 0.25, %v4961_v9  ;;  %v20608_v9 = vld [vmem:[#allocation288_spill] sm:$0xff] }
 0x42e   :  { %vm5026_vm11 = vcmp.gt.f32.partialorder %v4994_v53, 0.0  ;;  %v5058_v57 = vmul.f32 0.2, %v4994_v53  ;;  %v3218_v38 = vpop.permute.xlu0 %3217  ;;  %v3220_v21 = vpop.permute.xlu1 %3219 }
 0x42f   :  { %vm5025_vm12 = vcmp.gt.f32.partialorder %v4993_v34, 0.0  ;;  %v5057_v59 = vmul.f32 0.2, %v4993_v34  ;;  %v4055_v6 = vsel %vm4022_vm5, %v3990_v29, %v3218_v38  ;;  %v4056_v31 = vsel %vm4022_vm5, %v3991_v17, %v3220_v21  ;;  %v20610_v38 = vld [vmem:[#allocation166_spill] sm:$0xff]  ;;  %v20618_v29 = vld [vmem:[#allocation265_spill] sm:$0xff]  ;;  %v20619_v17 = vld [vmem:[#allocation260_spill] sm:$0xff] }
 0x430   :  { %v15523_v40 = vsel %vm5026_vm11, %v4994_v53, %v5058_v57  ;;  %3428 = vrot.lane.b32.xlu0 %v20600_v20, %s11974_s21  ;;  %3430 = vrot.lane.b32.xlu1 %v20601_v48, %s11974_s21  ;;  %v20609_v57 = vld [vmem:[#allocation286_spill] sm:$0xff]  ;;  %v20614_v48 = vld [vmem:[#allocation315_spill] sm:$0xff] }
 0x431   :  { %v15529_v51 = vsel %vm5025_vm12, %v4993_v34, %v5057_v59  ;;  %v5155_v26 = vrot.slane %v15523_v40, 6  ;;  %v19907_v27 = vrot.slane %v15523_v40, 2  ;;  %v3735_v21 = vsel %vm738_vm2, %v20610_v38, %v20609_v57  ;;  %v20611_v59 = vld [vmem:[#allocation256_spill] sm:$0xff]  ;;  %v20622_v57 = vld [vmem:[#allocation369_spill] sm:$0xff] }
 0x432   :  { %v3401_v58 = vpop.permute.xlu0 %3400  ;;  %v3403_v5 = vpop.permute.xlu1 %3402  ;;  %v5154_v42 = vrot.slane %v15529_v51, 6  ;;  %v5249_v44 = vrot.slane %v15529_v51, 2  ;;  %v3797_v20 = vsel %vm3765_vm10, %v3735_v21, %v20613_v13 }
 0x433   :  { %v4120_v61 = vsel %vm4087_vm6, %v4055_v6, %v3401_v58  ;;  %v4121_v12 = vsel %vm4087_vm6, %v4056_v31, %v3403_v5  ;;  %v20616_v58 = vld [vmem:[#allocation281_spill] sm:$0xff]  ;;  %v20617_v5 = vld [vmem:[#allocation162_spill] sm:$0xff] }
 0x434   :  { %3611 = vrot.lane.b32.xlu0 %v20605_v43, %s11975_s29  ;;  %3059 = vrot.lane.b32.xlu1 %v20605_v43, %s11972_s25  ;;  %v15551_v11 = vsel %vm5153_vm14, %v5154_v42, %v5155_v26  ;;  %v15556_v56 = vsel %vm5248_vm13, %v5249_v44, %v19907_v27  ;;  %v3862_v26 = vsel %vm3827_vm3, %v3797_v20, %v20614_v48  ;;  %v20620_v43 = vld [vmem:[#allocation292_spill] sm:$0xff] }
 0x435   :  { %v3927_v54 = vsel %vm3892_vm1, %v3862_v26, %v20615_v49  ;;  %v3736_v44 = vsel %vm738_vm2, %v20617_v5, %v20616_v58 }
 0x436   :  { %v3584_v45 = vpop.permute.xlu0 %3583  ;;  %v3586_v36 = vpop.permute.xlu1 %3585  ;;  %v3798_v6 = vsel %vm3765_vm10, %v3736_v44, %v20620_v43 }
 0x437   :  { %v4185_v15 = vsel %vm4152_vm8, %v4120_v61, %v3584_v45  ;;  %v4186_v0 = vsel %vm4152_vm8, %v4121_v12, %v3586_v36  ;;  %v20621_v45 = vld [vmem:[#allocation312_spill] sm:$0xff] }
 0x438   :  { %3613 = vrot.lane.b32.xlu0 %v20606_v2, %s11975_s29  ;;  %3061 = vrot.lane.b32.xlu1 %v20606_v2, %s11972_s25  ;;  %v3863_v36 = vsel %vm3827_vm3, %v3798_v6, %v20621_v45  ;;  %v20625_v6 = vld [vmem:[#allocation300_spill] sm:$0xff]  ;;  %v20627_v45 = vld [vmem:[#allocation311_spill] sm:$0xff] }
 0x439   :  { %10702 = vmatprep.mubr.msk.f32.mxu0 %vm4223_vm9, %v4185_v15  ;;  %v3928_v38 = vsel %vm3892_vm1, %v3863_v36, %v20622_v57 }
 0x43a   :  { %10703 = vmatmul.mubr.msk.f32.gmra.mrb[68].mxu0 %vm4223_vm9, %v4186_v0  ;;  %v3032_v60 = vpop.permute.xlu0 %3031  ;;  %v3034_v46 = vpop.permute.xlu1 %3033 }
 0x43b   :  { %v3992_v28 = vsel %vm3957_vm4, %v3927_v54, %v3032_v60 }
 0x43c   :  { %3249 = vrot.lane.b32.xlu0 %v20607_v37, %s11973_s27  ;;  %3251 = vrot.lane.b32.xlu1 %v20608_v9, %s11973_s27 }
 0x43e   :  { %v3222_v53 = vpop.permute.xlu0 %3221  ;;  %v3224_v34 = vpop.permute.xlu1 %3223 }
 0x43f   :  { %v4057_v31 = vsel %vm4022_vm5, %v3992_v28, %v3222_v53  ;;  %v3993_v53 = vsel %vm3957_vm4, %v3928_v38, %v3034_v46 }
 0x440   :  { %3432 = vrot.lane.b32.xlu0 %v20611_v59, %s11974_s21  ;;  %3434 = vrot.lane.b32.xlu1 %v20612_v50, %s11974_s21  ;;  %v4058_v20 = vsel %vm4022_vm5, %v3993_v53, %v3224_v34  ;;  %v20623_v34 = vld [vmem:[#allocation293_spill] sm:$0xff] }
 0x442   :  { %v3405_v33 = vpop.permute.xlu0 %3404  ;;  %v3407_v4 = vpop.permute.xlu1 %3406 }
 0x443   :  { %v4122_v15 = vsel %vm4087_vm6, %v4057_v31, %v3405_v33  ;;  %v4123_v26 = vsel %vm4087_vm6, %v4058_v20, %v3407_v4  ;;  %v3737_v31 = vsel %vm738_vm2, %v20496_v63, %v20625_v6 }
 0x444   :  { %v10665_v1 = vpop.f32.mrb[54].mxu0  ;;  %3615 = vrot.lane.b32.xlu0 %v20618_v29, %s11975_s29  ;;  %3617 = vrot.lane.b32.xlu1 %v20619_v17, %s11975_s29  ;;  %v3799_v36 = vsel %vm3765_vm10, %v3737_v31, %v20627_v45  ;;  %v20635_v45 = vld [vmem:[#allocation15_spill] sm:$0xff] }
 0x445   :  { %v10992_v61 = vadd.f32 %v15472_v7, %v10665_v1  ;;  %v4512_v12 = vpop.f32.mrb[55].mxu0 }
 0x446   :  { %v10994_v0 = vadd.f32 %v15472_v7, %v4512_v12  ;;  %v3588_v2 = vpop.permute.xlu0 %3587  ;;  %v3036_v60 = vpop.permute.xlu1 %3035 }
 0x447   :  { %v4869_v21 = vrot.slane %v10992_v61, 1  ;;  %v4187_v59 = vsel %vm4152_vm8, %v4122_v15, %v3588_v2  ;;  %v20629_v2 = vld [vmem:[#allocation7_spill] sm:$0xff] }
 0x448   :  { %v4868_v13 = vrot.slane %v10994_v0, 1  ;;  %2871 = vrot.lane.b32.xlu0 %v20612_v50, %s11971_s30  ;;  %3063 = vrot.lane.b32.xlu1 %v20618_v29, %s11972_s25  ;;  %v20624_v29 = vld [vmem:[#allocation291_spill] sm:$0xff] }
 0x449   :  { %v4946_v48 = vsel %vm1380_vm7, %v4869_v21, 0.0  ;;  %10705 = vmatprep.mubr.msk.f32.mxu0 %vm4223_vm9, %v4187_v59  ;;  %v3738_v43 = vsel %vm738_vm2, %v20497_v16, %v20624_v29  ;;  %v20630_v16 = vld [vmem:[#allocation16_spill] sm:$0xff]  ;;  %v20631_v59 = vld [vmem:[#allocation322_spill] sm:$0xff] }
 0x44a   :  { %v4964_v33 = vadd.f32 %v10992_v61, %v4946_v48  ;;  %v4870_v49 = vsel %vm1380_vm7, %v4868_v13, %v4869_v21  ;;  %v3590_v54 = vpop.permute.xlu0 %3589  ;;  %v3038_v46 = vpop.permute.xlu1 %3037  ;;  %v20626_v61 = vld [vmem:[#allocation306_spill] sm:$0xff]  ;;  %v3864_v57 = vsel %vm3827_vm3, %v3799_v36, %v20630_v16  ;;  %v20632_v13 = vld [vmem:[#allocation72_spill] sm:$0xff]  ;;  %v20636_v36 = vld [vmem:[#allocation11_spill] sm:$0xff] }
 0x44b   :  { %v4963_v58 = vadd.f32 %v10994_v0, %v4870_v49  ;;  %v4188_v5 = vsel %vm4152_vm8, %v4123_v26, %v3590_v54  ;;  %v3800_v12 = vsel %vm3765_vm10, %v3738_v43, %v20626_v61  ;;  %v20628_v0 = vld [vmem:[#allocation290_spill] sm:$0xff]  ;;  %v3929_v20 = vsel %vm3892_vm1, %v3864_v57, %v20632_v13  ;;  %v20637_v57 = vld [vmem:[#allocation316_spill] sm:$0xff] }
 0x44c   :  { %v4996_v50 = vmul.f32 0.25, %v4964_v33  ;;  %3065 = vrot.lane.b32.xlu0 %v20619_v17, %s11972_s25  ;;  %3253 = vrot.lane.b32.xlu1 %v20623_v34, %s11973_s27  ;;  %v3865_v53 = vsel %vm3827_vm3, %v3800_v12, %v20631_v59  ;;  %v20633_v54 = vld [vmem:[#allocation370_spill] sm:$0xff] }
 0x44d   :  { %v4995_v44 = vmul.f32 0.25, %v4963_v58  ;;  %10706 = vmatmul.mubr.msk.f32.gmra.mrb[68].mxu0 %vm4223_vm9, %v4188_v5  ;;  %v3930_v58 = vsel %vm3892_vm1, %v3865_v53, %v20633_v54  ;;  %v3994_v5 = vsel %vm3957_vm4, %v3929_v20, %v3036_v60  ;;  %v20638_v59 = vld [vmem:[#allocation298_spill] sm:$0xff]  ;;  %v20641_v54 = vld [vmem:[#allocation69_spill] sm:$0xff] }
 0x44e   :  { %vm5028_vm15 = vcmp.gt.f32.partialorder %v4996_v50, 0.0  ;;  %v5060_v4 = vmul.f32 0.2, %v4996_v50  ;;  %v3226_v28 = vpop.permute.xlu0 %3225  ;;  %v3228_v1 = vpop.permute.xlu1 %3227  ;;  %v20639_v53 = vld [vmem:[#allocation6_spill] sm:$0xff] }
 0x44f   :  { %vm5027_vm0 = vcmp.gt.f32.partialorder %v4995_v44, 0.0  ;;  %v5059_v17 = vmul.f32 0.2, %v4995_v44  ;;  %v4059_v60 = vsel %vm4022_vm5, %v3994_v5, %v3226_v28  ;;  %v20640_v20 = vld [vmem:[#allocation46_spill] sm:$0xff]  ;;  %v20642_v5 = vld [vmem:[#allocation305_spill] sm:$0xff] }
 0x450   :  { %v15632_v15 = vsel %vm5028_vm15, %v4996_v50, %v5060_v4  ;;  %3255 = vrot.lane.b32.xlu0 %v20628_v0, %s11973_s27  ;;  %3436 = vrot.lane.b32.xlu1 %v20629_v2, %s11974_s21  ;;  %v3995_v50 = vsel %vm3957_vm4, %v3930_v58, %v3038_v46 }
 0x451   :  { %v15640_v63 = vsel %vm5027_vm0, %v4995_v44, %v5059_v17  ;;  %v5158_v38 = vrot.slane %v15632_v15, 6  ;;  %v19903_v21 = vrot.slane %v15632_v15, 2  ;;  %v20634_v44 = vld [vmem:[#allocation5_spill] sm:$0xff]  ;;  %v4060_v46 = vsel %vm4022_vm5, %v3995_v50, %v3228_v1 }
 0x452   :  { %v3409_v48 = vpop.permute.xlu0 %3408  ;;  %v3411_v26 = vpop.permute.xlu1 %3410  ;;  %v19906_v33 = vrot.slane %v15640_v63, 6  ;;  %v5252_v49 = vrot.slane %v15640_v63, 2 }
 0x453   :  { %v4124_v43 = vsel %vm4087_vm6, %v4059_v60, %v3409_v48  ;;  %v4125_v6 = vsel %vm4087_vm6, %v4060_v46, %v3411_v26  ;;  %v20643_v60 = vld [vmem:[#allocation297_spill] sm:$0xff]  ;;  %v20644_v46 = vld [vmem:[#allocation18_spill] sm:$0xff] }
 0x454   :  { %2873 = vrot.lane.b32.xlu0 %v20629_v2, %s11971_s30  ;;  %3438 = vrot.lane.b32.xlu1 %v20634_v44, %s11974_s21  ;;  %v15661_v4 = vsel %vm5153_vm14, %v19906_v33, %v5158_v38  ;;  %v15666_v29 = vsel %vm5248_vm13, %v5252_v49, %v19903_v21  ;;  %v3739_v38 = vsel %vm738_vm2, %v20512_v30, %v20637_v57 }
 0x455   :  { %v3801_v13 = vsel %vm3765_vm10, %v3739_v38, %v20639_v53  ;;  %v3740_v30 = vsel %vm738_vm2, %v20513_v41, %v20642_v5  ;;  %v20647_v38 = vld [vmem:[#allocation371_spill] sm:$0xff] }
 0x456   :  { %v3592_v31 = vpop.permute.xlu0 %3591  ;;  %v3594_v17 = vpop.permute.xlu1 %3593  ;;  %v3866_v48 = vsel %vm3827_vm3, %v3801_v13, %v20640_v20 }
 0x457   :  { %v4189_v61 = vsel %vm4152_vm8, %v4124_v43, %v3592_v31  ;;  %v4190_v12 = vsel %vm4152_vm8, %v4125_v6, %v3594_v17  ;;  %v3931_v58 = vsel %vm3892_vm1, %v3866_v48, %v20641_v54  ;;  %v20645_v43 = vld [vmem:[#allocation321_spill] sm:$0xff]  ;;  %v20648_v54 = vld [vmem:[#allocation12_spill] sm:$0xff] }
 0x458   :  { %3619 = vrot.lane.b32.xlu0 %v20635_v45, %s11975_s29  ;;  %2875 = vrot.lane.b32.xlu1 %v20634_v44, %s11971_s30  ;;  %v3802_v6 = vsel %vm3765_vm10, %v3740_v30, %v20645_v43 }
 0x459   :  { %10708 = vmatprep.mubr.msk.f32.mxu0 %vm4223_vm9, %v4189_v61 }
 0x45a   :  { %10709 = vmatmul.mubr.msk.f32.gmra.mrb[70].mxu0 %vm4223_vm9, %v4190_v12  ;;  %v3040_v28 = vpop.permute.xlu0 %3039  ;;  %v3042_v1 = vpop.permute.xlu1 %3041  ;;  %v20646_v12 = vld [vmem:[#allocation29_spill] sm:$0xff] }
 0x45b   :  { %v3996_v50 = vsel %vm3957_vm4, %v3931_v58, %v3040_v28  ;;  %v3867_v41 = vsel %vm3827_vm3, %v3802_v6, %v20646_v12  ;;  %v20649_v58 = vld [vmem:[#allocation25_spill] sm:$0xff]  ;;  %v20650_v12 = vld [vmem:[#allocation22_spill] sm:$0xff] }
 0x45c   :  { %3067 = vrot.lane.b32.xlu0 %v20635_v45, %s11972_s25  ;;  %3621 = vrot.lane.b32.xlu1 %v20636_v36, %s11975_s29  ;;  %v3932_v53 = vsel %vm3892_vm1, %v3867_v41, %v20647_v38 }
 0x45e   :  { %v3230_v2 = vpop.permute.xlu0 %3229  ;;  %v3232_v16 = vpop.permute.xlu1 %3231 }
 0x45f   :  { %v4061_v31 = vsel %vm4022_vm5, %v3996_v50, %v3230_v2  ;;  %v3997_v2 = vsel %vm3957_vm4, %v3932_v53, %v3042_v1 }
 0x460   :  { %3069 = vrot.lane.b32.xlu0 %v20636_v36, %s11972_s25  ;;  %3257 = vrot.lane.b32.xlu1 %v20638_v59, %s11973_s27 }
 0x462   :  { %v3413_v26 = vpop.permute.xlu0 %3412  ;;  %v3415_v49 = vpop.permute.xlu1 %3414 }
 0x463   :  { %v4126_v45 = vsel %vm4087_vm6, %v4061_v31, %v3413_v26  ;;  %v4062_v26 = vsel %vm4022_vm5, %v3997_v2, %v3232_v16 }
 0x464   :  { %v10671_v44 = vpop.f32.mrb[56].mxu0  ;;  %3259 = vrot.lane.b32.xlu0 %v20643_v60, %s11973_s27  ;;  %3440 = vrot.lane.b32.xlu1 %v20644_v46, %s11974_s21  ;;  %v4127_v30 = vsel %vm4087_vm6, %v4062_v26, %v3415_v49 }
 0x465   :  { %v10996_v17 = vadd.f32 %v15472_v7, %v10671_v44  ;;  %v4532_v61 = vpop.f32.mrb[57].mxu0 }
 0x466   :  { %v10998_v28 = vadd.f32 %v15472_v7, %v4532_v61  ;;  %v3596_v36 = vpop.permute.xlu0 %3595  ;;  %v3044_v57 = vpop.permute.xlu1 %3043 }
 0x467   :  { %v4872_v13 = vrot.slane %v10996_v17, 1  ;;  %v4191_v20 = vsel %vm4152_vm8, %v4126_v45, %v3596_v36  ;;  %v20651_v45 = vld [vmem:[#allocation320_spill] sm:$0xff]  ;;  %v20652_v36 = vld [vmem:[#allocation10_spill] sm:$0xff] }
 0x468   :  { %v4871_v48 = vrot.slane %v10998_v28, 1  ;;  %3442 = vrot.lane.b32.xlu0 %v20648_v54, %s11974_s21  ;;  %3623 = vrot.lane.b32.xlu1 %v20649_v58, %s11975_s29  ;;  %v3741_v38 = vsel %vm738_vm2, %v20526_v55, %v20652_v36  ;;  %v20659_v36 = vld [vmem:[#allocation302_spill] sm:$0xff] }
 0x469   :  { %v4947_v5 = vsel %vm1380_vm7, %v4872_v13, 0.0  ;;  %10711 = vmatprep.mubr.msk.f32.mxu0 %vm4223_vm9, %v4191_v20  ;;  %v20654_v20 = vld [vmem:[#allocation36_spill] sm:$0xff] }
 0x46a   :  { %v4966_v50 = vadd.f32 %v10996_v17, %v4947_v5  ;;  %v4873_v44 = vsel %vm1380_vm7, %v4871_v48, %v4872_v13  ;;  %v3598_v43 = vpop.permute.xlu0 %3597  ;;  %v3046_v1 = vpop.permute.xlu1 %3045  ;;  %v20653_v13 = vld [vmem:[#allocation19_spill] sm:$0xff]  ;;  %v3803_v2 = vsel %vm3765_vm10, %v3741_v38, %v20654_v20 }
 0x46b   :  { %v4965_v6 = vadd.f32 %v10998_v28, %v4873_v44  ;;  %v4192_v31 = vsel %vm4152_vm8, %v4127_v30, %v3598_v43  ;;  %v3742_v28 = vsel %vm738_vm2, %v20527_v10, %v20651_v45  ;;  %v20655_v10 = vld [vmem:[#allocation329_spill] sm:$0xff]  ;;  %v20657_v43 = vld [vmem:[#allocation68_spill] sm:$0xff] }
 0x46c   :  { %v4998_v61 = vmul.f32 0.25, %v4966_v50  ;;  %3625 = vrot.lane.b32.xlu0 %v20650_v12, %s11975_s29  ;;  %2877 = vrot.lane.b32.xlu1 %v20644_v46, %s11971_s30  ;;  %v3804_v46 = vsel %vm3765_vm10, %v3742_v28, %v20653_v13  ;;  %v3868_v26 = vsel %vm3827_vm3, %v3803_v2, %v20655_v10  ;;  %v20656_v50 = vld [vmem:[#allocation350_spill] sm:$0xff] }
 0x46d   :  { %v4997_v16 = vmul.f32 0.25, %v4965_v6  ;;  %10712 = vmatmul.mubr.msk.f32.gmra.mrb[70].mxu0 %vm4223_vm9, %v4192_v31  ;;  %v3869_v44 = vsel %vm3827_vm3, %v3804_v46, %v20656_v50  ;;  %v3933_v6 = vsel %vm3892_vm1, %v3868_v26, %v20657_v43  ;;  %v20660_v26 = vld [vmem:[#allocation301_spill] sm:$0xff] }
 0x46e   :  { %vm5030_vm11 = vcmp.gt.f32.partialorder %v4998_v61, 0.0  ;;  %v5062_v49 = vmul.f32 0.2, %v4998_v61  ;;  %v3234_v17 = vpop.permute.xlu0 %3233  ;;  %v3236_v41 = vpop.permute.xlu1 %3235  ;;  %v3998_v45 = vsel %vm3957_vm4, %v3933_v6, %v3044_v57  ;;  %v20662_v50 = vld [vmem:[#allocation21_spill] sm:$0xff]  ;;  %v20663_v6 = vld [vmem:[#allocation39_spill] sm:$0xff] }
 0x46f   :  { %vm5029_vm12 = vcmp.gt.f32.partialorder %v4997_v16, 0.0  ;;  %v5061_v53 = vmul.f32 0.2, %v4997_v16  ;;  %v4063_v57 = vsel %vm4022_vm5, %v3998_v45, %v3234_v17 }
 0x470   :  { %v15742_v48 = vsel %vm5030_vm11, %v4998_v61, %v5062_v49  ;;  %2879 = vrot.lane.b32.xlu0 %v20648_v54, %s11971_s30  ;;  %3071 = vrot.lane.b32.xlu1 %v20649_v58, %s11972_s25  ;;  %v20658_v49 = vld [vmem:[#allocation372_spill] sm:$0xff] }
 0x471   :  { %v15750_v55 = vsel %vm5029_vm12, %v4997_v16, %v5061_v53  ;;  %v5161_v5 = vrot.slane %v15742_v48, 6  ;;  %v19899_v30 = vrot.slane %v15742_v48, 2  ;;  %v3934_v16 = vsel %vm3892_vm1, %v3869_v44, %v20658_v49 }
 0x472   :  { %v3417_v31 = vpop.permute.xlu0 %3416  ;;  %v3419_v54 = vpop.permute.xlu1 %3418  ;;  %v19900_v61 = vrot.slane %v15750_v55, 6  ;;  %v5255_v58 = vrot.slane %v15750_v55, 2  ;;  %v3999_v28 = vsel %vm3957_vm4, %v3934_v16, %v3046_v1  ;;  %v20666_v16 = vld [vmem:[#allocation351_spill] sm:$0xff] }
 0x473   :  { %v4064_v1 = vsel %vm4022_vm5, %v3999_v28, %v3236_v41  ;;  %v4128_v13 = vsel %vm4087_vm6, %v4063_v57, %v3417_v31  ;;  %v3743_v31 = vsel %vm738_vm2, %v20540_v62, %v20663_v6 }
 0x474   :  { %3073 = vrot.lane.b32.xlu0 %v20650_v12, %s11972_s25  ;;  %3261 = vrot.lane.b32.xlu1 %v20659_v36, %s11973_s27  ;;  %v15771_v38 = vsel %vm5153_vm14, %v19900_v61, %v5161_v5  ;;  %v15776_v53 = vsel %vm5248_vm13, %v5255_v58, %v19899_v30  ;;  %v4129_v12 = vsel %vm4087_vm6, %v4064_v1, %v3419_v54  ;;  %v20661_v5 = vld [vmem:[#allocation28_spill] sm:$0xff]  ;;  %v20664_v54 = vld [vmem:[#allocation35_spill] sm:$0xff]  ;;  %v20667_v1 = vld [vmem:[#allocation65_spill] sm:$0xff] }
 0x475   :  { %v20665_v58 = vld [vmem:[#allocation56_spill] sm:$0xff]  ;;  %v20685_v61 = vld [vmem:[#allocation374_spill] sm:$0xff] }
 0x476   :  { %v3600_v46 = vpop.permute.xlu0 %3599  ;;  %v3602_v20 = vpop.permute.xlu1 %3601  ;;  %v3805_v49 = vsel %vm3765_vm10, %v3743_v31, %v20665_v58  ;;  %v20671_v58 = vld [vmem:[#allocation352_spill] sm:$0xff] }
 0x477   :  { %v4193_v2 = vsel %vm4152_vm8, %v4128_v13, %v3600_v46  ;;  %v4194_v10 = vsel %vm4152_vm8, %v4129_v12, %v3602_v20  ;;  %v3870_v45 = vsel %vm3827_vm3, %v3805_v49, %v20666_v16  ;;  %v20668_v12 = vld [vmem:[#allocation26_spill] sm:$0xff] }
 0x478   :  { %3263 = vrot.lane.b32.xlu0 %v20660_v26, %s11973_s27  ;;  %3444 = vrot.lane.b32.xlu1 %v20661_v5, %s11974_s21  ;;  %v3935_v13 = vsel %vm3892_vm1, %v3870_v45, %v20667_v1  ;;  %v3744_v62 = vsel %vm738_vm2, %v20541_v39, %v20668_v12  ;;  %v20672_v45 = vld [vmem:[#allocation373_spill] sm:$0xff] }
 0x479   :  { %10714 = vmatprep.mubr.msk.f32.mxu0 %vm4223_vm9, %v4193_v2  ;;  %v20669_v2 = vld [vmem:[#allocation32_spill] sm:$0xff] }
 0x47a   :  { %10715 = vmatmul.mubr.msk.f32.gmra.mrb[72].mxu0 %vm4223_vm9, %v4194_v10  ;;  %v3048_v17 = vpop.permute.xlu0 %3047  ;;  %v3050_v41 = vpop.permute.xlu1 %3049  ;;  %v20670_v10 = vld [vmem:[#allocation326_spill] sm:$0xff] }
 0x47b   :  { %v4000_v46 = vsel %vm3957_vm4, %v3935_v13, %v3048_v17 }
 0x47c   :  { %2881 = vrot.lane.b32.xlu0 %v20661_v5, %s11971_s30  ;;  %3446 = vrot.lane.b32.xlu1 %v20662_v50, %s11974_s21  ;;  %v3806_v5 = vsel %vm3765_vm10, %v3744_v62, %v20670_v10 }
 0x47d   :  { %v3871_v39 = vsel %vm3827_vm3, %v3806_v5, %v20671_v58 }
 0x47e   :  { %v3238_v44 = vpop.permute.xlu0 %3237  ;;  %v3240_v43 = vpop.permute.xlu1 %3239  ;;  %v3936_v1 = vsel %vm3892_vm1, %v3871_v39, %v20672_v45 }
 0x480   :  { %3627 = vrot.lane.b32.xlu0 %v20664_v54, %s11975_s29  ;;  %2883 = vrot.lane.b32.xlu1 %v20662_v50, %s11971_s30  ;;  %v4065_v50 = vsel %vm4022_vm5, %v4000_v46, %v3238_v44  ;;  %v4001_v44 = vsel %vm3957_vm4, %v3936_v1, %v3050_v41  ;;  %v20673_v46 = vld [vmem:[#allocation307_spill] sm:$0xff]  ;;  %v20676_v1 = vld [vmem:[#allocation49_spill] sm:$0xff] }
 0x482   :  { %v3421_v28 = vpop.permute.xlu0 %3420  ;;  %v3423_v57 = vpop.permute.xlu1 %3422 }
 0x483   :  { %v4130_v17 = vsel %vm4087_vm6, %v4065_v50, %v3421_v28  ;;  %v4066_v28 = vsel %vm4022_vm5, %v4001_v44, %v3240_v43  ;;  %v20675_v43 = vld [vmem:[#allocation38_spill] sm:$0xff] }
 0x484   :  { %v10677_v20 = vpop.f32.mrb[58].mxu0  ;;  %3075 = vrot.lane.b32.xlu0 %v20664_v54, %s11972_s25  ;;  %3629 = vrot.lane.b32.xlu1 %v20669_v2, %s11975_s29  ;;  %v4131_v10 = vsel %vm4087_vm6, %v4066_v28, %v3423_v57 }
 0x485   :  { %v11000_v6 = vadd.f32 %v15472_v7, %v10677_v20  ;;  %v4552_v31 = vpop.f32.mrb[59].mxu0 }
 0x486   :  { %v11002_v49 = vadd.f32 %v15472_v7, %v4552_v31  ;;  %v3604_v16 = vpop.permute.xlu0 %3603  ;;  %v3052_v54 = vpop.permute.xlu1 %3051 }
 0x487   :  { %v4875_v13 = vrot.slane %v11000_v6, 1  ;;  %v4195_v12 = vsel %vm4152_vm8, %v4130_v17, %v3604_v16  ;;  %v20674_v17 = vld [vmem:[#allocation304_spill] sm:$0xff] }
 0x488   :  { %v4874_v62 = vrot.slane %v11002_v49, 1  ;;  %3077 = vrot.lane.b32.xlu0 %v20669_v2, %s11972_s25  ;;  %3265 = vrot.lane.b32.xlu1 %v20673_v46, %s11973_s27 }
 0x489   :  { %v4948_v20 = vsel %vm1380_vm7, %v4875_v13, 0.0  ;;  %10717 = vmatprep.mubr.msk.f32.mxu0 %vm4223_vm9, %v4195_v12 }
 0x48a   :  { %v4968_v5 = vadd.f32 %v11000_v6, %v4948_v20  ;;  %v4876_v50 = vsel %vm1380_vm7, %v4874_v62, %v4875_v13  ;;  %v3606_v31 = vpop.permute.xlu0 %3605  ;;  %v3054_v41 = vpop.permute.xlu1 %3053  ;;  %v20677_v13 = vld [vmem:[#allocation328_spill] sm:$0xff]  ;;  %v20678_v62 = vld [vmem:[#allocation330_spill] sm:$0xff]  ;;  %v20679_v20 = vld [vmem:[#allocation335_spill] sm:$0xff] }
 0x48b   :  { %v4967_v58 = vadd.f32 %v11002_v49, %v4876_v50  ;;  %v4196_v39 = vsel %vm4152_vm8, %v4131_v10, %v3606_v31  ;;  %v3746_v49 = vsel %vm738_vm2, %v20555_v25, %v20676_v1  ;;  %v3745_v12 = vsel %vm738_vm2, %v20554_v22, %v20677_v13  ;;  %v20680_v50 = vld [vmem:[#allocation31_spill] sm:$0xff]  ;;  %v20681_v31 = vld [vmem:[#allocation45_spill] sm:$0xff] }
 0x48c   :  { %v5000_v2 = vmul.f32 0.25, %v4968_v5  ;;  %3267 = vrot.lane.b32.xlu0 %v20674_v17, %s11973_s27  ;;  %3448 = vrot.lane.b32.xlu1 %v20675_v43, %s11974_s21  ;;  %v3808_v28 = vsel %vm3765_vm10, %v3746_v49, %v20678_v62  ;;  %v3807_v10 = vsel %vm3765_vm10, %v3745_v12, %v20679_v20  ;;  %v20682_v25 = vld [vmem:[#allocation353_spill] sm:$0xff]  ;;  %v20683_v49 = vld [vmem:[#allocation354_spill] sm:$0xff] }
 0x48d   :  { %v4999_v16 = vmul.f32 0.25, %v4967_v58  ;;  %10718 = vmatmul.mubr.msk.f32.gmra.mrb[72].mxu0 %vm4223_vm9, %v4196_v39  ;;  %v3872_v58 = vsel %vm3827_vm3, %v3807_v10, %v20682_v25  ;;  %v3873_v13 = vsel %vm3827_vm3, %v3808_v28, %v20683_v49  ;;  %v20686_v25 = vld [vmem:[#allocation42_spill] sm:$0xff] }
 0x48e   :  { %vm5032_vm15 = vcmp.gt.f32.partialorder %v5000_v2, 0.0  ;;  %v5064_v57 = vmul.f32 0.2, %v5000_v2  ;;  %v3242_v6 = vpop.permute.xlu0 %3241  ;;  %v3244_v45 = vpop.permute.xlu1 %3243 }
 0x48f   :  { %vm5031_vm0 = vcmp.gt.f32.partialorder %v4999_v16, 0.0  ;;  %v5063_v44 = vmul.f32 0.2, %v4999_v16 }
 0x490   :  { %v15852_v5 = vsel %vm5032_vm15, %v5000_v2, %v5064_v57  ;;  %3450 = vrot.lane.b32.xlu0 %v20680_v50, %s11974_s21  ;;  %3631 = vrot.lane.b32.xlu1 %v20681_v31, %s11975_s29  ;;  %v20684_v2 = vld [vmem:[#allocation82_spill] sm:$0xff] }
 0x491   :  { %v15860_v22 = vsel %vm5031_vm0, %v4999_v16, %v5063_v44  ;;  %v5164_v39 = vrot.slane %v15852_v5, 6  ;;  %v19901_v1 = vrot.slane %v15852_v5, 2  ;;  %v3937_v57 = vsel %vm3892_vm1, %v3872_v58, %v20684_v2 }
 0x492   :  { %v3425_v12 = vpop.permute.xlu0 %3424  ;;  %v3427_v62 = vpop.permute.xlu1 %3426  ;;  %v19902_v20 = vrot.slane %v15860_v22, 6  ;;  %v5258_v30 = vrot.slane %v15860_v22, 2  ;;  %v3938_v16 = vsel %vm3892_vm1, %v3873_v13, %v20685_v61  ;;  %v4002_v44 = vsel %vm3957_vm4, %v3937_v57, %v3052_v54 }
 0x493   :  { %v4003_v10 = vsel %vm3957_vm4, %v3938_v16, %v3054_v41  ;;  %v4067_v61 = vsel %vm4022_vm5, %v4002_v44, %v3242_v6  ;;  %v20690_v16 = vld [vmem:[#allocation48_spill] sm:$0xff]  ;;  %v20691_v44 = vld [vmem:[#allocation339_spill] sm:$0xff] }
 0x494   :  { %3633 = vrot.lane.b32.xlu0 %v20686_v25, %s11975_s29  ;;  %2885 = vrot.lane.b32.xlu1 %v20675_v43, %s11971_s30  ;;  %v15881_v28 = vsel %vm5153_vm14, %v19902_v20, %v5164_v39  ;;  %v15886_v58 = vsel %vm5248_vm13, %v5258_v30, %v19901_v1  ;;  %v4068_v54 = vsel %vm4022_vm5, %v4003_v10, %v3244_v45  ;;  %v20687_v45 = vld [vmem:[#allocation314_spill] sm:$0xff]  ;;  %v20698_v1 = vld [vmem:[#allocation376_spill] sm:$0xff] }
 0x495   :  { %v4132_v41 = vsel %vm4087_vm6, %v4067_v61, %v3425_v12  ;;  %v4133_v49 = vsel %vm4087_vm6, %v4068_v54, %v3427_v62  ;;  %v20688_v62 = vld [vmem:[#allocation333_spill] sm:$0xff]  ;;  %v20692_v61 = vld [vmem:[#allocation355_spill] sm:$0xff] }
 0x496   :  { %v3608_v13 = vpop.permute.xlu0 %3607  ;;  %v3610_v43 = vpop.permute.xlu1 %3609 }
 0x497   :  { %v4197_v2 = vsel %vm4152_vm8, %v4132_v41, %v3608_v13  ;;  %v4198_v39 = vsel %vm4152_vm8, %v4133_v49, %v3610_v43  ;;  %v20693_v49 = vld [vmem:[#allocation375_spill] sm:$0xff]  ;;  %v20694_v43 = vld [vmem:[#allocation332_spill] sm:$0xff] }
 0x498   :  { %2887 = vrot.lane.b32.xlu0 %v20680_v50, %s11971_s30  ;;  %3079 = vrot.lane.b32.xlu1 %v20681_v31, %s11972_s25  ;;  %v3747_v50 = vsel %vm738_vm2, %v20568_v19, %v20688_v62  ;;  %v20689_v31 = vld [vmem:[#allocation313_spill] sm:$0xff]  ;;  %v3748_v19 = vsel %vm738_vm2, %v20569_v23, %v20694_v43 }
 0x499   :  { %10720 = vmatprep.mubr.msk.f32.mxu0 %vm4223_vm9, %v4197_v2  ;;  %v3809_v10 = vsel %vm3765_vm10, %v3747_v50, %v20691_v44  ;;  %v20695_v62 = vld [vmem:[#allocation41_spill] sm:$0xff]  ;;  %v20696_v50 = vld [vmem:[#allocation336_spill] sm:$0xff] }
 0x49a   :  { %10721 = vmatmul.mubr.msk.f32.gmra.mrb[74].mxu0 %vm4223_vm9, %v4198_v39  ;;  %v3056_v30 = vpop.permute.xlu0 %3055  ;;  %v3058_v6 = vpop.permute.xlu1 %3057  ;;  %v3810_v44 = vsel %vm3765_vm10, %v3748_v19, %v20696_v50 }
 0x49c   :  { %3081 = vrot.lane.b32.xlu0 %v20686_v25, %s11972_s25  ;;  %3269 = vrot.lane.b32.xlu1 %v20687_v45, %s11973_s27  ;;  %v3874_v25 = vsel %vm3827_vm3, %v3809_v10, %v20692_v61 }
 0x49d   :  { %v3939_v13 = vsel %vm3892_vm1, %v3874_v25, %v20693_v49  ;;  %v20697_v49 = vld [vmem:[#allocation356_spill] sm:$0xff] }
 0x49e   :  { %v3246_v57 = vpop.permute.xlu0 %3245  ;;  %v3248_v12 = vpop.permute.xlu1 %3247  ;;  %v4004_v2 = vsel %vm3957_vm4, %v3939_v13, %v3056_v30  ;;  %v3875_v23 = vsel %vm3827_vm3, %v3810_v44, %v20697_v49 }
 0x49f   :  { %v4069_v10 = vsel %vm4022_vm5, %v4004_v2, %v3246_v57  ;;  %v3940_v20 = vsel %vm3892_vm1, %v3875_v23, %v20698_v1 }
 0x4a0   :  { %3271 = vrot.lane.b32.xlu0 %v20689_v31, %s11973_s27  ;;  %3452 = vrot.lane.b32.xlu1 %v20690_v16, %s11974_s21  ;;  %v4005_v57 = vsel %vm3957_vm4, %v3940_v20, %v3058_v6 }
 0x4a2   :  { %v3429_v54 = vpop.permute.xlu0 %3428  ;;  %v3431_v41 = vpop.permute.xlu1 %3430 }
 0x4a3   :  { %v4134_v30 = vsel %vm4087_vm6, %v4069_v10, %v3429_v54  ;;  %v4070_v54 = vsel %vm4022_vm5, %v4005_v57, %v3248_v12  ;;  %v20700_v12 = vld [vmem:[#allocation52_spill] sm:$0xff] }
 0x4a4   :  { %v10683_v39 = vpop.f32.mrb[60].mxu0  ;;  %2889 = vrot.lane.b32.xlu0 %v20690_v16, %s11971_s30  ;;  %3454 = vrot.lane.b32.xlu1 %v20695_v62, %s11974_s21  ;;  %v4135_v1 = vsel %vm4087_vm6, %v4070_v54, %v3431_v41  ;;  %v20704_v54 = vld [vmem:[#allocation343_spill] sm:$0xff] }
 0x4a5   :  { %v11004_v61 = vadd.f32 %v15472_v7, %v10683_v39  ;;  %v4572_v25 = vpop.f32.mrb[61].mxu0  ;;  %v20699_v39 = vld [vmem:[#allocation53_spill] sm:$0xff] }
 0x4a6   :  { %v11006_v13 = vadd.f32 %v15472_v7, %v4572_v25  ;;  %v3612_v43 = vpop.permute.xlu0 %3611  ;;  %v3060_v16 = vpop.permute.xlu1 %3059 }
 0x4a7   :  { %v4878_v21 = vrot.slane %v11004_v61, 1  ;;  %v4199_v19 = vsel %vm4152_vm8, %v4134_v30, %v3612_v43  ;;  %v20702_v43 = vld [vmem:[#allocation338_spill] sm:$0xff] }
 0x4a8   :  { %v4877_v2 = vrot.slane %v11006_v13, 1  ;;  %3635 = vrot.lane.b32.xlu0 %v20699_v39, %s11975_s29  ;;  %2891 = vrot.lane.b32.xlu1 %v20695_v62, %s11971_s30 }
 0x4a9   :  { %v4949_v50 = vsel %vm1380_vm7, %v4878_v21, 0.0  ;;  %10723 = vmatprep.mubr.msk.f32.mxu0 %vm4223_vm9, %v4199_v19  ;;  %v3749_v19 = vsel %vm738_vm2, %v20582_v8, %v20702_v43 }
 0x4aa   :  { %v4970_v44 = vadd.f32 %v11004_v61, %v4949_v50  ;;  %v4879_v10 = vsel %vm1380_vm7, %v4877_v2, %v4878_v21  ;;  %v3614_v25 = vpop.permute.xlu0 %3613  ;;  %v3062_v20 = vpop.permute.xlu1 %3061  ;;  %v20701_v21 = vld [vmem:[#allocation337_spill] sm:$0xff]  ;;  %v20703_v2 = vld [vmem:[#allocation340_spill] sm:$0xff]  ;;  %v3811_v50 = vsel %vm3765_vm10, %v3749_v19, %v20704_v54 }
 0x4ab   :  { %v4969_v6 = vadd.f32 %v11006_v13, %v4879_v10  ;;  %v4200_v49 = vsel %vm4152_vm8, %v4135_v1, %v3614_v25  ;;  %v3750_v13 = vsel %vm738_vm2, %v20583_v18, %v20701_v21  ;;  %v20706_v18 = vld [vmem:[#allocation357_spill] sm:$0xff] }
 0x4ac   :  { %v5002_v23 = vmul.f32 0.25, %v4970_v44  ;;  %3083 = vrot.lane.b32.xlu0 %v20699_v39, %s11972_s25  ;;  %3637 = vrot.lane.b32.xlu1 %v20700_v12, %s11975_s29  ;;  %v3812_v39 = vsel %vm3765_vm10, %v3750_v13, %v20703_v2  ;;  %v20705_v44 = vld [vmem:[#allocation317_spill] sm:$0xff]  ;;  %v3876_v10 = vsel %vm3827_vm3, %v3811_v50, %v20706_v18 }
 0x4ad   :  { %v5001_v62 = vmul.f32 0.25, %v4969_v6  ;;  %10724 = vmatmul.mubr.msk.f32.gmra.mrb[74].mxu0 %vm4223_vm9, %v4200_v49  ;;  %v20707_v49 = vld [vmem:[#allocation358_spill] sm:$0xff]  ;;  %v20709_v2 = vld [vmem:[#allocation377_spill] sm:$0xff] }
 0x4ae   :  { %vm5034_vm11 = vcmp.gt.f32.partialorder %v5002_v23, 0.0  ;;  %v5066_v41 = vmul.f32 0.2, %v5002_v23  ;;  %v3250_v61 = vpop.permute.xlu0 %3249  ;;  %v3252_v30 = vpop.permute.xlu1 %3251  ;;  %v3877_v21 = vsel %vm3827_vm3, %v3812_v39, %v20707_v49  ;;  %v20710_v54 = vld [vmem:[#allocation309_spill] sm:$0xff]  ;;  %v20712_v49 = vld [vmem:[#allocation318_spill] sm:$0xff] }
 0x4af   :  { %vm5033_vm12 = vcmp.gt.f32.partialorder %v5001_v62, 0.0  ;;  %v5065_v57 = vmul.f32 0.2, %v5001_v62  ;;  %v2081_v50 = vrot.slane %v20710_v54, 1 }
 0x4b0   :  { %v15962_v1 = vsel %vm5034_vm11, %v5002_v23, %v5066_v41  ;;  %3085 = vrot.lane.b32.xlu0 %v20700_v12, %s11972_s25  ;;  %3273 = vrot.lane.b32.xlu1 %v20705_v44, %s11973_s27  ;;  %v20708_v23 = vld [vmem:[#allocation78_spill] sm:$0xff]  ;;  %v20711_v44 = vld [vmem:[#allocation308_spill] sm:$0xff] }
 0x4b1   :  { %v15970_v8 = vsel %vm5033_vm12, %v5001_v62, %v5065_v57  ;;  %v5167_v25 = vrot.slane %v15962_v1, 6  ;;  %v19905_v6 = vrot.slane %v15962_v1, 2  ;;  %v3941_v41 = vsel %vm3892_vm1, %v3876_v10, %v20708_v23 }
 0x4b2   :  { %v3433_v13 = vpop.permute.xlu0 %3432  ;;  %v3435_v12 = vpop.permute.xlu1 %3434  ;;  %v19904_v43 = vrot.slane %v15970_v8, 6  ;;  %v5261_v19 = vrot.slane %v15970_v8, 2  ;;  %v3942_v62 = vsel %vm3892_vm1, %v3877_v21, %v20709_v2  ;;  %v4006_v57 = vsel %vm3957_vm4, %v3941_v41, %v3060_v16 }
 0x4b3   :  { %v2082_v18 = vrot.slane %v20711_v44, 1  ;;  %v4007_v39 = vsel %vm3957_vm4, %v3942_v62, %v3062_v20  ;;  %v4071_v21 = vsel %vm4022_vm5, %v4006_v57, %v3250_v61 }
 0x4b4   :  { %3275 = vrot.lane.b32.xlu0 %v20712_v49, %s11973_s27  ;;  %3456 = vrot.lane.b32.xlu1 %v20710_v54, %s11974_s21  ;;  %v15993_v10 = vsel %vm5153_vm14, %v19904_v43, %v5167_v25  ;;  %v15998_v16 = vsel %vm5248_vm13, %v5261_v19, %v19905_v6  ;;  %v4072_v20 = vsel %vm4022_vm5, %v4007_v39, %v3252_v30  ;;  %v16022_v39 = vsel %vm5153_vm14, 0.0, %v5154_v42 }
 0x4b5   :  { %v4136_v23 = vsel %vm4087_vm6, %v4071_v21, %v3433_v13  ;;  %v4137_v41 = vsel %vm4087_vm6, %v4072_v20, %v3435_v12  ;;  %v2083_v43 = vsel %vm1380_vm7, %v2081_v50, %v2082_v18  ;;  %v2147_v13 = vsel %vm1380_vm7, %v2082_v18, 0.0  ;;  %v20713_v18 = vld [vmem:[#allocation342_spill] sm:$0xff] }
 0x4b6   :  { %v3616_v2 = vpop.permute.xlu0 %3615  ;;  %v3618_v62 = vpop.permute.xlu1 %3617  ;;  %v3751_v21 = vsel %vm738_vm2, %v20597_v3, %v20713_v18  ;;  %v20717_v18 = vld [vmem:[#allocation341_spill] sm:$0xff] }
 0x4b7   :  { %v4201_v49 = vsel %vm4152_vm8, %v4136_v23, %v3616_v2  ;;  %v4202_v25 = vsel %vm4152_vm8, %v4137_v41, %v3618_v62  ;;  %v20715_v41 = vld [vmem:[#allocation359_spill] sm:$0xff]  ;;  %v3752_v6 = vsel %vm738_vm2, %v20598_v47, %v20717_v18 }
 0x4b8   :  { %3458 = vrot.lane.b32.xlu0 %v20711_v44, %s11974_s21  ;;  %3639 = vrot.lane.b32.xlu1 %v2083_v43, %s11975_s29 }
 0x4b9   :  { %10726 = vmatprep.mubr.msk.f32.mxu0 %vm4223_vm9, %v4201_v49  ;;  %v20716_v49 = vld [vmem:[#allocation75_spill] sm:$0xff] }
 0x4ba   :  { %10727 = vmatmul.mubr.msk.f32.gmra.mrb[76].mxu0 %vm4223_vm9, %v4202_v25  ;;  %v2872_v61 = vpop.permute.xlu0 %2871  ;;  %v3064_v30 = vpop.permute.xlu1 %3063 }
 0x4bc   :  { %3641 = vrot.lane.b32.xlu0 %v2147_v13, %s11975_s29  ;;  %2893 = vrot.lane.b32.xlu1 %v20710_v54, %s11971_s30  ;;  %v20714_v54 = vld [vmem:[#allocation347_spill] sm:$0xff] }
 0x4be   :  { %v3066_v12 = vpop.permute.xlu0 %3065  ;;  %v3254_v19 = vpop.permute.xlu1 %3253 }
 0x4c0   :  { %2895 = vrot.lane.b32.xlu0 %v20711_v44, %s11971_s30  ;;  %3087 = vrot.lane.b32.xlu1 %v2083_v43, %s11972_s25  ;;  %v3813_v43 = vsel %vm3765_vm10, %v3751_v21, %v20714_v54  ;;  %v20718_v54 = vld [vmem:[#allocation344_spill] sm:$0xff] }
 0x4c1   :  { %v3878_v42 = vsel %vm3827_vm3, %v3813_v43, %v20715_v41  ;;  %v3814_v43 = vsel %vm3765_vm10, %v3752_v6, %v20718_v54 }
 0x4c2   :  { %v3256_v57 = vpop.permute.xlu0 %3255  ;;  %v3437_v50 = vpop.permute.xlu1 %3436  ;;  %v3943_v25 = vsel %vm3892_vm1, %v3878_v42, %v20716_v49  ;;  %v20719_v42 = vld [vmem:[#allocation360_spill] sm:$0xff] }
 0x4c3   :  { %v4008_v21 = vsel %vm3957_vm4, %v3943_v25, %v3064_v30  ;;  %v3879_v49 = vsel %vm3827_vm3, %v3814_v43, %v20719_v42 }
 0x4c4   :  { %v10689_v20 = vpop.f32.mrb[62].mxu0  ;;  %3089 = vrot.lane.b32.xlu0 %v2147_v13, %s11972_s25  ;;  %5527 = vrot.lane.b32.xlu1 %v16022_v39, %s11970_s22  ;;  %v3944_v27 = vsel %vm3892_vm1, %v3879_v49, %v2872_v61  ;;  %v727_v61 = vld [vmem:[%s19537_s5] sm:$0xff] }
 0x4c5   :  { %v11008_v44 = vadd.f32 %v15472_v7, %v10689_v20  ;;  %v4592_v23 = vpop.f32.mrb[63].mxu0 }
 0x4c6   :  { %v11010_v2 = vadd.f32 %v15472_v7, %v4592_v23  ;;  %v16036_v62 = vpop.permute.xlu0 %2873  ;;  %v3439_v3 = vpop.permute.xlu1 %3438  ;;  %v4073_v23 = vsel %vm4022_vm5, %v4008_v21, %v3254_v19  ;;  %v4009_v19 = vsel %vm3957_vm4, %v3944_v27, %v3066_v12  ;;  %v728_v27 = vld [vmem:[%s19537_s5 + $0x8] sm:$0xff] }
 0x4c7   :  { %v4881_v13 = vrot.slane %v11008_v44, 1  ;;  %v4138_v47 = vsel %vm4087_vm6, %v4073_v23, %v3437_v50  ;;  %v4074_v50 = vsel %vm4022_vm5, %v4009_v19, %v3256_v57  ;;  %v10905_v54 = vpack.c.bf16 %v728_v27, %v727_v61  ;;  %v729_v19 = vld [vmem:[%s19537_s5 + $0x10] sm:$0xff]  ;;  %v20723_v27 = vld [vmem:[#allocation361_spill] sm:$0xff] }
 0x4c8   :  { %v4880_v20 = vrot.slane %v11010_v2, 1  ;;  %5623 = vrot.lane.b32.xlu1 %v15529_v51, %s11971_s30  ;;  %5529 = vrot.lane.b32.xlu0 %v15551_v11, %s11970_s22 }
 0x4c9   :  { %v4950_v41 = vsel %vm1380_vm7, %v4881_v13, 0.0  ;;  %10906 = vmatprep.subr.bf16.mxu1 %v10905_v54 }
 0x4ca   :  { %v4972_v30 = vadd.f32 %v11008_v44, %v4950_v41  ;;  %v4882_v25 = vsel %vm1380_vm7, %v4880_v20, %v4881_v13  ;;  %v3620_v18 = vpop.permute.xlu0 %3619  ;;  %v16056_v33 = vpop.permute.xlu1 %2875  ;;  %10908 = vmatpush3.bf16.msra.mxu1 %v10905_v54 }
 0x4cb   :  { %v4971_v52 = vadd.f32 %v11010_v2, %v4882_v25  ;;  %v4203_v6 = vsel %vm4152_vm8, %v4138_v47, %v3620_v18  ;;  %v4139_v2 = vsel %vm4087_vm6, %v4074_v50, %v3439_v3  ;;  %v20721_v18 = vld [vmem:[#allocation346_spill] sm:$0xff] }
 0x4cc   :  { %v5004_v21 = vmul.f32 0.25, %v4972_v30  ;;  %10729 = vmatprep.mubr.msk.f32.mxu0 %vm4223_vm9, %v4203_v6  ;;  %5625 = vrot.lane.b32.xlu1 %v15523_v40, %s11971_s30  ;;  %v20720_v30 = vrot.slane %v15523_v40, 2  ;;  %v3753_v6 = vsel %vm738_vm2, %v20607_v37, %v20721_v18  ;;  %v20722_v37 = vld [vmem:[#allocation349_spill] sm:$0xff]  ;;  %v20726_v18 = vld [vmem:[#allocation348_spill] sm:$0xff] }
 0x4cd   :  { %v5003_v44 = vmul.f32 0.25, %v4971_v52  ;;  %5329 = vrot.lane.b32.xlu0 %v15529_v51, %s11969_s28 }
 0x4ce   :  { %vm5036_vm15 = vcmp.gt.f32.partialorder %v5004_v21, 0.0  ;;  %v5068_v12 = vmul.f32 0.2, %v5004_v21  ;;  %v3068_v13 = vpop.permute.xlu0 %3067  ;;  %v3622_v20 = vpop.permute.xlu1 %3621  ;;  %v5313_v25 = vsel %vm5248_vm13, %v20720_v30, 0.0  ;;  %v731_v30 = vld [vmem:[%s19537_s5 + $0x20] sm:$0xff] }
 0x4cf   :  { %vm5035_vm0 = vcmp.gt.f32.partialorder %v5003_v44, 0.0  ;;  %v5067_v52 = vmul.f32 0.2, %v5003_v44  ;;  %v4204_v57 = vsel %vm4152_vm8, %v4139_v2, %v3622_v20 }
 0x4d0   :  { %v16075_v51 = vsel %vm5036_vm15, %v5004_v21, %v5068_v12  ;;  %10730 = vmatmul.mubr.msk.f32.gmra.mrb[76].mxu0 %vm4223_vm9, %v4204_v57  ;;  %5331 = vrot.lane.b32.xlu1 %v15523_v40, %s11969_s28  ;;  %v730_v21 = vld [vmem:[%s19537_s5 + $0x18] sm:$0xff] }
 0x4d1   :  { %v16080_v43 = vsel %vm5035_vm0, %v5003_v44, %v5067_v52  ;;  %5721 = vrot.lane.b32.xlu0 %v15556_v56, %s11972_s25  ;;  %v5170_v3 = vrot.slane %v16075_v51, 6  ;;  %v19917_v23 = vrot.slane %v16075_v51, 2  ;;  %v3815_v44 = vsel %vm3765_vm10, %v3753_v6, %v20722_v37  ;;  %v20724_v52 = vld [vmem:[#allocation345_spill] sm:$0xff]  ;;  %v20727_v6 = vld [vmem:[#allocation362_spill] sm:$0xff] }
 0x4d2   :  { %v3070_v41 = vpop.permute.xlu0 %3069  ;;  %v3258_v42 = vpop.permute.xlu1 %3257  ;;  %v5169_v49 = vrot.slane %v16080_v43, 6  ;;  %v5264_v47 = vrot.slane %v16080_v43, 2  ;;  %v10909_v61 = vpack.c.bf16 %v730_v21, %v729_v19  ;;  %v3880_v12 = vsel %vm3827_vm3, %v3815_v44, %v20723_v27 }
 0x4d3   :  { %v3945_v54 = vsel %vm3892_vm1, %v3880_v12, %v16036_v62  ;;  %v3754_v57 = vsel %vm738_vm2, %v20608_v9, %v20724_v52  ;;  %v732_v62 = vld [vmem:[%s19537_s5 + $0x28] sm:$0xff] }
 0x4d4   :  { %5723 = vrot.lane.b32.xlu1 %v5313_v25, %s11972_s25  ;;  %v16104_v40 = vsel %vm5153_vm14, %v5169_v49, %v5170_v3  ;;  %v16109_v50 = vsel %vm5248_vm13, %v5264_v47, %v19917_v23  ;;  %10910 = vmatprep.subr.bf16.mxu1 %v10909_v61  ;;  %v4010_v3 = vsel %vm3957_vm4, %v3945_v54, %v3068_v13 }
 0x4d5   :  { %5427 = vrot.lane.b32.xlu0 %v15556_v56, %s11968_s24  ;;  %v20725_v56 = vrot.slane %v15640_v63, 6  ;;  %10912 = vmatpush3.bf16.msra.mxu1 %v10909_v61  ;;  %v3816_v9 = vsel %vm3765_vm10, %v3754_v57, %v20726_v18  ;;  %v4075_v13 = vsel %vm4022_vm5, %v4010_v3, %v3258_v42  ;;  %v733_v42 = vld [vmem:[%s19537_s5 + $0x30] sm:$0xff] }
 0x4d6   :  { %v3260_v2 = vpop.permute.xlu0 %3259  ;;  %v3441_v20 = vpop.permute.xlu1 %3440  ;;  %v3881_v19 = vsel %vm3827_vm3, %v3816_v9, %v20727_v6 }
 0x4d7   :  { %v16127_v47 = vsel %vm5153_vm14, 0.0, %v20725_v56  ;;  %v4140_v21 = vsel %vm4087_vm6, %v4075_v13, %v3441_v20  ;;  %v3946_v61 = vsel %vm3892_vm1, %v3881_v19, %v16056_v33  ;;  %v734_v20 = vld [vmem:[%s19537_s5 + $0x38] sm:$0xff] }
 0x4d8   :  { %5429 = vrot.lane.b32.xlu1 %v5313_v25, %s11968_s24  ;;  %v10913_v25 = vpack.c.bf16 %v732_v62, %v731_v30  ;;  %v4011_v12 = vsel %vm3957_vm4, %v3946_v61, %v3070_v41  ;;  %v10917_v41 = vpack.c.bf16 %v734_v20, %v733_v42  ;;  %v20728_v20 = vrot.slane %v15632_v15, 2 }
 0x4d9   :  { %5817 = vrot.lane.b32.xlu0 %v16127_v47, %s11973_s27  ;;  %v4076_v33 = vsel %vm4022_vm5, %v4011_v12, %v3260_v2  ;;  %v735_v2 = vld [vmem:[%s19537_s5 + $0x40] sm:$0xff] }
 0x4da   :  { %v3443_v37 = vpop.permute.xlu0 %3442  ;;  %v3624_v44 = vpop.permute.xlu1 %3623  ;;  %10914 = vmatprep.subr.bf16.mxu1 %v10913_v25 }
 0x4db   :  { %v4205_v27 = vsel %vm4152_vm8, %v4140_v21, %v3624_v44  ;;  %10916 = vmatpush3.bf16.msra.mxu1 %v10913_v25  ;;  %v4141_v54 = vsel %vm4087_vm6, %v4076_v33, %v3443_v37  ;;  %v16184_v33 = vsel %vm5248_vm13, %v20728_v20, 0.0 }
 0x4dc   :  { %10732 = vmatprep.mubr.msk.f32.mxu0 %vm4223_vm9, %v4205_v27  ;;  %5819 = vrot.lane.b32.xlu1 %v15661_v4, %s11973_s27 }
 0x4dd   :  { %5531 = vrot.lane.b32.xlu0 %v16127_v47, %s11970_s22  ;;  %10918 = vmatprep.subr.bf16.mxu1 %v10917_v41 }
 0x4de   :  { %v3626_v52 = vpop.permute.xlu0 %3625  ;;  %v2878_v57 = vpop.permute.xlu1 %2877 }
 0x4df   :  { %v4206_v3 = vsel %vm4152_vm8, %v4141_v54, %v3626_v52  ;;  %10920 = vmatpush3.bf16.msra.mxu1 %v10917_v41  ;;  %v20729_v41 = vld [vmem:[#allocation66_spill] sm:$0xff] }
 0x4e0   :  { %10733 = vmatmul.mubr.msk.f32.gmra.mrb[78].mxu0 %vm4223_vm9, %v4206_v3  ;;  %5533 = vrot.lane.b32.xlu1 %v15661_v4, %s11970_s22  ;;  %v3755_v54 = vsel %vm738_vm2, %v20623_v34, %v20729_v41  ;;  %v20730_v3 = vld [vmem:[#allocation80_spill] sm:$0xff]  ;;  %v20734_v41 = vld [vmem:[#allocation73_spill] sm:$0xff] }
 0x4e1   :  { %5901 = vrot.lane.b32.xlu0 %v15640_v63, %s11974_s21  ;;  %10766 = vmatprep.subr.mxu1 %v735_v2 }
 0x4e2   :  { %v2880_v56 = vpop.permute.xlu0 %2879  ;;  %v3072_v30 = vpop.permute.xlu1 %3071 }
 0x4e3   :  { %10767 = vmatpush3.msra.mxu1 %v735_v2  ;;  %v3817_v2 = vsel %vm3765_vm10, %v3755_v54, %v20730_v3 }
 0x4e4   :  { %v10695_v62 = vpop.f32.mrb[64].mxu0  ;;  %5903 = vrot.lane.b32.xlu1 %v15632_v15, %s11974_s21 }
 0x4e5   :  { %v11012_v18 = vadd.f32 %v15472_v7, %v10695_v62  ;;  %5627 = vrot.lane.b32.xlu0 %v15640_v63, %s11971_s30  ;;  %v4612_v9 = vpop.f32.mrb[65].mxu0 }
 0x4e6   :  { %v11014_v13 = vadd.f32 %v15472_v7, %v4612_v9  ;;  %v3074_v25 = vpop.permute.xlu0 %3073  ;;  %v3262_v6 = vpop.permute.xlu1 %3261 }
 0x4e7   :  { %v4884_v19 = vrot.slane %v11012_v18, 1 }
 0x4e8   :  { %v4883_v21 = vrot.slane %v11014_v13, 1  ;;  %5629 = vrot.lane.b32.xlu1 %v15632_v15, %s11971_s30 }
 0x4e9   :  { %v4951_v37 = vsel %vm1380_vm7, %v4884_v19, 0.0  ;;  %5985 = vrot.lane.b32.xlu0 %v15666_v29, %s11975_s29 }
 0x4ea   :  { %v4974_v44 = vadd.f32 %v11012_v18, %v4951_v37  ;;  %v4885_v61 = vsel %vm1380_vm7, %v4883_v21, %v4884_v19  ;;  %v3264_v27 = vpop.permute.xlu0 %3263  ;;  %v3445_v12 = vpop.permute.xlu1 %3444  ;;  %v20731_v18 = vld [vmem:[#allocation63_spill] sm:$0xff] }
 0x4eb   :  { %v4973_v42 = vadd.f32 %v11014_v13, %v4885_v61  ;;  %v3756_v9 = vsel %vm738_vm2, %v20628_v0, %v20731_v18  ;;  %v20732_v13 = vld [vmem:[#allocation363_spill] sm:$0xff] }
 0x4ec   :  { %v5006_v52 = vmul.f32 0.25, %v4974_v44  ;;  %5987 = vrot.lane.b32.xlu1 %v16184_v33, %s11975_s29  ;;  %v3882_v19 = vsel %vm3827_vm3, %v3817_v2, %v20732_v13  ;;  %v3818_v54 = vsel %vm3765_vm10, %v3756_v9, %v20734_v41 }
 0x4ed   :  { %v5005_v62 = vmul.f32 0.25, %v4973_v42  ;;  %5725 = vrot.lane.b32.xlu0 %v15666_v29, %s11972_s25  ;;  %v3947_v44 = vsel %vm3892_vm1, %v3882_v19, %v2878_v57  ;;  %v20733_v42 = vrot.slane %v15750_v55, 6  ;;  %v20735_v19 = vld [vmem:[#allocation364_spill] sm:$0xff] }
 0x4ee   :  { %vm5038_vm11 = vcmp.gt.f32.partialorder %v5006_v52, 0.0  ;;  %v5070_v34 = vmul.f32 0.2, %v5006_v52  ;;  %v2882_v21 = vpop.permute.xlu0 %2881  ;;  %v3447_v37 = vpop.permute.xlu1 %3446  ;;  %v4012_v0 = vsel %vm3957_vm4, %v3947_v44, %v3072_v30  ;;  %v3883_v9 = vsel %vm3827_vm3, %v3818_v54, %v20735_v19 }
 0x4ef   :  { %vm5037_vm12 = vcmp.gt.f32.partialorder %v5005_v62, 0.0  ;;  %v5069_v61 = vmul.f32 0.2, %v5005_v62  ;;  %v16204_v20 = vsel %vm5153_vm14, 0.0, %v20733_v42  ;;  %v4077_v57 = vsel %vm4022_vm5, %v4012_v0, %v3262_v6 }
 0x4f0   :  { %v16209_v3 = vsel %vm5038_vm11, %v5006_v52, %v5070_v34  ;;  %5821 = vrot.lane.b32.xlu1 %v16204_v20, %s11973_s27  ;;  %v4142_v30 = vsel %vm4087_vm6, %v4077_v57, %v3445_v12  ;;  %v3948_v6 = vsel %vm3892_vm1, %v3883_v9, %v2880_v56 }
 0x4f1   :  { %v16213_v2 = vsel %vm5037_vm12, %v5005_v62, %v5069_v61  ;;  %5727 = vrot.lane.b32.xlu0 %v16184_v33, %s11972_s25  ;;  %v5173_v18 = vrot.slane %v16209_v3, 6  ;;  %v19909_v13 = vrot.slane %v16209_v3, 2  ;;  %v4013_v42 = vsel %vm3957_vm4, %v3948_v6, %v3074_v25 }
 0x4f2   :  { %v3628_v52 = vpop.permute.xlu0 %3627  ;;  %v2884_v34 = vpop.permute.xlu1 %2883  ;;  %v19916_v44 = vrot.slane %v16213_v2, 6  ;;  %v5267_v62 = vrot.slane %v16213_v2, 2  ;;  %v4078_v56 = vsel %vm4022_vm5, %v4013_v42, %v3264_v27  ;;  %v20736_v27 = vrot.slane %v15742_v48, 2 }
 0x4f3   :  { %v4207_v61 = vsel %vm4152_vm8, %v4142_v30, %v3628_v52  ;;  %v4143_v25 = vsel %vm4087_vm6, %v4078_v56, %v3447_v37  ;;  %v20737_v37 = vld [vmem:[#allocation84_spill] sm:$0xff] }
 0x4f4   :  { %10735 = vmatprep.mubr.msk.f32.mxu0 %vm4223_vm9, %v4207_v61  ;;  %5905 = vrot.lane.b32.xlu1 %v15750_v55, %s11974_s21  ;;  %v16234_v12 = vsel %vm5153_vm14, %v19916_v44, %v5173_v18  ;;  %v16239_v41 = vsel %vm5248_vm13, %v5267_v62, %v19909_v13  ;;  %v16254_v9 = vsel %vm5248_vm13, %v20736_v27, 0.0  ;;  %v3757_v30 = vsel %vm738_vm2, %v20638_v59, %v20737_v37  ;;  %v20738_v52 = vld [vmem:[#allocation96_spill] sm:$0xff]  ;;  %v20739_v61 = vld [vmem:[#allocation365_spill] sm:$0xff]  ;;  %v20740_v27 = vld [vmem:[#allocation74_spill] sm:$0xff] }
 0x4f5   :  { %5823 = vrot.lane.b32.xlu0 %v15771_v38, %s11973_s27  ;;  %v3819_v62 = vsel %vm3765_vm10, %v3757_v30, %v20738_v52  ;;  %v3758_v37 = vsel %vm738_vm2, %v20643_v60, %v20740_v27 }
 0x4f6   :  { %v3076_v54 = vpop.permute.xlu0 %3075  ;;  %v3630_v0 = vpop.permute.xlu1 %3629  ;;  %v3884_v42 = vsel %vm3827_vm3, %v3819_v62, %v20739_v61  ;;  %v20741_v62 = vld [vmem:[#allocation91_spill] sm:$0xff] }
 0x4f7   :  { %v4208_v57 = vsel %vm4152_vm8, %v4143_v25, %v3630_v0 }
 0x4f8   :  { %10736 = vmatmul.mubr.msk.f32.gmra.mrb[78].mxu0 %vm4223_vm9, %v4208_v57  ;;  %5989 = vrot.lane.b32.xlu1 %v15776_v53, %s11975_s29  ;;  %v3949_v57 = vsel %vm3892_vm1, %v3884_v42, %v2882_v21  ;;  %v20742_v21 = vld [vmem:[#allocation366_spill] sm:$0xff] }
 0x4f9   :  { %5907 = vrot.lane.b32.xlu0 %v15742_v48, %s11974_s21  ;;  %v4014_v30 = vsel %vm3957_vm4, %v3949_v57, %v3076_v54 }
 0x4fa   :  { %v3078_v18 = vpop.permute.xlu0 %3077  ;;  %v3266_v19 = vpop.permute.xlu1 %3265 }
 0x4fb   :  { %v4079_v61 = vsel %vm4022_vm5, %v4014_v30, %v3266_v19 }
 0x4fc   :  { %5991 = vrot.lane.b32.xlu1 %v16254_v9, %s11975_s29 }
 0x4fd   :  { %5333 = vrot.lane.b32.xlu0 %v15640_v63, %s11969_s28  ;;  %v10701_v6 = vpop.f32.mrb[66].mxu0 }
 0x4fe   :  { %v11016_v56 = vadd.f32 %v15472_v7, %v10701_v6  ;;  %v3268_v25 = vpop.permute.xlu0 %3267  ;;  %v3449_v0 = vpop.permute.xlu1 %3448  ;;  %v3820_v6 = vsel %vm3765_vm10, %v3758_v37, %v20741_v62 }
 0x4ff   :  { %v4632_v59 = vpop.f32.mrb[67].mxu0  ;;  %v3885_v42 = vsel %vm3827_vm3, %v3820_v6, %v20742_v21  ;;  %v4144_v54 = vsel %vm4087_vm6, %v4079_v61, %v3449_v0 }
 0x500   :  { %v4887_v52 = vrot.slane %v11016_v56, 1  ;;  %v11018_v63 = vadd.f32 %v15472_v7, %v4632_v59  ;;  %5431 = vrot.lane.b32.xlu1 %v15666_v29, %s11968_s24  ;;  %v3950_v29 = vsel %vm3892_vm1, %v3885_v42, %v2884_v34 }
 0x501   :  { %5335 = vrot.lane.b32.xlu0 %v15632_v15, %s11969_s28  ;;  %v4015_v19 = vsel %vm3957_vm4, %v3950_v29, %v3078_v18 }
 0x502   :  { %v4952_v60 = vsel %vm1380_vm7, %v4887_v52, 0.0  ;;  %v4886_v57 = vrot.slane %v11018_v63, 1  ;;  %v3451_v59 = vpop.permute.xlu0 %3450  ;;  %v3632_v27 = vpop.permute.xlu1 %3631  ;;  %v4080_v0 = vsel %vm4022_vm5, %v4015_v19, %v3268_v25  ;;  %v20743_v19 = vrot.slane %v15860_v22, 6 }
 0x503   :  { %v4976_v13 = vadd.f32 %v11016_v56, %v4952_v60  ;;  %v4209_v37 = vsel %vm4152_vm8, %v4144_v54, %v3632_v27  ;;  %v4145_v34 = vsel %vm4087_vm6, %v4080_v0, %v3451_v59 }
 0x504   :  { %v4888_v30 = vsel %vm1380_vm7, %v4886_v57, %v4887_v52  ;;  %10738 = vmatprep.mubr.msk.f32.mxu0 %vm4223_vm9, %v4209_v37  ;;  %5535 = vrot.lane.b32.xlu1 %v16204_v20, %s11970_s22 }
 0x505   :  { %v5008_v15 = vmul.f32 0.25, %v4976_v13  ;;  %v4975_v62 = vadd.f32 %v11018_v63, %v4888_v30  ;;  %5433 = vrot.lane.b32.xlu0 %v16184_v33, %s11968_s24  ;;  %v16327_v30 = vsel %vm5153_vm14, 0.0, %v20743_v19  ;;  %v20747_v19 = vld [vmem:[#allocation90_spill] sm:$0xff] }
 0x506   :  { %v3634_v56 = vpop.permute.xlu0 %3633  ;;  %v2886_v6 = vpop.permute.xlu1 %2885 }
 0x507   :  { %vm5040_vm15 = vcmp.gt.f32.partialorder %v5008_v15, 0.0  ;;  %v5072_v18 = vmul.f32 0.2, %v5008_v15  ;;  %v5007_v61 = vmul.f32 0.25, %v4975_v62  ;;  %v4210_v52 = vsel %vm4152_vm8, %v4145_v34, %v3634_v56  ;;  %v20744_v62 = vld [vmem:[#allocation98_spill] sm:$0xff]  ;;  %v20745_v56 = vld [vmem:[#allocation109_spill] sm:$0xff] }
 0x508   :  { %10739 = vmatmul.mubr.msk.f32.gmra.mrb[80].mxu0 %vm4223_vm9, %v4210_v52  ;;  %5631 = vrot.lane.b32.xlu1 %v15750_v55, %s11971_s30  ;;  %v3759_v34 = vsel %vm738_vm2, %v20659_v36, %v20744_v62  ;;  %v3760_v36 = vsel %vm738_vm2, %v20660_v26, %v20747_v19  ;;  %v20750_v19 = vrot.slane %v15852_v5, 2 }
 0x509   :  { %v16300_v13 = vsel %vm5040_vm15, %v5008_v15, %v5072_v18  ;;  %vm5039_vm0 = vcmp.gt.f32.partialorder %v5007_v61, 0.0  ;;  %v5071_v25 = vmul.f32 0.2, %v5007_v61  ;;  %5537 = vrot.lane.b32.xlu0 %v15771_v38, %s11970_s22  ;;  %v3821_v18 = vsel %vm3765_vm10, %v3759_v34, %v20745_v56  ;;  %v20748_v34 = vld [vmem:[#allocation103_spill] sm:$0xff] }
 0x50a   :  { %v2888_v33 = vpop.permute.xlu0 %2887  ;;  %v3080_v63 = vpop.permute.xlu1 %3079  ;;  %v5176_v21 = vrot.slane %v16300_v13, 6  ;;  %v19910_v42 = vrot.slane %v16300_v13, 2  ;;  %v3822_v56 = vsel %vm3765_vm10, %v3760_v36, %v20748_v34  ;;  %v16364_v36 = vsel %vm5248_vm13, %v20750_v19, 0.0 }
 0x50b   :  { %v16306_v60 = vsel %vm5039_vm0, %v5007_v61, %v5071_v25  ;;  %v20746_v61 = vld [vmem:[#allocation13_spill] sm:$0xff] }
 0x50c   :  { %5729 = vrot.lane.b32.xlu1 %v15776_v53, %s11972_s25  ;;  %v19915_v54 = vrot.slane %v16306_v60, 6  ;;  %v5270_v57 = vrot.slane %v16306_v60, 2  ;;  %v3886_v52 = vsel %vm3827_vm3, %v3821_v18, %v20746_v61  ;;  %v20749_v18 = vld [vmem:[#allocation367_spill] sm:$0xff] }
 0x50d   :  { %5633 = vrot.lane.b32.xlu0 %v15742_v48, %s11971_s30 }
 0x50e   :  { %v3082_v59 = vpop.permute.xlu0 %3081  ;;  %v3270_v27 = vpop.permute.xlu1 %3269  ;;  %v16317_v29 = vsel %vm5153_vm14, %v19915_v54, %v5176_v21  ;;  %v16322_v37 = vsel %vm5248_vm13, %v5270_v57, %v19910_v42  ;;  %v3951_v57 = vsel %vm3892_vm1, %v3886_v52, %v2886_v6  ;;  %v3887_v6 = vsel %vm3827_vm3, %v3822_v56, %v20749_v18 }
 0x50f   :  { %v4016_v62 = vsel %vm3957_vm4, %v3951_v57, %v3080_v63  ;;  %v3952_v63 = vsel %vm3892_vm1, %v3887_v6, %v2888_v33 }
 0x510   :  { %5825 = vrot.lane.b32.xlu1 %v16327_v30, %s11973_s27  ;;  %v4081_v42 = vsel %vm4022_vm5, %v4016_v62, %v3270_v27  ;;  %v4017_v27 = vsel %vm3957_vm4, %v3952_v63, %v3082_v59 }
 0x511   :  { %5731 = vrot.lane.b32.xlu0 %v16254_v9, %s11972_s25 }
 0x512   :  { %v3272_v15 = vpop.permute.xlu0 %3271  ;;  %v3453_v0 = vpop.permute.xlu1 %3452 }
 0x513   :  { %v4146_v61 = vsel %vm4087_vm6, %v4081_v42, %v3453_v0  ;;  %v4082_v42 = vsel %vm4022_vm5, %v4017_v27, %v3272_v15 }
 0x514   :  { %5909 = vrot.lane.b32.xlu1 %v15860_v22, %s11974_s21 }
 0x515   :  { %5827 = vrot.lane.b32.xlu0 %v15881_v28, %s11973_s27 }
 0x516   :  { %v2890_v25 = vpop.permute.xlu0 %2889  ;;  %v3455_v21 = vpop.permute.xlu1 %3454 }
 0x517   :  { %v4147_v33 = vsel %vm4087_vm6, %v4082_v42, %v3455_v21 }
 0x518   :  { %5993 = vrot.lane.b32.xlu1 %v15886_v58, %s11975_s29 }
 0x519   :  { %5911 = vrot.lane.b32.xlu0 %v15852_v5, %s11974_s21 }
 0x51a   :  { %v3636_v52 = vpop.permute.xlu0 %3635  ;;  %v2892_v26 = vpop.permute.xlu1 %2891 }
 0x51b   :  { %v4211_v57 = vsel %vm4152_vm8, %v4146_v61, %v3636_v52  ;;  %v20751_v61 = vld [vmem:[#allocation113_spill] sm:$0xff] }
 0x51c   :  { %10741 = vmatprep.mubr.msk.f32.mxu0 %vm4223_vm9, %v4211_v57  ;;  %5995 = vrot.lane.b32.xlu1 %v16364_v36, %s11975_s29  ;;  %v3761_v52 = vsel %vm738_vm2, %v20673_v46, %v20751_v61 }
 0x51d   :  { %5337 = vrot.lane.b32.xlu0 %v15750_v55, %s11969_s28 }
 0x51e   :  { %v3084_v0 = vpop.permute.xlu0 %3083  ;;  %v3638_v62 = vpop.permute.xlu1 %3637 }
 0x51f   :  { %v4212_v34 = vsel %vm4152_vm8, %v4147_v33, %v3638_v62 }
 0x520   :  { %v10707_v56 = vpop.f32.mrb[68].mxu0  ;;  %10742 = vmatmul.mubr.msk.f32.gmra.mrb[80].mxu0 %vm4223_vm9, %v4212_v34  ;;  %5435 = vrot.lane.b32.xlu1 %v15776_v53, %s11968_s24  ;;  %v20752_v53 = vld [vmem:[#allocation126_spill] sm:$0xff] }
 0x521   :  { %v11020_v59 = vadd.f32 %v15472_v7, %v10707_v56  ;;  %5339 = vrot.lane.b32.xlu0 %v15742_v48, %s11969_s28  ;;  %v4652_v15 = vpop.f32.mrb[69].mxu0  ;;  %v3823_v57 = vsel %vm3765_vm10, %v3761_v52, %v20752_v53  ;;  %v20753_v48 = vld [vmem:[#allocation9_spill] sm:$0xff] }
 0x522   :  { %v11022_v55 = vadd.f32 %v15472_v7, %v4652_v15  ;;  %v3086_v18 = vpop.permute.xlu0 %3085  ;;  %v3274_v21 = vpop.permute.xlu1 %3273  ;;  %v3888_v27 = vsel %vm3827_vm3, %v3823_v57, %v20753_v48  ;;  %v20754_v15 = vld [vmem:[#allocation102_spill] sm:$0xff] }
 0x523   :  { %v4890_v6 = vrot.slane %v11020_v59, 1  ;;  %v3953_v34 = vsel %vm3892_vm1, %v3888_v27, %v2890_v25  ;;  %v3762_v61 = vsel %vm738_vm2, %v20674_v17, %v20754_v15  ;;  %v20756_v25 = vld [vmem:[#allocation27_spill] sm:$0xff] }
 0x524   :  { %v4889_v63 = vrot.slane %v11022_v55, 1  ;;  %5539 = vrot.lane.b32.xlu1 %v16327_v30, %s11970_s22  ;;  %v4018_v52 = vsel %vm3957_vm4, %v3953_v34, %v3084_v0 }
 0x525   :  { %v4953_v19 = vsel %vm1380_vm7, %v4890_v6, 0.0  ;;  %5437 = vrot.lane.b32.xlu0 %v16254_v9, %s11968_s24  ;;  %v20755_v9 = vld [vmem:[#allocation120_spill] sm:$0xff] }
 0x526   :  { %v4978_v42 = vadd.f32 %v11020_v59, %v4953_v19  ;;  %v4891_v33 = vsel %vm1380_vm7, %v4889_v63, %v4890_v6  ;;  %v3276_v62 = vpop.permute.xlu0 %3275  ;;  %v3457_v46 = vpop.permute.xlu1 %3456  ;;  %v3824_v59 = vsel %vm3765_vm10, %v3762_v61, %v20755_v9  ;;  %v4083_v6 = vsel %vm4022_vm5, %v4018_v52, %v3274_v21  ;;  %v20757_v9 = vld [vmem:[#allocation130_spill] sm:$0xff] }
 0x527   :  { %v4977_v56 = vadd.f32 %v11022_v55, %v4891_v33  ;;  %v3889_v55 = vsel %vm3827_vm3, %v3824_v59, %v20756_v25  ;;  %v4148_v0 = vsel %vm4087_vm6, %v4083_v6, %v3457_v46  ;;  %v3763_v59 = vsel %vm738_vm2, %v20687_v45, %v20757_v9  ;;  %v20759_v25 = vld [vmem:[#allocation139_spill] sm:$0xff] }
 0x528   :  { %v5010_v53 = vmul.f32 0.25, %v4978_v42  ;;  %5635 = vrot.lane.b32.xlu1 %v15860_v22, %s11971_s30  ;;  %v3954_v48 = vsel %vm3892_vm1, %v3889_v55, %v2892_v26  ;;  %v3825_v55 = vsel %vm3765_vm10, %v3763_v59, %v20759_v25 }
 0x529   :  { %v5009_v57 = vmul.f32 0.25, %v4977_v56  ;;  %5541 = vrot.lane.b32.xlu0 %v15881_v28, %s11970_s22  ;;  %v4019_v21 = vsel %vm3957_vm4, %v3954_v48, %v3086_v18 }
 0x52a   :  { %vm5042_vm11 = vcmp.gt.f32.partialorder %v5010_v53, 0.0  ;;  %v5074_v17 = vmul.f32 0.2, %v5010_v53  ;;  %v3459_v63 = vpop.permute.xlu0 %3458  ;;  %v3640_v19 = vpop.permute.xlu1 %3639  ;;  %v4084_v46 = vsel %vm4022_vm5, %v4019_v21, %v3276_v62 }
 0x52b   :  { %vm5041_vm12 = vcmp.gt.f32.partialorder %v5009_v57, 0.0  ;;  %v5073_v27 = vmul.f32 0.2, %v5009_v57  ;;  %v4213_v42 = vsel %vm4152_vm8, %v4148_v0, %v3640_v19  ;;  %v4149_v15 = vsel %vm4087_vm6, %v4084_v46, %v3459_v63  ;;  %v20760_v0 = vld [vmem:[#allocation24_spill] sm:$0xff] }
 0x52c   :  { %v16412_v33 = vsel %vm5042_vm11, %v5010_v53, %v5074_v17  ;;  %10744 = vmatprep.mubr.msk.f32.mxu0 %vm4223_vm9, %v4213_v42  ;;  %5733 = vrot.lane.b32.xlu1 %v15886_v58, %s11972_s25  ;;  %v3890_v63 = vsel %vm3827_vm3, %v3825_v55, %v20760_v0  ;;  %v20761_v42 = vld [vmem:[#allocation119_spill] sm:$0xff] }
 0x52d   :  { %v16418_v34 = vsel %vm5041_vm12, %v5009_v57, %v5073_v27  ;;  %5637 = vrot.lane.b32.xlu0 %v15852_v5, %s11971_s30  ;;  %v5179_v26 = vrot.slane %v16412_v33, 6  ;;  %v19911_v56 = vrot.slane %v16412_v33, 2  ;;  %v20758_v57 = vrot.slane %v15970_v8, 6 }
 0x52e   :  { %v3642_v61 = vpop.permute.xlu0 %3641  ;;  %v2894_v18 = vpop.permute.xlu1 %2893  ;;  %v19914_v52 = vrot.slane %v16418_v34, 6  ;;  %v5273_v53 = vrot.slane %v16418_v34, 2  ;;  %v3764_v21 = vsel %vm738_vm2, %v20689_v31, %v20761_v42 }
 0x52f   :  { %v4214_v62 = vsel %vm4152_vm8, %v4149_v15, %v3642_v61  ;;  %v16435_v6 = vsel %vm5153_vm14, 0.0, %v20758_v57  ;;  %v3955_v19 = vsel %vm3892_vm1, %v3890_v63, %v2894_v18 }
 0x530   :  { %10745 = vmatmul.mubr.msk.f32.gmra.mrb[82].mxu0 %vm4223_vm9, %v4214_v62  ;;  %5829 = vrot.lane.b32.xlu1 %v16435_v6, %s11973_s27  ;;  %v16445_v17 = vsel %vm5153_vm14, %v19914_v52, %v5179_v26  ;;  %v16450_v45 = vsel %vm5248_vm13, %v5273_v53, %v19911_v56  ;;  %v20762_v26 = vld [vmem:[#allocation137_spill] sm:$0xff]  ;;  %v20763_v53 = vld [vmem:[#allocation368_spill] sm:$0xff] }
 0x531   :  { %5735 = vrot.lane.b32.xlu0 %v16364_v36, %s11972_s25  ;;  %v3826_v15 = vsel %vm3765_vm10, %v3764_v21, %v20762_v26 }
 0x532   :  { %v2896_v48 = vpop.permute.xlu0 %2895  ;;  %v3088_v27 = vpop.permute.xlu1 %3087  ;;  %v3891_v18 = vsel %vm3827_vm3, %v3826_v15, %v20763_v53 }
 0x533   :  { %v4020_v46 = vsel %vm3957_vm4, %v3955_v19, %v3088_v27  ;;  %v3956_v9 = vsel %vm3892_vm1, %v3891_v18, %v2896_v48  ;;  %v20764_v27 = vrot.slane %v15962_v1, 2 }
 0x534   :  { %v4085_v61 = vsel %vm4022_vm5, %v4020_v46, %v15478_v14  ;;  %5913 = vrot.lane.b32.xlu1 %v15970_v8, %s11974_s21 }
 0x535   :  { %5831 = vrot.lane.b32.xlu0 %v15993_v10, %s11973_s27  ;;  %v4150_v31 = vsel %vm4087_vm6, %v4085_v61, %v15492_v24  ;;  %v16496_v42 = vsel %vm5248_vm13, %v20764_v27, 0.0 }
 0x536   :  { %v3090_v59 = vpop.permute.xlu0 %3089  ;;  %v16474_v62 = vpop.permute.xlu1 %5527  ;;  %v4215_v57 = vsel %vm4152_vm8, %v4150_v31, %v15494_v35 }
 0x537   :  { %v4021_v25 = vsel %vm3957_vm4, %v3956_v9, %v3090_v59  ;;  %10747 = vmatprep.mubr.msk.f32.mxu0 %vm4223_vm9, %v4215_v57 }
 0x538   :  { %v4086_v55 = vsel %vm4022_vm5, %v4021_v25, %v15478_v14  ;;  %5997 = vrot.lane.b32.xlu1 %v15998_v16, %s11975_s29 }
 0x539   :  { %5915 = vrot.lane.b32.xlu0 %v15962_v1, %s11974_s21  ;;  %v4151_v0 = vsel %vm4087_vm6, %v4086_v55, %v15492_v24 }
 0x53a   :  { %v5624_v63 = vpop.permute.xlu1 %5623  ;;  %v16488_v19 = vpop.permute.xlu0 %5529  ;;  %v4216_v48 = vsel %vm4152_vm8, %v4151_v0, %v15494_v35 }
 0x53b   :  { %10748 = vmatmul.mubr.msk.f32.gmra.mrb[82].mxu0 %vm4223_vm9, %v4216_v48  ;;  %v6126_v52 = vsel %vm3827_vm3, %v14809_v32, %v16488_v19 }
 0x53c   :  { %5999 = vrot.lane.b32.xlu1 %v16496_v42, %s11975_s29 }
 0x53d   :  { %5341 = vrot.lane.b32.xlu0 %v15860_v22, %s11969_s28 }
 0x53e   :  { %v5626_v21 = vpop.permute.xlu1 %5625 }
 0x53f   :  { %v16502_v46 = vpop.permute.xlu0 %5329 }
 0x540   :  { %v10713_v26 = vpop.f32.mrb[70].mxu0  ;;  %5439 = vrot.lane.b32.xlu1 %v15886_v58, %s11968_s24 }
 0x541   :  { %v11024_v15 = vadd.f32 %v15472_v7, %v10713_v26  ;;  %5343 = vrot.lane.b32.xlu0 %v15852_v5, %s11969_s28  ;;  %v4672_v61 = vpop.f32.mrb[71].mxu0 }
 0x542   :  { %v11026_v53 = vadd.f32 %v15472_v7, %v4672_v61  ;;  %v16510_v18 = vpop.permute.xlu1 %5331 }
 0x543   :  { %v4893_v31 = vrot.slane %v11024_v15, 1  ;;  %v5722_v9 = vpop.permute.xlu0 %5721 }
 0x544   :  { %v4892_v22 = vrot.slane %v11026_v53, 1  ;;  %5543 = vrot.lane.b32.xlu1 %v16435_v6, %s11970_s22 }
 0x545   :  { %v4954_v59 = vsel %vm1380_vm7, %v4893_v31, 0.0  ;;  %5441 = vrot.lane.b32.xlu0 %v16364_v36, %s11968_s24 }
 0x546   :  { %v4980_v58 = vadd.f32 %v11024_v15, %v4954_v59  ;;  %v4894_v57 = vsel %vm1380_vm7, %v4892_v22, %v4893_v31  ;;  %v5724_v5 = vpop.permute.xlu1 %5723 }
 0x547   :  { %v4979_v25 = vadd.f32 %v11026_v53, %v4894_v57  ;;  %v16518_v55 = vpop.permute.xlu0 %5427 }
 0x548   :  { %v5012_v0 = vmul.f32 0.25, %v4980_v58  ;;  %5639 = vrot.lane.b32.xlu1 %v15970_v8, %s11971_s30 }
 0x549   :  { %v5011_v48 = vmul.f32 0.25, %v4979_v25  ;;  %5545 = vrot.lane.b32.xlu0 %v15993_v10, %s11970_s22 }
 0x54a   :  { %vm5044_vm15 = vcmp.gt.f32.partialorder %v5012_v0, 0.0  ;;  %v5076_v27 = vmul.f32 0.2, %v5012_v0  ;;  %v16524_v26 = vpop.permute.xlu1 %5429 }
 0x54b   :  { %vm5043_vm0 = vcmp.gt.f32.partialorder %v5011_v48, 0.0  ;;  %v5075_v36 = vmul.f32 0.2, %v5011_v48  ;;  %v5818_v15 = vpop.permute.xlu0 %5817 }
 0x54c   :  { %v16526_v61 = vsel %vm5044_vm15, %v5012_v0, %v5076_v27  ;;  %5737 = vrot.lane.b32.xlu1 %v15998_v16, %s11972_s25  ;;  %v16541_v0 = vsel %vm5153_vm14, 0.0, %v5169_v49 }
 0x54d   :  { %v16530_v53 = vsel %vm5043_vm0, %v5011_v48, %v5075_v36  ;;  %5641 = vrot.lane.b32.xlu0 %v15962_v1, %s11971_s30  ;;  %v5182_v31 = vrot.slane %v16526_v61, 6  ;;  %v19913_v22 = vrot.slane %v16526_v61, 2 }
 0x54e   :  { %v5820_v59 = vpop.permute.xlu1 %5819  ;;  %v19912_v58 = vrot.slane %v16530_v53, 6  ;;  %v5276_v57 = vrot.slane %v16530_v53, 2 }
 0x54f   :  { %v5532_v25 = vpop.permute.xlu0 %5531 }
 0x550   :  { %5833 = vrot.lane.b32.xlu1 %v16541_v0, %s11973_s27  ;;  %v16548_v48 = vsel %vm5153_vm14, %v19912_v58, %v5182_v31  ;;  %v16553_v27 = vsel %vm5248_vm13, %v5276_v57, %v19913_v22  ;;  %v6125_v31 = vsel %vm3827_vm3, %v14809_v32, %v16474_v62  ;;  %v6158_v62 = vsel %vm3892_vm1, %v6126_v52, %v5626_v21 }
 0x551   :  { %5739 = vrot.lane.b32.xlu0 %v16496_v42, %s11972_s25  ;;  %v6157_v57 = vsel %vm3892_vm1, %v6125_v31, %v5624_v63  ;;  %v20765_v31 = vrot.slane %v16075_v51, 2 }
 0x552   :  { %v5534_v36 = vpop.permute.xlu1 %5533  ;;  %v6189_v22 = vsel %vm3957_vm4, %v6157_v57, %v5722_v9  ;;  %v6190_v9 = vsel %vm3957_vm4, %v6158_v62, %v5724_v5  ;;  %v6069_v62 = vsel %vm738_vm2, %v16022_v39, %v16502_v46 }
 0x553   :  { %v5902_v56 = vpop.permute.xlu0 %5901  ;;  %v6221_v54 = vsel %vm4022_vm5, %v6189_v22, %v5818_v15  ;;  %v16579_v35 = vsel %vm5248_vm13, %v20765_v31, 0.0  ;;  %v6222_v19 = vsel %vm4022_vm5, %v6190_v9, %v5820_v59 }
 0x554   :  { %5917 = vrot.lane.b32.xlu1 %v16080_v43, %s11974_s21  ;;  %v6253_v23 = vsel %vm4087_vm6, %v6221_v54, %v5902_v56 }
 0x555   :  { %5835 = vrot.lane.b32.xlu0 %v16104_v40, %s11973_s27 }
 0x556   :  { %v5904_v49 = vpop.permute.xlu1 %5903 }
 0x557   :  { %v5628_v58 = vpop.permute.xlu0 %5627  ;;  %v6254_v54 = vsel %vm4087_vm6, %v6222_v19, %v5904_v49 }
 0x558   :  { %6001 = vrot.lane.b32.xlu1 %v16109_v50, %s11975_s29 }
 0x559   :  { %5919 = vrot.lane.b32.xlu0 %v16075_v51, %s11974_s21 }
 0x55a   :  { %v5630_v44 = vpop.permute.xlu1 %5629 }
 0x55b   :  { %v5986_v63 = vpop.permute.xlu0 %5985 }
 0x55c   :  { %v6285_v57 = vsel %vm4152_vm8, %v6253_v23, %v5986_v63  ;;  %6003 = vrot.lane.b32.xlu1 %v16579_v35, %s11975_s29 }
 0x55d   :  { %5345 = vrot.lane.b32.xlu0 %v15970_v8, %s11969_s28  ;;  %10768 = vmatprep.mubr.msk.f32.mxu1 %vm4223_vm9, %v6285_v57 }
 0x55e   :  { %v5988_v56 = vpop.permute.xlu1 %5987 }
 0x55f   :  { %v5726_v52 = vpop.permute.xlu0 %5725  ;;  %v6286_v21 = vsel %vm4152_vm8, %v6254_v54, %v5988_v56  ;;  %v6070_v56 = vsel %vm738_vm2, %v15551_v11, %v16510_v18 }
 0x560   :  { %v10719_v15 = vpop.f32.mrb[72].mxu0  ;;  %5443 = vrot.lane.b32.xlu1 %v15998_v16, %s11968_s24  ;;  %10769 = vmatmul.mubr.msk.f32.vlgmr.msra.gmra.mrb[44].mxu1 %vm4223_vm9, %v6286_v21  ;;  %v6097_v16 = vsel %vm3765_vm10, %v6069_v62, %v16518_v55 }
 0x561   :  { %v11028_v23 = vadd.f32 %v15472_v7, %v10719_v15  ;;  %5347 = vrot.lane.b32.xlu0 %v15962_v1, %s11969_s28  ;;  %v4692_v8 = vpop.f32.mrb[73].mxu0  ;;  %v6127_v1 = vsel %vm3827_vm3, %v6097_v16, %v5532_v25 }
 0x562   :  { %v11030_v5 = vadd.f32 %v15472_v7, %v4692_v8  ;;  %v5822_v22 = vpop.permute.xlu1 %5821  ;;  %v6159_v39 = vsel %vm3892_vm1, %v6127_v1, %v5628_v58 }
 0x563   :  { %v4896_v59 = vrot.slane %v11028_v23, 1  ;;  %v5728_v49 = vpop.permute.xlu0 %5727  ;;  %v6191_v55 = vsel %vm3957_vm4, %v6159_v39, %v5726_v52 }
 0x564   :  { %v4895_v63 = vrot.slane %v11030_v5, 1  ;;  %5547 = vrot.lane.b32.xlu1 %v16541_v0, %s11970_s22  ;;  %v6223_v15 = vsel %vm4022_vm5, %v6191_v55, %v5822_v22 }
 0x565   :  { %v4955_v31 = vsel %vm1380_vm7, %v4896_v59, 0.0  ;;  %5445 = vrot.lane.b32.xlu0 %v16496_v42, %s11968_s24  ;;  %v6098_v42 = vsel %vm3765_vm10, %v6070_v56, %v16524_v26 }
 0x566   :  { %v4982_v9 = vadd.f32 %v11028_v23, %v4955_v31  ;;  %v4897_v57 = vsel %vm1380_vm7, %v4895_v63, %v4896_v59  ;;  %v5906_v19 = vpop.permute.xlu1 %5905  ;;  %v6128_v58 = vsel %vm3827_vm3, %v6098_v42, %v5534_v36 }
 0x567   :  { %v4981_v46 = vadd.f32 %v11030_v5, %v4897_v57  ;;  %v5824_v54 = vpop.permute.xlu0 %5823  ;;  %v6255_v11 = vsel %vm4087_vm6, %v6223_v15, %v5906_v19  ;;  %v6160_v52 = vsel %vm3892_vm1, %v6128_v58, %v5630_v44  ;;  %v20766_v19 = vrot.slane %v16213_v2, 6 }
 0x568   :  { %v5014_v21 = vmul.f32 0.25, %v4982_v9  ;;  %5643 = vrot.lane.b32.xlu1 %v16080_v43, %s11971_s30  ;;  %v6192_v22 = vsel %vm3957_vm4, %v6160_v52, %v5728_v49  ;;  %v20767_v58 = vrot.slane %v16209_v3, 2 }
 0x569   :  { %v5013_v25 = vmul.f32 0.25, %v4981_v46  ;;  %5549 = vrot.lane.b32.xlu0 %v16104_v40, %s11970_s22  ;;  %v6224_v62 = vsel %vm4022_vm5, %v6192_v22, %v5824_v54  ;;  %v16646_v39 = vsel %vm5153_vm14, 0.0, %v20766_v19 }
 0x56a   :  { %vm5046_vm11 = vcmp.gt.f32.partialorder %v5014_v21, 0.0  ;;  %v5078_v23 = vmul.f32 0.2, %v5014_v21  ;;  %v5990_v18 = vpop.permute.xlu1 %5989 }
 0x56b   :  { %vm5045_vm12 = vcmp.gt.f32.partialorder %v5013_v25, 0.0  ;;  %v5077_v8 = vmul.f32 0.2, %v5013_v25  ;;  %v6287_v5 = vsel %vm4152_vm8, %v6255_v11, %v5990_v18  ;;  %v5908_v26 = vpop.permute.xlu0 %5907 }
 0x56c   :  { %v16626_v59 = vsel %vm5046_vm11, %v5014_v21, %v5078_v23  ;;  %5741 = vrot.lane.b32.xlu1 %v16109_v50, %s11972_s25  ;;  %10771 = vmatprep.mubr.msk.f32.mxu1 %vm4223_vm9, %v6287_v5  ;;  %v6256_v16 = vsel %vm4087_vm6, %v6224_v62, %v5908_v26  ;;  %v16674_v23 = vsel %vm5248_vm13, %v20767_v58, 0.0 }
 0x56d   :  { %v16632_v36 = vsel %vm5045_vm12, %v5013_v25, %v5077_v8  ;;  %5645 = vrot.lane.b32.xlu0 %v16075_v51, %s11971_s30  ;;  %v5185_v44 = vrot.slane %v16626_v59, 6  ;;  %v5280_v63 = vrot.slane %v16626_v59, 2 }
 0x56e   :  { %v5992_v31 = vpop.permute.xlu1 %5991  ;;  %v5184_v49 = vrot.slane %v16632_v36, 6  ;;  %v5279_v1 = vrot.slane %v16632_v36, 2 }
 0x56f   :  { %v6288_v9 = vsel %vm4152_vm8, %v6256_v16, %v5992_v31  ;;  %v5334_v57 = vpop.permute.xlu0 %5333 }
 0x570   :  { %5837 = vrot.lane.b32.xlu1 %v16646_v39, %s11973_s27  ;;  %10772 = vmatmul.mubr.msk.f32.gmra.mrb[46].mxu1 %vm4223_vm9, %v6288_v9  ;;  %v16654_v46 = vsel %vm5153_vm14, %v5184_v49, %v5185_v44  ;;  %v16659_v54 = vsel %vm5248_vm13, %v5279_v1, %v5280_v63 }
 0x571   :  { %5743 = vrot.lane.b32.xlu0 %v16579_v35, %s11972_s25 }
 0x572   :  { %v5432_v56 = vpop.permute.xlu1 %5431 }
 0x573   :  { %v5336_v55 = vpop.permute.xlu0 %5335 }
 0x574   :  { %5921 = vrot.lane.b32.xlu1 %v16213_v2, %s11974_s21 }
 0x575   :  { %5839 = vrot.lane.b32.xlu0 %v16234_v12, %s11973_s27 }
 0x576   :  { %v5536_v21 = vpop.permute.xlu1 %5535 }
 0x577   :  { %v5434_v42 = vpop.permute.xlu0 %5433 }
 0x578   :  { %6005 = vrot.lane.b32.xlu1 %v16239_v41, %s11975_s29 }
 0x579   :  { %5923 = vrot.lane.b32.xlu0 %v16209_v3, %s11974_s21 }
 0x57a   :  { %v5632_v25 = vpop.permute.xlu1 %5631 }
 0x57b   :  { %v5538_v15 = vpop.permute.xlu0 %5537 }
 0x57c   :  { %6007 = vrot.lane.b32.xlu1 %v16674_v23, %s11975_s29 }
 0x57d   :  { %5349 = vrot.lane.b32.xlu0 %v16080_v43, %s11969_s28  ;;  %v6071_v43 = vsel %vm738_vm2, %v16127_v47, %v5334_v57 }
 0x57e   :  { %v5730_v11 = vpop.permute.xlu1 %5729 }
 0x57f   :  { %v5634_v18 = vpop.permute.xlu0 %5633 }
 0x580   :  { %v10725_v52 = vpop.f32.mrb[74].mxu0  ;;  %5447 = vrot.lane.b32.xlu1 %v16109_v50, %s11968_s24  ;;  %v6099_v50 = vsel %vm3765_vm10, %v6071_v43, %v5432_v56 }
 0x581   :  { %v11032_v8 = vadd.f32 %v15472_v7, %v10725_v52  ;;  %5351 = vrot.lane.b32.xlu0 %v16075_v51, %s11969_s28  ;;  %v4712_v5 = vpop.f32.mrb[75].mxu0  ;;  %v6129_v51 = vsel %vm3827_vm3, %v6099_v50, %v5536_v21  ;;  %v6072_v52 = vsel %vm738_vm2, %v15661_v4, %v5336_v55 }
 0x582   :  { %v11034_v26 = vadd.f32 %v15472_v7, %v4712_v5  ;;  %v5826_v22 = vpop.permute.xlu1 %5825  ;;  %v6161_v58 = vsel %vm3892_vm1, %v6129_v51, %v5632_v25 }
 0x583   :  { %v4899_v62 = vrot.slane %v11032_v8, 1  ;;  %v5732_v44 = vpop.permute.xlu0 %5731  ;;  %v6193_v56 = vsel %vm3957_vm4, %v6161_v58, %v5730_v11 }
 0x584   :  { %v4898_v16 = vrot.slane %v11034_v26, 1  ;;  %5551 = vrot.lane.b32.xlu1 %v16646_v39, %s11970_s22 }
 0x585   :  { %v4956_v31 = vsel %vm1380_vm7, %v4899_v62, 0.0  ;;  %5449 = vrot.lane.b32.xlu0 %v16579_v35, %s11968_s24  ;;  %v6100_v35 = vsel %vm3765_vm10, %v6072_v52, %v5434_v42 }
 0x586   :  { %v4984_v1 = vadd.f32 %v11032_v8, %v4956_v31  ;;  %v4900_v9 = vsel %vm1380_vm7, %v4898_v16, %v4899_v62  ;;  %v5910_v19 = vpop.permute.xlu1 %5909  ;;  %v6225_v8 = vsel %vm4022_vm5, %v6193_v56, %v5826_v22  ;;  %v6130_v25 = vsel %vm3827_vm3, %v6100_v35, %v5538_v15 }
 0x587   :  { %v4983_v47 = vadd.f32 %v11034_v26, %v4900_v9  ;;  %v5828_v57 = vpop.permute.xlu0 %5827  ;;  %v6257_v4 = vsel %vm4087_vm6, %v6225_v8, %v5910_v19  ;;  %v6162_v11 = vsel %vm3892_vm1, %v6130_v25, %v5634_v18 }
 0x588   :  { %v5016_v5 = vmul.f32 0.25, %v4984_v1  ;;  %5647 = vrot.lane.b32.xlu1 %v16213_v2, %s11971_s30  ;;  %v6194_v22 = vsel %vm3957_vm4, %v6162_v11, %v5732_v44 }
 0x589   :  { %v5015_v21 = vmul.f32 0.25, %v4983_v47  ;;  %5553 = vrot.lane.b32.xlu0 %v16234_v12, %s11970_s22  ;;  %v6226_v50 = vsel %vm4022_vm5, %v6194_v22, %v5828_v57  ;;  %v20768_v47 = vrot.slane %v16306_v60, 6 }
 0x58a   :  { %vm5048_vm15 = vcmp.gt.f32.partialorder %v5016_v5, 0.0  ;;  %v5080_v26 = vmul.f32 0.2, %v5016_v5  ;;  %v5994_v55 = vpop.permute.xlu1 %5993 }
 0x58b   :  { %vm5047_vm0 = vcmp.gt.f32.partialorder %v5015_v21, 0.0  ;;  %v5079_v62 = vmul.f32 0.2, %v5015_v21  ;;  %v6289_v43 = vsel %vm4152_vm8, %v6257_v4, %v5994_v55  ;;  %v5912_v42 = vpop.permute.xlu0 %5911  ;;  %v5239_v57 = vsel %vm5153_vm14, 0.0, %v20768_v47 }
 0x58c   :  { %v16710_v16 = vsel %vm5048_vm15, %v5016_v5, %v5080_v26  ;;  %5745 = vrot.lane.b32.xlu1 %v16239_v41, %s11972_s25  ;;  %10774 = vmatprep.mubr.msk.f32.mxu1 %vm4223_vm9, %v6289_v43  ;;  %v6258_v51 = vsel %vm4087_vm6, %v6226_v50, %v5912_v42  ;;  %v20769_v4 = vrot.slane %v16300_v13, 2 }
 0x58d   :  { %v16716_v15 = vsel %vm5047_vm0, %v5015_v21, %v5079_v62  ;;  %5649 = vrot.lane.b32.xlu0 %v16209_v3, %s11971_s30  ;;  %v5188_v18 = vrot.slane %v16710_v16, 6  ;;  %v5283_v31 = vrot.slane %v16710_v16, 2 }
 0x58e   :  { %v5996_v1 = vpop.permute.xlu1 %5995  ;;  %v5187_v44 = vrot.slane %v16716_v15, 6  ;;  %v5282_v9 = vrot.slane %v16716_v15, 2  ;;  %v5320_v55 = vsel %vm5248_vm13, %v20769_v4, 0.0 }
 0x58f   :  { %v6290_v19 = vsel %vm4152_vm8, %v6258_v51, %v5996_v1  ;;  %v5338_v58 = vpop.permute.xlu0 %5337 }
 0x590   :  { %5841 = vrot.lane.b32.xlu1 %v5239_v57, %s11973_s27  ;;  %10775 = vmatmul.mubr.msk.f32.gmra.mrb[48].mxu1 %vm4223_vm9, %v6290_v19  ;;  %v16735_v52 = vsel %vm5153_vm14, %v5187_v44, %v5188_v18  ;;  %v16740_v56 = vsel %vm5248_vm13, %v5282_v9, %v5283_v31  ;;  %v6073_v50 = vsel %vm738_vm2, %v16204_v20, %v5338_v58 }
 0x591   :  { %5747 = vrot.lane.b32.xlu0 %v16674_v23, %s11972_s25 }
 0x592   :  { %v5436_v5 = vpop.permute.xlu1 %5435 }
 0x593   :  { %v5340_v35 = vpop.permute.xlu0 %5339 }
 0x594   :  { %5925 = vrot.lane.b32.xlu1 %v16306_v60, %s11974_s21  ;;  %v6074_v58 = vsel %vm738_vm2, %v15771_v38, %v5340_v35 }
 0x595   :  { %5843 = vrot.lane.b32.xlu0 %v16317_v29, %s11973_s27 }
 0x596   :  { %v5540_v21 = vpop.permute.xlu1 %5539 }
 0x597   :  { %v5438_v8 = vpop.permute.xlu0 %5437 }
 0x598   :  { %6009 = vrot.lane.b32.xlu1 %v16322_v37, %s11975_s29 }
 0x599   :  { %5927 = vrot.lane.b32.xlu0 %v16300_v13, %s11974_s21 }
 0x59a   :  { %v5636_v25 = vpop.permute.xlu1 %5635 }
 0x59b   :  { %v5542_v26 = vpop.permute.xlu0 %5541 }
 0x59c   :  { %6011 = vrot.lane.b32.xlu1 %v5320_v55, %s11975_s29 }
 0x59d   :  { %5353 = vrot.lane.b32.xlu0 %v16213_v2, %s11969_s28  ;;  %v6101_v2 = vsel %vm3765_vm10, %v6073_v50, %v5436_v5 }
 0x59e   :  { %v5734_v11 = vpop.permute.xlu1 %5733 }
 0x59f   :  { %v5638_v62 = vpop.permute.xlu0 %5637 }
 0x5a0   :  { %5451 = vrot.lane.b32.xlu1 %v16239_v41, %s11968_s24 }
 0x5a1   :  { %5355 = vrot.lane.b32.xlu0 %v16209_v3, %s11969_s28  ;;  %v6131_v3 = vsel %vm3827_vm3, %v6101_v2, %v5540_v21 }
 0x5a2   :  { %v5830_v43 = vpop.permute.xlu1 %5829  ;;  %v6163_v19 = vsel %vm3892_vm1, %v6131_v3, %v5636_v25 }
 0x5a3   :  { %v5736_v42 = vpop.permute.xlu0 %5735  ;;  %v10731_v22 = vpop.f32.mrb[76].mxu0 }
 0x5a4   :  { %v11036_v18 = vadd.f32 %v15472_v7, %v10731_v22  ;;  %5555 = vrot.lane.b32.xlu1 %v5239_v57, %s11970_s22  ;;  %v4732_v51 = vpop.f32.mrb[77].mxu0  ;;  %v6195_v57 = vsel %vm3957_vm4, %v6163_v19, %v5734_v11 }
 0x5a5   :  { %5453 = vrot.lane.b32.xlu0 %v16674_v23, %s11968_s24  ;;  %v11038_v41 = vadd.f32 %v15472_v7, %v4732_v51  ;;  %v6102_v23 = vsel %vm3765_vm10, %v6074_v58, %v5438_v8  ;;  %v6227_v21 = vsel %vm4022_vm5, %v6195_v57, %v5830_v43 }
 0x5a6   :  { %v4902_v1 = vrot.slane %v11036_v18, 1  ;;  %v5914_v9 = vpop.permute.xlu1 %5913  ;;  %v6132_v25 = vsel %vm3827_vm3, %v6102_v23, %v5542_v26 }
 0x5a7   :  { %v4901_v47 = vrot.slane %v11038_v41, 1  ;;  %v5832_v20 = vpop.permute.xlu0 %5831  ;;  %v6259_v35 = vsel %vm4087_vm6, %v6227_v21, %v5914_v9  ;;  %v6164_v50 = vsel %vm3892_vm1, %v6132_v25, %v5638_v62 }
 0x5a8   :  { %v4957_v5 = vsel %vm1380_vm7, %v4902_v1, 0.0  ;;  %5651 = vrot.lane.b32.xlu1 %v16306_v60, %s11971_s30  ;;  %v6196_v43 = vsel %vm3957_vm4, %v6164_v50, %v5736_v42 }
 0x5a9   :  { %v4986_v4 = vadd.f32 %v11036_v18, %v4957_v5  ;;  %v4903_v22 = vsel %vm1380_vm7, %v4901_v47, %v4902_v1  ;;  %5557 = vrot.lane.b32.xlu0 %v16317_v29, %s11970_s22  ;;  %v6228_v26 = vsel %vm4022_vm5, %v6196_v43, %v5832_v20 }
 0x5aa   :  { %v4985_v38 = vadd.f32 %v11038_v41, %v4903_v22  ;;  %v5998_v11 = vpop.permute.xlu1 %5997 }
 0x5ab   :  { %v5018_v51 = vmul.f32 0.25, %v4986_v4  ;;  %v6291_v60 = vsel %vm4152_vm8, %v6259_v35, %v5998_v11  ;;  %v5916_v8 = vpop.permute.xlu0 %5915  ;;  %v20771_v11 = vrot.slane %v16412_v33, 2 }
 0x5ac   :  { %v5017_v18 = vmul.f32 0.25, %v4985_v38  ;;  %5749 = vrot.lane.b32.xlu1 %v16322_v37, %s11972_s25  ;;  %10777 = vmatprep.mubr.msk.f32.mxu1 %vm4223_vm9, %v6291_v60  ;;  %v6260_v2 = vsel %vm4087_vm6, %v6228_v26, %v5916_v8  ;;  %v20770_v37 = vrot.slane %v16418_v34, 6  ;;  %v20772_v8 = vrot.slane %v16530_v53, 6 }
 0x5ad   :  { %vm5050_vm11 = vcmp.gt.f32.partialorder %v5018_v51, 0.0  ;;  %v5082_v29 = vmul.f32 0.2, %v5018_v51  ;;  %5653 = vrot.lane.b32.xlu0 %v16300_v13, %s11971_s30  ;;  %v5321_v50 = vsel %vm5248_vm13, %v20771_v11, 0.0 }
 0x5ae   :  { %vm5049_vm12 = vcmp.gt.f32.partialorder %v5017_v18, 0.0  ;;  %v5081_v62 = vmul.f32 0.2, %v5017_v18  ;;  %v6000_v41 = vpop.permute.xlu1 %5999  ;;  %v16801_v9 = vsel %vm5153_vm14, 0.0, %v20770_v37  ;;  %v16847_v43 = vsel %vm5153_vm14, 0.0, %v20772_v8 }
 0x5af   :  { %v16795_v3 = vsel %vm5050_vm11, %v5018_v51, %v5082_v29  ;;  %v6292_v42 = vsel %vm4152_vm8, %v6260_v2, %v6000_v41  ;;  %v5342_v1 = vpop.permute.xlu0 %5341 }
 0x5b0   :  { %v16803_v19 = vsel %vm5049_vm12, %v5017_v18, %v5081_v62  ;;  %5559 = vrot.lane.b32.xlu1 %v16801_v9, %s11970_s22  ;;  %10778 = vmatmul.mubr.msk.f32.gmra.mrb[50].mxu1 %vm4223_vm9, %v6292_v42  ;;  %v5191_v13 = vrot.slane %v16795_v3, 6  ;;  %v5286_v47 = vrot.slane %v16795_v3, 2  ;;  %v6075_v60 = vsel %vm738_vm2, %v16327_v30, %v5342_v1 }
 0x5b1   :  { %5751 = vrot.lane.b32.xlu0 %v5320_v55, %s11972_s25  ;;  %v5190_v20 = vrot.slane %v16803_v19, 6  ;;  %v5285_v58 = vrot.slane %v16803_v19, 2 }
 0x5b2   :  { %v5440_v57 = vpop.permute.xlu1 %5439 }
 0x5b3   :  { %v5344_v5 = vpop.permute.xlu0 %5343  ;;  %v16816_v23 = vsel %vm5153_vm14, %v5190_v20, %v5191_v13  ;;  %v16821_v21 = vsel %vm5248_vm13, %v5285_v58, %v5286_v47 }
 0x5b4   :  { %5655 = vrot.lane.b32.xlu1 %v16418_v34, %s11971_s30  ;;  %v6076_v30 = vsel %vm738_vm2, %v15881_v28, %v5344_v5 }
 0x5b5   :  { %5561 = vrot.lane.b32.xlu0 %v16445_v17, %s11970_s22 }
 0x5b6   :  { %v5544_v55 = vpop.permute.xlu1 %5543 }
 0x5b7   :  { %v5442_v4 = vpop.permute.xlu0 %5441 }
 0x5b8   :  { %5657 = vrot.lane.b32.xlu1 %v16412_v33, %s11971_s30  ;;  %v6104_v2 = vsel %vm3765_vm10, %v6076_v30, %v5442_v4 }
 0x5b9   :  { %5357 = vrot.lane.b32.xlu0 %v16418_v34, %s11969_s28 }
 0x5ba   :  { %v5640_v22 = vpop.permute.xlu1 %5639 }
 0x5bb   :  { %v5546_v25 = vpop.permute.xlu0 %5545 }
 0x5bc   :  { %5359 = vrot.lane.b32.xlu1 %v16412_v33, %s11969_s28  ;;  %v6103_v33 = vsel %vm3765_vm10, %v6075_v60, %v5440_v57  ;;  %v6134_v42 = vsel %vm3827_vm3, %v6104_v2, %v5546_v25 }
 0x5bd   :  { %5753 = vrot.lane.b32.xlu0 %v16450_v45, %s11972_s25  ;;  %v6133_v18 = vsel %vm3827_vm3, %v6103_v33, %v5544_v55 }
 0x5be   :  { %v5738_v38 = vpop.permute.xlu1 %5737  ;;  %v6165_v29 = vsel %vm3892_vm1, %v6133_v18, %v5640_v22 }
 0x5bf   :  { %v5642_v35 = vpop.permute.xlu0 %5641  ;;  %v6197_v62 = vsel %vm3957_vm4, %v6165_v29, %v5738_v38 }
 0x5c0   :  { %5755 = vrot.lane.b32.xlu1 %v5321_v50, %s11972_s25  ;;  %v6166_v13 = vsel %vm3892_vm1, %v6134_v42, %v5642_v35 }
 0x5c1   :  { %5455 = vrot.lane.b32.xlu0 %v16450_v45, %s11968_s24 }
 0x5c2   :  { %v5834_v34 = vpop.permute.xlu1 %5833 }
 0x5c3   :  { %v5740_v51 = vpop.permute.xlu0 %5739  ;;  %v6229_v41 = vsel %vm4022_vm5, %v6197_v62, %v5834_v34 }
 0x5c4   :  { %5457 = vrot.lane.b32.xlu1 %v5321_v50, %s11968_s24  ;;  %v6198_v5 = vsel %vm3957_vm4, %v6166_v13, %v5740_v51 }
 0x5c5   :  { %5845 = vrot.lane.b32.xlu0 %v16847_v43, %s11973_s27 }
 0x5c6   :  { %v5918_v45 = vpop.permute.xlu1 %5917 }
 0x5c7   :  { %v5836_v26 = vpop.permute.xlu0 %5835  ;;  %v6261_v1 = vsel %vm4087_vm6, %v6229_v41, %v5918_v45 }
 0x5c8   :  { %5847 = vrot.lane.b32.xlu1 %v16548_v48, %s11973_s27  ;;  %v6230_v22 = vsel %vm4022_vm5, %v6198_v5, %v5836_v26 }
 0x5c9   :  { %5563 = vrot.lane.b32.xlu0 %v16847_v43, %s11970_s22 }
 0x5ca   :  { %v6002_v37 = vpop.permute.xlu1 %6001 }
 0x5cb   :  { %v6293_v28 = vsel %vm4152_vm8, %v6261_v1, %v6002_v37  ;;  %v5920_v58 = vpop.permute.xlu0 %5919  ;;  %v10737_v57 = vpop.f32.mrb[78].mxu0  ;;  %v20773_v37 = vrot.slane %v16526_v61, 2 }
 0x5cc   :  { %v11040_v55 = vadd.f32 %v15472_v7, %v10737_v57  ;;  %5565 = vrot.lane.b32.xlu1 %v16548_v48, %s11970_s22  ;;  %v4752_v4 = vpop.f32.mrb[79].mxu0  ;;  %10780 = vmatprep.mubr.msk.f32.mxu1 %vm4223_vm9, %v6293_v28  ;;  %v6262_v38 = vsel %vm4087_vm6, %v6230_v22, %v5920_v58 }
 0x5cd   :  { %5929 = vrot.lane.b32.xlu0 %v16530_v53, %s11974_s21  ;;  %v11042_v25 = vadd.f32 %v15472_v7, %v4752_v4  ;;  %v5322_v13 = vsel %vm5248_vm13, %v20773_v37, 0.0 }
 0x5ce   :  { %v4905_v35 = vrot.slane %v11040_v55, 1  ;;  %v6004_v11 = vpop.permute.xlu1 %6003 }
 0x5cf   :  { %v4904_v50 = vrot.slane %v11042_v25, 1  ;;  %v6294_v34 = vsel %vm4152_vm8, %v6262_v38, %v6004_v11  ;;  %v5346_v51 = vpop.permute.xlu0 %5345 }
 0x5d0   :  { %v4958_v60 = vsel %vm1380_vm7, %v4905_v35, 0.0  ;;  %5931 = vrot.lane.b32.xlu1 %v16526_v61, %s11974_s21  ;;  %10781 = vmatmul.mubr.msk.f32.gmra.mrb[52].mxu1 %vm4223_vm9, %v6294_v34 }
 0x5d1   :  { %v4988_v8 = vadd.f32 %v11040_v55, %v4958_v60  ;;  %v4906_v33 = vsel %vm1380_vm7, %v4904_v50, %v4905_v35  ;;  %5659 = vrot.lane.b32.xlu0 %v16530_v53, %s11971_s30  ;;  %v6077_v60 = vsel %vm738_vm2, %v16435_v6, %v5346_v51 }
 0x5d2   :  { %v4987_v18 = vadd.f32 %v11042_v25, %v4906_v33  ;;  %v5444_v45 = vpop.permute.xlu1 %5443  ;;  %v16906_v25 = vsel %vm5153_vm14, 0.0, %v5184_v49 }
 0x5d3   :  { %v5020_v29 = vmul.f32 0.25, %v4988_v8  ;;  %v5348_v26 = vpop.permute.xlu0 %5347  ;;  %v6105_v8 = vsel %vm3765_vm10, %v6077_v60, %v5444_v45 }
 0x5d4   :  { %v5019_v30 = vmul.f32 0.25, %v4987_v18  ;;  %5661 = vrot.lane.b32.xlu1 %v16526_v61, %s11971_s30  ;;  %v6078_v6 = vsel %vm738_vm2, %v15993_v10, %v5348_v26 }
 0x5d5   :  { %vm5052_vm15 = vcmp.gt.f32.partialorder %v5020_v29, 0.0  ;;  %v5084_v62 = vmul.f32 0.2, %v5020_v29  ;;  %6013 = vrot.lane.b32.xlu0 %v16553_v27, %s11975_s29 }
 0x5d6   :  { %vm5051_vm0 = vcmp.gt.f32.partialorder %v5019_v30, 0.0  ;;  %v5083_v2 = vmul.f32 0.2, %v5019_v30  ;;  %v5548_v41 = vpop.permute.xlu1 %5547 }
 0x5d7   :  { %v16889_v42 = vsel %vm5052_vm15, %v5020_v29, %v5084_v62  ;;  %v5446_v1 = vpop.permute.xlu0 %5445  ;;  %v6135_v33 = vsel %vm3827_vm3, %v6105_v8, %v5548_v41  ;;  %v16937_v62 = vsel %vm5248_vm13, %v5280_v63, 0.0 }
 0x5d8   :  { %v16894_v28 = vsel %vm5051_vm0, %v5019_v30, %v5083_v2  ;;  %6015 = vrot.lane.b32.xlu1 %v5322_v13, %s11975_s29  ;;  %v5194_v58 = vrot.slane %v16889_v42, 6  ;;  %v19924_v57 = vrot.slane %v16889_v42, 2  ;;  %v6106_v45 = vsel %vm3765_vm10, %v6078_v6, %v5446_v1 }
 0x5d9   :  { %5757 = vrot.lane.b32.xlu0 %v16553_v27, %s11972_s25  ;;  %v5193_v5 = vrot.slane %v16894_v28, 6  ;;  %v5288_v55 = vrot.slane %v16894_v28, 2 }
 0x5da   :  { %v5644_v4 = vpop.permute.xlu1 %5643 }
 0x5db   :  { %v5550_v22 = vpop.permute.xlu0 %5549  ;;  %v16911_v38 = vsel %vm5153_vm14, %v5193_v5, %v5194_v58  ;;  %v16916_v35 = vsel %vm5248_vm13, %v5288_v55, %v19924_v57  ;;  %v6167_v29 = vsel %vm3892_vm1, %v6135_v33, %v5644_v4 }
 0x5dc   :  { %5849 = vrot.lane.b32.xlu1 %v16906_v25, %s11973_s27  ;;  %v6136_v41 = vsel %vm3827_vm3, %v6106_v45, %v5550_v22 }
 0x5dd   :  { %5759 = vrot.lane.b32.xlu0 %v5322_v13, %s11972_s25 }
 0x5de   :  { %v5742_v11 = vpop.permute.xlu1 %5741 }
 0x5df   :  { %v5646_v50 = vpop.permute.xlu0 %5645  ;;  %v6199_v51 = vsel %vm3957_vm4, %v6167_v29, %v5742_v11 }
 0x5e0   :  { %5933 = vrot.lane.b32.xlu1 %v16632_v36, %s11974_s21  ;;  %v6168_v58 = vsel %vm3892_vm1, %v6136_v41, %v5646_v50 }
 0x5e1   :  { %5851 = vrot.lane.b32.xlu0 %v16654_v46, %s11973_s27 }
 0x5e2   :  { %v5838_v49 = vpop.permute.xlu1 %5837 }
 0x5e3   :  { %v5744_v34 = vpop.permute.xlu0 %5743  ;;  %v6231_v2 = vsel %vm4022_vm5, %v6199_v51, %v5838_v49 }
 0x5e4   :  { %6017 = vrot.lane.b32.xlu1 %v16659_v54, %s11975_s29  ;;  %v6200_v55 = vsel %vm3957_vm4, %v6168_v58, %v5744_v34 }
 0x5e5   :  { %5935 = vrot.lane.b32.xlu0 %v16626_v59, %s11974_s21 }
 0x5e6   :  { %v5922_v18 = vpop.permute.xlu1 %5921 }
 0x5e7   :  { %v5840_v30 = vpop.permute.xlu0 %5839  ;;  %v6263_v63 = vsel %vm4087_vm6, %v6231_v2, %v5922_v18 }
 0x5e8   :  { %6019 = vrot.lane.b32.xlu1 %v16937_v62, %s11975_s29  ;;  %v6232_v1 = vsel %vm4022_vm5, %v6200_v55, %v5840_v30 }
 0x5e9   :  { %5361 = vrot.lane.b32.xlu0 %v16530_v53, %s11969_s28 }
 0x5ea   :  { %v6006_v37 = vpop.permute.xlu1 %6005 }
 0x5eb   :  { %v6295_v10 = vsel %vm4152_vm8, %v6263_v63, %v6006_v37  ;;  %v5924_v26 = vpop.permute.xlu0 %5923  ;;  %v16980_v63 = vsel %vm5153_vm14, 0.0, %v5187_v44 }
 0x5ec   :  { %5459 = vrot.lane.b32.xlu1 %v16553_v27, %s11968_s24  ;;  %10783 = vmatprep.mubr.msk.f32.mxu1 %vm4223_vm9, %v6295_v10  ;;  %v6264_v53 = vsel %vm4087_vm6, %v6232_v1, %v5924_v26 }
 0x5ed   :  { %5363 = vrot.lane.b32.xlu0 %v16526_v61, %s11969_s28 }
 0x5ee   :  { %v6008_v4 = vpop.permute.xlu1 %6007 }
 0x5ef   :  { %v6296_v22 = vsel %vm4152_vm8, %v6264_v53, %v6008_v4  ;;  %v5350_v11 = vpop.permute.xlu0 %5349 }
 0x5f0   :  { %5567 = vrot.lane.b32.xlu1 %v16906_v25, %s11970_s22  ;;  %10784 = vmatmul.mubr.msk.f32.gmra.mrb[54].mxu1 %vm4223_vm9, %v6296_v22 }
 0x5f1   :  { %5461 = vrot.lane.b32.xlu0 %v5322_v13, %s11968_s24 }
 0x5f2   :  { %v5448_v27 = vpop.permute.xlu1 %5447 }
 0x5f3   :  { %v5352_v50 = vpop.permute.xlu0 %5351  ;;  %v10743_v49 = vpop.f32.mrb[80].mxu0 }
 0x5f4   :  { %v11044_v34 = vadd.f32 %v15472_v7, %v10743_v49  ;;  %5663 = vrot.lane.b32.xlu1 %v16632_v36, %s11971_s30  ;;  %v4772_v61 = vpop.f32.mrb[81].mxu0 }
 0x5f5   :  { %5569 = vrot.lane.b32.xlu0 %v16654_v46, %s11970_s22  ;;  %v11046_v60 = vadd.f32 %v15472_v7, %v4772_v61 }
 0x5f6   :  { %v4908_v8 = vrot.slane %v11044_v34, 1  ;;  %v5552_v33 = vpop.permute.xlu1 %5551 }
 0x5f7   :  { %v4907_v18 = vrot.slane %v11046_v60, 1  ;;  %v5450_v29 = vpop.permute.xlu0 %5449 }
 0x5f8   :  { %v4959_v13 = vsel %vm1380_vm7, %v4908_v8, 0.0  ;;  %5761 = vrot.lane.b32.xlu1 %v16659_v54, %s11972_s25 }
 0x5f9   :  { %v4990_v30 = vadd.f32 %v11044_v34, %v4959_v13  ;;  %v4909_v6 = vsel %vm1380_vm7, %v4907_v18, %v4908_v8  ;;  %5665 = vrot.lane.b32.xlu0 %v16626_v59, %s11971_s30  ;;  %v6079_v18 = vsel %vm738_vm2, %v16541_v0, %v5350_v11  ;;  %v6080_v0 = vsel %vm738_vm2, %v16104_v40, %v5352_v50 }
 0x5fa   :  { %v4989_v51 = vadd.f32 %v11046_v60, %v4909_v6  ;;  %v5648_v45 = vpop.permute.xlu1 %5647  ;;  %v6107_v13 = vsel %vm3765_vm10, %v6079_v18, %v5448_v27  ;;  %v6108_v27 = vsel %vm3765_vm10, %v6080_v0, %v5450_v29 }
 0x5fb   :  { %v5022_v2 = vmul.f32 0.25, %v4990_v30  ;;  %v5554_v41 = vpop.permute.xlu0 %5553  ;;  %v6137_v30 = vsel %vm3827_vm3, %v6107_v13, %v5552_v33 }
 0x5fc   :  { %v5021_v37 = vmul.f32 0.25, %v4989_v51  ;;  %5853 = vrot.lane.b32.xlu1 %v16980_v63, %s11973_s27  ;;  %v6169_v51 = vsel %vm3892_vm1, %v6137_v30, %v5648_v45  ;;  %v6138_v45 = vsel %vm3827_vm3, %v6108_v27, %v5554_v41 }
 0x5fd   :  { %vm5054_vm11 = vcmp.gt.f32.partialorder %v5022_v2, 0.0  ;;  %v5086_v58 = vmul.f32 0.2, %v5022_v2  ;;  %5763 = vrot.lane.b32.xlu0 %v16937_v62, %s11972_s25 }
 0x5fe   :  { %vm5053_vm12 = vcmp.gt.f32.partialorder %v5021_v37, 0.0  ;;  %v5085_v10 = vmul.f32 0.2, %v5021_v37  ;;  %v5746_v26 = vpop.permute.xlu1 %5745 }
 0x5ff   :  { %v16986_v55 = vsel %vm5054_vm11, %v5022_v2, %v5086_v58  ;;  %v5650_v1 = vpop.permute.xlu0 %5649  ;;  %v6201_v11 = vsel %vm3957_vm4, %v6169_v51, %v5746_v26 }
 0x600   :  { %v16988_v53 = vsel %vm5053_vm12, %v5021_v37, %v5085_v10  ;;  %5937 = vrot.lane.b32.xlu1 %v16716_v15, %s11974_s21  ;;  %v5197_v44 = vrot.slane %v16986_v55, 6  ;;  %v19922_v4 = vrot.slane %v16986_v55, 2  ;;  %v17020_v37 = vsel %vm5248_vm13, %v5283_v31, 0.0 }
 0x601   :  { %5855 = vrot.lane.b32.xlu0 %v16735_v52, %s11973_s27  ;;  %v19923_v22 = vrot.slane %v16988_v53, 6  ;;  %v5291_v49 = vrot.slane %v16988_v53, 2  ;;  %v6170_v10 = vsel %vm3892_vm1, %v6138_v45, %v5650_v1 }
 0x602   :  { %v5842_v34 = vpop.permute.xlu1 %5841 }
 0x603   :  { %v5748_v61 = vpop.permute.xlu0 %5747  ;;  %v17001_v60 = vsel %vm5153_vm14, %v19923_v22, %v5197_v44  ;;  %v17006_v8 = vsel %vm5248_vm13, %v5291_v49, %v19922_v4  ;;  %v6233_v33 = vsel %vm4022_vm5, %v6201_v11, %v5842_v34 }
 0x604   :  { %6021 = vrot.lane.b32.xlu1 %v16740_v56, %s11975_s29  ;;  %v6202_v26 = vsel %vm3957_vm4, %v6170_v10, %v5748_v61  ;;  %v17066_v10 = vsel %vm5153_vm14, 0.0, %v5190_v20 }
 0x605   :  { %5939 = vrot.lane.b32.xlu0 %v16710_v16, %s11974_s21 }
 0x606   :  { %v5926_v6 = vpop.permute.xlu1 %5925 }
 0x607   :  { %v5844_v2 = vpop.permute.xlu0 %5843  ;;  %v6265_v31 = vsel %vm4087_vm6, %v6233_v33, %v5926_v6 }
 0x608   :  { %6023 = vrot.lane.b32.xlu1 %v17020_v37, %s11975_s29  ;;  %v6234_v29 = vsel %vm4022_vm5, %v6202_v26, %v5844_v2 }
 0x609   :  { %5365 = vrot.lane.b32.xlu0 %v16632_v36, %s11969_s28 }
 0x60a   :  { %v6010_v58 = vpop.permute.xlu1 %6009 }
 0x60b   :  { %v6297_v40 = vsel %vm4152_vm8, %v6265_v31, %v6010_v58  ;;  %v5928_v50 = vpop.permute.xlu0 %5927 }
 0x60c   :  { %5463 = vrot.lane.b32.xlu1 %v16659_v54, %s11968_s24  ;;  %10786 = vmatprep.mubr.msk.f32.mxu1 %vm4223_vm9, %v6297_v40  ;;  %v6266_v36 = vsel %vm4087_vm6, %v6234_v29, %v5928_v50 }
 0x60d   :  { %5367 = vrot.lane.b32.xlu0 %v16626_v59, %s11969_s28 }
 0x60e   :  { %v6012_v41 = vpop.permute.xlu1 %6011  ;;  %v10749_v44 = vpop.f32.mrb[82].mxu0 }
 0x60f   :  { %v6298_v1 = vsel %vm4152_vm8, %v6266_v36, %v6012_v41  ;;  %v5354_v49 = vpop.permute.xlu0 %5353  ;;  %v11048_v34 = vadd.f32 %v15472_v7, %v10749_v44  ;;  %v4792_v61 = vpop.f32.mrb[83].mxu0 }
 0x610   :  { %v11050_v18 = vadd.f32 %v15472_v7, %v4792_v61  ;;  %5571 = vrot.lane.b32.xlu1 %v16980_v63, %s11970_s22  ;;  %10787 = vmatmul.mubr.msk.f32.gmra.mrb[56].mxu1 %vm4223_vm9, %v6298_v1  ;;  %v6081_v40 = vsel %vm738_vm2, %v16646_v39, %v5354_v49 }
 0x611   :  { %v4911_v54 = vrot.slane %v11048_v34, 1  ;;  %5465 = vrot.lane.b32.xlu0 %v16937_v62, %s11968_s24 }
 0x612   :  { %v4910_v59 = vrot.slane %v11050_v18, 1  ;;  %v5452_v13 = vpop.permute.xlu1 %5451 }
 0x613   :  { %v4960_v30 = vsel %vm1380_vm7, %v4911_v54, 0.0  ;;  %v5356_v6 = vpop.permute.xlu0 %5355  ;;  %v6109_v41 = vsel %vm3765_vm10, %v6081_v40, %v5452_v13 }
 0x614   :  { %v4992_v51 = vadd.f32 %v11048_v34, %v4960_v30  ;;  %v4912_v2 = vsel %vm1380_vm7, %v4910_v59, %v4911_v54  ;;  %5667 = vrot.lane.b32.xlu1 %v16716_v15, %s11971_s30  ;;  %v6082_v59 = vsel %vm738_vm2, %v16234_v12, %v5356_v6 }
 0x615   :  { %v4991_v7 = vadd.f32 %v11050_v18, %v4912_v2  ;;  %5573 = vrot.lane.b32.xlu0 %v16735_v52, %s11970_s22 }
 0x616   :  { %v5024_v0 = vmul.f32 0.25, %v4992_v51  ;;  %v5556_v11 = vpop.permute.xlu1 %5555 }
 0x617   :  { %v5023_v27 = vmul.f32 0.25, %v4991_v7  ;;  %v5454_v33 = vpop.permute.xlu0 %5453  ;;  %v6139_v1 = vsel %vm3827_vm3, %v6109_v41, %v5556_v11 }
 0x618   :  { %vm5056_vm15 = vcmp.gt.f32.partialorder %v5024_v0, 0.0  ;;  %v5088_v62 = vmul.f32 0.2, %v5024_v0  ;;  %5765 = vrot.lane.b32.xlu1 %v16740_v56, %s11972_s25  ;;  %v6110_v30 = vsel %vm3765_vm10, %v6082_v59, %v5454_v33 }
 0x619   :  { %vm5055_vm0 = vcmp.gt.f32.partialorder %v5023_v27, 0.0  ;;  %v5087_v45 = vmul.f32 0.2, %v5023_v27  ;;  %5669 = vrot.lane.b32.xlu0 %v16710_v16, %s11971_s30 }
 0x61a   :  { %v17061_v31 = vsel %vm5056_vm15, %v5024_v0, %v5088_v62  ;;  %v5652_v58 = vpop.permute.xlu1 %5651  ;;  %v20774_v0 = vld [vmem:[#allocation61_spill] sm:$0xff] }
 0x61b   :  { %v17070_v50 = vsel %vm5055_vm0, %v5023_v27, %v5087_v45  ;;  %v5558_v26 = vpop.permute.xlu0 %5557  ;;  %v5200_v29 = vrot.slane %v17061_v31, 6  ;;  %v19920_v36 = vrot.slane %v17061_v31, 2  ;;  %v6171_v39 = vsel %vm3892_vm1, %v6139_v1, %v5652_v58 }
 0x61c   :  { %5857 = vrot.lane.b32.xlu1 %v17066_v10, %s11973_s27  ;;  %v19921_v44 = vrot.slane %v17070_v50, 6  ;;  %v5294_v20 = vrot.slane %v17070_v50, 2  ;;  %v6140_v2 = vsel %vm3827_vm3, %v6110_v30, %v5558_v26  ;;  %v17124_v26 = vsel %vm5248_vm13, %v5286_v47, 0.0 }
 0x61d   :  { %5767 = vrot.lane.b32.xlu0 %v17020_v37, %s11972_s25 }
 0x61e   :  { %v5750_v49 = vpop.permute.xlu1 %5749  ;;  %v17086_v34 = vsel %vm5153_vm14, %v19921_v44, %v5200_v29  ;;  %v17091_v61 = vsel %vm5248_vm13, %v5294_v20, %v19920_v36  ;;  %v20775_v20 = vld [vmem:[#allocation149_spill] sm:$0xff] }
 0x61f   :  { %v6203_v18 = vsel %vm3957_vm4, %v6171_v39, %v5750_v49  ;;  %v5654_v54 = vpop.permute.xlu0 %5653  ;;  %v20776_v1 = vrot.slane %v20775_v20, 1 }
 0x620   :  { %v6235_v13 = vsel %vm4022_vm5, %v6203_v18, %v15478_v14  ;;  %5941 = vrot.lane.b32.xlu1 %v16803_v19, %s11974_s21  ;;  %v6172_v6 = vsel %vm3892_vm1, %v6140_v2, %v5654_v54 }
 0x621   :  { %5859 = vrot.lane.b32.xlu0 %v16816_v23, %s11973_s27  ;;  %v6267_v51 = vsel %vm4087_vm6, %v6235_v13, %v15492_v24  ;;  %v1461_v39 = vsel %vm1380_vm7, %v20776_v1, 0.0 }
 0x622   :  { %v5560_v7 = vpop.permute.xlu1 %5559  ;;  %v6299_v12 = vsel %vm4152_vm8, %v6267_v51, %v20774_v0  ;;  %v1478_v18 = vadd.f32 %v20775_v20, %v1461_v39  ;;  %v20777_v51 = vld [vmem:[#allocation154_spill] sm:$0xff]  ;;  %v20778_v20 = vld [vmem:[#allocation163_spill] sm:$0xff] }
 0x623   :  { %v5752_v11 = vpop.permute.xlu0 %5751  ;;  %10789 = vmatprep.mubr.msk.f32.mxu1 %vm4223_vm9, %v6299_v12  ;;  %v1509_v2 = vmul.f32 0.25, %v20777_v51  ;;  %v20779_v1 = vrot.slane %v20778_v20, 1 }
 0x624   :  { %v6204_v27 = vsel %vm3957_vm4, %v6172_v6, %v5752_v11  ;;  %6025 = vrot.lane.b32.xlu1 %v16821_v21, %s11975_s29  ;;  %v1510_v59 = vmul.f32 0.25, %v1478_v18 }
 0x625   :  { %v6236_v33 = vsel %vm4022_vm5, %v6204_v27, %v15478_v14  ;;  %5943 = vrot.lane.b32.xlu0 %v16795_v3, %s11974_s21  ;;  %v1462_v39 = vsel %vm1380_vm7, %v20779_v1, 0.0 }
 0x626   :  { %v5656_v62 = vpop.permute.xlu1 %5655  ;;  %v6268_v45 = vsel %vm4087_vm6, %v6236_v33, %v15492_v24 }
 0x627   :  { %v5562_v58 = vpop.permute.xlu0 %5561  ;;  %v6300_v40 = vsel %vm4152_vm8, %v6268_v45, %v20774_v0 }
 0x628   :  { %10790 = vmatmul.mubr.msk.f32.gmra.mrb[58].mxu1 %vm4223_vm9, %v6300_v40  ;;  %6027 = vrot.lane.b32.xlu1 %v17124_v26, %s11975_s29  ;;  %v17176_v40 = vsel %vm5153_vm14, 0.0, %v5193_v5 }
 0x629   :  { %5369 = vrot.lane.b32.xlu0 %v16716_v15, %s11969_s28  ;;  %v17150_v15 = vld [vmem:[%s19538_s6] ss:$0 sm:$0xff] }
 0x62a   :  { %v5658_v29 = vpop.permute.xlu1 %5657 }
 0x62b   :  { %v17131_v41 = vpop.permute.xlu0 %5357 }
 0x62c   :  { %5467 = vrot.lane.b32.xlu1 %v16740_v56, %s11968_s24 }
 0x62d   :  { %5371 = vrot.lane.b32.xlu0 %v16710_v16, %s11969_s28 }
 0x62e   :  { %v17140_v47 = vpop.permute.xlu1 %5359 }
 0x62f   :  { %v5754_v49 = vpop.permute.xlu0 %5753 }
 0x630   :  { %5575 = vrot.lane.b32.xlu1 %v17066_v10, %s11970_s22 }
 0x631   :  { %5469 = vrot.lane.b32.xlu0 %v17020_v37, %s11968_s24 }
 0x632   :  { %v5756_v56 = vpop.permute.xlu1 %5755 }
 0x633   :  { %v17152_v54 = vpop.permute.xlu0 %5455  ;;  %v10770_v16 = vpop.f32.mrb[44].mxu1 }
 0x634   :  { %v6491_v13 = vadd.f32 %v10770_v16, %v17150_v15  ;;  %5671 = vrot.lane.b32.xlu1 %v16803_v19, %s11971_s30  ;;  %v6485_v30 = vpop.f32.mrb[45].mxu1 }
 0x635   :  { %5577 = vrot.lane.b32.xlu0 %v16816_v23, %s11970_s22  ;;  %v6486_v37 = vadd.f32 %v17150_v15, %v6485_v30 }
 0x636   :  { %v17161_v12 = vadd.f32 %v6491_v13, %v1510_v59  ;;  %v17163_v6 = vpop.permute.xlu1 %5457  ;;  %v1480_v59 = vadd.f32 %v20778_v20, %v1462_v39  ;;  %v6141_v13 = vsel %vm3827_vm3, %v14809_v32, %v5560_v7  ;;  %v20780_v39 = vld [vmem:[#allocation168_spill] sm:$0xff] }
 0x637   :  { %v17165_v11 = vadd.f32 %v6486_v37, %v1509_v2  ;;  %v5846_v27 = vpop.permute.xlu0 %5845  ;;  %v6173_v37 = vsel %vm3892_vm1, %v6141_v13, %v5656_v62  ;;  %v1511_v36 = vmul.f32 0.25, %v20780_v39 }
 0x638   :  { %5769 = vrot.lane.b32.xlu1 %v16821_v21, %s11972_s25  ;;  %v1512_v2 = vmul.f32 0.25, %v1480_v59  ;;  %v6205_v44 = vsel %vm3957_vm4, %v6173_v37, %v5754_v49  ;;  %v6142_v59 = vsel %vm3827_vm3, %v14809_v32, %v5562_v58  ;;  %v20781_v49 = vrot.slane %v16889_v42, 2 }
 0x639   :  { %5673 = vrot.lane.b32.xlu0 %v16795_v3, %s11971_s30  ;;  %v6237_v62 = vsel %vm4022_vm5, %v6205_v44, %v5846_v27  ;;  %v6174_v4 = vsel %vm3892_vm1, %v6142_v59, %v5658_v29  ;;  %v6083_v59 = vsel %vm738_vm2, %v16801_v9, %v17131_v41 }
 0x63a   :  { %v5848_v33 = vpop.permute.xlu1 %5847  ;;  %v17211_v37 = vsel %vm5248_vm13, %v20781_v49, 0.0 }
 0x63b   :  { %v17171_v45 = vpop.permute.xlu0 %5563 }
 0x63c   :  { %5861 = vrot.lane.b32.xlu1 %v17176_v40, %s11973_s27 }
 0x63d   :  { %5771 = vrot.lane.b32.xlu0 %v17124_v26, %s11972_s25 }
 0x63e   :  { %v17185_v18 = vpop.permute.xlu1 %5565 }
 0x63f   :  { %v5930_v16 = vpop.permute.xlu0 %5929 }
 0x640   :  { %5945 = vrot.lane.b32.xlu1 %v16894_v28, %s11974_s21  ;;  %v6269_v22 = vsel %vm4087_vm6, %v6237_v62, %v5930_v16 }
 0x641   :  { %5863 = vrot.lane.b32.xlu0 %v16911_v38, %s11973_s27 }
 0x642   :  { %v5932_v5 = vpop.permute.xlu1 %5931 }
 0x643   :  { %v5660_v30 = vpop.permute.xlu0 %5659  ;;  %v10773_v51 = vpop.f32.mrb[46].mxu1 }
 0x644   :  { %v6501_v1 = vadd.f32 %v10773_v51, %v17150_v15  ;;  %6029 = vrot.lane.b32.xlu1 %v16916_v35, %s11975_s29  ;;  %v6495_v20 = vpop.f32.mrb[47].mxu1 }
 0x645   :  { %5947 = vrot.lane.b32.xlu0 %v16889_v42, %s11974_s21  ;;  %v6496_v7 = vadd.f32 %v17150_v15, %v6495_v20  ;;  %v6206_v20 = vsel %vm3957_vm4, %v6174_v4, %v5756_v56 }
 0x646   :  { %v6647_v13 = vadd.f32 %v6501_v1, %v1512_v2  ;;  %v5662_v51 = vpop.permute.xlu1 %5661  ;;  %v6238_v44 = vsel %vm4022_vm5, %v6206_v20, %v5848_v33  ;;  %v6084_v20 = vsel %vm738_vm2, %v16445_v17, %v17140_v47 }
 0x647   :  { %v6646_v57 = vadd.f32 %v6496_v7, %v1511_v36  ;;  %v6014_v39 = vpop.permute.xlu0 %6013  ;;  %v6270_v36 = vsel %vm4087_vm6, %v6238_v44, %v5932_v5 }
 0x648   :  { %v17214_v0 = vmul.f32 0.70710677, %v6647_v13  ;;  %v6301_v32 = vsel %vm4152_vm8, %v6269_v22, %v6014_v39  ;;  %6031 = vrot.lane.b32.xlu1 %v17211_v37, %s11975_s29  ;;  %v6111_v13 = vsel %vm3765_vm10, %v6083_v59, %v17152_v54 }
 0x649   :  { %v17220_v58 = vmul.f32 0.70710677, %v6646_v57  ;;  %5373 = vrot.lane.b32.xlu0 %v16803_v19, %s11969_s28  ;;  %10792 = vmatprep.mubr.msk.f32.mxu1 %vm4223_vm9, %v6301_v32  ;;  %v6143_v9 = vsel %vm3827_vm3, %v6111_v13, %v17171_v45 }
 0x64a   :  { %vm7184_vm11 = vcmp.gt.f32.partialorder %v17214_v0, 0.0  ;;  %v7216_v4 = vmul.f32 0.2, %v17214_v0  ;;  %v6016_v29 = vpop.permute.xlu1 %6015  ;;  %v6175_v39 = vsel %vm3892_vm1, %v6143_v9, %v5660_v30 }
 0x64b   :  { %vm7183_vm12 = vcmp.gt.f32.partialorder %v17220_v58, 0.0  ;;  %v7215_v22 = vmul.f32 0.2, %v17220_v58  ;;  %v5758_v56 = vpop.permute.xlu0 %5757  ;;  %v6302_v57 = vsel %vm4152_vm8, %v6270_v36, %v6016_v29 }
 0x64c   :  { %v17232_v27 = vsel %vm7184_vm11, %v17214_v0, %v7216_v4  ;;  %5471 = vrot.lane.b32.xlu1 %v16821_v21, %s11968_s24  ;;  %10793 = vmatmul.mubr.msk.f32.gmra.mrb[60].mxu1 %vm4223_vm9, %v6302_v57  ;;  %v6207_v32 = vsel %vm3957_vm4, %v6175_v39, %v5758_v56  ;;  %v20782_v56 = vrot.slane %v16988_v53, 6 }
 0x64d   :  { %v17238_v19 = vsel %vm7183_vm12, %v17220_v58, %v7215_v22  ;;  %5375 = vrot.lane.b32.xlu0 %v16795_v3, %s11969_s28  ;;  %v7407_v33 = vrot.slane %v17232_v27, 2  ;;  %v7313_v16 = vrot.slane %v17232_v27, 6 }
 0x64e   :  { %v5850_v5 = vpop.permute.xlu1 %5849  ;;  %v7406_v2 = vrot.slane %v17238_v19, 2  ;;  %v7312_v1 = vrot.slane %v17238_v19, 6  ;;  %v17248_v21 = vpack.i.bf16 %v17232_v27, %v17238_v19  ;;  %v17302_v57 = vsel %vm5153_vm14, 0.0, %v20782_v56 }
 0x64f   :  { %v5760_v7 = vpop.permute.xlu0 %5759  ;;  %v6239_v54 = vsel %vm4022_vm5, %v6207_v32, %v5850_v5 }
 0x650   :  { %5579 = vrot.lane.b32.xlu1 %v17176_v40, %s11970_s22  ;;  %v17258_v3 = vsel %vm5248_vm13, %v7406_v2, %v7407_v33  ;;  %v17263_v62 = vsel %vm5153_vm14, %v7312_v1, %v7313_v16  ;;  %v20783_v16 = vld [vmem:[#allocation177_spill] sm:$0xff] }
 0x651   :  { %5473 = vrot.lane.b32.xlu0 %v17124_v26, %s11968_s24  ;;  %10107 = vmatprep.mubr.msk.f32.mxu0 %vm3765_vm10, %v17258_v3  ;;  %v6112_v26 = vsel %vm3765_vm10, %v6084_v20, %v17163_v6  ;;  %v20784_v5 = vrot.slane %v20783_v16, 1 }
 0x652   :  { %v5934_v41 = vpop.permute.xlu1 %5933  ;;  %v6144_v45 = vsel %vm3827_vm3, %v6112_v26, %v17185_v18  ;;  %v20785_v26 = vld [vmem:[#allocation182_spill] sm:$0xff] }
 0x653   :  { %v5852_v49 = vpop.permute.xlu0 %5851  ;;  %v6271_v30 = vsel %vm4087_vm6, %v6239_v54, %v5934_v41  ;;  %v6176_v17 = vsel %vm3892_vm1, %v6144_v45, %v5662_v51  ;;  %v1463_v2 = vsel %vm1380_vm7, %v20784_v5, 0.0  ;;  %v1513_v54 = vmul.f32 0.25, %v20785_v26 }
 0x654   :  { %5675 = vrot.lane.b32.xlu1 %v16894_v28, %s11971_s30  ;;  %v6208_v4 = vsel %vm3957_vm4, %v6176_v17, %v5760_v7  ;;  %v1482_v13 = vadd.f32 %v20783_v16, %v1463_v2 }
 0x655   :  { %5581 = vrot.lane.b32.xlu0 %v16911_v38, %s11970_s22  ;;  %v6240_v6 = vsel %vm4022_vm5, %v6208_v4, %v5852_v49 }
 0x656   :  { %v6018_v44 = vpop.permute.xlu1 %6017  ;;  %v1514_v49 = vmul.f32 0.25, %v1482_v13 }
 0x657   :  { %v6303_v47 = vsel %vm4152_vm8, %v6271_v30, %v6018_v44  ;;  %v5936_v36 = vpop.permute.xlu0 %5935 }
 0x658   :  { %5773 = vrot.lane.b32.xlu1 %v16916_v35, %s11972_s25  ;;  %10795 = vmatprep.mubr.msk.f32.mxu1 %vm4223_vm9, %v6303_v47  ;;  %v6272_v18 = vsel %vm4087_vm6, %v6240_v6, %v5936_v36  ;;  %v20786_v36 = vrot.slane %v16986_v55, 2 }
 0x659   :  { %5677 = vrot.lane.b32.xlu0 %v16889_v42, %s11971_s30 }
 0x65a   :  { %v6020_v29 = vpop.permute.xlu1 %6019  ;;  %v17331_v4 = vsel %vm5248_vm13, %v20786_v36, 0.0  ;;  %v20788_v36 = vld [vmem:[#allocation191_spill] sm:$0xff] }
 0x65b   :  { %v6304_v51 = vsel %vm4152_vm8, %v6272_v18, %v6020_v29  ;;  %v5362_v22 = vpop.permute.xlu0 %5361 }
 0x65c   :  { %5865 = vrot.lane.b32.xlu1 %v17302_v57, %s11973_s27  ;;  %10796 = vmatmul.mubr.msk.f32.gmra.mrb[62].mxu1 %vm4223_vm9, %v6304_v51  ;;  %v6085_v56 = vsel %vm738_vm2, %v16847_v43, %v5362_v22 }
 0x65d   :  { %5775 = vrot.lane.b32.xlu0 %v17211_v37, %s11972_s25 }
 0x65e   :  { %v5460_v7 = vpop.permute.xlu1 %5459 }
 0x65f   :  { %v5364_v59 = vpop.permute.xlu0 %5363  ;;  %v6113_v16 = vsel %vm3765_vm10, %v6085_v56, %v5460_v7 }
 0x660   :  { %5949 = vrot.lane.b32.xlu1 %v16988_v53, %s11974_s21 }
 0x661   :  { %5867 = vrot.lane.b32.xlu0 %v17001_v60, %s11973_s27 }
 0x662   :  { %v5568_v9 = vpop.permute.xlu1 %5567 }
 0x663   :  { %v5462_v41 = vpop.permute.xlu0 %5461  ;;  %v10776_v39 = vpop.f32.mrb[48].mxu1 }
 0x664   :  { %v6511_v20 = vadd.f32 %v10776_v39, %v17150_v15  ;;  %6033 = vrot.lane.b32.xlu1 %v17006_v8, %s11975_s29  ;;  %v6505_v32 = vpop.f32.mrb[49].mxu1 }
 0x665   :  { %5951 = vrot.lane.b32.xlu0 %v16986_v55, %s11974_s21  ;;  %v6506_v45 = vadd.f32 %v17150_v15, %v6505_v32 }
 0x666   :  { %v17324_v30 = vadd.f32 %v6511_v20, %v1514_v49  ;;  %v5664_v44 = vpop.permute.xlu1 %5663  ;;  %v19926_v20 = vmov 0.0|0.0  }
 0x667   :  { %v17326_v17 = vadd.f32 %v6506_v45, %v1513_v54  ;;  %v5570_v47 = vpop.permute.xlu0 %5569  ;;  %10925 = vmatprep.subr.bf16.mxu0 %v19926_v20 }
 0x668   :  { %6035 = vrot.lane.b32.xlu1 %v17331_v4, %s11975_s29 }
 0x669   :  { %5377 = vrot.lane.b32.xlu0 %v16894_v28, %s11969_s28  ;;  %v6145_v28 = vsel %vm3827_vm3, %v6113_v16, %v5568_v9 }
 0x66a   :  { %v5762_v6 = vpop.permute.xlu1 %5761 }
 0x66b   :  { %v5666_v18 = vpop.permute.xlu0 %5665 }
 0x66c   :  { %5475 = vrot.lane.b32.xlu1 %v16916_v35, %s11968_s24  ;;  %v6177_v35 = vsel %vm3892_vm1, %v6145_v28, %v5664_v44  ;;  %v20787_v44 = vrot.slane %v17070_v50, 6 }
 0x66d   :  { %5379 = vrot.lane.b32.xlu0 %v16889_v42, %s11969_s28  ;;  %v6086_v42 = vsel %vm738_vm2, %v16548_v48, %v5364_v59  ;;  %v6209_v13 = vsel %vm3957_vm4, %v6177_v35, %v5762_v6  ;;  %v20789_v6 = vrot.slane %v20788_v36, 1 }
 0x66e   :  { %v5854_v29 = vpop.permute.xlu1 %5853  ;;  %v6114_v43 = vsel %vm3765_vm10, %v6086_v42, %v5462_v41 }
 0x66f   :  { %v5764_v51 = vpop.permute.xlu0 %5763  ;;  %v6241_v22 = vsel %vm4022_vm5, %v6209_v13, %v5854_v29  ;;  %v20790_v13 = vld [vmem:[#allocation196_spill] sm:$0xff] }
 0x670   :  { %5583 = vrot.lane.b32.xlu1 %v17302_v57, %s11970_s22 }
 0x671   :  { %5477 = vrot.lane.b32.xlu0 %v17211_v37, %s11968_s24  ;;  %v6146_v37 = vsel %vm3827_vm3, %v6114_v43, %v5570_v47  ;;  %v5247_v47 = vsel %vm5153_vm14, 0.0, %v20787_v44  ;;  %v1515_v43 = vmul.f32 0.25, %v20790_v13 }
 0x672   :  { %v5938_v5 = vpop.permute.xlu1 %5937  ;;  %v6178_v39 = vsel %vm3892_vm1, %v6146_v37, %v5666_v18  ;;  %v1464_v18 = vsel %vm1380_vm7, %v20789_v6, 0.0  ;;  %v6708_v37 = vld [vmem:[%s19540_s8] sm:$0xff] }
 0x673   :  { %v5856_v2 = vpop.permute.xlu0 %5855  ;;  %v6273_v7 = vsel %vm4087_vm6, %v6241_v22, %v5938_v5  ;;  %v6210_v49 = vsel %vm3957_vm4, %v6178_v39, %v5764_v51  ;;  %v1484_v56 = vadd.f32 %v20788_v36, %v1464_v18  ;;  %v17424_v36 = vmul.f32 0.70710677, %v17165_v11  ;;  %v6713_v18 = vld [vmem:[%s19540_s8 + $0x28] sm:$0xff] }
 0x674   :  { %5679 = vrot.lane.b32.xlu1 %v16988_v53, %s11971_s30  ;;  %v6242_v41 = vsel %vm4022_vm5, %v6210_v49, %v5856_v2  ;;  %v6711_v49 = vld [vmem:[%s19540_s8 + $0x18] sm:$0xff] }
 0x675   :  { %5585 = vrot.lane.b32.xlu0 %v17001_v60, %s11970_s22  ;;  %v1516_v35 = vmul.f32 0.25, %v1484_v56  ;;  %vm7181_vm0 = vcmp.gt.f32.partialorder %v17424_v36, 0.0 }
 0x676   :  { %v6022_v9 = vpop.permute.xlu1 %6021 }
 0x677   :  { %v6305_v48 = vsel %vm4152_vm8, %v6273_v7, %v6022_v9  ;;  %v5940_v59 = vpop.permute.xlu0 %5939  ;;  %v6709_v7 = vld [vmem:[%s19540_s8 + $0x8] sm:$0xff]  ;;  %v6710_v9 = vld [vmem:[%s19540_s8 + $0x10] sm:$0xff] }
 0x678   :  { %5777 = vrot.lane.b32.xlu1 %v17006_v8, %s11972_s25  ;;  %10798 = vmatprep.mubr.msk.f32.mxu1 %vm4223_vm9, %v6305_v48  ;;  %v6274_v32 = vsel %vm4087_vm6, %v6242_v41, %v5940_v59  ;;  %v10926_v59 = vpack.c.bf16 %v6709_v7, %v6708_v37  ;;  %v17414_v41 = vmul.f32 0.70710677, %v17161_v12  ;;  %v10929_v6 = vpack.c.bf16 %v6711_v49, %v6710_v9  ;;  %v6712_v12 = vld [vmem:[%s19540_s8 + $0x20] sm:$0xff] }
 0x679   :  { %5681 = vrot.lane.b32.xlu0 %v16986_v55, %s11971_s30  ;;  %v6716_v49 = vld [vmem:[%s19540_s8 + $0x40] sm:$0xff] }
 0x67a   :  { %v6024_v26 = vpop.permute.xlu1 %6023  ;;  %10927 = vmatpush1.bf16.msra.mxu0 %v10926_v59  ;;  %v7214_v56 = vmul.f32 0.2, %v17414_v41  ;;  %vm7182_vm15 = vcmp.gt.f32.partialorder %v17414_v41, 0.0 }
 0x67b   :  { %v6306_v54 = vsel %vm4152_vm8, %v6274_v32, %v6024_v26  ;;  %v5366_v45 = vpop.permute.xlu0 %5365  ;;  %10928 = vmatprep.subr.bf16.mxu0 %v19926_v20 }
 0x67c   :  { %5869 = vrot.lane.b32.xlu1 %v5247_v47, %s11973_s27  ;;  %10799 = vmatmul.mubr.msk.f32.gmra.mrb[64].mxu1 %vm4223_vm9, %v6306_v54  ;;  %v20791_v54 = vrot.slane %v17061_v31, 2 }
 0x67d   :  { %5779 = vrot.lane.b32.xlu0 %v17331_v4, %s11972_s25 }
 0x67e   :  { %v5464_v29 = vpop.permute.xlu1 %5463  ;;  %v17421_v44 = vsel %vm5248_vm13, %v20791_v54, 0.0  ;;  %10930 = vmatpush1.bf16.msra.mxu0 %v10929_v6 }
 0x67f   :  { %v17383_v51 = vpop.permute.xlu0 %5367  ;;  %10931 = vmatprep.subr.bf16.mxu0 %v19926_v20 }
 0x680   :  { %5953 = vrot.lane.b32.xlu1 %v17070_v50, %s11974_s21 }
 0x681   :  { %5871 = vrot.lane.b32.xlu0 %v17086_v34, %s11973_s27 }
 0x682   :  { %v5572_v16 = vpop.permute.xlu1 %5571 }
 0x683   :  { %v17390_v28 = vpop.permute.xlu0 %5465  ;;  %v10779_v5 = vpop.f32.mrb[50].mxu1 }
 0x684   :  { %v6521_v2 = vadd.f32 %v10779_v5, %v17150_v15  ;;  %6037 = vrot.lane.b32.xlu1 %v17091_v61, %s11975_s29  ;;  %v6515_v42 = vpop.f32.mrb[51].mxu1 }
 0x685   :  { %5955 = vrot.lane.b32.xlu0 %v17061_v31, %s11974_s21  ;;  %v6516_v22 = vadd.f32 %v17150_v15, %v6515_v42  ;;  %v6715_v42 = vld [vmem:[%s19540_s8 + $0x38] sm:$0xff] }
 0x686   :  { %v17408_v39 = vadd.f32 %v6521_v2, %v1516_v35  ;;  %v5668_v48 = vpop.permute.xlu1 %5667  ;;  %v7213_v35 = vmul.f32 0.2, %v17424_v36  ;;  %v6714_v2 = vld [vmem:[%s19540_s8 + $0x30] sm:$0xff] }
 0x687   :  { %v17416_v32 = vadd.f32 %v6516_v22, %v1515_v43  ;;  %v5574_v26 = vpop.permute.xlu0 %5573  ;;  %v10935_v37 = vpack.c.bf16 %v6715_v42, %v6714_v2 }
 0x688   :  { %6039 = vrot.lane.b32.xlu1 %v17421_v44, %s11975_s29  ;;  %v17456_v22 = vsel %vm7181_vm0, %v17424_v36, %v7213_v35 }
 0x689   :  { %5381 = vrot.lane.b32.xlu0 %v16988_v53, %s11969_s28  ;;  %v10932_v53 = vpack.c.bf16 %v6713_v18, %v6712_v12 }
 0x68a   :  { %v5766_v11 = vpop.permute.xlu1 %5765 }
 0x68b   :  { %v5670_v5 = vpop.permute.xlu0 %5669  ;;  %10933 = vmatpush1.bf16.msra.mxu0 %v10932_v53 }
 0x68c   :  { %5479 = vrot.lane.b32.xlu1 %v17006_v8, %s11968_s24  ;;  %v17453_v8 = vsel %vm7182_vm15, %v17414_v41, %v7214_v56  ;;  %10934 = vmatprep.subr.bf16.mxu0 %v19926_v20 }
 0x68d   :  { %5383 = vrot.lane.b32.xlu0 %v16986_v55, %s11969_s28  ;;  %v6087_v55 = vsel %vm738_vm2, %v16906_v25, %v5366_v45  ;;  %v6717_v25 = vld [vmem:[%s19540_s8 + $0x48] sm:$0xff]  ;;  %v7404_v45 = vrot.slane %v17453_v8, 2 }
 0x68e   :  { %v5858_v13 = vpop.permute.xlu1 %5857  ;;  %v6115_v7 = vsel %vm3765_vm10, %v6087_v55, %v5464_v29  ;;  %v7310_v55 = vrot.slane %v17453_v8, 6 }
 0x68f   :  { %v5768_v43 = vpop.permute.xlu0 %5767  ;;  %v6147_v9 = vsel %vm3827_vm3, %v6115_v7, %v5572_v16  ;;  %v6088_v16 = vsel %vm738_vm2, %v16654_v46, %v17383_v51  ;;  %10936 = vmatpush1.bf16.msra.mxu0 %v10935_v37  ;;  %v6718_v46 = vld [vmem:[%s19540_s8 + $0x50] sm:$0xff] }
 0x690   :  { %5587 = vrot.lane.b32.xlu1 %v5247_v47, %s11970_s22  ;;  %v6179_v47 = vsel %vm3892_vm1, %v6147_v9, %v5668_v48  ;;  %v6116_v6 = vsel %vm3765_vm10, %v6088_v16, %v17390_v28  ;;  %10937 = vmatprep.subr.bf16.mxu0 %v19926_v20  ;;  %v10938_v48 = vpack.c.bf16 %v6717_v25, %v6716_v49  ;;  %v6719_v28 = vld [vmem:[%s19540_s8 + $0x58] sm:$0xff]  ;;  %v6721_v49 = vld [vmem:[%s19540_s8 + $0x68] sm:$0xff] }
 0x691   :  { %5481 = vrot.lane.b32.xlu0 %v17331_v4, %s11968_s24  ;;  %v7403_v4 = vrot.slane %v17456_v22, 2  ;;  %v6211_v54 = vsel %vm3957_vm4, %v6179_v47, %v5766_v11  ;;  %v6148_v51 = vsel %vm3827_vm3, %v6116_v6, %v5574_v26  ;;  %v6747_v11 = vld [vmem:[%s19544_s12 + $0x8] sm:$0xff]  ;;  %v10941_v37 = vpack.c.bf16 %v6719_v28, %v6718_v46  ;;  %v6722_v46 = vld [vmem:[%s19540_s8 + $0x70] sm:$0xff] }
 0x692   :  { %v5942_v59 = vpop.permute.xlu1 %5941  ;;  %v6243_v12 = vsel %vm4022_vm5, %v6211_v54, %v5858_v13  ;;  %v6180_v56 = vsel %vm3892_vm1, %v6148_v51, %v5670_v5  ;;  %v7309_v13 = vrot.slane %v17456_v22, 6  ;;  %v20793_v47 = vld [vmem:[#allocation205_spill] sm:$0xff]  ;;  %v6723_v51 = vld [vmem:[%s19540_s8 + $0x78] sm:$0xff]  ;;  %v17565_v28 = vmul.f32 0.70710677, %v17324_v30 }
 0x693   :  { %v5860_v29 = vpop.permute.xlu0 %5859  ;;  %v17504_v53 = vsel %vm5248_vm13, %v7403_v4, %v7404_v45  ;;  %v6212_v42 = vsel %vm3957_vm4, %v6180_v56, %v5768_v43  ;;  %10939 = vmatpush1.bf16.msra.mxu0 %v10938_v48  ;;  %v20792_v43 = vmov 0.0   ;;  %v11220_v48 = vpack.i.bf16 %v17453_v8, %v17456_v22  ;;  %v6725_v30 = vld [vmem:[%s19540_s8 + $0x88] sm:$0xff] }
 0x694   :  { %5683 = vrot.lane.b32.xlu1 %v17070_v50, %s11971_s30  ;;  %v6275_v50 = vsel %vm4087_vm6, %v6243_v12, %v5942_v59  ;;  %v6244_v5 = vsel %vm4022_vm5, %v6212_v42, %v5860_v29  ;;  %v11210_v59 = vpack.i.bf16 %v17504_v53, %v20792_v43  ;;  %10940 = vmatprep.subr.bf16.mxu0 %v19926_v20  ;;  %v20794_v29 = vrot.slane %v20793_v47, 1 }
 0x695   :  { %5589 = vrot.lane.b32.xlu0 %v17086_v34, %s11970_s22  ;;  %v6746_v34 = vld [vmem:[%s19544_s12] sm:$0xff]  ;;  %v17534_v16 = vsel %vm5153_vm14, %v7309_v13, %v7310_v55  ;;  %v17537_v54 = vsel %vm5153_vm14, 0.0, %v7309_v13  ;;  %v17561_v8 = vsel %vm5153_vm14, 0.0, %v7312_v1  ;;  %v7467_v22 = vsel %vm5248_vm13, %v7404_v45, 0.0  ;;  %s11979_s22 = smov 112  }
 0x696   :  { %v6026_v18 = vpop.permute.xlu1 %6025  ;;  %v10921_v2 = vpack.c.bf16 %v6747_v11, %v6746_v34  ;;  %v1465_v4 = vsel %vm1380_vm7, %v20794_v29, 0.0  ;;  %v17568_v34 = vmul.f32 0.70710677, %v17326_v17  ;;  %v10947_v11 = vpack.c.bf16 %v6723_v51, %v6722_v46  ;;  %v6724_v1 = vld [vmem:[%s19540_s8 + $0x80] sm:$0xff] }
 0x697   :  { %v6307_v35 = vsel %vm4152_vm8, %v6275_v50, %v6026_v18  ;;  %v5944_v26 = vpop.permute.xlu0 %5943  ;;  %10942 = vmatpush1.bf16.msra.mxu0 %v10941_v37  ;;  %v11215_v18 = vpack.i.bf16 %v17534_v16, %v17537_v54  ;;  %v11230_v19 = vpack.i.bf16 %v17263_v62, %v17561_v8  ;;  %v7218_v13 = vmul.f32 0.2, %v17565_v28 }
 0x698   :  { %5781 = vrot.lane.b32.xlu1 %v17091_v61, %s11972_s25  ;;  %10801 = vmatprep.mubr.msk.f32.mxu1 %vm4223_vm9, %v6307_v35  ;;  %v6276_v7 = vsel %vm4087_vm6, %v6244_v5, %v5944_v26  ;;  %v6720_v61 = vld [vmem:[%s19540_s8 + $0x60] sm:$0xff]  ;;  %v11225_v26 = vpack.i.bf16 %v7467_v22, %v17504_v53  ;;  %v7217_v55 = vmul.f32 0.2, %v17568_v34  ;;  %vm7186_vm11 = vcmp.gt.f32.partialorder %v17565_v28, 0.0  ;;  %s11978_s8 = smov 80  }
 0x699   :  { %5685 = vrot.lane.b32.xlu0 %v17061_v31, %s11971_s30  ;;  %10922 = vmatprep.subr.bf16.mxu1 %v10921_v2  ;;  %v10944_v6 = vpack.c.bf16 %v6721_v49, %v6720_v61  ;;  %vm7185_vm12 = vcmp.gt.f32.partialorder %v17568_v34, 0.0  ;;  %v10950_v53 = vpack.c.bf16 %v6725_v30, %v6724_v1  ;;  %v17606_v51 = vsel %vm5248_vm13, %v7407_v33, 0.0 }
 0x69a   :  { %v6028_v9 = vpop.permute.xlu1 %6027  ;;  %10924 = vmatpush3.bf16.msra.mxu1 %v10921_v2  ;;  %10943 = vmatprep.subr.bf16.mxu0 %v19926_v20  ;;  %v20795_v2 = vld [vmem:[#allocation210_spill] sm:$0xff]  ;;  %v11255_v27 = vpack.i.bf16 %v17606_v51, %v17258_v3 }
 0x69b   :  { %v6308_v31 = vsel %vm4152_vm8, %v6276_v7, %v6028_v9  ;;  %v17526_v25 = vpop.permute.xlu0 %5369  ;;  %10952 = vmatprep.subr.bf16.mxu1 %v19926_v20  ;;  %10945 = vmatpush1.bf16.msra.mxu0 %v10944_v6  ;;  %v1517_v42 = vmul.f32 0.25, %v20795_v2 }
 0x69c   :  { %10802 = vmatmul.mubr.msk.f32.gmra.mrb[66].mxu1 %vm4223_vm9, %v6308_v31  ;;  %11211 = vrot.lane.b32.xlu1 %v11210_v59, %s11971_s30  ;;  %v7250_v31 = vsel %vm7186_vm11, %v17565_v28, %v7218_v13  ;;  %v6089_v30 = vsel %vm738_vm2, %v16980_v63, %v17526_v25 }
 0x69d   :  { %5783 = vrot.lane.b32.xlu0 %v17421_v44, %s11972_s25  ;;  %v1486_v44 = vadd.f32 %v20793_v47, %v1465_v4  ;;  %10946 = vmatprep.subr.bf16.mxu0 %v19926_v20  ;;  %v7249_v47 = vsel %vm7185_vm12, %v17568_v34, %v7217_v55  ;;  %v7316_v46 = vrot.slane %v7250_v31, 6 }
 0x69e   :  { %v17541_v12 = vpop.permute.xlu1 %5467  ;;  %v7315_v6 = vrot.slane %v7249_v47, 6  ;;  %v7409_v63 = vrot.slane %v7249_v47, 2 }
 0x69f   :  { %v17554_v50 = vpop.permute.xlu0 %5371  ;;  %v1518_v17 = vmul.f32 0.25, %v1486_v44  ;;  %10948 = vmatpush1.bf16.msra.mxu0 %v10947_v11  ;;  %v17609_v44 = vmul.f32 0.70710677, %v17408_v39 }
 0x6a0   :  { %11221 = vrot.lane.b32.xlu1 %v11220_v48, %s11975_s29  ;;  %10949 = vmatprep.subr.bf16.mxu0 %v19926_v20  ;;  %v17621_v33 = vsel %vm5153_vm14, %v7315_v6, %v7316_v46 }
 0x6a1   :  { %11216 = vrot.lane.b32.xlu0 %v11215_v18, %s11973_s27  ;;  %v17612_v18 = vmul.f32 0.70710677, %v17416_v32  ;;  %v7220_v39 = vmul.f32 0.2, %v17609_v44  ;;  %vm7188_vm15 = vcmp.gt.f32.partialorder %v17609_v44, 0.0 }
 0x6a2   :  { %v5576_v56 = vpop.permute.xlu1 %5575 }
 0x6a3   :  { %v17581_v45 = vpop.permute.xlu0 %5469  ;;  %v10782_v35 = vpop.f32.mrb[52].mxu1  ;;  %10951 = vmatpush1.bf16.msra.mxu0 %v10950_v53  ;;  %v7219_v32 = vmul.f32 0.2, %v17612_v18  ;;  %vm7187_vm0 = vcmp.gt.f32.partialorder %v17612_v18, 0.0  ;;  %v17642_v13 = vsel %vm7188_vm15, %v17609_v44, %v7220_v39 }
 0x6a4   :  { %v6531_v5 = vadd.f32 %v10782_v35, %v17150_v15  ;;  %v6525_v37 = vpop.f32.mrb[53].mxu1  ;;  %11231 = vrot.lane.b32.xlu1 %v11230_v19, %s11977_s2 }
 0x6a5   :  { %v6526_v7 = vadd.f32 %v17150_v15, %v6525_v37  ;;  %11226 = vrot.lane.b32.xlu0 %v11225_v26, %s11978_s8  ;;  %v11270_v26 = vpack.i.bf16 %v7250_v31, %v7249_v47  ;;  %v17645_v55 = vsel %vm7187_vm0, %v17612_v18, %v7219_v32 }
 0x6a6   :  { %v17593_v9 = vadd.f32 %v6531_v5, %v1518_v17  ;;  %v5672_v59 = vpop.permute.xlu1 %5671 }
 0x6a7   :  { %v17596_v61 = vadd.f32 %v6526_v7, %v1517_v42  ;;  %v5578_v49 = vpop.permute.xlu0 %5577 }
 0x6a8   :  { %11241 = vrot.lane.b32.xlu1 %v11220_v48, %s11968_s24  ;;  %v11260_v48 = vpack.i.bf16 %v17258_v3, %v7467_v22  ;;  %v17630_v22 = vsel %vm5153_vm14, 0.0, %v7315_v6  ;;  %v6117_v3 = vsel %vm3765_vm10, %v6089_v30, %v17541_v12  ;;  %v6090_v12 = vsel %vm738_vm2, %v16735_v52, %v17554_v50 }
 0x6a9   :  { %11236 = vrot.lane.b32.xlu0 %v17248_v21, %s11979_s22  ;;  %v6149_v17 = vsel %vm3827_vm3, %v6117_v3, %v5576_v56  ;;  %v11265_v42 = vpack.i.bf16 %v17621_v33, %v17630_v22  ;;  %v6118_v5 = vsel %vm3765_vm10, %v6090_v12, %v17581_v45  ;;  %v7319_v6 = vrot.slane %v17642_v13, 6 }
 0x6aa   :  { %v5770_v29 = vpop.permute.xlu1 %5769  ;;  %v6181_v25 = vsel %vm3892_vm1, %v6149_v17, %v5672_v59  ;;  %v6150_v53 = vsel %vm3827_vm3, %v6118_v5, %v5578_v49  ;;  %v17695_v17 = vmul.f32 0.70710677, %v17596_v61 }
 0x6ab   :  { %v5674_v4 = vpop.permute.xlu0 %5673  ;;  %v6213_v56 = vsel %vm3957_vm4, %v6181_v25, %v5770_v29  ;;  %v7318_v29 = vrot.slane %v17645_v55, 6 }
 0x6ac   :  { %11251 = vrot.lane.b32.xlu1 %v17248_v21, %s11975_s29  ;;  %v6182_v50 = vsel %vm3892_vm1, %v6150_v53, %v5674_v4  ;;  %v7221_v61 = vmul.f32 0.2, %v17695_v17  ;;  %vm7189_vm12 = vcmp.gt.f32.partialorder %v17695_v17, 0.0  ;;  %v7412_v53 = vrot.slane %v17645_v55, 2 }
 0x6ad   :  { %11246 = vrot.lane.b32.xlu0 %v11230_v19, %s11973_s27  ;;  %v7410_v19 = vrot.slane %v7250_v31, 2  ;;  %v17684_v32 = vsel %vm5153_vm14, 0.0, %v7318_v29 }
 0x6ae   :  { %v5862_v11 = vpop.permute.xlu1 %5861 }
 0x6af   :  { %v5772_v1 = vpop.permute.xlu0 %5771  ;;  %v6245_v37 = vsel %vm4022_vm5, %v6213_v56, %v5862_v11  ;;  %v17657_v7 = vsel %vm5248_vm13, %v7410_v19, 0.0  ;;  %v17662_v52 = vsel %vm5248_vm13, %v7409_v63, %v7410_v19  ;;  %v17692_v19 = vmul.f32 0.70710677, %v17593_v9 }
 0x6b0   :  { %11261 = vrot.lane.b32.xlu1 %v11260_v48, %s11971_s30  ;;  %v6214_v46 = vsel %vm3957_vm4, %v6182_v50, %v5772_v1  ;;  %v11290_v11 = vpack.i.bf16 %v17657_v7, %v17662_v52  ;;  %v17681_v1 = vsel %vm5153_vm14, %v7318_v29, %v7319_v6 }
 0x6b1   :  { %11256 = vrot.lane.b32.xlu0 %v11255_v27, %s11978_s8  ;;  %v11300_v63 = vpack.i.bf16 %v17681_v1, %v17684_v32  ;;  %v7222_v9 = vmul.f32 0.2, %v17692_v19  ;;  %vm7190_vm11 = vcmp.gt.f32.partialorder %v17692_v19, 0.0 }
 0x6b2   :  { %v5946_v35 = vpop.permute.xlu1 %5945 }
 0x6b3   :  { %v5864_v2 = vpop.permute.xlu0 %5863  ;;  %v6277_v59 = vsel %vm4087_vm6, %v6245_v37, %v5946_v35  ;;  %v11305_v37 = vpack.i.bf16 %v17642_v13, %v17645_v55  ;;  %v7254_v6 = vsel %vm7190_vm11, %v17692_v19, %v7222_v9 }
 0x6b4   :  { %11271 = vrot.lane.b32.xlu1 %v11270_v26, %s11979_s22  ;;  %v6246_v49 = vsel %vm4022_vm5, %v6214_v46, %v5864_v2  ;;  %v11295_v2 = vpack.i.bf16 %v17662_v52, %v17606_v51  ;;  %v7253_v46 = vsel %vm7189_vm12, %v17695_v17, %v7221_v61 }
 0x6b5   :  { %11266 = vrot.lane.b32.xlu0 %v11265_v42, %s11977_s2 }
 0x6b6   :  { %v6030_v31 = vpop.permute.xlu1 %6029 }
 0x6b7   :  { %v6309_v47 = vsel %vm4152_vm8, %v6277_v59, %v6030_v31  ;;  %v5948_v45 = vpop.permute.xlu0 %5947  ;;  %v7413_v59 = vrot.slane %v17642_v13, 2 }
 0x6b8   :  { %10804 = vmatprep.mubr.msk.f32.mxu1 %vm4223_vm9, %v6309_v47  ;;  %11281 = vrot.lane.b32.xlu1 %v11265_v42, %s11973_s27  ;;  %v6278_v4 = vsel %vm4087_vm6, %v6246_v49, %v5948_v45  ;;  %v20798_v45 = vld [vmem:[#allocation225_spill] sm:$0xff] }
 0x6b9   :  { %11276 = vrot.lane.b32.xlu0 %v17248_v21, %s11968_s24  ;;  %v20796_v21 = vld [vmem:[#allocation219_spill] sm:$0xff]  ;;  %v1519_v29 = vmul.f32 0.25, %v20798_v45 }
 0x6ba   :  { %v6032_v48 = vpop.permute.xlu1 %6031  ;;  %v20797_v30 = vrot.slane %v20796_v21, 1 }
 0x6bb   :  { %v6310_v27 = vsel %vm4152_vm8, %v6278_v4, %v6032_v48  ;;  %v17678_v39 = vpop.permute.xlu0 %5373 }
 0x6bc   :  { %10805 = vmatmul.mubr.msk.f32.gmra.mrb[68].mxu1 %vm4223_vm9, %v6310_v27  ;;  %11291 = vrot.lane.b32.xlu1 %v11290_v11, %s11978_s8  ;;  %v1466_v3 = vsel %vm1380_vm7, %v20797_v30, 0.0  ;;  %v17723_v11 = vsel %vm5248_vm13, %v7412_v53, %v7413_v59  ;;  %v7322_v30 = vrot.slane %v7254_v6, 6 }
 0x6bd   :  { %11286 = vrot.lane.b32.xlu0 %v11270_v26, %s11975_s29  ;;  %v1488_v42 = vadd.f32 %v20796_v21, %v1466_v3  ;;  %v7321_v21 = vrot.slane %v7253_v46, 6 }
 0x6be   :  { %v5472_v35 = vpop.permute.xlu1 %5471 }
 0x6bf   :  { %v17700_v25 = vpop.permute.xlu0 %5375  ;;  %v1520_v31 = vmul.f32 0.25, %v1488_v42  ;;  %v17742_v53 = vsel %vm5153_vm14, %v7321_v21, %v7322_v30 }
 0x6c0   :  { %11301 = vrot.lane.b32.xlu1 %v11300_v63, %s11977_s2  ;;  %20799 = vst [vmem:[#allocation83_spill] sm:$0xff] %v17742_v53 }
 0x6c1   :  { %11296 = vrot.lane.b32.xlu0 %v11295_v2, %s11971_s30  ;;  %v11330_v2 = vpack.i.bf16 %v17723_v11, %v17657_v7 }
 0x6c2   :  { %v5580_v12 = vpop.permute.xlu1 %5579 }
 0x6c3   :  { %v5474_v56 = vpop.permute.xlu0 %5473  ;;  %v10785_v5 = vpop.f32.mrb[54].mxu1 }
 0x6c4   :  { %v6541_v50 = vadd.f32 %v10785_v5, %v17150_v15  ;;  %v6535_v47 = vpop.f32.mrb[55].mxu1  ;;  %11311 = vrot.lane.b32.xlu1 %v11270_v26, %s11968_s24  ;;  %v17729_v26 = vsel %vm5248_vm13, %v7413_v59, 0.0  ;;  %v17745_v59 = vsel %vm5153_vm14, 0.0, %v7321_v21 }
 0x6c5   :  { %v6536_v49 = vadd.f32 %v17150_v15, %v6535_v47  ;;  %11306 = vrot.lane.b32.xlu0 %v11305_v37, %s11979_s22  ;;  %v11325_v9 = vpack.i.bf16 %v17729_v26, %v17723_v11  ;;  %20800 = vst [vmem:[#allocation88_spill] sm:$0xff] %v17745_v59  ;;  %v11335_v45 = vpack.i.bf16 %v17742_v53, %v17745_v59 }
 0x6c6   :  { %v6655_v4 = vadd.f32 %v6541_v50, %v1520_v31  ;;  %v5676_v55 = vpop.permute.xlu1 %5675  ;;  %v11340_v31 = vpack.i.bf16 %v7254_v6, %v7253_v46  ;;  %v7416_v50 = vrot.slane %v7254_v6, 2 }
 0x6c7   :  { %v6654_v48 = vadd.f32 %v6536_v49, %v1519_v29  ;;  %v5582_v13 = vpop.permute.xlu0 %5581  ;;  %v7415_v29 = vrot.slane %v7253_v46, 2  ;;  %v6091_v49 = vsel %vm738_vm2, %v17066_v10, %v17678_v39 }
 0x6c8   :  { %v17725_v27 = vmul.f32 0.70710677, %v6655_v4  ;;  %11321 = vrot.lane.b32.xlu1 %v11305_v37, %s11975_s29  ;;  %v6119_v21 = vsel %vm3765_vm10, %v6091_v49, %v5472_v35  ;;  %v6092_v35 = vsel %vm738_vm2, %v16816_v23, %v17700_v25 }
 0x6c9   :  { %v17731_v3 = vmul.f32 0.70710677, %v6654_v48  ;;  %11316 = vrot.lane.b32.xlu0 %v11300_v63, %s11973_s27  ;;  %v6151_v6 = vsel %vm3827_vm3, %v6119_v21, %v5580_v12  ;;  %v17766_v10 = vsel %vm5248_vm13, %v7415_v29, %v7416_v50  ;;  %v6120_v12 = vsel %vm3765_vm10, %v6092_v35, %v5474_v56 }
 0x6ca   :  { %v5774_v15 = vpop.permute.xlu1 %5773  ;;  %v7224_v61 = vmul.f32 0.2, %v17725_v27  ;;  %vm7192_vm15 = vcmp.gt.f32.partialorder %v17725_v27, 0.0  ;;  %v6183_v46 = vsel %vm3892_vm1, %v6151_v6, %v5676_v55  ;;  %v6152_v55 = vsel %vm3827_vm3, %v6120_v12, %v5582_v13 }
 0x6cb   :  { %v5678_v42 = vpop.permute.xlu0 %5677  ;;  %v7223_v5 = vmul.f32 0.2, %v17731_v3  ;;  %vm7191_vm0 = vcmp.gt.f32.partialorder %v17731_v3, 0.0 }
 0x6cc   :  { %11331 = vrot.lane.b32.xlu1 %v11330_v2, %s11971_s30  ;;  %v7256_v4 = vsel %vm7192_vm15, %v17725_v27, %v7224_v61  ;;  %v17762_v2 = vsel %vm5248_vm13, %v7416_v50, 0.0  ;;  %v6184_v23 = vsel %vm3892_vm1, %v6152_v55, %v5678_v42 }
 0x6cd   :  { %11326 = vrot.lane.b32.xlu0 %v11325_v9, %s11978_s8  ;;  %v7255_v48 = vsel %vm7191_vm0, %v17731_v3, %v7223_v5  ;;  %v7325_v61 = vrot.slane %v7256_v4, 6  ;;  %v6215_v5 = vsel %vm3957_vm4, %v6183_v46, %v5774_v15  ;;  %v11360_v21 = vpack.i.bf16 %v17762_v2, %v17766_v10 }
 0x6ce   :  { %v5866_v63 = vpop.permute.xlu1 %5865  ;;  %v7324_v39 = vrot.slane %v7255_v48, 6  ;;  %v17805_v12 = vpack.i.bf16 %v7256_v4, %v7255_v48  ;;  %v7419_v55 = vrot.slane %v7256_v4, 2 }
 0x6cf   :  { %v5776_v47 = vpop.permute.xlu0 %5775  ;;  %v6247_v49 = vsel %vm4022_vm5, %v6215_v5, %v5866_v63 }
 0x6d0   :  { %11341 = vrot.lane.b32.xlu1 %v11340_v31, %s11979_s22  ;;  %v17786_v56 = vsel %vm5153_vm14, 0.0, %v7324_v39 }
 0x6d1   :  { %11336 = vrot.lane.b32.xlu0 %v11335_v45, %s11977_s2  ;;  %20802 = vst [vmem:[#allocation85_spill] sm:$0xff] %v17786_v56 }
 0x6d2   :  { %v5950_v30 = vpop.permute.xlu1 %5949 }
 0x6d3   :  { %v5868_v9 = vpop.permute.xlu0 %5867  ;;  %v6279_v50 = vsel %vm4087_vm6, %v6247_v49, %v5950_v30  ;;  %v7418_v49 = vrot.slane %v7255_v48, 2 }
 0x6d4   :  { %11351 = vrot.lane.b32.xlu1 %v11335_v45, %s11973_s27  ;;  %v17783_v45 = vsel %vm5153_vm14, %v7324_v39, %v7325_v61  ;;  %v20803_v39 = vld [vmem:[#allocation233_spill] sm:$0xff] }
 0x6d5   :  { %11346 = vrot.lane.b32.xlu0 %v11305_v37, %s11968_s24  ;;  %20801 = vst [vmem:[#allocation77_spill] sm:$0xff] %v17783_v45  ;;  %v6216_v37 = vsel %vm3957_vm4, %v6184_v23, %v5776_v47  ;;  %v11370_v6 = vpack.i.bf16 %v17783_v45, %v17786_v56  ;;  %v11365_v47 = vpack.i.bf16 %v17766_v10, %v17729_v26 }
 0x6d6   :  { %v6034_v29 = vpop.permute.xlu1 %6033  ;;  %v6248_v13 = vsel %vm4022_vm5, %v6216_v37, %v5868_v9  ;;  %v20804_v9 = vrot.slane %v20803_v39, 1  ;;  %v17817_v37 = vld [vmem:[%s19538_s6] ss:$0 sm:$0xff] }
 0x6d7   :  { %v6311_v25 = vsel %vm4152_vm8, %v6279_v50, %v6034_v29  ;;  %v5952_v15 = vpop.permute.xlu0 %5951 }
 0x6d8   :  { %10807 = vmatprep.mubr.msk.f32.mxu1 %vm4223_vm9, %v6311_v25  ;;  %11361 = vrot.lane.b32.xlu1 %v11360_v21, %s11978_s8  ;;  %v6280_v42 = vsel %vm4087_vm6, %v6248_v13, %v5952_v15  ;;  %v1467_v61 = vsel %vm1380_vm7, %v20804_v9, 0.0  ;;  %v17812_v25 = vsel %vm5248_vm13, %v7418_v49, %v7419_v55  ;;  %v20805_v13 = vld [vmem:[#allocation238_spill] sm:$0xff] }
 0x6d9   :  { %11356 = vrot.lane.b32.xlu0 %v11340_v31, %s11975_s29  ;;  %v1490_v50 = vadd.f32 %v20803_v39, %v1467_v61  ;;  %v11400_v39 = vpack.i.bf16 %v17812_v25, %v17762_v2 }
 0x6da   :  { %v6036_v63 = vpop.permute.xlu1 %6035 }
 0x6db   :  { %v6312_v30 = vsel %vm4152_vm8, %v6280_v42, %v6036_v63  ;;  %v5378_v46 = vpop.permute.xlu0 %5377  ;;  %v1522_v15 = vmul.f32 0.25, %v1490_v50  ;;  %v1521_v42 = vmul.f32 0.25, %v20805_v13 }
 0x6dc   :  { %10808 = vmatmul.mubr.msk.f32.gmra.mrb[70].mxu1 %vm4223_vm9, %v6312_v30  ;;  %11371 = vrot.lane.b32.xlu1 %v11370_v6, %s11977_s2  ;;  %v6093_v45 = vsel %vm738_vm2, %v17176_v40, %v5378_v46 }
 0x6dd   :  { %11366 = vrot.lane.b32.xlu0 %v11365_v47, %s11971_s30 }
 0x6de   :  { %v5476_v35 = vpop.permute.xlu1 %5475 }
 0x6df   :  { %v5380_v5 = vpop.permute.xlu0 %5379 }
 0x6e0   :  { %11381 = vrot.lane.b32.xlu1 %v11340_v31, %s11968_s24  ;;  %v17823_v31 = vsel %vm5248_vm13, %v7419_v55, 0.0 }
 0x6e1   :  { %11376 = vrot.lane.b32.xlu0 %v17805_v12, %s11979_s22  ;;  %v11395_v49 = vpack.i.bf16 %v17823_v31, %v17812_v25 }
 0x6e2   :  { %v5584_v29 = vpop.permute.xlu1 %5583 }
 0x6e3   :  { %v5478_v21 = vpop.permute.xlu0 %5477  ;;  %v10788_v23 = vpop.f32.mrb[56].mxu1 }
 0x6e4   :  { %v6551_v4 = vadd.f32 %v17817_v37, %v10788_v23  ;;  %v6545_v48 = vpop.f32.mrb[57].mxu1  ;;  %11391 = vrot.lane.b32.xlu1 %v17805_v12, %s11975_s29 }
 0x6e5   :  { %v6546_v63 = vadd.f32 %v17817_v37, %v6545_v48  ;;  %11386 = vrot.lane.b32.xlu0 %v11370_v6, %s11973_s27 }
 0x6e6   :  { %v6657_v30 = vadd.f32 %v6551_v4, %v1522_v15  ;;  %v5680_v47 = vpop.permute.xlu1 %5679 }
 0x6e7   :  { %v6656_v9 = vadd.f32 %v6546_v63, %v1521_v42  ;;  %v5586_v61 = vpop.permute.xlu0 %5585 }
 0x6e8   :  { %v17832_v50 = vmul.f32 0.70710677, %v6657_v30  ;;  %11401 = vrot.lane.b32.xlu1 %v11400_v39, %s11971_s30 }
 0x6e9   :  { %v17835_v55 = vmul.f32 0.70710677, %v6656_v9  ;;  %11396 = vrot.lane.b32.xlu0 %v11395_v49, %s11978_s8 }
 0x6ea   :  { %vm7194_vm11 = vcmp.gt.f32.partialorder %v17832_v50, 0.0  ;;  %v7226_v6 = vmul.f32 0.2, %v17832_v50  ;;  %v5778_v23 = vpop.permute.xlu1 %5777 }
 0x6eb   :  { %vm7193_vm12 = vcmp.gt.f32.partialorder %v17835_v55, 0.0  ;;  %v7225_v15 = vmul.f32 0.2, %v17835_v55  ;;  %v5682_v4 = vpop.permute.xlu0 %5681 }
 0x6ec   :  { %v7258_v48 = vsel %vm7194_vm11, %v17832_v50, %v7226_v6 }
 0x6ed   :  { %v7257_v13 = vsel %vm7193_vm12, %v17835_v55, %v7225_v15  ;;  %v7328_v42 = vrot.slane %v7258_v48, 6  ;;  %v7422_v20 = vrot.slane %v7258_v48, 2  ;;  %v6121_v15 = vsel %vm3765_vm10, %v6093_v45, %v5476_v35 }
 0x6ee   :  { %v5870_v63 = vpop.permute.xlu1 %5869  ;;  %v17844_v30 = vpack.i.bf16 %v7258_v48, %v7257_v13  ;;  %v7327_v39 = vrot.slane %v7257_v13, 6  ;;  %v7421_v49 = vrot.slane %v7257_v13, 2  ;;  %v6153_v13 = vsel %vm3827_vm3, %v6121_v15, %v5584_v29  ;;  %v20809_v29 = vld [vmem:[#allocation247_spill] sm:$0xff] }
 0x6ef   :  { %v5780_v9 = vpop.permute.xlu0 %5779  ;;  %v6185_v53 = vsel %vm3892_vm1, %v6153_v13, %v5680_v47  ;;  %v6094_v45 = vsel %vm738_vm2, %v16911_v38, %v5380_v5 }
 0x6f0   :  { %11411 = vrot.lane.b32.xlu1 %v17844_v30, %s11979_s22  ;;  %v17851_v56 = vsel %vm5153_vm14, %v7327_v39, %v7328_v42  ;;  %v17854_v6 = vsel %vm5153_vm14, 0.0, %v7327_v39  ;;  %v17863_v46 = vsel %vm5248_vm13, %v7421_v49, %v7422_v20  ;;  %v17866_v42 = vsel %vm5248_vm13, %v7422_v20, 0.0 }
 0x6f1   :  { %20806 = vst [vmem:[#allocation67_spill] sm:$0xff] %v17851_v56  ;;  %20807 = vst [vmem:[#allocation17_spill] sm:$0xff] %v17854_v6  ;;  %v11405_v59 = vpack.i.bf16 %v17851_v56, %v17854_v6  ;;  %v6217_v35 = vsel %vm3957_vm4, %v6185_v53, %v5778_v23  ;;  %v20810_v39 = vrot.slane %v20809_v29, 1  ;;  %v6122_v15 = vsel %vm3765_vm10, %v6094_v45, %v5478_v21 }
 0x6f2   :  { %v5954_v48 = vpop.permute.xlu1 %5953  ;;  %20808 = vst [vmem:[#allocation76_spill] sm:$0xff] %v17863_v46  ;;  %v6249_v13 = vsel %vm4022_vm5, %v6217_v35, %v5870_v63  ;;  %v6154_v49 = vsel %vm3827_vm3, %v6122_v15, %v5586_v61  ;;  %v11430_v38 = vpack.i.bf16 %v17866_v42, %v17863_v46 }
 0x6f3   :  { %v5872_v40 = vpop.permute.xlu0 %5871  ;;  %11406 = vrot.lane.b32.xlu0 %v11405_v59, %s11977_s2  ;;  %v1468_v47 = vsel %vm1380_vm7, %v20810_v39, 0.0  ;;  %v6281_v20 = vsel %vm4087_vm6, %v6249_v13, %v5954_v48  ;;  %v6186_v53 = vsel %vm3892_vm1, %v6154_v49, %v5682_v4 }
 0x6f4   :  { %11421 = vrot.lane.b32.xlu1 %v11405_v59, %s11973_s27  ;;  %v1492_v21 = vadd.f32 %v20809_v29, %v1468_v47  ;;  %v6218_v23 = vsel %vm3957_vm4, %v6186_v53, %v5780_v9  ;;  %v20811_v29 = vld [vmem:[#allocation253_spill] sm:$0xff]  ;;  %v11435_v47 = vpack.i.bf16 %v17863_v46, %v17823_v31 }
 0x6f5   :  { %v6250_v61 = vsel %vm4022_vm5, %v6218_v23, %v5872_v40  ;;  %v1523_v39 = vmul.f32 0.25, %v20811_v29 }
 0x6f6   :  { %v6038_v56 = vpop.permute.xlu1 %6037 }
 0x6f7   :  { %v6313_v59 = vsel %vm4152_vm8, %v6281_v20, %v6038_v56  ;;  %v5956_v5 = vpop.permute.xlu0 %5955  ;;  %11416 = vrot.lane.b32.xlu0 %v17805_v12, %s11968_s24  ;;  %v1524_v12 = vmul.f32 0.25, %v1492_v21 }
 0x6f8   :  { %10810 = vmatprep.mubr.msk.f32.mxu1 %vm4223_vm9, %v6313_v59  ;;  %11431 = vrot.lane.b32.xlu1 %v11430_v38, %s11978_s8  ;;  %v6282_v63 = vsel %vm4087_vm6, %v6250_v61, %v5956_v5 }
 0x6fa   :  { %v6040_v48 = vpop.permute.xlu1 %6039 }
 0x6fb   :  { %v6314_v4 = vsel %vm4152_vm8, %v6282_v63, %v6040_v48  ;;  %v5382_v56 = vpop.permute.xlu0 %5381  ;;  %v10791_v45 = vpop.f32.mrb[58].mxu1  ;;  %11426 = vrot.lane.b32.xlu0 %v17844_v30, %s11975_s29 }
 0x6fc   :  { %v6561_v35 = vadd.f32 %v17817_v37, %v10791_v45  ;;  %v6555_v9 = vpop.f32.mrb[59].mxu1  ;;  %10811 = vmatmul.mubr.msk.f32.gmra.mrb[72].mxu1 %vm4223_vm9, %v6314_v4 }
 0x6fd   :  { %v6556_v40 = vadd.f32 %v17817_v37, %v6555_v9 }
 0x6fe   :  { %v6659_v15 = vadd.f32 %v6561_v35, %v1524_v12  ;;  %v5480_v13 = vpop.permute.xlu1 %5479  ;;  %v6095_v35 = vsel %vm738_vm2, %v17302_v57, %v5382_v56 }
 0x6ff   :  { %v6658_v49 = vadd.f32 %v6556_v40, %v1523_v39  ;;  %v5384_v20 = vpop.permute.xlu0 %5383  ;;  %11436 = vrot.lane.b32.xlu0 %v11435_v47, %s11971_s30  ;;  %v6123_v40 = vsel %vm3765_vm10, %v6095_v35, %v5480_v13 }
 0x700   :  { %v17901_v38 = vmul.f32 0.70710677, %v6659_v15 }
 0x701   :  { %v17903_v53 = vmul.f32 0.70710677, %v6658_v49 }
 0x702   :  { %vm7196_vm15 = vcmp.gt.f32.partialorder %v17901_v38, 0.0  ;;  %v7228_v59 = vmul.f32 0.2, %v17901_v38  ;;  %v5588_v5 = vpop.permute.xlu1 %5587 }
 0x703   :  { %vm7195_vm0 = vcmp.gt.f32.partialorder %v17903_v53, 0.0  ;;  %v7227_v21 = vmul.f32 0.2, %v17903_v53  ;;  %v5482_v23 = vpop.permute.xlu0 %5481  ;;  %v6155_v49 = vsel %vm3827_vm3, %v6123_v40, %v5588_v5 }
 0x704   :  { %v7260_v61 = vsel %vm7196_vm15, %v17901_v38, %v7228_v59 }
 0x705   :  { %v7259_v63 = vsel %vm7195_vm0, %v17903_v53, %v7227_v21  ;;  %v7331_v48 = vrot.slane %v7260_v61, 6  ;;  %v7425_v39 = vrot.slane %v7260_v61, 2 }
 0x706   :  { %v5684_v4 = vpop.permute.xlu1 %5683  ;;  %v11445_v45 = vpack.i.bf16 %v7260_v61, %v7259_v63  ;;  %v7330_v12 = vrot.slane %v7259_v63, 6  ;;  %v7424_v29 = vrot.slane %v7259_v63, 2  ;;  %v6096_v61 = vsel %vm738_vm2, %v17001_v60, %v5384_v20 }
 0x707   :  { %v5590_v9 = vpop.permute.xlu0 %5589  ;;  %v6187_v21 = vsel %vm3892_vm1, %v6155_v49, %v5684_v4  ;;  %v17925_v13 = vsel %vm5248_vm13, %v7425_v39, 0.0  ;;  %v6124_v63 = vsel %vm3765_vm10, %v6096_v61, %v5482_v23 }
 0x708   :  { %11446 = vrot.lane.b32.xlu0 %v11445_v45, %s11979_s22  ;;  %v7332_v47 = vsel %vm5153_vm14, %v7330_v12, %v7331_v48  ;;  %v7394_v15 = vsel %vm5153_vm14, 0.0, %v7330_v12  ;;  %v17922_v56 = vsel %vm5248_vm13, %v7424_v29, %v7425_v39  ;;  %v6156_v48 = vsel %vm3827_vm3, %v6124_v63, %v5590_v9  ;;  %v20812_v12 = vld [vmem:[#allocation61_spill] sm:$0xff] }
 0x709   :  { %v11440_v59 = vpack.i.bf16 %v7332_v47, %v7394_v15  ;;  %v11465_v60 = vpack.i.bf16 %v17925_v13, %v17922_v56  ;;  %v20813_v15 = vld [vmem:[#allocation60_spill] sm:$0xff]  ;;  %vm8270_vm3 = vcmask 654336  }
 0x70a   :  { %v5782_v6 = vpop.permute.xlu1 %5781  ;;  %v8148_v49 = vsel %vm3765_vm10, 0.0, %v20813_v15 }
 0x70b   :  { %v6219_v46 = vsel %vm3957_vm4, %v6187_v21, %v5782_v6  ;;  %v5686_v57 = vpop.permute.xlu0 %5685  ;;  %11441 = vrot.lane.b32.xlu1 %v11440_v59, %s11977_s2 }
 0x70c   :  { %v6251_v5 = vsel %vm4022_vm5, %v6219_v46, %v15478_v14  ;;  %11456 = vrot.lane.b32.xlu0 %v11440_v59, %s11973_s27  ;;  %v6188_v20 = vsel %vm3892_vm1, %v6156_v48, %v5686_v57 }
 0x70d   :  { %v6283_v6 = vsel %vm4087_vm6, %v6251_v5, %v15492_v24  ;;  %v20814_v5 = vld [vmem:[#allocation261_spill] sm:$0xff] }
 0x70e   :  { %v17936_v4 = vpop.permute.xlu1 %11211  ;;  %v6315_v35 = vsel %vm4152_vm8, %v6283_v6, %v20812_v12  ;;  %v20815_v63 = vrot.slane %v20814_v5, 1 }
 0x70f   :  { %v5784_v46 = vpop.permute.xlu0 %5783  ;;  %11451 = vrot.lane.b32.xlu1 %v17844_v30, %s11968_s24  ;;  %10813 = vmatprep.mubr.msk.f32.mxu1 %vm4223_vm9, %v6315_v35  ;;  %v11213_v29 = vunpack.i.l.bf16 %v17936_v4 }
 0x710   :  { %v6220_v23 = vsel %vm3957_vm4, %v6188_v20, %v5784_v46  ;;  %11466 = vrot.lane.b32.xlu0 %v11465_v60, %s11978_s8  ;;  %v1469_v6 = vsel %vm1380_vm7, %v20815_v63, 0.0  ;;  %vm8303_vm4 = vcmask 785408  }
 0x711   :  { %v6252_v9 = vsel %vm4022_vm5, %v6220_v23, %v15478_v14  ;;  %v17960_v14 = vsel %vm3892_vm1, %v8148_v49, %v11213_v29 }
 0x712   :  { %v11222_v39 = vpop.permute.xlu1 %11221  ;;  %v6284_v40 = vsel %vm4087_vm6, %v6252_v9, %v15492_v24  ;;  %v1494_v9 = vadd.f32 %v20814_v5, %v1469_v6  ;;  %vm8336_vm6 = vcmask 916480   ;;  %v11214_v5 = vunpack.i.h.bf16 %v17936_v4 }
 0x713   :  { %11461 = vrot.lane.b32.xlu1 %v11445_v45, %s11975_s29  ;;  %v11217_v47 = vpop.permute.xlu0 %11216  ;;  %v6316_v30 = vsel %vm4152_vm8, %v6284_v40, %v20812_v12  ;;  %v11223_v21 = vunpack.i.l.bf16 %v11222_v39  ;;  %v11224_v12 = vunpack.i.h.bf16 %v11222_v39 }
 0x714   :  { %v11218_v59 = vunpack.i.l.bf16 %v11217_v47  ;;  %10814 = vmatmul.mubr.msk.f32.gmra.mrb[74].mxu1 %vm4223_vm9, %v6316_v30  ;;  %v11219_v24 = vunpack.i.h.bf16 %v11217_v47 }
 0x715   :  { %10820 = vmatprep.mubr.msk.f32.mxu1 %vm3765_vm10, %v17424_v36 }
 0x716   :  { %v8206_v45 = vsel %vm4022_vm5, %v17960_v14, %v11218_v59  ;;  %v11232_v57 = vpop.permute.xlu1 %11231  ;;  %v8207_v36 = vsel %vm4022_vm5, %v17960_v14, %v11219_v24 }
 0x717   :  { %v11227_v61 = vpop.permute.xlu0 %11226  ;;  %v11233_v35 = vunpack.i.l.bf16 %v11232_v57  ;;  %v8238_v60 = vsel %vm4152_vm8, %v8206_v45, %v11223_v21  ;;  %v11234_v39 = vunpack.i.h.bf16 %v11232_v57  ;;  %v8239_v30 = vsel %vm4152_vm8, %v8207_v36, %v11224_v12  ;;  %v20816_v12 = vld [vmem:[#allocation266_spill] sm:$0xff] }
 0x718   :  { %v11228_v48 = vunpack.i.l.bf16 %v11227_v61  ;;  %10821 = vmatmul.mubr.msk.f32.vlgmr.msra.gmra.mrb[76].mxu1 %vm3765_vm10, %v17414_v41  ;;  %v11229_v20 = vunpack.i.h.bf16 %v11227_v61  ;;  %v1526_v21 = vmul.f32 0.25, %v1494_v9 }
 0x719   :  { %10823 = vmatprep.mubr.msk.f32.mxu1 %vm3765_vm10, %v17220_v58 }
 0x71a   :  { %v8271_v46 = vsel %vm8270_vm3, %v8238_v60, %v11228_v48  ;;  %v11242_v23 = vpop.permute.xlu1 %11241  ;;  %v8272_v59 = vsel %vm8270_vm3, %v8239_v30, %v11229_v20 }
 0x71b   :  { %v11243_v29 = vunpack.i.l.bf16 %v11242_v23  ;;  %v11237_v40 = vpop.permute.xlu0 %11236  ;;  %v8304_v47 = vsel %vm8303_vm4, %v8271_v46, %v11233_v35  ;;  %v11244_v57 = vunpack.i.h.bf16 %v11242_v23  ;;  %v1525_v35 = vmul.f32 0.25, %v20816_v12 }
 0x71c   :  { %v11238_v41 = vunpack.i.l.bf16 %v11237_v40  ;;  %v11239_v58 = vunpack.i.h.bf16 %v11237_v40  ;;  %v8305_v4 = vsel %vm8303_vm4, %v8272_v59, %v11234_v39  ;;  %v20817_v40 = vld [vmem:[#allocation275_spill] sm:$0xff] }
 0x71d   :  { %v8149_v24 = vsel %vm3765_vm10, %v17537_v54, %v11243_v29 }
 0x71e   :  { %v11252_v15 = vpop.permute.xlu1 %11251  ;;  %v8337_v49 = vsel %vm8336_vm6, %v8304_v47, %v11238_v41  ;;  %v8178_v36 = vsel %vm3892_vm1, %v8149_v24, %v11214_v5  ;;  %v20818_v41 = vrot.slane %v20817_v40, 1 }
 0x71f   :  { %v11247_v45 = vpop.permute.xlu0 %11246  ;;  %8498 = vmatmul.mubr.f32.vlgmr.msra.gmra.mrb[84].mxu0 %v8337_v49  ;;  %v10794_v61 = vpop.f32.mrb[60].mxu1  ;;  %v11253_v60 = vunpack.i.l.bf16 %v11252_v15 }
 0x720   :  { %v11248_v63 = vunpack.i.l.bf16 %v11247_v45  ;;  %v6571_v6 = vadd.f32 %v17817_v37, %v10794_v61  ;;  %10824 = vmatmul.mubr.msk.f32.gmra.mrb[76].mxu1 %vm3765_vm10, %v17214_v0  ;;  %10108 = vmatprep.mubr.msk.f32.mxu0 %vm3765_vm10, %v17606_v51  ;;  %v6565_v48 = vpop.f32.mrb[61].mxu1  ;;  %v8338_v0 = vsel %vm8336_vm6, %v8305_v4, %v11239_v58  ;;  %v1470_v47 = vsel %vm1380_vm7, %v20818_v41, 0.0 }
 0x721   :  { %v6566_v54 = vadd.f32 %v17817_v37, %v6565_v48  ;;  %10826 = vmatprep.mubr.msk.f32.mxu1 %vm3765_vm10, %v17568_v34  ;;  %v8150_v34 = vsel %vm3765_vm10, %v17534_v16, %v11244_v57  ;;  %v11249_v39 = vunpack.i.h.bf16 %v11247_v45  ;;  %v11254_v58 = vunpack.i.h.bf16 %v11252_v15 }
 0x722   :  { %v6661_v20 = vadd.f32 %v6571_v6, %v1526_v21  ;;  %v11262_v46 = vpop.permute.xlu1 %11261  ;;  %v8208_v23 = vsel %vm4022_vm5, %v8178_v36, %v11248_v63 }
 0x723   :  { %v6660_v51 = vadd.f32 %v6566_v54, %v1525_v35  ;;  %v11263_v9 = vunpack.i.l.bf16 %v11262_v46  ;;  %v11257_v29 = vpop.permute.xlu0 %11256  ;;  %8503 = vmatmul.mubr.f32.gmra.mrb[86].mxu0 %v8338_v0 }
 0x724   :  { %v18003_v30 = vmul.f32 0.70710677, %v6661_v20  ;;  %10827 = vmatmul.mubr.msk.f32.gmra.mrb[78].mxu1 %vm3765_vm10, %v17565_v28  ;;  %10109 = vmatprep.mubr.msk.f32.mxu0 %vm3765_vm10, %v17662_v52  ;;  %v11258_v21 = vunpack.i.l.bf16 %v11257_v29  ;;  %v8240_v28 = vsel %vm4152_vm8, %v8208_v23, %v11253_v60  ;;  %v11259_v15 = vunpack.i.h.bf16 %v11257_v29 }
 0x725   :  { %v18009_v49 = vmul.f32 0.70710677, %v6660_v51  ;;  %v8179_v59 = vsel %vm3892_vm1, %v8150_v34, %v11263_v9  ;;  %10829 = vmatprep.mubr.msk.f32.mxu1 %vm3765_vm10, %v17612_v18  ;;  %v1496_v23 = vadd.f32 %v20817_v40, %v1470_v47 }
 0x726   :  { %vm7198_vm9 = vcmp.gt.f32.partialorder %v18003_v30, 0.0  ;;  %v7230_v16 = vmul.f32 0.2, %v18003_v30  ;;  %v8209_v24 = vsel %vm4022_vm5, %v8179_v59, %v11249_v39  ;;  %v11272_v45 = vpop.permute.xlu1 %11271  ;;  %v8273_v12 = vsel %vm8270_vm3, %v8240_v28, %v11258_v21 }
 0x727   :  { %vm7197_vm11 = vcmp.gt.f32.partialorder %v18009_v49, 0.0  ;;  %v7229_v52 = vmul.f32 0.2, %v18009_v49  ;;  %v11273_v61 = vunpack.i.l.bf16 %v11272_v45  ;;  %v11267_v5 = vpop.permute.xlu0 %11266  ;;  %v8241_v6 = vsel %vm4152_vm8, %v8209_v24, %v11254_v58 }
 0x728   :  { %v7262_v57 = vsel %vm7198_vm9, %v18003_v30, %v7230_v16  ;;  %v11269_v63 = vunpack.i.h.bf16 %v11267_v5  ;;  %v11268_v18 = vunpack.i.l.bf16 %v11267_v5  ;;  %v8274_v54 = vsel %vm8270_vm3, %v8241_v6, %v11259_v15 }
 0x729   :  { %v18023_v48 = vsel %vm7197_vm11, %v18009_v49, %v7229_v52  ;;  %v7428_v35 = vrot.slane %v7262_v57, 2  ;;  %v7334_v0 = vrot.slane %v7262_v57, 6  ;;  %v11274_v51 = vunpack.i.h.bf16 %v11272_v45 }
 0x72a   :  { %v18027_v4 = vpop.permute.xlu1 %11281  ;;  %v8306_v60 = vsel %vm8303_vm4, %v8273_v12, %v11268_v18  ;;  %v7427_v36 = vrot.slane %v18023_v48, 2  ;;  %v18032_v20 = vpack.i.bf16 %v7262_v57, %v18023_v48  ;;  %v8307_v39 = vsel %vm8303_vm4, %v8274_v54, %v11269_v63 }
 0x72b   :  { %v11277_v9 = vpop.permute.xlu0 %11276  ;;  %v8339_v29 = vsel %vm8336_vm6, %v8306_v60, %v11273_v61  ;;  %v7333_v58 = vrot.slane %v18023_v48, 6  ;;  %v11264_v59 = vunpack.i.h.bf16 %v11262_v46  ;;  %v18057_v46 = vsel %vm5248_vm13, %v7428_v35, 0.0  ;;  %v20819_v61 = vld [vmem:[#allocation280_spill] sm:$0xff] }
 0x72c   :  { %v11278_v41 = vunpack.i.l.bf16 %v11277_v9  ;;  %10830 = vmatmul.mubr.msk.f32.gmra.mrb[78].mxu1 %vm3765_vm10, %v17609_v44  ;;  %8508 = vmatmul.mubr.f32.gmra.mrb[84].mxu0 %v8339_v29  ;;  %v18039_v34 = vsel %vm5248_vm13, %v7427_v36, %v7428_v35  ;;  %v1528_v45 = vmul.f32 0.25, %v1496_v23  ;;  %v11279_v28 = vunpack.i.h.bf16 %v11277_v9 }
 0x72d   :  { %10832 = vmatprep.mubr.msk.f32.mxu1 %vm3765_vm10, %v17695_v17  ;;  %10110 = vmatprep.mubr.msk.f32.mxu0 %vm3765_vm10, %v17657_v7  ;;  %v11470_v40 = vpack.i.bf16 %v18039_v34, %v17866_v42  ;;  %v18054_v21 = vsel %vm5153_vm14, %v7333_v58, %v7334_v0  ;;  %v8340_v7 = vsel %vm8336_vm6, %v8307_v39, %v11274_v51  ;;  %v1527_v5 = vmul.f32 0.25, %v20819_v61 }
 0x72e   :  { %v8151_v44 = vsel %vm3765_vm10, %v17561_v8, %v11278_v41  ;;  %v11292_v47 = vpop.permute.xlu1 %11291  ;;  %v11283_v8 = vunpack.i.l.bf16 %v18027_v4  ;;  %v11495_v18 = vpack.i.bf16 %v18057_v46, %v18039_v34  ;;  %v11284_v35 = vunpack.i.h.bf16 %v18027_v4 }
 0x72f   :  { %v8180_v17 = vsel %vm3892_vm1, %v8151_v44, %v11264_v59  ;;  %v11287_v16 = vpop.permute.xlu0 %11286  ;;  %v10797_v24 = vpop.f32.mrb[62].mxu1  ;;  %11471 = vrot.lane.b32.xlu1 %v11470_v40, %s11971_s30  ;;  %v8152_v36 = vsel %vm3765_vm10, %v17263_v62, %v11279_v28  ;;  %v11293_v0 = vunpack.i.l.bf16 %v11292_v47  ;;  %v11294_v23 = vunpack.i.h.bf16 %v11292_v47 }
 0x730   :  { %v6581_v52 = vadd.f32 %v17817_v37, %v10797_v24  ;;  %10833 = vmatmul.mubr.msk.f32.gmra.mrb[80].mxu1 %vm3765_vm10, %v17692_v19  ;;  %8513 = vmatmul.mubr.f32.gmra.mrb[86].mxu0 %v8340_v7  ;;  %v6575_v15 = vpop.f32.mrb[63].mxu1  ;;  %v11288_v57 = vunpack.i.l.bf16 %v11287_v16  ;;  %v8210_v6 = vsel %vm4022_vm5, %v8180_v17, %v11283_v8  ;;  %v11289_v41 = vunpack.i.h.bf16 %v11287_v16 }
 0x731   :  { %v6576_v63 = vadd.f32 %v17817_v37, %v6575_v15  ;;  %10835 = vmatprep.mubr.msk.f32.mxu1 %vm3765_vm10, %v17731_v3  ;;  %10111 = vmatprep.mubr.msk.f32.mxu0 %vm3765_vm10, %v17723_v11 }
 0x732   :  { %v6663_v12 = vadd.f32 %v6581_v52, %v1528_v45  ;;  %v11302_v19 = vpop.permute.xlu1 %11301  ;;  %v8242_v51 = vsel %vm4152_vm8, %v8210_v6, %v11288_v57 }
 0x733   :  { %v6662_v54 = vadd.f32 %v6576_v63, %v1527_v5  ;;  %v18076_v60 = vpop.permute.xlu0 %11296  ;;  %v11303_v29 = vunpack.i.l.bf16 %v11302_v19  ;;  %v11304_v40 = vunpack.i.h.bf16 %v11302_v19  ;;  %v8275_v7 = vsel %vm8270_vm3, %v8242_v51, %v11293_v0 }
 0x734   :  { %v18080_v3 = vmul.f32 0.70710677, %v6663_v12  ;;  %v11298_v11 = vunpack.i.l.bf16 %v18076_v60 }
 0x735   :  { %v18084_v9 = vmul.f32 0.70710677, %v6662_v54  ;;  %v8308_v28 = vsel %vm8303_vm4, %v8275_v7, %v11303_v29 }
 0x736   :  { %vm7200_vm12 = vcmp.gt.f32.partialorder %v18080_v3, 0.0  ;;  %v7232_v4 = vmul.f32 0.2, %v18080_v3  ;;  %v8181_v39 = vsel %vm3892_vm1, %v8152_v36, %v11298_v11  ;;  %v11312_v59 = vpop.permute.xlu1 %11311 }
 0x737   :  { %vm7199_vm15 = vcmp.gt.f32.partialorder %v18084_v9, 0.0  ;;  %v7231_v62 = vmul.f32 0.2, %v18084_v9  ;;  %v8211_v44 = vsel %vm4022_vm5, %v8181_v39, %v11284_v35  ;;  %v11307_v47 = vpop.permute.xlu0 %11306  ;;  %v11313_v24 = vunpack.i.l.bf16 %v11312_v59 }
 0x738   :  { %v18093_v17 = vsel %vm7200_vm12, %v18080_v3, %v7232_v4  ;;  %v11308_v16 = vunpack.i.l.bf16 %v11307_v47  ;;  %10836 = vmatmul.mubr.msk.f32.gmra.mrb[80].mxu1 %vm3765_vm10, %v17725_v27  ;;  %v11309_v8 = vunpack.i.h.bf16 %v11307_v47  ;;  %v8243_v52 = vsel %vm4152_vm8, %v8211_v44, %v11289_v41 }
 0x739   :  { %v7263_v45 = vsel %vm7199_vm15, %v18084_v9, %v7231_v62  ;;  %10838 = vmatprep.mubr.msk.f32.mxu1 %vm3765_vm10, %v17835_v55  ;;  %v8276_v57 = vsel %vm8270_vm3, %v8243_v52, %v11294_v23  ;;  %v7337_v27 = vrot.slane %v18093_v17, 6  ;;  %v11314_v63 = vunpack.i.h.bf16 %v11312_v59 }
 0x73a   :  { %v11322_v15 = vpop.permute.xlu1 %11321  ;;  %v8341_v61 = vsel %vm8336_vm6, %v8308_v28, %v11308_v16  ;;  %v11480_v5 = vpack.i.bf16 %v7263_v45, %v20792_v43  ;;  %v8309_v12 = vsel %vm8303_vm4, %v8276_v57, %v11304_v40  ;;  %v8153_v55 = vsel %vm3765_vm10, %v17630_v22, %v11313_v24 }
 0x73b   :  { %v11317_v6 = vpop.permute.xlu0 %11316  ;;  %8518 = vmatmul.mubr.f32.gmra.mrb[88].mxu0 %v8341_v61  ;;  %v7336_v35 = vrot.slane %v7263_v45, 6  ;;  %v18118_v54 = vpack.i.bf16 %v18093_v17, %v7263_v45  ;;  %v7430_v36 = vrot.slane %v7263_v45, 2  ;;  %v7431_v0 = vrot.slane %v18093_v17, 2 }
 0x73c   :  { %v11318_v19 = vunpack.i.l.bf16 %v11317_v6  ;;  %10839 = vmatmul.mubr.msk.f32.gmra.mrb[82].mxu1 %vm3765_vm10, %v17832_v50  ;;  %10112 = vmatprep.mubr.msk.f32.mxu0 %vm3765_vm10, %v17729_v26  ;;  %v11299_v22 = vunpack.i.h.bf16 %v18076_v60  ;;  %v8342_v50 = vsel %vm8336_vm6, %v8309_v12, %v11309_v8  ;;  %v18136_v60 = vsel %vm5153_vm14, 0.0, %v7333_v58  ;;  %v20820_v12 = vld [vmem:[#allocation289_spill] sm:$0xff] }
 0x73d   :  { %11481 = vrot.lane.b32.xlu1 %v11480_v5, %s11979_s22  ;;  %10841 = vmatprep.mubr.msk.f32.mxu1 %vm3765_vm10, %v17903_v53  ;;  %v18124_v23 = vsel %vm5153_vm14, 0.0, %v7336_v35  ;;  %v18127_v26 = vsel %vm5153_vm14, %v7336_v35, %v7337_v27  ;;  %v8154_v53 = vsel %vm3765_vm10, %v17621_v33, %v11314_v63  ;;  %v11323_v4 = vunpack.i.l.bf16 %v11322_v15 }
 0x73e   :  { %v11332_v11 = vpop.permute.xlu1 %11331  ;;  %v11475_v41 = vpack.i.bf16 %v18124_v23, %v20792_v43  ;;  %v11319_v39 = vunpack.i.h.bf16 %v11317_v6  ;;  %v8182_v59 = vsel %vm3892_vm1, %v8153_v55, %v11299_v22  ;;  %v18144_v33 = vsel %vm5248_vm13, %v7430_v36, %v7431_v0 }
 0x73f   :  { %v11333_v51 = vunpack.i.l.bf16 %v11332_v11  ;;  %v11327_v29 = vpop.permute.xlu0 %11326  ;;  %8523 = vmatmul.mubr.f32.gmra.mrb[90].mxu0 %v8342_v50  ;;  %v11324_v62 = vunpack.i.h.bf16 %v11322_v15  ;;  %v8212_v40 = vsel %vm4022_vm5, %v8182_v59, %v11318_v19  ;;  %v11485_v7 = vpack.i.bf16 %v18054_v21, %v18136_v60 }
 0x740   :  { %10113 = vmatprep.mubr.msk.f32.mxu0 %vm3765_vm10, %v17766_v10  ;;  %v11328_v44 = vunpack.i.l.bf16 %v11327_v29  ;;  %11476 = vrot.lane.b32.xlu0 %v11475_v41, %s11977_s2  ;;  %v11329_v10 = vunpack.i.h.bf16 %v11327_v29  ;;  %v8244_v52 = vsel %vm4152_vm8, %v8212_v40, %v11323_v4  ;;  %v11510_v6 = vpack.i.bf16 %v18127_v26, %v18124_v23  ;;  %v20822_v29 = vld [vmem:[#allocation294_spill] sm:$0xff] }
 0x741   :  { %v8183_v48 = vsel %vm3892_vm1, %v8154_v53, %v11333_v51  ;;  %11491 = vrot.lane.b32.xlu1 %v18032_v20, %s11975_s29  ;;  %v20821_v55 = vrot.slane %v20820_v12, 1  ;;  %v11334_v35 = vunpack.i.h.bf16 %v11332_v11  ;;  %v1529_v41 = vmul.f32 0.25, %v20822_v29  ;;  %v20823_v29 = vld [vmem:[#allocation76_spill] sm:$0xff] }
 0x742   :  { %v8213_v58 = vsel %vm4022_vm5, %v8183_v48, %v11319_v39  ;;  %v11342_v47 = vpop.permute.xlu1 %11341  ;;  %v8277_v15 = vsel %vm8270_vm3, %v8244_v52, %v11328_v44  ;;  %v11530_v59 = vpack.i.bf16 %v18144_v33, %v18057_v46 }
 0x743   :  { %v11343_v24 = vunpack.i.l.bf16 %v11342_v47  ;;  %v11337_v16 = vpop.permute.xlu0 %11336  ;;  %v8245_v45 = vsel %vm4152_vm8, %v8213_v58, %v11324_v62  ;;  %v11344_v27 = vunpack.i.h.bf16 %v11342_v47 }
 0x744   :  { %v11339_v8 = vunpack.i.h.bf16 %v11337_v16  ;;  %v11338_v28 = vunpack.i.l.bf16 %v11337_v16  ;;  %10842 = vmatmul.mubr.msk.f32.gmra.mrb[82].mxu1 %vm3765_vm10, %v17901_v38  ;;  %11486 = vrot.lane.b32.xlu0 %v11485_v7, %s11973_s27  ;;  %v8278_v61 = vsel %vm8270_vm3, %v8245_v45, %v11329_v10 }
 0x745   :  { %11501 = vrot.lane.b32.xlu1 %v18032_v20, %s11968_s24  ;;  %10844 = vmatprep.mubr.msk.f32.mxu1 %vm3765_vm10, %v18009_v49  ;;  %v1471_v20 = vsel %vm1380_vm7, %v20821_v55, 0.0 }
 0x746   :  { %v11352_v5 = vpop.permute.xlu1 %11351  ;;  %v8310_v57 = vsel %vm8303_vm4, %v8277_v15, %v11338_v28  ;;  %v8311_v49 = vsel %vm8303_vm4, %v8278_v61, %v11339_v8  ;;  %v1498_v22 = vadd.f32 %v20820_v12, %v1471_v20 }
 0x747   :  { %v11347_v63 = vpop.permute.xlu0 %11346  ;;  %v8343_v38 = vsel %vm8336_vm6, %v8310_v57, %v11343_v24  ;;  %v8344_v34 = vsel %vm8336_vm6, %v8311_v49, %v11344_v27  ;;  %v11354_v62 = vunpack.i.h.bf16 %v11352_v5 }
 0x748   :  { %v11348_v19 = vunpack.i.l.bf16 %v11347_v63  ;;  %10845 = vmatmul.mubr.msk.f32.gmra.mrb[84].mxu1 %vm3765_vm10, %v18003_v30  ;;  %8528 = vmatmul.mubr.f32.gmra.mrb[88].mxu0 %v8343_v38  ;;  %v11349_v53 = vunpack.i.h.bf16 %v11347_v63 }
 0x749   :  { %11496 = vrot.lane.b32.xlu0 %v11495_v18, %s11978_s8  ;;  %11511 = vrot.lane.b32.xlu1 %v11510_v6, %s11973_s27  ;;  %v11353_v18 = vunpack.i.l.bf16 %v11352_v5 }
 0x74a   :  { %v8155_v36 = vsel %vm3765_vm10, %v17684_v32, %v11348_v19  ;;  %10847 = vmatprep.mubr.msk.f32.mxu1 %vm3765_vm10, %v18084_v9  ;;  %10114 = vmatprep.mubr.msk.f32.mxu0 %vm3765_vm10, %v17762_v2  ;;  %v11362_v30 = vpop.permute.xlu1 %11361  ;;  %v1530_v9 = vmul.f32 0.25, %v1498_v22  ;;  %v8156_v58 = vsel %vm3765_vm10, %v17681_v1, %v11349_v53 }
 0x74b   :  { %v8184_v11 = vsel %vm3892_vm1, %v8155_v36, %v11334_v35  ;;  %v11357_v50 = vpop.permute.xlu0 %11356  ;;  %v11363_v40 = vunpack.i.l.bf16 %v11362_v30  ;;  %v11364_v8 = vunpack.i.h.bf16 %v11362_v30 }
 0x74c   :  { %8533 = vmatmul.mubr.f32.gmra.mrb[90].mxu0 %v8344_v34  ;;  %v11358_v51 = vunpack.i.l.bf16 %v11357_v50  ;;  %v8214_v32 = vsel %vm4022_vm5, %v8184_v11, %v11353_v18  ;;  %v11359_v46 = vunpack.i.h.bf16 %v11357_v50 }
 0x74d   :  { %11521 = vrot.lane.b32.xlu1 %v18118_v54, %s11975_s29  ;;  %10115 = vmatprep.mubr.msk.f32.mxu0 %vm3765_vm10, %v17812_v25 }
 0x74e   :  { %v11372_v2 = vpop.permute.xlu1 %11371  ;;  %v8246_v47 = vsel %vm4152_vm8, %v8214_v32, %v11358_v51 }
 0x74f   :  { %v18195_v4 = vpop.permute.xlu0 %11366  ;;  %v10800_v39 = vpop.f32.mrb[64].mxu1  ;;  %v11373_v10 = vunpack.i.l.bf16 %v11372_v2  ;;  %v8279_v1 = vsel %vm8270_vm3, %v8246_v47, %v11363_v40  ;;  %v11374_v57 = vunpack.i.h.bf16 %v11372_v2  ;;  %v20824_v40 = vld [vmem:[#allocation83_spill] sm:$0xff] }
 0x750   :  { %v11368_v48 = vunpack.i.l.bf16 %v18195_v4  ;;  %v6591_v44 = vadd.f32 %v17817_v37, %v10800_v39  ;;  %10848 = vmatmul.mubr.msk.f32.gmra.mrb[84].mxu1 %vm3765_vm10, %v18080_v3  ;;  %v6585_v25 = vpop.f32.mrb[65].mxu1  ;;  %v11369_v47 = vunpack.i.h.bf16 %v18195_v4 }
 0x751   :  { %v6586_v24 = vadd.f32 %v17817_v37, %v6585_v25  ;;  %11531 = vrot.lane.b32.xlu1 %v11530_v59, %s11971_s30  ;;  %v8312_v63 = vsel %vm8303_vm4, %v8279_v1, %v11373_v10 }
 0x752   :  { %v8185_v16 = vsel %vm3892_vm1, %v8156_v58, %v11368_v48  ;;  %v6665_v7 = vadd.f32 %v6591_v44, %v1530_v9  ;;  %v11382_v45 = vpop.permute.xlu1 %11381  ;;  %v20825_v44 = vld [vmem:[#allocation88_spill] sm:$0xff] }
 0x753   :  { %v8215_v28 = vsel %vm4022_vm5, %v8185_v16, %v11354_v62  ;;  %v6664_v3 = vadd.f32 %v6586_v24, %v1529_v41  ;;  %v11377_v52 = vpop.permute.xlu0 %11376  ;;  %v11383_v32 = vunpack.i.l.bf16 %v11382_v45 }
 0x754   :  { %v6697_v15 = vmul.f32 0.70710677, %v6665_v7  ;;  %v11378_v61 = vunpack.i.l.bf16 %v11377_v52  ;;  %v8247_v5 = vsel %vm4152_vm8, %v8215_v28, %v11359_v46  ;;  %v11379_v12 = vunpack.i.h.bf16 %v11377_v52 }
 0x755   :  { %v6696_v27 = vmul.f32 0.70710677, %v6664_v3  ;;  %v8280_v38 = vsel %vm8270_vm3, %v8247_v5, %v11364_v8  ;;  %v8157_v25 = vsel %vm3765_vm10, %v20825_v44, %v11383_v32 }
 0x756   :  { %vm7202_vm0 = vcmp.gt.f32.partialorder %v6697_v15, 0.0  ;;  %v7234_v6 = vmul.f32 0.2, %v6697_v15  ;;  %v11392_v55 = vpop.permute.xlu1 %11391  ;;  %v8345_v20 = vsel %vm8336_vm6, %v8312_v63, %v11378_v61  ;;  %v8313_v35 = vsel %vm8303_vm4, %v8280_v38, %v11374_v57 }
 0x757   :  { %vm7201_vm9 = vcmp.gt.f32.partialorder %v6696_v27, 0.0  ;;  %v7233_v19 = vmul.f32 0.2, %v6696_v27  ;;  %8538 = vmatmul.mubr.f32.gmra.mrb[92].mxu0 %v8345_v20  ;;  %10850 = vmatprep.mubr.msk.f32.mxu1 %vm3765_vm10, %v6696_v27  ;;  %v11387_v11 = vpop.permute.xlu0 %11386  ;;  %v8346_v34 = vsel %vm8336_vm6, %v8313_v35, %v11379_v12  ;;  %v11393_v16 = vunpack.i.l.bf16 %v11392_v55 }
 0x758   :  { %v18216_v49 = vsel %vm7202_vm0, %v6697_v15, %v7234_v6  ;;  %10116 = vmatprep.mubr.msk.f32.mxu0 %vm3765_vm10, %v17823_v31  ;;  %10851 = vmatmul.mubr.msk.f32.gmra.mrb[86].mxu1 %vm3765_vm10, %v6697_v15  ;;  %v11384_v31 = vunpack.i.h.bf16 %v11382_v45  ;;  %v11388_v58 = vunpack.i.l.bf16 %v11387_v11  ;;  %v11389_v46 = vunpack.i.h.bf16 %v11387_v11  ;;  %v20826_v6 = vld [vmem:[#allocation303_spill] sm:$0xff] }
 0x759   :  { %v7265_v36 = vsel %vm7201_vm9, %v6696_v27, %v7233_v19  ;;  %v7340_v30 = vrot.slane %v18216_v49, 6  ;;  %v7434_v22 = vrot.slane %v18216_v49, 2  ;;  %v8186_v7 = vsel %vm3892_vm1, %v8157_v25, %v11369_v47 }
 0x75a   :  { %v18224_v50 = vpop.permute.xlu1 %11401  ;;  %v7339_v18 = vrot.slane %v7265_v36, 6  ;;  %v11515_v53 = vpack.i.bf16 %v7265_v36, %v18093_v17  ;;  %v18229_v51 = vpack.i.bf16 %v18216_v49, %v7265_v36  ;;  %v7433_v2 = vrot.slane %v7265_v36, 2 }
 0x75b   :  { %8543 = vmatmul.mubr.f32.gmra.mrb[94].mxu0 %v8346_v34  ;;  %v11403_v9 = vunpack.i.l.bf16 %v18224_v50  ;;  %v8158_v48 = vsel %vm3765_vm10, %v20824_v40, %v11384_v31  ;;  %v11397_v24 = vpop.permute.xlu0 %11396  ;;  %v18258_v45 = vsel %vm5248_vm13, %v7431_v0, 0.0  ;;  %v8216_v8 = vsel %vm4022_vm5, %v8186_v7, %v11388_v58  ;;  %v20829_v58 = vld [vmem:[#allocation85_spill] sm:$0xff] }
 0x75c   :  { %10117 = vmatprep.mubr.msk.f32.mxu0 %vm3765_vm10, %v20823_v29  ;;  %v18235_v41 = vsel %vm5153_vm14, 0.0, %v7339_v18  ;;  %v18238_v39 = vsel %vm5153_vm14, %v7339_v18, %v7340_v30  ;;  %v18245_v62 = vsel %vm5248_vm13, %v7433_v2, %v7434_v22  ;;  %v11398_v3 = vunpack.i.l.bf16 %v11397_v24 }
 0x75d   :  { %v11505_v59 = vpack.i.bf16 %v18235_v41, %v18127_v26  ;;  %v8187_v10 = vsel %vm3892_vm1, %v8158_v48, %v11403_v9  ;;  %v11394_v4 = vunpack.i.h.bf16 %v11392_v55  ;;  %v11525_v61 = vpack.i.bf16 %v18258_v45, %v18144_v33  ;;  %v20828_v9 = vld [vmem:[#allocation310_spill] sm:$0xff] }
 0x75e   :  { %v8217_v28 = vsel %vm4022_vm5, %v8187_v10, %v11389_v46  ;;  %v8248_v17 = vsel %vm4152_vm8, %v8216_v8, %v11393_v16  ;;  %v11399_v57 = vunpack.i.h.bf16 %v11397_v24  ;;  %v20827_v12 = vrot.slane %v20826_v6, 1 }
 0x75f   :  { %11506 = vrot.lane.b32.xlu0 %v11505_v59, %s11977_s2  ;;  %v8249_v0 = vsel %vm4152_vm8, %v8217_v28, %v11394_v4  ;;  %v8281_v63 = vsel %vm8270_vm3, %v8248_v17, %v11398_v3  ;;  %v1531_v29 = vmul.f32 0.25, %v20828_v9  ;;  %v20830_v3 = vld [vmem:[#allocation77_spill] sm:$0xff] }
 0x760   :  { %v1472_v55 = vsel %vm1380_vm7, %v20827_v12, 0.0  ;;  %v8282_v35 = vsel %vm8270_vm3, %v8249_v0, %v11399_v57 }
 0x761   :  { %v1500_v11 = vadd.f32 %v20826_v6, %v1472_v55 }
 0x762   :  { %v11412_v52 = vpop.permute.xlu1 %11411 }
 0x763   :  { %11516 = vrot.lane.b32.xlu0 %v11515_v53, %s11979_s22  ;;  %v11413_v27 = vunpack.i.l.bf16 %v11412_v52  ;;  %v11414_v30 = vunpack.i.h.bf16 %v11412_v52  ;;  %v11545_v53 = vpack.i.bf16 %v18238_v39, %v18235_v41 }
 0x765   :  { %v11407_v15 = vpop.permute.xlu0 %11406 }
 0x766   :  { %v11409_v1 = vunpack.i.h.bf16 %v11407_v15  ;;  %v11408_v5 = vunpack.i.l.bf16 %v11407_v15  ;;  %v11422_v44 = vpop.permute.xlu1 %11421 }
 0x767   :  { %11526 = vrot.lane.b32.xlu0 %v11525_v61, %s11978_s8  ;;  %v11423_v28 = vunpack.i.l.bf16 %v11422_v44 }
 0x768   :  { %v8314_v38 = vsel %vm8303_vm4, %v8281_v63, %v11408_v5  ;;  %v8315_v36 = vsel %vm8303_vm4, %v8282_v35, %v11409_v1 }
 0x769   :  { %v11417_v20 = vpop.permute.xlu0 %11416  ;;  %v8347_v19 = vsel %vm8336_vm6, %v8314_v38, %v11413_v27  ;;  %v8348_v18 = vsel %vm8336_vm6, %v8315_v36, %v11414_v30 }
 0x76a   :  { %8548 = vmatmul.mubr.f32.gmra.mrb[92].mxu0 %v8347_v19  ;;  %v11418_v31 = vunpack.i.l.bf16 %v11417_v20  ;;  %v11419_v25 = vunpack.i.h.bf16 %v11417_v20  ;;  %v11432_v5 = vpop.permute.xlu1 %11431 }
 0x76b   :  { %11536 = vrot.lane.b32.xlu0 %v18118_v54, %s11968_s24  ;;  %10118 = vmatprep.mubr.msk.f32.mxu0 %vm3765_vm10, %v17866_v42  ;;  %v1532_v54 = vmul.f32 0.25, %v1500_v11 }
 0x76c   :  { %v8159_v47 = vsel %vm3765_vm10, %v20829_v58, %v11418_v31  ;;  %v8160_v4 = vsel %vm3765_vm10, %v20830_v3, %v11419_v25  ;;  %v18341_v25 = vsel %vm5248_vm13, %v7434_v22, 0.0 }
 0x76d   :  { %v11427_v34 = vpop.permute.xlu0 %11426 }
 0x76e   :  { %8553 = vmatmul.mubr.f32.gmra.mrb[94].mxu0 %v8348_v18  ;;  %v11428_v15 = vunpack.i.l.bf16 %v11427_v34  ;;  %v11429_v55 = vunpack.i.h.bf16 %v11427_v34  ;;  %v11433_v18 = vunpack.i.l.bf16 %v11432_v5 }
 0x76f   :  { %v10803_v32 = vpop.f32.mrb[66].mxu1  ;;  %11546 = vrot.lane.b32.xlu0 %v11545_v53, %s11973_s27  ;;  %10119 = vmatprep.mubr.msk.f32.mxu0 %vm3765_vm10, %v17922_v56  ;;  %v11404_v56 = vunpack.i.h.bf16 %v18224_v50  ;;  %v11424_v50 = vunpack.i.h.bf16 %v11422_v44 }
 0x770   :  { %v6601_v2 = vadd.f32 %v17817_v37, %v10803_v32  ;;  %v6595_v42 = vpop.f32.mrb[67].mxu1 }
 0x771   :  { %v6596_v59 = vadd.f32 %v17817_v37, %v6595_v42  ;;  %v18290_v40 = vpop.permute.xlu0 %11436  ;;  %v11565_v37 = vpack.i.bf16 %v18245_v62, %v18258_v45  ;;  %v8188_v7 = vsel %vm3892_vm1, %v8159_v47, %v11404_v56 }
 0x772   :  { %v6667_v48 = vadd.f32 %v6601_v2, %v1532_v54  ;;  %v11438_v46 = vunpack.i.l.bf16 %v18290_v40  ;;  %v8218_v17 = vsel %vm4022_vm5, %v8188_v7, %v11423_v28  ;;  %v11434_v2 = vunpack.i.h.bf16 %v11432_v5  ;;  %v20833_v28 = vld [vmem:[#allocation8_spill] sm:$0xff] }
 0x773   :  { %v6666_v10 = vadd.f32 %v6596_v59, %v1531_v29  ;;  %11556 = vrot.lane.b32.xlu0 %v18229_v51, %s11975_s29  ;;  %v8250_v19 = vsel %vm4152_vm8, %v8218_v17, %v11428_v15  ;;  %v1533_v3 = vmul.f32 0.25, %v20833_v28 }
 0x774   :  { %v6699_v24 = vmul.f32 0.70710677, %v6667_v48  ;;  %v8189_v1 = vsel %vm3892_vm1, %v8160_v4, %v11438_v46  ;;  %v8283_v9 = vsel %vm8270_vm3, %v8250_v19, %v11433_v18 }
 0x775   :  { %v6698_v16 = vmul.f32 0.70710677, %v6666_v10  ;;  %v8219_v20 = vsel %vm4022_vm5, %v8189_v1, %v11424_v50  ;;  %v11560_v10 = vpack.i.bf16 %v18341_v25, %v18245_v62 }
 0x776   :  { %vm7204_vm11 = vcmp.gt.f32.partialorder %v6699_v24, 0.0  ;;  %v7236_v8 = vmul.f32 0.2, %v6699_v24  ;;  %v8251_v54 = vsel %vm4152_vm8, %v8219_v20, %v11429_v55 }
 0x777   :  { %vm7203_vm12 = vcmp.gt.f32.partialorder %v6698_v16, 0.0  ;;  %v7235_v52 = vmul.f32 0.2, %v6698_v16  ;;  %11566 = vrot.lane.b32.xlu0 %v11565_v37, %s11971_s30  ;;  %10853 = vmatprep.mubr.msk.f32.mxu1 %vm3765_vm10, %v6698_v16  ;;  %v8284_v48 = vsel %vm8270_vm3, %v8251_v54, %v11434_v2  ;;  %v18363_v37 = vld [vmem:[%s19538_s6] ss:$0 sm:$0xff]  ;;  %s11981_s6 = smov [#allocation2]  }
 0x778   :  { %v18305_v61 = vsel %vm7204_vm11, %v6699_v24, %v7236_v8  ;;  %10854 = vmatmul.mubr.msk.f32.gmra.mrb[86].mxu1 %vm3765_vm10, %v6699_v24  ;;  %s9838_s26 = sshll.u32 %s11981_s6, 4  ;;  %s9839_s26 = int_to_ptr.vmem [resolvable:$true] %s9838_s26 }
 0x779   :  { %v7267_v0 = vsel %vm7203_vm12, %v6698_v16, %v7235_v52  ;;  %v7343_v57 = vrot.slane %v18305_v61, 6  ;;  %v7437_v27 = vrot.slane %v18305_v61, 2  ;;  %p11948_p1 = scmp.lt.s32.totalorder %s9839_s26, %s9839_s26 }
 0x77a   :  { %v7342_v63 = vrot.slane %v7267_v0, 6  ;;  %v11550_v38 = vpack.i.bf16 %v7267_v0, %v18216_v49  ;;  %v18314_v6 = vpack.i.bf16 %v18305_v61, %v7267_v0  ;;  %v7436_v12 = vrot.slane %v7267_v0, 2  ;;  %v11447_v35 = vpop.permute.xlu0 %11446  ;;  %v20831_v49 = vld [vmem:[#allocation319_spill] sm:$0xff] }
 0x77b   :  { %v11448_v42 = vunpack.i.l.bf16 %v11447_v35  ;;  %v11449_v58 = vunpack.i.h.bf16 %v11447_v35  ;;  %v20832_v56 = vrot.slane %v20831_v49, 1 }
 0x77c   :  { %v18319_v36 = vsel %vm5153_vm14, 0.0, %v7342_v63  ;;  %v18322_v30 = vsel %vm5153_vm14, %v7342_v63, %v7343_v57  ;;  %v18327_v11 = vsel %vm5248_vm13, %v7436_v12, %v7437_v27 }
 0x77d   :  { %v11442_v53 = vpop.permute.xlu1 %11441  ;;  %v11540_v34 = vpack.i.bf16 %v18319_v36, %v18238_v39  ;;  %v1473_v22 = vsel %vm1380_vm7, %v20832_v56, 0.0  ;;  %v11580_v24 = vpack.i.bf16 %v18322_v30, %v18319_v36  ;;  %v11600_v1 = vpack.i.bf16 %v18327_v11, %v18341_v25 }
 0x77e   :  { %v11444_v31 = vunpack.i.h.bf16 %v11442_v53  ;;  %v11443_v32 = vunpack.i.l.bf16 %v11442_v53 }
 0x77f   :  { %11541 = vrot.lane.b32.xlu1 %v11540_v34, %s11977_s2 }
 0x780   :  { %v8316_v29 = vsel %vm8303_vm4, %v8283_v9, %v11443_v32  ;;  %v8317_v44 = vsel %vm8303_vm4, %v8284_v48, %v11444_v31  ;;  %v18400_v32 = vsel %vm5248_vm13, %v7437_v27, 0.0 }
 0x781   :  { %v8349_v59 = vsel %vm8336_vm6, %v8316_v29, %v11448_v42  ;;  %v8350_v47 = vsel %vm8336_vm6, %v8317_v44, %v11449_v58  ;;  %v11452_v34 = vpop.permute.xlu1 %11451  ;;  %v11595_v42 = vpack.i.bf16 %v18400_v32, %v18327_v11  ;;  %v20834_v29 = vld [vmem:[#allocation323_spill] sm:$0xff]  ;;  %v11457_v44 = vpop.permute.xlu0 %11456  ;;  %v20836_v58 = vld [vmem:[#allocation17_spill] sm:$0xff] }
 0x782   :  { %8558 = vmatmul.mubr.f32.gmra.mrb[96].mxu0 %v8349_v59  ;;  %v11453_v2 = vunpack.i.l.bf16 %v11452_v34  ;;  %v20835_v59 = vrot.slane %v20834_v29, 1 }
 0x783   :  { %10120 = vmatprep.mubr.msk.f32.mxu0 %vm3765_vm10, %v17925_v13  ;;  %11551 = vrot.lane.b32.xlu1 %v11550_v38, %s11979_s22  ;;  %v1502_v13 = vadd.f32 %v20831_v49, %v1473_v22  ;;  %v11458_v22 = vunpack.i.l.bf16 %v11457_v44 }
 0x784   :  { %v1474_v48 = vsel %vm1380_vm7, %v20835_v59, 0.0  ;;  %v8161_v27 = vsel %vm3765_vm10, %v20836_v58, %v11453_v2 }
 0x785   :  { %v1534_v16 = vmul.f32 0.25, %v1502_v13  ;;  %v11462_v54 = vpop.permute.xlu1 %11461  ;;  %v1504_v49 = vadd.f32 %v20834_v29, %v1474_v48  ;;  %v20837_v13 = vld [vmem:[#allocation67_spill] sm:$0xff] }
 0x786   :  { %8563 = vmatmul.mubr.f32.gmra.mrb[98].mxu0 %v8350_v47  ;;  %v11439_v47 = vunpack.i.h.bf16 %v18290_v40  ;;  %v11459_v40 = vunpack.i.h.bf16 %v11457_v44 }
 0x787   :  { %11561 = vrot.lane.b32.xlu1 %v11560_v10, %s11978_s8  ;;  %8567 = vmatprep.mubr.f32.mxu0 %v20792_v43 }
 0x788   :  { %v8190_v56 = vsel %vm3892_vm1, %v8161_v27, %v11439_v47 }
 0x789   :  { %v8220_v28 = vsel %vm4022_vm5, %v8190_v56, %v11458_v22 }
 0x78b   :  { %11571 = vrot.lane.b32.xlu1 %v18229_v51, %s11968_s24 }
 0x78f   :  { %v10806_v46 = vpop.f32.mrb[68].mxu1  ;;  %11581 = vrot.lane.b32.xlu1 %v11580_v24, %s11973_s27 }
 0x790   :  { %v6611_v7 = vadd.f32 %v18363_v37, %v10806_v46  ;;  %v6605_v8 = vpop.f32.mrb[69].mxu1 }
 0x791   :  { %v6606_v51 = vadd.f32 %v18363_v37, %v6605_v8  ;;  %v11467_v8 = vpop.permute.xlu0 %11466 }
 0x792   :  { %v6669_v4 = vadd.f32 %v6611_v7, %v1534_v16  ;;  %v11463_v16 = vunpack.i.l.bf16 %v11462_v54 }
 0x793   :  { %v6668_v52 = vadd.f32 %v6606_v51, %v1533_v3  ;;  %11591 = vrot.lane.b32.xlu1 %v18314_v6, %s11975_s29 }
 0x794   :  { %v6701_v50 = vmul.f32 0.70710677, %v6669_v4 }
 0x795   :  { %v6700_v15 = vmul.f32 0.70710677, %v6668_v52  ;;  %v20838_v52 = vld [vmem:[#allocation324_spill] sm:$0xff] }
 0x796   :  { %vm7206_vm15 = vcmp.gt.f32.partialorder %v6701_v50, 0.0  ;;  %v7238_v5 = vmul.f32 0.2, %v6701_v50 }
 0x797   :  { %vm7205_vm0 = vcmp.gt.f32.partialorder %v6700_v15, 0.0  ;;  %v7237_v17 = vmul.f32 0.2, %v6700_v15  ;;  %11601 = vrot.lane.b32.xlu1 %v11600_v1, %s11971_s30  ;;  %10856 = vmatprep.mubr.msk.f32.mxu1 %vm3765_vm10, %v6700_v15 }
 0x798   :  { %v18374_v0 = vsel %vm7206_vm15, %v6701_v50, %v7238_v5  ;;  %10857 = vmatmul.mubr.msk.f32.gmra.mrb[88].mxu1 %vm3765_vm10, %v6701_v50  ;;  %v1535_v50 = vmul.f32 0.25, %v20838_v52 }
 0x799   :  { %v7269_v57 = vsel %vm7205_vm0, %v6700_v15, %v7237_v17  ;;  %v7346_v63 = vrot.slane %v18374_v0, 6  ;;  %v7440_v38 = vrot.slane %v18374_v0, 2  ;;  %v11464_v17 = vunpack.i.h.bf16 %v11462_v54 }
 0x79a   :  { %v7345_v12 = vrot.slane %v7269_v57, 6  ;;  %v11585_v55 = vpack.i.bf16 %v7269_v57, %v18305_v61  ;;  %v18381_v20 = vpack.i.bf16 %v18374_v0, %v7269_v57  ;;  %v7439_v19 = vrot.slane %v7269_v57, 2 }
 0x79b   :  { %v11454_v61 = vunpack.i.h.bf16 %v11452_v34  ;;  %v8252_v57 = vsel %vm4152_vm8, %v8220_v28, %v11463_v16  ;;  %v11469_v34 = vunpack.i.h.bf16 %v11467_v8 }
 0x79c   :  { %v18384_v35 = vsel %vm5153_vm14, 0.0, %v7345_v12  ;;  %v18387_v18 = vsel %vm5153_vm14, %v7345_v12, %v7346_v63  ;;  %v18392_v53 = vsel %vm5248_vm13, %v7439_v19, %v7440_v38  ;;  %v11468_v12 = vunpack.i.l.bf16 %v11467_v8 }
 0x79d   :  { %v11575_v31 = vpack.i.bf16 %v18384_v35, %v18322_v30  ;;  %v8162_v24 = vsel %vm3765_vm10, %v20837_v13, %v11454_v61  ;;  %v11615_v46 = vpack.i.bf16 %v18387_v18, %v18384_v35  ;;  %v11635_v48 = vpack.i.bf16 %v18392_v53, %v18400_v32 }
 0x79e   :  { %v8285_v54 = vsel %vm8270_vm3, %v8252_v57, %v11468_v12 }
 0x79f   :  { %11576 = vrot.lane.b32.xlu0 %v11575_v31, %s11977_s2 }
 0x7a1   :  { %v18405_v9 = vpop.permute.xlu1 %11471 }
 0x7a2   :  { %v11473_v10 = vunpack.i.l.bf16 %v18405_v9 }
 0x7a3   :  { %11586 = vrot.lane.b32.xlu0 %v11585_v55, %s11979_s22 }
 0x7a4   :  { %v8191_v7 = vsel %vm3892_vm1, %v8162_v24, %v11473_v10 }
 0x7a5   :  { %v8221_v15 = vsel %vm4022_vm5, %v8191_v7, %v11459_v40 }
 0x7a7   :  { %11596 = vrot.lane.b32.xlu0 %v11595_v42, %s11978_s8  ;;  %v8253_v42 = vsel %vm4152_vm8, %v8221_v15, %v11464_v17 }
 0x7ab   :  { %11606 = vrot.lane.b32.xlu0 %v18314_v6, %s11968_s24  ;;  %v1536_v6 = vmul.f32 0.25, %v1504_v49  ;;  %v8286_v49 = vsel %vm8270_vm3, %v8253_v42, %v11469_v34  ;;  %v20839_v42 = vld [vmem:[#allocation325_spill] sm:$0xff] }
 0x7af   :  { %v10809_v3 = vpop.f32.mrb[70].mxu1  ;;  %11616 = vrot.lane.b32.xlu0 %v11615_v46, %s11973_s27  ;;  %v11482_v1 = vpop.permute.xlu1 %11481 }
 0x7b0   :  { %v6621_v51 = vadd.f32 %v18363_v37, %v10809_v3  ;;  %v6615_v4 = vpop.f32.mrb[71].mxu1  ;;  %v18436_v29 = vunpack.i.l.bf16 %v11482_v1  ;;  %v11484_v57 = vunpack.i.h.bf16 %v11482_v1  ;;  %v18495_v1 = vsel %vm5248_vm13, %v7440_v38, 0.0 }
 0x7b1   :  { %v6616_v5 = vadd.f32 %v18363_v37, %v6615_v4 }
 0x7b2   :  { %v6671_v63 = vadd.f32 %v6621_v51, %v1536_v6  ;;  %v11477_v19 = vpop.permute.xlu0 %11476 }
 0x7b3   :  { %v6670_v55 = vadd.f32 %v6616_v5, %v1535_v50  ;;  %11626 = vrot.lane.b32.xlu0 %v18381_v20, %s11975_s29  ;;  %v18433_v2 = vunpack.i.l.bf16 %v11477_v19  ;;  %v18443_v27 = vpop.permute.xlu1 %11491  ;;  %v11479_v4 = vunpack.i.h.bf16 %v11477_v19 }
 0x7b4   :  { %v6703_v31 = vmul.f32 0.70710677, %v6671_v63  ;;  %v11493_v16 = vunpack.i.l.bf16 %v18443_v27 }
 0x7b5   :  { %v6702_v59 = vmul.f32 0.70710677, %v6670_v55  ;;  %v8318_v61 = vsel %vm8303_vm4, %v8285_v54, %v18433_v2  ;;  %v8319_v13 = vsel %vm8303_vm4, %v8286_v49, %v18433_v2 }
 0x7b6   :  { %vm7208_vm9 = vcmp.gt.f32.partialorder %v6703_v31, 0.0  ;;  %v7240_v44 = vmul.f32 0.2, %v6703_v31  ;;  %v11487_v47 = vpop.permute.xlu0 %11486  ;;  %v8351_v10 = vsel %vm8336_vm6, %v8318_v61, %v18436_v29  ;;  %v8352_v28 = vsel %vm8336_vm6, %v8319_v13, %v18436_v29 }
 0x7b7   :  { %vm7207_vm11 = vcmp.gt.f32.partialorder %v6702_v59, 0.0  ;;  %v7239_v58 = vmul.f32 0.2, %v6702_v59  ;;  %11636 = vrot.lane.b32.xlu0 %v11635_v48, %s11971_s30  ;;  %10859 = vmatprep.mubr.msk.f32.mxu1 %vm3765_vm10, %v6702_v59  ;;  %v11488_v22 = vunpack.i.l.bf16 %v11487_v47  ;;  %v18498_v34 = vpop.permute.xlu1 %11501 }
 0x7b8   :  { %v18450_v56 = vsel %vm7208_vm9, %v6703_v31, %v7240_v44  ;;  %8568 = vmatmul.mubr.f32.gmra.mrb[96].mxu0 %v8351_v10  ;;  %10860 = vmatmul.mubr.msk.f32.gmra.mrb[88].mxu1 %vm3765_vm10, %v6703_v31  ;;  %v11630_v31 = vpack.i.bf16 %v18495_v1, %v18392_v53 }
 0x7b9   :  { %v7271_v24 = vsel %vm7207_vm11, %v6702_v59, %v7239_v58  ;;  %8572 = vmatprep.mubr.f32.mxu0 %v20792_v43  ;;  %v7349_v46 = vrot.slane %v18450_v56, 6  ;;  %v8222_v7 = vsel %vm4022_vm5, %v17960_v14, %v11488_v22  ;;  %v7443_v51 = vrot.slane %v18450_v56, 2  ;;  %v20841_v22 = vld [vmem:[#allocation327_spill] sm:$0xff] }
 0x7ba   :  { %v7348_v40 = vrot.slane %v7271_v24, 6  ;;  %v11620_v3 = vpack.i.bf16 %v7271_v24, %v18374_v0  ;;  %v18466_v6 = vpack.i.bf16 %v18450_v56, %v7271_v24  ;;  %v8254_v15 = vsel %vm4152_vm8, %v8222_v7, %v11493_v16 }
 0x7bb   :  { %v18460_v8 = vpop.permute.xlu0 %11496  ;;  %v7442_v17 = vrot.slane %v7271_v24, 2  ;;  %v20840_v59 = vrot.slane %v20839_v42, 1  ;;  %v18507_v48 = vpop.permute.xlu1 %11511  ;;  %v11489_v0 = vunpack.i.h.bf16 %v11487_v47  ;;  %v11503_v58 = vunpack.i.l.bf16 %v18498_v34 }
 0x7bc   :  { %v11498_v52 = vunpack.i.l.bf16 %v18460_v8  ;;  %8573 = vmatmul.mubr.f32.gmra.mrb[98].mxu0 %v8352_v28  ;;  %v18473_v50 = vsel %vm5153_vm14, 0.0, %v7348_v40  ;;  %v18477_v5 = vsel %vm5153_vm14, %v7348_v40, %v7349_v46  ;;  %v1537_v13 = vmul.f32 0.25, %v20841_v22 }
 0x7bd   :  { %10121 = vmatprep.mubr.msk.f32.mxu0 %vm3765_vm10, %v18144_v33  ;;  %v11610_v63 = vpack.i.bf16 %v18473_v50, %v18387_v18  ;;  %v18486_v33 = vsel %vm5248_vm13, %v7442_v17, %v7443_v51  ;;  %v1475_v54 = vsel %vm1380_vm7, %v20840_v59, 0.0  ;;  %v11650_v38 = vpack.i.bf16 %v18477_v5, %v18473_v50 }
 0x7be   :  { %v8287_v12 = vsel %vm8270_vm3, %v8254_v15, %v11498_v52  ;;  %v11499_v47 = vunpack.i.h.bf16 %v18460_v8  ;;  %v11494_v40 = vunpack.i.h.bf16 %v18443_v27  ;;  %v8163_v52 = vsel %vm3765_vm10, %v18136_v60, %v11503_v58 }
 0x7bf   :  { %v8320_v55 = vsel %vm8303_vm4, %v8287_v12, %v11479_v4  ;;  %11611 = vrot.lane.b32.xlu1 %v11610_v63, %s11977_s2  ;;  %v18521_v16 = vpop.permute.xlu1 %11521  ;;  %v11474_v4 = vunpack.i.h.bf16 %v18405_v9  ;;  %v11513_v15 = vunpack.i.l.bf16 %v18507_v48  ;;  %v11670_v27 = vpack.i.bf16 %v18486_v33, %v18495_v1 }
 0x7c0   :  { %v8353_v19 = vsel %vm8336_vm6, %v8320_v55, %v11484_v57  ;;  %v11523_v8 = vunpack.i.l.bf16 %v18521_v16  ;;  %vm8834_vm11 = vcmask 1043456  }
 0x7c1   :  { %8578 = vmatmul.mubr.f32.gmra.mrb[100].mxu0 %v8353_v19 }
 0x7c2   :  { %10122 = vmatprep.mubr.msk.f32.mxu0 %vm3765_vm10, %v18258_v45  ;;  %v1506_v45 = vadd.f32 %v20839_v42, %v1475_v54  ;;  %v8192_v42 = vsel %vm3892_vm1, %v8163_v52, %v11474_v4  ;;  %v20842_v52 = vld [vmem:[#allocation331_spill] sm:$0xff] }
 0x7c3   :  { %11621 = vrot.lane.b32.xlu1 %v11620_v3, %s11979_s22 }
 0x7c4   :  { %v1538_v61 = vmul.f32 0.25, %v1506_v45  ;;  %v8224_v45 = vsel %vm4022_vm5, %v8192_v42, %v11513_v15  ;;  %v20843_v15 = vrot.slane %v20842_v52, 1 }
 0x7c5   :  { %v8256_v58 = vsel %vm4152_vm8, %v8224_v45, %v11523_v8  ;;  %v18581_v8 = vsel %vm5248_vm13, %v7443_v51, 0.0  ;;  %v20844_v51 = vld [vmem:[#allocation334_spill] sm:$0xff] }
 0x7c7   :  { %11631 = vrot.lane.b32.xlu1 %v11630_v31, %s11978_s8 }
 0x7cb   :  { %11641 = vrot.lane.b32.xlu1 %v18381_v20, %s11968_s24  ;;  %v8223_v20 = vsel %vm4022_vm5, %v17960_v14, %v11489_v0 }
 0x7cc   :  { %v8255_v12 = vsel %vm4152_vm8, %v8223_v20, %v11494_v40 }
 0x7cd   :  { %v8288_v60 = vsel %vm8270_vm3, %v8255_v12, %v11499_v47 }
 0x7cf   :  { %v10812_v44 = vpop.f32.mrb[72].mxu1  ;;  %11651 = vrot.lane.b32.xlu1 %v11650_v38, %s11973_s27 }
 0x7d0   :  { %v6631_v10 = vadd.f32 %v18363_v37, %v10812_v44  ;;  %v6625_v49 = vpop.f32.mrb[73].mxu1 }
 0x7d1   :  { %v6626_v24 = vadd.f32 %v18363_v37, %v6625_v49  ;;  %v11507_v46 = vpop.permute.xlu0 %11506 }
 0x7d2   :  { %v6673_v7 = vadd.f32 %v6631_v10, %v1538_v61  ;;  %v11508_v3 = vunpack.i.l.bf16 %v11507_v46 }
 0x7d3   :  { %v6672_v28 = vadd.f32 %v6626_v24, %v1537_v13  ;;  %11661 = vrot.lane.b32.xlu1 %v18466_v6, %s11975_s29  ;;  %v11509_v13 = vunpack.i.h.bf16 %v11507_v46 }
 0x7d4   :  { %v6705_v17 = vmul.f32 0.70710677, %v6673_v7  ;;  %v8321_v31 = vsel %vm8303_vm4, %v8288_v60, %v11508_v3  ;;  %v1539_v60 = vmul.f32 0.25, %v20844_v51 }
 0x7d5   :  { %v6704_v57 = vmul.f32 0.70710677, %v6672_v28  ;;  %v11517_v63 = vpop.permute.xlu0 %11516 }
 0x7d6   :  { %vm7210_vm12 = vcmp.gt.f32.partialorder %v6705_v17, 0.0  ;;  %v7242_v9 = vmul.f32 0.2, %v6705_v17  ;;  %v11518_v55 = vunpack.i.l.bf16 %v11517_v63  ;;  %v11519_v47 = vunpack.i.h.bf16 %v11517_v63 }
 0x7d7   :  { %vm7209_vm15 = vcmp.gt.f32.partialorder %v6704_v57, 0.0  ;;  %v7241_v19 = vmul.f32 0.2, %v6704_v57  ;;  %10862 = vmatprep.mubr.msk.f32.mxu1 %vm3765_vm10, %v6704_v57  ;;  %11671 = vrot.lane.b32.xlu1 %v11670_v27, %s11971_s30  ;;  %v11665_v63 = vpack.i.bf16 %v18581_v8, %v18486_v33  ;;  %v18587_v27 = vpop.permute.xlu1 %11531 }
 0x7d8   :  { %v18538_v59 = vsel %vm7210_vm12, %v6705_v17, %v7242_v9  ;;  %10863 = vmatmul.mubr.msk.f32.gmra.mrb[90].mxu1 %vm3765_vm10, %v6705_v17  ;;  %v8354_v54 = vsel %vm8336_vm6, %v8321_v31, %v11518_v55  ;;  %v1476_v17 = vsel %vm1380_vm7, %v20843_v15, 0.0  ;;  %v11533_v42 = vunpack.i.l.bf16 %v18587_v27 }
 0x7d9   :  { %v7273_v0 = vsel %vm7209_vm15, %v6704_v57, %v7241_v19  ;;  %v18544_v38 = vpop.permute.xlu0 %11526  ;;  %8583 = vmatmul.mubr.f32.gmra.mrb[102].mxu0 %v8354_v54  ;;  %v7352_v44 = vrot.slane %v18538_v59, 6  ;;  %v7446_v61 = vrot.slane %v18538_v59, 2  ;;  %v1508_v57 = vadd.f32 %v20842_v52, %v1476_v17 }
 0x7da   :  { %v11528_v10 = vunpack.i.l.bf16 %v18544_v38  ;;  %10123 = vmatprep.mubr.msk.f32.mxu0 %vm3765_vm10, %v18245_v62  ;;  %v7351_v49 = vrot.slane %v7273_v0, 6  ;;  %v11655_v22 = vpack.i.bf16 %v7273_v0, %v18450_v56  ;;  %v18554_v24 = vpack.i.bf16 %v18538_v59, %v7273_v0 }
 0x7db   :  { %v7445_v20 = vrot.slane %v7273_v0, 2  ;;  %v11504_v19 = vunpack.i.h.bf16 %v18498_v34 }
 0x7dc   :  { %v18557_v7 = vsel %vm5153_vm14, 0.0, %v7351_v49  ;;  %v8289_v40 = vsel %vm8270_vm3, %v8256_v58, %v11528_v10  ;;  %v18561_v28 = vsel %vm5153_vm14, %v7351_v49, %v7352_v44 }
 0x7dd   :  { %v11645_v62 = vpack.i.bf16 %v18557_v7, %v18477_v5  ;;  %v8322_v3 = vsel %vm8303_vm4, %v8289_v40, %v11509_v13  ;;  %v18569_v46 = vsel %vm5248_vm13, %v7445_v20, %v7446_v61  ;;  %v18590_v9 = vpop.permute.xlu0 %11536  ;;  %v8164_v44 = vsel %vm3765_vm10, %v18054_v21, %v11504_v19 }
 0x7de   :  { %v8355_v4 = vsel %vm8336_vm6, %v8322_v3, %v11519_v47  ;;  %v11685_v10 = vpack.i.bf16 %v18561_v28, %v18557_v7  ;;  %v8193_v49 = vsel %vm3892_vm1, %v8164_v44, %v11533_v42  ;;  %v11524_v21 = vunpack.i.h.bf16 %v18521_v16 }
 0x7df   :  { %11646 = vrot.lane.b32.xlu0 %v11645_v62, %s11977_s2  ;;  %8588 = vmatmul.mubr.f32.gmra.mrb[100].mxu0 %v8355_v4  ;;  %v11529_v3 = vunpack.i.h.bf16 %v18544_v38  ;;  %v11538_v4 = vunpack.i.l.bf16 %v18590_v9 }
 0x7e0   :  { %10124 = vmatprep.mubr.msk.f32.mxu0 %vm3765_vm10, %v18341_v25  ;;  %v1540_v25 = vmul.f32 0.25, %v1508_v57 }
 0x7e1   :  { %v18604_v34 = vpop.permute.xlu0 %11546 }
 0x7e3   :  { %11656 = vrot.lane.b32.xlu0 %v11655_v22, %s11979_s22  ;;  %v11514_v22 = vunpack.i.h.bf16 %v18507_v48 }
 0x7e5   :  { %v8225_v20 = vsel %vm4022_vm5, %v8193_v49, %v11514_v22 }
 0x7e7   :  { %v10815_v12 = vpop.f32.mrb[74].mxu1  ;;  %11666 = vrot.lane.b32.xlu0 %v11665_v63, %s11978_s8  ;;  %v18628_v63 = vpop.permute.xlu0 %11556 }
 0x7e8   :  { %v6641_v56 = vadd.f32 %v18363_v37, %v10815_v12  ;;  %v6635_v55 = vpop.f32.mrb[75].mxu1 }
 0x7e9   :  { %v6636_v31 = vadd.f32 %v18363_v37, %v6635_v55 }
 0x7ea   :  { %v6675_v54 = vadd.f32 %v6641_v56, %v1540_v25  ;;  %v8257_v56 = vsel %vm4152_vm8, %v8225_v20, %v11524_v21 }
 0x7eb   :  { %v6674_v45 = vadd.f32 %v6636_v31, %v1539_v60  ;;  %11676 = vrot.lane.b32.xlu0 %v18466_v6, %s11968_s24  ;;  %v11705_v31 = vpack.i.bf16 %v18569_v46, %v18581_v8  ;;  %v8290_v44 = vsel %vm8270_vm3, %v8257_v56, %v11529_v3 }
 0x7ec   :  { %v6707_v0 = vmul.f32 0.70710677, %v6675_v54  ;;  %v8165_v54 = vsel %vm3765_vm10, %v18124_v23, %v11538_v4 }
 0x7ed   :  { %v6706_v58 = vmul.f32 0.70710677, %v6674_v45  ;;  %v11548_v45 = vunpack.i.l.bf16 %v18604_v34 }
 0x7ee   :  { %vm7212_vm7 = vcmp.gt.f32.partialorder %v6707_v0, 0.0  ;;  %v7244_v37 = vmul.f32 0.2, %v6707_v0 }
 0x7ef   :  { %vm7211_vm0 = vcmp.gt.f32.partialorder %v6706_v58, 0.0  ;;  %v7243_v13 = vmul.f32 0.2, %v6706_v58  ;;  %10865 = vmatprep.mubr.msk.f32.mxu1 %vm3765_vm10, %v6706_v58  ;;  %11686 = vrot.lane.b32.xlu0 %v11685_v10, %s11973_s27  ;;  %v11558_v10 = vunpack.i.l.bf16 %v18628_v63 }
 0x7f0   :  { %v18610_v6 = vsel %vm7212_vm7, %v6707_v0, %v7244_v37  ;;  %10866 = vmatmul.mubr.msk.f32.gmra.mrb[90].mxu1 %vm3765_vm10, %v6707_v0 }
 0x7f1   :  { %v18614_v47 = vsel %vm7211_vm0, %v6706_v58, %v7243_v13  ;;  %v11542_v40 = vpop.permute.xlu1 %11541  ;;  %v7355_v62 = vrot.slane %v18610_v6, 6  ;;  %v7449_v48 = vrot.slane %v18610_v6, 2  ;;  %v11534_v58 = vunpack.i.h.bf16 %v18587_v27 }
 0x7f2   :  { %v7354_v52 = vrot.slane %v18614_v47, 6  ;;  %v11690_v16 = vpack.i.bf16 %v18614_v47, %v18538_v59  ;;  %v11543_v15 = vunpack.i.l.bf16 %v11542_v40  ;;  %v7448_v57 = vrot.slane %v18614_v47, 2 }
 0x7f3   :  { %v18623_v17 = vpop.f32.mrb[76].mxu1  ;;  %11696 = vrot.lane.b32.xlu0 %v18554_v24, %s11975_s29  ;;  %v8194_v13 = vsel %vm3892_vm1, %v8165_v54, %v11534_v58  ;;  %v11544_v4 = vunpack.i.h.bf16 %v11542_v40 }
 0x7f4   :  { %v7102_v12 = vrot.slane %v18623_v17, 2  ;;  %v6920_v38 = vpop.f32.mrb[77].mxu1  ;;  %v7402_v25 = vsel %vm5153_vm14, 0.0, %v7354_v52  ;;  %v18634_v55 = vsel %vm5153_vm14, %v7354_v52, %v7355_v62  ;;  %v18642_v42 = vsel %vm5248_vm13, %v7448_v57, %v7449_v48  ;;  %v10106_v52 = vld [vmem:[%s19541_s9] ss:$0 sm:$0xff] }
 0x7f5   :  { %v7101_v51 = vrot.slane %v6920_v38, 2  ;;  %v11552_v60 = vpop.permute.xlu1 %11551  ;;  %v11680_v19 = vpack.i.bf16 %v7402_v25, %v18561_v28  ;;  %v8323_v37 = vsel %vm8303_vm4, %v8290_v44, %v11543_v15  ;;  %v8226_v27 = vsel %vm4022_vm5, %v8194_v13, %v11548_v45  ;;  %v6729_v13 = vld [vmem:[%s19542_s10 + $0x10] sm:$0xff] }
 0x7f6   :  { %v11553_v0 = vunpack.i.l.bf16 %v11552_v60  ;;  %v18669_v62 = vsel %vm5248_vm13, %v7446_v61, 0.0  ;;  %v8258_v3 = vsel %vm4152_vm8, %v8226_v27, %v11558_v10  ;;  %v11554_v15 = vunpack.i.h.bf16 %v11552_v60  ;;  %v6728_v10 = vld [vmem:[%s19542_s10 + $0x8] sm:$0xff]  ;;  %v6730_v27 = vld [vmem:[%s19542_s10 + $0x18] sm:$0xff] }
 0x7f7   :  { %v7103_v49 = vsel %vm5248_vm13, %v7101_v51, %v7102_v12  ;;  %11681 = vrot.lane.b32.xlu1 %v11680_v19, %s11977_s2  ;;  %11706 = vrot.lane.b32.xlu0 %v11705_v31, %s11971_s30  ;;  %v11700_v59 = vpack.i.bf16 %v18669_v62, %v18569_v46  ;;  %v18682_v57 = vadd.f32 %v10106_v52, %v10106_v52 }
 0x7f8   :  { %v18656_v23 = vadd.f32 %v7103_v49, %v6920_v38  ;;  %v8356_v22 = vsel %vm8336_vm6, %v8323_v37, %v11553_v0 }
 0x7f9   :  { %v18660_v21 = vpop.permute.xlu1 %11561  ;;  %8593 = vmatmul.mubr.f32.gmra.mrb[102].mxu0 %v8356_v22  ;;  %v18710_v22 = vpop.permute.xlu0 %11566 }
 0x7fa   :  { %v11563_v20 = vunpack.i.l.bf16 %v18660_v21  ;;  %10125 = vmatprep.mubr.msk.f32.mxu0 %vm3765_vm10, %v18327_v11 }
 0x7fb   :  { %11691 = vrot.lane.b32.xlu1 %v11690_v16, %s11979_s22  ;;  %8030 = vrot.lane.b32.xlu0 %v18634_v55, %s11977_s2 }
 0x7fc   :  { %v8291_v11 = vsel %vm8270_vm3, %v8258_v3, %v11563_v20 }
 0x7fd   :  { %v8324_v61 = vsel %vm8303_vm4, %v8291_v11, %v11544_v4  ;;  %v18719_v20 = vpop.permute.xlu1 %11571  ;;  %v10956_v11 = vpack.c.bf16 %v6730_v27, %v6729_v13  ;;  %v11564_v13 = vunpack.i.h.bf16 %v18660_v21  ;;  %v6731_v21 = vld [vmem:[%s19542_s10 + $0x20] sm:$0xff] }
 0x7fe   :  { %v8357_v40 = vsel %vm8336_vm6, %v8324_v61, %v11554_v15  ;;  %v20845_v61 = vmov 0.0|0.0  }
 0x7ff   :  { %v18685_v16 = vpop.f32.mrb[78].mxu1  ;;  %v8509_v38 = vpop.f32.mrb[84].mxu0  ;;  %11701 = vrot.lane.b32.xlu1 %v11700_v59, %s11978_s8  ;;  %8598 = vmatmul.mubr.f32.gmra.mrb[104].mxu0 %v8357_v40  ;;  %v11568_v59 = vunpack.i.l.bf16 %v18710_v22 }
 0x800   :  { %v7105_v56 = vrot.slane %v18685_v16, 2  ;;  %v6940_v51 = vpop.f32.mrb[79].mxu1  ;;  %v8511_v60 = vpop.f32.mrb[85].mxu0  ;;  %8117 = vrot.lane.b32.xlu0 %v18610_v6, %s11979_s22  ;;  %10126 = vmatprep.mubr.msk.f32.mxu0 %vm3765_vm10, %v18400_v32  ;;  %v11052_v31 = vadd.f32 %v18682_v57, %v8509_v38  ;;  %v6727_v32 = vld [vmem:[%s19542_s10] sm:$0xff] }
 0x801   :  { %v7104_v19 = vrot.slane %v6940_v51, 2 }
 0x802   :  { %v8690_v49 = vrot.slane %v11052_v31, 2 }
 0x803   :  { %v7106_v54 = vsel %vm5248_vm13, %v7104_v19, %v7105_v56  ;;  %v8514_v45 = vpop.f32.mrb[86].mxu0  ;;  %11711 = vrot.lane.b32.xlu1 %v18554_v24, %s11968_s24  ;;  %v10953_v24 = vpack.c.bf16 %v6728_v10, %v6727_v32 }
 0x804   :  { %v18699_v0 = vadd.f32 %v7106_v54, %v6940_v51  ;;  %v11054_v44 = vadd.f32 %v18682_v57, %v8514_v45  ;;  %v8516_v58 = vpop.f32.mrb[87].mxu0  ;;  %7938 = vrot.lane.b32.xlu0 %v18642_v42, %s11978_s8  ;;  %v18743_v45 = vpop.permute.xlu1 %11581 }
 0x805   :  { %10954 = vmatpush1.bf16.msra.mxu1 %v10953_v24 }
 0x806   :  { %v8691_v37 = vrot.slane %v11054_v44, 2  ;;  %10955 = vmatprep.subr.bf16.mxu1 %v20845_v61 }
 0x807   :  { %7744 = vrot.lane.b32.xlu1 %v7402_v25, %s11973_s27  ;;  %v11539_v25 = vunpack.i.h.bf16 %v18590_v9 }
 0x808   :  { %v8692_v3 = vsel %vm5248_vm13, %v8690_v49, %v8691_v37  ;;  %v8730_v4 = vsel %vm5248_vm13, %v8691_v37, 0.0  ;;  %7746 = vrot.lane.b32.xlu0 %v18634_v55, %s11973_s27  ;;  %v18735_v55 = vsel %vm5248_vm13, %v7449_v48, 0.0  ;;  %v11549_v48 = vunpack.i.h.bf16 %v18604_v34 }
 0x809   :  { %v8738_v52 = vadd.f32 %v11052_v31, %v8692_v3  ;;  %v8739_v15 = vadd.f32 %v11054_v44, %v8730_v4  ;;  %v8166_v19 = vsel %vm3765_vm10, %v18127_v26, %v11539_v25  ;;  %10957 = vmatpush1.bf16.msra.mxu1 %v10956_v11  ;;  %v11559_v3 = vunpack.i.h.bf16 %v18628_v63 }
 0x80a   :  { %10958 = vmatprep.subr.bf16.mxu1 %v20845_v61  ;;  %v11573_v4 = vunpack.i.l.bf16 %v18719_v20 }
 0x80b   :  { %v8754_v40 = vmul.f32 0.25, %v8738_v52  ;;  %v8755_v38 = vmul.f32 0.25, %v8739_v15  ;;  %v18728_v51 = vpop.f32.mrb[80].mxu1  ;;  %7840 = vrot.lane.b32.xlu1 %v18614_v47, %s11975_s29  ;;  %v8195_v47 = vsel %vm3892_vm1, %v8166_v19, %v11568_v59  ;;  %v6732_v15 = vld [vmem:[%s19542_s10 + $0x28] sm:$0xff]  ;;  %v18776_v59 = vpop.permute.xlu1 %11591 }
 0x80c   :  { %v7108_v9 = vrot.slane %v18728_v51, 2  ;;  %v6960_v60 = vpop.f32.mrb[81].mxu1  ;;  %7940 = vrot.lane.b32.xlu0 %v18735_v55, %s11978_s8  ;;  %v8227_v24 = vsel %vm4022_vm5, %v8195_v47, %v11549_v48  ;;  %v10959_v11 = vpack.c.bf16 %v6732_v15, %v6731_v21  ;;  %v11593_v48 = vunpack.i.l.bf16 %v18776_v59 }
 0x80d   :  { %vm8771_vm14 = vcmp.gt.f32.partialorder %v8755_v38, 0.0  ;;  %v8786_v31 = vmul.f32 0.2, %v8754_v40  ;;  %v8787_v54 = vmul.f32 0.2, %v8755_v38  ;;  %v7107_v44 = vrot.slane %v6960_v60, 2 }
 0x80e   :  { %vm8770_vm9 = vcmp.gt.f32.partialorder %v8754_v40, 0.0  ;;  %10960 = vmatpush1.bf16.msra.mxu1 %v10959_v11 }
 0x80f   :  { %v8803_v58 = vsel %vm8771_vm14, %v8755_v38, %v8787_v54  ;;  %7637 = vrot.lane.b32.xlu1 %v18669_v62, %s11971_s30  ;;  %v8802_v32 = vsel %vm8770_vm9, %v8754_v40, %v8786_v31  ;;  %v7109_v10 = vsel %vm5248_vm13, %v7107_v44, %v7108_v9  ;;  %v8259_v40 = vsel %vm4152_vm8, %v8227_v24, %v11559_v3 }
 0x810   :  { %v8836_v26 = vrot.slane %v8803_v58, 4  ;;  %v18752_v49 = vpack.i.bf16 %v8803_v58, %v8802_v32  ;;  %v8835_v37 = vrot.slane %v8802_v32, 4  ;;  %v18756_v27 = vadd.f32 %v7109_v10, %v6960_v60  ;;  %10961 = vmatprep.subr.bf16.mxu1 %v20845_v61 }
 0x811   :  { %v11577_v34 = vpop.permute.xlu0 %11576  ;;  %v8292_v19 = vsel %vm8270_vm3, %v8259_v40, %v11564_v13  ;;  %v8167_v31 = vsel %vm3765_vm10, %v18235_v41, %v11573_v4  ;;  %v11583_v54 = vunpack.i.l.bf16 %v18743_v45  ;;  %v11569_v44 = vunpack.i.h.bf16 %v18710_v22 }
 0x812   :  { %11721 = vrot.lane.b32.xlu0 %v18752_v49, %s11975_s29  ;;  %v18763_v25 = vsel %vm8834_vm11, %v8835_v37, %v8836_v26  ;;  %v18766_v52 = vsel %vm8834_vm11, 0.0, %v8835_v37  ;;  %v11578_v63 = vunpack.i.l.bf16 %v11577_v34  ;;  %v11579_v15 = vunpack.i.h.bf16 %v11577_v34  ;;  %v6734_v34 = vld [vmem:[%s19542_s10 + $0x38] sm:$0xff] }
 0x813   :  { %7842 = vrot.lane.b32.xlu1 %v18610_v6, %s11975_s29  ;;  %v11715_v60 = vpack.i.bf16 %v18763_v25, %v18766_v52  ;;  %v8889_v6 = vsel %vm8834_vm11, %v8836_v26, 0.0  ;;  %v8196_v24 = vsel %vm3892_vm1, %v8167_v31, %v11569_v44  ;;  %v6735_v31 = vld [vmem:[%s19542_s10 + $0x40] sm:$0xff]  ;;  %v6736_v44 = vld [vmem:[%s19542_s10 + $0x48] sm:$0xff] }
 0x814   :  { %v8325_v32 = vsel %vm8303_vm4, %v8292_v19, %v11578_v63  ;;  %v18799_v22 = vpack.i.bf16 %v8889_v6, %v18763_v25  ;;  %v8228_v3 = vsel %vm4022_vm5, %v8196_v24, %v11583_v54 }
 0x815   :  { %v11587_v38 = vpop.permute.xlu0 %11586  ;;  %v8260_v21 = vsel %vm4152_vm8, %v8228_v3, %v11593_v48  ;;  %v6738_v3 = vld [vmem:[%s19542_s10 + $0x58] sm:$0xff] }
 0x816   :  { %v11588_v47 = vunpack.i.l.bf16 %v11587_v38  ;;  %v11589_v54 = vunpack.i.h.bf16 %v11587_v38  ;;  %v6737_v38 = vld [vmem:[%s19542_s10 + $0x50] sm:$0xff] }
 0x817   :  { %v18789_v58 = vpop.f32.mrb[82].mxu1  ;;  %11716 = vrot.lane.b32.xlu1 %v11715_v60, %s11973_s27 }
 0x818   :  { %v7111_v10 = vrot.slane %v18789_v58, 2  ;;  %v6980_v41 = vpop.f32.mrb[83].mxu1  ;;  %v8358_v37 = vsel %vm8336_vm6, %v8325_v32, %v11588_v47 }
 0x819   :  { %v7110_v26 = vrot.slane %v6980_v41, 2  ;;  %v18796_v13 = vpop.permute.xlu0 %11596  ;;  %8603 = vmatmul.mubr.f32.gmra.mrb[106].mxu0 %v8358_v37  ;;  %v10965_v37 = vpack.c.bf16 %v6736_v44, %v6735_v31 }
 0x81a   :  { %v11598_v4 = vunpack.i.l.bf16 %v18796_v13  ;;  %10127 = vmatprep.mubr.msk.f32.mxu0 %vm3765_vm10, %v18392_v53  ;;  %v6733_v53 = vld [vmem:[%s19542_s10 + $0x30] sm:$0xff] }
 0x81b   :  { %v7112_v63 = vsel %vm5248_vm13, %v7110_v26, %v7111_v10  ;;  %v8529_v11 = vpop.f32.mrb[88].mxu0  ;;  %11726 = vrot.lane.b32.xlu1 %v18799_v22, %s11978_s8  ;;  %v10962_v6 = vpack.c.bf16 %v6734_v34, %v6733_v53  ;;  %v6739_v34 = vld [vmem:[%s19542_s10 + $0x60] sm:$0xff] }
 0x81c   :  { %v18811_v40 = vadd.f32 %v7112_v63, %v6980_v41  ;;  %v8531_v60 = vpop.f32.mrb[89].mxu0  ;;  %v8293_v19 = vsel %vm8270_vm3, %v8260_v21, %v11598_v4  ;;  %v11056_v48 = vadd.f32 %v18682_v57, %v8529_v11  ;;  %v10968_v63 = vpack.c.bf16 %v6738_v3, %v6737_v38  ;;  %v6741_v38 = vld [vmem:[%s19542_s10 + $0x70] sm:$0xff] }
 0x81d   :  { %v8326_v47 = vsel %vm8303_vm4, %v8293_v19, %v11579_v15  ;;  %10963 = vmatpush1.bf16.msra.mxu1 %v10962_v6 }
 0x81e   :  { %v8359_v41 = vsel %vm8336_vm6, %v8326_v47, %v11589_v54  ;;  %10964 = vmatprep.subr.bf16.mxu1 %v20845_v61  ;;  %v8693_v4 = vrot.slane %v11056_v48, 2 }
 0x81f   :  { %v8534_v32 = vpop.f32.mrb[90].mxu0  ;;  %8608 = vmatmul.mubr.f32.gmra.mrb[104].mxu0 %v8359_v41 }
 0x820   :  { %v11058_v24 = vadd.f32 %v18682_v57, %v8534_v32  ;;  %v8536_v26 = vpop.f32.mrb[91].mxu0  ;;  %10128 = vmatprep.mubr.msk.f32.mxu0 %vm3765_vm10, %v18495_v1  ;;  %v6740_v1 = vld [vmem:[%s19542_s10 + $0x68] sm:$0xff] }
 0x821   :  { %10966 = vmatpush1.bf16.msra.mxu1 %v10965_v37  ;;  %v10971_v41 = vpack.c.bf16 %v6740_v1, %v6739_v34  ;;  %v11602_v37 = vpop.permute.xlu1 %11601 }
 0x822   :  { %v8694_v21 = vrot.slane %v11058_v24, 2  ;;  %10967 = vmatprep.subr.bf16.mxu1 %v20845_v61 }
 0x823   :  { %v18839_v15 = vpop.f32.mrb[84].mxu1 }
 0x824   :  { %v8695_v11 = vsel %vm5248_vm13, %v8693_v4, %v8694_v21  ;;  %v8731_v60 = vsel %vm5248_vm13, %v8694_v21, 0.0  ;;  %v7114_v19 = vrot.slane %v18839_v15, 2  ;;  %v7000_v53 = vpop.f32.mrb[85].mxu1  ;;  %v11574_v21 = vunpack.i.h.bf16 %v18719_v20 }
 0x825   :  { %v8740_v31 = vadd.f32 %v11056_v48, %v8695_v11  ;;  %v8741_v54 = vadd.f32 %v11058_v24, %v8731_v60  ;;  %v7113_v47 = vrot.slane %v7000_v53, 2  ;;  %10969 = vmatpush1.bf16.msra.mxu1 %v10968_v63  ;;  %v6742_v48 = vld [vmem:[%s19542_s10 + $0x78] sm:$0xff]  ;;  %v18863_v24 = vpop.permute.xlu0 %11606  ;;  %v11603_v63 = vunpack.i.l.bf16 %v11602_v37 }
 0x826   :  { %10970 = vmatprep.subr.bf16.mxu1 %v20845_v61  ;;  %v8168_v20 = vsel %vm3765_vm10, %v18238_v39, %v11574_v21  ;;  %v11584_v39 = vunpack.i.h.bf16 %v18743_v45 }
 0x827   :  { %v8756_v6 = vmul.f32 0.25, %v8740_v31  ;;  %v8757_v44 = vmul.f32 0.25, %v8741_v54  ;;  %v7115_v32 = vsel %vm5248_vm13, %v7113_v47, %v7114_v19  ;;  %v10974_v31 = vpack.c.bf16 %v6742_v48, %v6741_v38  ;;  %v6743_v54 = vld [vmem:[%s19542_s10 + $0x80] sm:$0xff]  ;;  %v6744_v47 = vld [vmem:[%s19542_s10 + $0x88] sm:$0xff] }
 0x828   :  { %v18854_v26 = vadd.f32 %v7115_v32, %v7000_v53  ;;  %v8197_v32 = vsel %vm3892_vm1, %v8168_v20, %v11603_v63  ;;  %v10977_v48 = vpack.c.bf16 %v6744_v47, %v6743_v54  ;;  %v11594_v63 = vunpack.i.h.bf16 %v18776_v59 }
 0x829   :  { %vm8772_vm12 = vcmp.gt.f32.partialorder %v8756_v6, 0.0  ;;  %vm8773_vm15 = vcmp.gt.f32.partialorder %v8757_v44, 0.0  ;;  %v8788_v3 = vmul.f32 0.2, %v8756_v6  ;;  %v8789_v4 = vmul.f32 0.2, %v8757_v44  ;;  %10972 = vmatpush1.bf16.msra.mxu1 %v10971_v41  ;;  %v18886_v41 = vpop.permute.xlu0 %11616 }
 0x82a   :  { %10973 = vmatprep.subr.bf16.mxu1 %v20845_v61  ;;  %v11604_v47 = vunpack.i.h.bf16 %v11602_v37 }
 0x82b   :  { %v8805_v11 = vsel %vm8773_vm15, %v8757_v44, %v8789_v4  ;;  %v8804_v60 = vsel %vm8772_vm12, %v8756_v6, %v8788_v3  ;;  %v8229_v3 = vsel %vm4022_vm5, %v8197_v32, %v11584_v39  ;;  %v11599_v4 = vunpack.i.h.bf16 %v18796_v13 }
 0x82c   :  { %v8839_v53 = vrot.slane %v8805_v11, 4  ;;  %v18866_v34 = vpack.i.bf16 %v8805_v11, %v8804_v60  ;;  %v8838_v1 = vrot.slane %v8804_v60, 4  ;;  %v11608_v11 = vunpack.i.l.bf16 %v18863_v24 }
 0x82d   :  { %10975 = vmatpush1.bf16.msra.mxu1 %v10974_v31  ;;  %v18901_v45 = vpop.permute.xlu0 %11626  ;;  %v11618_v31 = vunpack.i.l.bf16 %v18886_v41 }
 0x82e   :  { %11736 = vrot.lane.b32.xlu1 %v18866_v34, %s11979_s22  ;;  %v18880_v6 = vsel %vm8834_vm11, %v8838_v1, %v8839_v53  ;;  %v18883_v44 = vsel %vm8834_vm11, 0.0, %v8838_v1  ;;  %10976 = vmatprep.subr.bf16.mxu1 %v20845_v61  ;;  %v8261_v1 = vsel %vm4152_vm8, %v8229_v3, %v11594_v63  ;;  %v8169_v59 = vsel %vm3765_vm10, %v18319_v36, %v11608_v11 }
 0x82f   :  { %10136 = vmatprep.mubr.msk.f32.mxu1 %vm3765_vm10, %v18880_v6  ;;  %v11730_v38 = vpack.i.bf16 %v18880_v6, %v18883_v44  ;;  %v11628_v20 = vunpack.i.l.bf16 %v18901_v45  ;;  %v18916_v32 = vsel %vm8834_vm11, %v8839_v53, 0.0 }
 0x830   :  { %v11760_v53 = vpack.i.bf16 %v18916_v32, %v18880_v6 }
 0x831   :  { %11731 = vrot.lane.b32.xlu0 %v11730_v38, %s11977_s2  ;;  %v11612_v21 = vpop.permute.xlu1 %11611  ;;  %10978 = vmatpush1.bf16.msra.mxu1 %v10977_v48  ;;  %v8198_v48 = vsel %vm3892_vm1, %v8169_v59, %v11604_v47 }
 0x832   :  { %11746 = vrot.lane.b32.xlu1 %v18799_v22, %s11971_s30  ;;  %v11613_v60 = vunpack.i.l.bf16 %v11612_v21  ;;  %10868 = vmatprep.subr.mxu1 %v20792_v43  ;;  %v8294_v22 = vsel %vm8270_vm3, %v8261_v1, %v11599_v4  ;;  %v8230_v36 = vsel %vm4022_vm5, %v8198_v48, %v11618_v31 }
 0x833   :  { %v8262_v4 = vsel %vm4152_vm8, %v8230_v36, %v11628_v20  ;;  %v11637_v20 = vpop.permute.xlu0 %11636 }
 0x835   :  { %11741 = vrot.lane.b32.xlu0 %v18752_v49, %s11968_s24  ;;  %v11622_v13 = vpop.permute.xlu1 %11621  ;;  %v8327_v49 = vsel %vm8303_vm4, %v8294_v22, %v11613_v60 }
 0x836   :  { %11756 = vrot.lane.b32.xlu1 %v18866_v34, %s11975_s29  ;;  %v11623_v54 = vunpack.i.l.bf16 %v11622_v13  ;;  %v11624_v63 = vunpack.i.h.bf16 %v11622_v13 }
 0x838   :  { %v8360_v39 = vsel %vm8336_vm6, %v8327_v49, %v11623_v54 }
 0x839   :  { %11751 = vrot.lane.b32.xlu0 %v11730_v38, %s11973_s27  ;;  %v18921_v3 = vpop.permute.xlu1 %11631  ;;  %8613 = vmatmul.mubr.f32.gmra.mrb[106].mxu0 %v8360_v39  ;;  %v11614_v38 = vunpack.i.h.bf16 %v11612_v21 }
 0x83a   :  { %v11633_v37 = vunpack.i.l.bf16 %v18921_v3  ;;  %10129 = vmatprep.mubr.msk.f32.mxu0 %vm3765_vm10, %v18486_v33 }
 0x83c   :  { %v8295_v60 = vsel %vm8270_vm3, %v8262_v4, %v11633_v37  ;;  %v11609_v37 = vunpack.i.h.bf16 %v18863_v24 }
 0x83d   :  { %11761 = vrot.lane.b32.xlu0 %v11760_v53, %s11978_s8  ;;  %v8549_v11 = vpop.f32.mrb[92].mxu0  ;;  %v8328_v22 = vsel %vm8303_vm4, %v8295_v60, %v11614_v38  ;;  %v18941_v4 = vpop.permute.xlu1 %11641  ;;  %v11638_v38 = vunpack.i.l.bf16 %v11637_v20 }
 0x83e   :  { %v8551_v1 = vpop.f32.mrb[93].mxu0  ;;  %v8361_v59 = vsel %vm8336_vm6, %v8328_v22, %v11624_v63  ;;  %v11060_v31 = vadd.f32 %v18682_v57, %v8549_v11 }
 0x83f   :  { %8618 = vmatmul.mubr.f32.gmra.mrb[108].mxu0 %v8361_v59  ;;  %v8170_v1 = vsel %vm3765_vm10, %v18322_v30, %v11609_v37 }
 0x840   :  { %10130 = vmatprep.mubr.msk.f32.mxu0 %vm3765_vm10, %v18581_v8  ;;  %v8696_v54 = vrot.slane %v11060_v31, 2  ;;  %v8199_v59 = vsel %vm3892_vm1, %v8170_v1, %v11638_v38  ;;  %v11629_v1 = vunpack.i.h.bf16 %v18901_v45 }
 0x841   :  { %v8554_v33 = vpop.f32.mrb[94].mxu0 }
 0x842   :  { %v11062_v21 = vadd.f32 %v18682_v57, %v8554_v33  ;;  %v8556_v13 = vpop.f32.mrb[95].mxu0 }
 0x843   :  { %v11619_v13 = vunpack.i.h.bf16 %v18886_v41 }
 0x844   :  { %v8697_v47 = vrot.slane %v11062_v21, 2 }
 0x846   :  { %v8698_v49 = vsel %vm5248_vm13, %v8696_v54, %v8697_v47  ;;  %v8732_v39 = vsel %vm5248_vm13, %v8697_v47, 0.0  ;;  %v11652_v54 = vpop.permute.xlu1 %11651 }
 0x847   :  { %v8742_v48 = vadd.f32 %v11060_v31, %v8698_v49  ;;  %v8743_v36 = vadd.f32 %v11062_v21, %v8732_v39 }
 0x849   :  { %v8758_v63 = vmul.f32 0.25, %v8742_v48  ;;  %v8759_v8 = vmul.f32 0.25, %v8743_v36  ;;  %v8231_v36 = vsel %vm4022_vm5, %v8199_v59, %v11619_v13 }
 0x84b   :  { %vm8774_vm7 = vcmp.gt.f32.partialorder %v8758_v63, 0.0  ;;  %vm8775_vm0 = vcmp.gt.f32.partialorder %v8759_v8, 0.0  ;;  %v8790_v11 = vmul.f32 0.2, %v8758_v63  ;;  %v8791_v60 = vmul.f32 0.2, %v8759_v8 }
 0x84c   :  { %v18945_v22 = vpop.f32.mrb[86].mxu1 }
 0x84d   :  { %v8807_v31 = vsel %vm8775_vm0, %v8759_v8, %v8791_v60  ;;  %v19935_v33 = vrot.slane %v18945_v22, 2  ;;  %v7020_v24 = vpop.f32.mrb[87].mxu1  ;;  %v8806_v21 = vsel %vm8774_vm7, %v8758_v63, %v8790_v11  ;;  %v11634_v8 = vunpack.i.h.bf16 %v18921_v3 }
 0x84e   :  { %v8842_v47 = vrot.slane %v8807_v31, 4  ;;  %v7116_v49 = vrot.slane %v7020_v24, 2  ;;  %v18950_v39 = vpack.i.bf16 %v8807_v31, %v8806_v21  ;;  %v8841_v48 = vrot.slane %v8806_v21, 4  ;;  %v11662_v31 = vpop.permute.xlu1 %11661 }
 0x84f   :  { %v11643_v11 = vunpack.i.l.bf16 %v18941_v4  ;;  %v8263_v21 = vsel %vm4152_vm8, %v8231_v36, %v11629_v1  ;;  %v11653_v3 = vunpack.i.l.bf16 %v11652_v54 }
 0x850   :  { %v7118_v30 = vsel %vm5248_vm13, %v7116_v49, %v19935_v33  ;;  %11771 = vrot.lane.b32.xlu0 %v18950_v39, %s11979_s22  ;;  %v18961_v41 = vsel %vm8834_vm11, %v8841_v48, %v8842_v47  ;;  %v18964_v63 = vsel %vm8834_vm11, 0.0, %v8841_v48  ;;  %v8296_v48 = vsel %vm8270_vm3, %v8263_v21, %v11634_v8 }
 0x851   :  { %v18958_v37 = vadd.f32 %v7118_v30, %v7020_v24  ;;  %v11647_v38 = vpop.permute.xlu0 %11646  ;;  %v11765_v60 = vpack.i.bf16 %v18961_v41, %v18964_v63  ;;  %v8171_v13 = vsel %vm3765_vm10, %v18384_v35, %v11643_v11  ;;  %v11639_v30 = vunpack.i.h.bf16 %v11637_v20 }
 0x852   :  { %v11648_v59 = vunpack.i.l.bf16 %v11647_v38  ;;  %v11663_v33 = vunpack.i.l.bf16 %v11662_v31  ;;  %v11649_v8 = vunpack.i.h.bf16 %v11647_v38 }
 0x853   :  { %11766 = vrot.lane.b32.xlu1 %v11765_v60, %s11977_s2  ;;  %v8200_v36 = vsel %vm3892_vm1, %v8171_v13, %v11639_v30 }
 0x854   :  { %11781 = vrot.lane.b32.xlu0 %v11760_v53, %s11971_s30  ;;  %v8329_v45 = vsel %vm8303_vm4, %v8296_v48, %v11648_v59  ;;  %v8232_v35 = vsel %vm4022_vm5, %v8200_v36, %v11653_v3 }
 0x855   :  { %v11657_v24 = vpop.permute.xlu0 %11656  ;;  %v8264_v20 = vsel %vm4152_vm8, %v8232_v35, %v11663_v33  ;;  %v11644_v33 = vunpack.i.h.bf16 %v18941_v4 }
 0x856   :  { %v11658_v49 = vunpack.i.l.bf16 %v11657_v24  ;;  %v11659_v59 = vunpack.i.h.bf16 %v11657_v24 }
 0x857   :  { %11776 = vrot.lane.b32.xlu1 %v18866_v34, %s11968_s24  ;;  %v18989_v34 = vsel %vm8834_vm11, %v8842_v47, 0.0 }
 0x858   :  { %11791 = vrot.lane.b32.xlu0 %v18950_v39, %s11975_s29  ;;  %v8362_v53 = vsel %vm8336_vm6, %v8329_v45, %v11658_v49  ;;  %v18997_v48 = vpack.i.bf16 %v18989_v34, %v18961_v41  ;;  %v11654_v45 = vunpack.i.h.bf16 %v11652_v54 }
 0x859   :  { %v11667_v1 = vpop.permute.xlu0 %11666  ;;  %8623 = vmatmul.mubr.f32.gmra.mrb[110].mxu0 %v8362_v53 }
 0x85a   :  { %v11668_v11 = vunpack.i.l.bf16 %v11667_v1  ;;  %10131 = vmatprep.mubr.msk.f32.mxu0 %vm3765_vm10, %v18569_v46  ;;  %v11672_v46 = vpop.permute.xlu1 %11671  ;;  %v11669_v35 = vunpack.i.h.bf16 %v11667_v1 }
 0x85b   :  { %11786 = vrot.lane.b32.xlu1 %v11765_v60, %s11973_s27  ;;  %v11673_v38 = vunpack.i.l.bf16 %v11672_v46  ;;  %v8172_v60 = vsel %vm3765_vm10, %v18387_v18, %v11644_v33 }
 0x85c   :  { %v8297_v21 = vsel %vm8270_vm3, %v8264_v20, %v11668_v11 }
 0x85d   :  { %v11677_v13 = vpop.permute.xlu0 %11676  ;;  %v8330_v49 = vsel %vm8303_vm4, %v8297_v21, %v11649_v8  ;;  %v8201_v30 = vsel %vm3892_vm1, %v8172_v60, %v11673_v38  ;;  %v11664_v8 = vunpack.i.h.bf16 %v11662_v31 }
 0x85e   :  { %v8363_v3 = vsel %vm8336_vm6, %v8330_v49, %v11659_v59  ;;  %v11679_v53 = vunpack.i.h.bf16 %v11677_v13  ;;  %v8233_v36 = vsel %vm4022_vm5, %v8201_v30, %v11654_v45  ;;  %v11678_v59 = vunpack.i.l.bf16 %v11677_v13 }
 0x85f   :  { %8628 = vmatmul.mubr.f32.gmra.mrb[108].mxu0 %v8363_v3  ;;  %11796 = vrot.lane.b32.xlu1 %v18997_v48, %s11978_s8  ;;  %v8265_v49 = vsel %vm4152_vm8, %v8233_v36, %v11664_v8  ;;  %v11674_v13 = vunpack.i.h.bf16 %v11672_v46 }
 0x860   :  { %10132 = vmatprep.mubr.msk.f32.mxu0 %vm3765_vm10, %v18669_v62  ;;  %v8174_v4 = vsel %vm3765_vm10, %v18477_v5, %v11679_v53  ;;  %v8298_v54 = vsel %vm8270_vm3, %v8265_v49, %v11669_v35  ;;  %v8173_v33 = vsel %vm3765_vm10, %v18473_v50, %v11678_v59 }
 0x861   :  { %v11687_v47 = vpop.permute.xlu0 %11686  ;;  %v8202_v36 = vsel %vm3892_vm1, %v8173_v33, %v11674_v13 }
 0x862   :  { %v11689_v1 = vunpack.i.h.bf16 %v11687_v47  ;;  %v11688_v38 = vunpack.i.l.bf16 %v11687_v47 }
 0x864   :  { %v8234_v35 = vsel %vm4022_vm5, %v8202_v36, %v11688_v38 }
 0x865   :  { %v11697_v24 = vpop.permute.xlu0 %11696 }
 0x866   :  { %v11698_v30 = vunpack.i.l.bf16 %v11697_v24  ;;  %v11699_v8 = vunpack.i.h.bf16 %v11697_v24 }
 0x868   :  { %v8266_v46 = vsel %vm4152_vm8, %v8234_v35, %v11698_v30 }
 0x869   :  { %v11682_v11 = vpop.permute.xlu1 %11681  ;;  %v11707_v20 = vpop.permute.xlu0 %11706 }
 0x86a   :  { %v11708_v62 = vunpack.i.l.bf16 %v11707_v20  ;;  %v11683_v21 = vunpack.i.l.bf16 %v11682_v11  ;;  %v11684_v47 = vunpack.i.h.bf16 %v11682_v11 }
 0x86c   :  { %v8203_v18 = vsel %vm3892_vm1, %v8174_v4, %v11708_v62  ;;  %v8331_v45 = vsel %vm8303_vm4, %v8298_v54, %v11683_v21 }
 0x86d   :  { %v11692_v3 = vpop.permute.xlu1 %11691  ;;  %v8031_v31 = vpop.permute.xlu0 %8030  ;;  %v8235_v5 = vsel %vm4022_vm5, %v8203_v18, %v11689_v1 }
 0x86e   :  { %v11693_v60 = vunpack.i.l.bf16 %v11692_v3  ;;  %v8267_v21 = vsel %vm4152_vm8, %v8235_v5, %v11699_v8  ;;  %v11694_v4 = vunpack.i.h.bf16 %v11692_v3 }
 0x870   :  { %v8364_v53 = vsel %vm8336_vm6, %v8331_v45, %v11693_v60  ;;  %v11709_v60 = vunpack.i.h.bf16 %v11707_v20 }
 0x871   :  { %v11702_v62 = vpop.permute.xlu1 %11701  ;;  %8633 = vmatmul.mubr.f32.gmra.mrb[110].mxu0 %v8364_v53 }
 0x872   :  { %v11704_v50 = vunpack.i.h.bf16 %v11702_v62  ;;  %v11703_v59 = vunpack.i.l.bf16 %v11702_v62  ;;  %10133 = vmatprep.mubr.msk.f32.mxu0 %vm3765_vm10, %v18642_v42  ;;  %v8118_v49 = vpop.permute.xlu0 %8117 }
 0x874   :  { %v8299_v18 = vsel %vm8270_vm3, %v8266_v46, %v11703_v59  ;;  %v8300_v24 = vsel %vm8270_vm3, %v8267_v21, %v11704_v50 }
 0x875   :  { %v11712_v54 = vpop.permute.xlu1 %11711  ;;  %v8332_v33 = vsel %vm8303_vm4, %v8299_v18, %v11684_v47  ;;  %v8333_v42 = vsel %vm8303_vm4, %v8300_v24, %v8031_v31 }
 0x876   :  { %v11713_v1 = vunpack.i.l.bf16 %v11712_v54  ;;  %v8365_v38 = vsel %vm8336_vm6, %v8332_v33, %v11694_v4  ;;  %v7939_v13 = vpop.permute.xlu0 %7938  ;;  %v8366_v45 = vsel %vm8336_vm6, %v8333_v42, %v8118_v49  ;;  %v11714_v5 = vunpack.i.h.bf16 %v11712_v54 }
 0x877   :  { %8638 = vmatmul.mubr.f32.gmra.mrb[112].mxu0 %v8365_v38 }
 0x878   :  { %10134 = vmatprep.mubr.msk.f32.mxu0 %vm3765_vm10, %v18735_v55  ;;  %v8175_v11 = vsel %vm3765_vm10, %v18557_v7, %v11713_v1  ;;  %v8176_v62 = vsel %vm3765_vm10, %v18561_v28, %v11714_v5 }
 0x879   :  { %v7745_v3 = vpop.permute.xlu1 %7744  ;;  %v8204_v30 = vsel %vm3892_vm1, %v8175_v11, %v11709_v60 }
 0x87a   :  { %v8236_v53 = vsel %vm4022_vm5, %v8204_v30, %v7745_v3  ;;  %v7747_v36 = vpop.permute.xlu0 %7746 }
 0x87b   :  { %8643 = vmatmul.mubr.f32.gmra.mrb[114].mxu0 %v8366_v45 }
 0x87c   :  { %8647 = vmatprep.mubr.f32.mxu0 %v20792_v43 }
 0x87d   :  { %v7841_v31 = vpop.permute.xlu1 %7840 }
 0x87e   :  { %v8268_v20 = vsel %vm4152_vm8, %v8236_v53, %v7841_v31  ;;  %v7941_v47 = vpop.permute.xlu0 %7940 }
 0x87f   :  { %v8301_v55 = vsel %vm8270_vm3, %v8268_v20, %v7939_v13 }
 0x880   :  { %v8334_v7 = vsel %vm8303_vm4, %v8301_v55, %v18433_v2 }
 0x881   :  { %v7638_v8 = vpop.permute.xlu1 %7637  ;;  %v8367_v35 = vsel %vm8336_vm6, %v8334_v7, %v18436_v29 }
 0x882   :  { %v8205_v50 = vsel %vm3892_vm1, %v8176_v62, %v7638_v8  ;;  %8648 = vmatmul.mubr.f32.gmra.mrb[112].mxu0 %v8367_v35 }
 0x883   :  { %8652 = vmatprep.mubr.f32.mxu0 %v20792_v43  ;;  %v8237_v46 = vsel %vm4022_vm5, %v8205_v50, %v7747_v36 }
 0x885   :  { %v7843_v59 = vpop.permute.xlu1 %7842 }
 0x886   :  { %v8269_v21 = vsel %vm4152_vm8, %v8237_v46, %v7843_v59 }
 0x887   :  { %v8302_v4 = vsel %vm8270_vm3, %v8269_v21, %v7941_v47 }
 0x888   :  { %v8335_v49 = vsel %vm8303_vm4, %v8302_v4, %v18433_v2 }
 0x889   :  { %v8368_v28 = vsel %vm8336_vm6, %v8335_v49, %v18436_v29  ;;  %v11717_v8 = vpop.permute.xlu1 %11716 }
 0x88a   :  { %8653 = vmatmul.mubr.f32.gmra.mrb[114].mxu0 %v8368_v28  ;;  %v11718_v4 = vunpack.i.l.bf16 %v11717_v8 }
 0x88b   :  { %v8569_v18 = vpop.f32.mrb[96].mxu0  ;;  %v19054_v24 = vpop.f32.mrb[88].mxu1 }
 0x88c   :  { %v8571_v54 = vpop.f32.mrb[97].mxu0  ;;  %v7120_v33 = vrot.slane %v19054_v24, 2  ;;  %v7040_v1 = vpop.f32.mrb[89].mxu1  ;;  %v11064_v42 = vadd.f32 %v18682_v57, %v8569_v18 }
 0x88d   :  { %v7119_v38 = vrot.slane %v7040_v1, 2  ;;  %v11727_v49 = vpop.permute.xlu1 %11726  ;;  %v11722_v54 = vpop.permute.xlu0 %11721 }
 0x88e   :  { %v8699_v45 = vrot.slane %v11064_v42, 2 }
 0x88f   :  { %v7121_v60 = vsel %vm5248_vm13, %v7119_v38, %v7120_v33  ;;  %v8574_v11 = vpop.f32.mrb[98].mxu0 }
 0x890   :  { %v19061_v3 = vadd.f32 %v7121_v60, %v7040_v1  ;;  %v11066_v13 = vadd.f32 %v18682_v57, %v8574_v11  ;;  %v8576_v30 = vpop.f32.mrb[99].mxu0  ;;  %v11719_v1 = vunpack.i.h.bf16 %v11717_v8  ;;  %v11728_v60 = vunpack.i.l.bf16 %v11727_v49 }
 0x891   :  { %v11723_v11 = vunpack.i.l.bf16 %v11722_v54 }
 0x892   :  { %v8700_v5 = vrot.slane %v11066_v13, 2  ;;  %v9226_v30 = vsel %vm4022_vm5, %v17960_v14, %v11719_v1 }
 0x894   :  { %v8701_v53 = vsel %vm5248_vm13, %v8699_v45, %v8700_v5  ;;  %v8733_v31 = vsel %vm5248_vm13, %v8700_v5, 0.0  ;;  %v11729_v45 = vunpack.i.h.bf16 %v11727_v49 }
 0x895   :  { %v8744_v20 = vadd.f32 %v11064_v42, %v8701_v53  ;;  %v8745_v55 = vadd.f32 %v11066_v13, %v8733_v31  ;;  %v9225_v42 = vsel %vm4022_vm5, %v17960_v14, %v11718_v4  ;;  %v11724_v53 = vunpack.i.h.bf16 %v11722_v54 }
 0x896   :  { %v9241_v31 = vsel %vm4152_vm8, %v9225_v42, %v11723_v11 }
 0x897   :  { %v8760_v36 = vmul.f32 0.25, %v8744_v20  ;;  %v8761_v7 = vmul.f32 0.25, %v8745_v55 }
 0x899   :  { %vm8777_vm14 = vcmp.gt.f32.partialorder %v8761_v7, 0.0  ;;  %v8792_v62 = vmul.f32 0.2, %v8760_v36  ;;  %v8793_v35 = vmul.f32 0.2, %v8761_v7  ;;  %vm8776_vm9 = vcmp.gt.f32.partialorder %v8760_v36, 0.0 }
 0x89b   :  { %v8809_v50 = vsel %vm8777_vm14, %v8761_v7, %v8793_v35  ;;  %v8808_v59 = vsel %vm8776_vm9, %v8760_v36, %v8792_v62  ;;  %v9257_v36 = vsel %vm8270_vm3, %v9241_v31, %v11728_v60 }
 0x89c   :  { %v8845_v46 = vrot.slane %v8809_v50, 4  ;;  %v11805_v47 = vpack.i.bf16 %v8809_v50, %v8808_v59  ;;  %v8844_v21 = vrot.slane %v8808_v59, 4 }
 0x89e   :  { %11806 = vrot.lane.b32.xlu1 %v11805_v47, %s11979_s22  ;;  %v19068_v28 = vsel %vm8834_vm11, %v8844_v21, %v8845_v46  ;;  %v8876_v18 = vsel %vm8834_vm11, 0.0, %v8844_v21  ;;  %v19089_v50 = vsel %vm8834_vm11, %v8845_v46, 0.0 }
 0x89f   :  { %v11800_v38 = vpack.i.bf16 %v19068_v28, %v8876_v18 }
 0x8a0   :  { %v11737_v13 = vpop.permute.xlu1 %11736 }
 0x8a1   :  { %11801 = vrot.lane.b32.xlu0 %v11800_v38, %s11977_s2  ;;  %v11738_v7 = vunpack.i.l.bf16 %v11737_v13  ;;  %v11739_v21 = vunpack.i.h.bf16 %v11737_v13 }
 0x8a2   :  { %11816 = vrot.lane.b32.xlu1 %v18997_v48, %s11971_s30  ;;  %v9242_v48 = vsel %vm4152_vm8, %v9226_v30, %v11724_v53 }
 0x8a3   :  { %v11732_v5 = vpop.permute.xlu0 %11731  ;;  %v9258_v35 = vsel %vm8270_vm3, %v9242_v48, %v11729_v45 }
 0x8a4   :  { %v11734_v20 = vunpack.i.h.bf16 %v11732_v5  ;;  %v11733_v55 = vunpack.i.l.bf16 %v11732_v5  ;;  %v11747_v54 = vpop.permute.xlu1 %11746 }
 0x8a5   :  { %11811 = vrot.lane.b32.xlu0 %v18950_v39, %s11968_s24  ;;  %v11830_v39 = vpack.i.bf16 %v19089_v50, %v19068_v28  ;;  %v11748_v60 = vunpack.i.l.bf16 %v11747_v54  ;;  %v11749_v5 = vunpack.i.h.bf16 %v11747_v54 }
 0x8a6   :  { %v9273_v8 = vsel %vm8303_vm4, %v9257_v36, %v11733_v55  ;;  %11826 = vrot.lane.b32.xlu1 %v11805_v47, %s11975_s29  ;;  %v9274_v59 = vsel %vm8303_vm4, %v9258_v35, %v11734_v20 }
 0x8a7   :  { %v9289_v62 = vsel %vm8336_vm6, %v9273_v8, %v11738_v7  ;;  %v9290_v47 = vsel %vm8336_vm6, %v9274_v59, %v11739_v21  ;;  %v11742_v49 = vpop.permute.xlu0 %11741 }
 0x8a8   :  { %9400 = vmatmul.mubr.f32.vlgmr.msra.gmra.mrb[92].mxu1 %v9289_v62  ;;  %v11743_v1 = vunpack.i.l.bf16 %v11742_v49  ;;  %v11757_v30 = vpop.permute.xlu1 %11756 }
 0x8a9   :  { %11821 = vrot.lane.b32.xlu0 %v11800_v38, %s11973_s27  ;;  %10137 = vmatprep.mubr.msk.f32.mxu1 %vm3765_vm10, %v18916_v32  ;;  %v11744_v38 = vunpack.i.h.bf16 %v11742_v49  ;;  %v11759_v35 = vunpack.i.h.bf16 %v11757_v30 }
 0x8aa   :  { %v9201_v32 = vsel %vm3765_vm10, %v18766_v52, %v11743_v1  ;;  %v11758_v52 = vunpack.i.l.bf16 %v11757_v30 }
 0x8ab   :  { %v11752_v18 = vpop.permute.xlu0 %11751  ;;  %v9202_v13 = vsel %vm3765_vm10, %v18763_v25, %v11744_v38  ;;  %v9213_v53 = vsel %vm3892_vm1, %v9201_v32, %v11748_v60 }
 0x8ac   :  { %9405 = vmatmul.mubr.f32.gmra.mrb[94].mxu1 %v9290_v47  ;;  %v11753_v42 = vunpack.i.l.bf16 %v11752_v18  ;;  %v11754_v45 = vunpack.i.h.bf16 %v11752_v18  ;;  %v9214_v8 = vsel %vm3892_vm1, %v9202_v13, %v11749_v5 }
 0x8ad   :  { %11831 = vrot.lane.b32.xlu0 %v11830_v39, %s11978_s8  ;;  %10138 = vmatprep.mubr.msk.f32.mxu1 %vm3765_vm10, %v18961_v41 }
 0x8ae   :  { %v9227_v20 = vsel %vm4022_vm5, %v9213_v53, %v11753_v42  ;;  %v9228_v25 = vsel %vm4022_vm5, %v9214_v8, %v11754_v45 }
 0x8af   :  { %v11762_v11 = vpop.permute.xlu0 %11761  ;;  %v9243_v49 = vsel %vm4152_vm8, %v9227_v20, %v11758_v52  ;;  %v9244_v32 = vsel %vm4152_vm8, %v9228_v25, %v11759_v35 }
 0x8b0   :  { %v11763_v55 = vunpack.i.l.bf16 %v11762_v11  ;;  %v11764_v59 = vunpack.i.h.bf16 %v11762_v11 }
 0x8b2   :  { %v8589_v46 = vpop.f32.mrb[100].mxu0  ;;  %v9259_v1 = vsel %vm8270_vm3, %v9243_v49, %v11763_v55  ;;  %v9260_v60 = vsel %vm8270_vm3, %v9244_v32, %v11764_v59 }
 0x8b3   :  { %v8591_v4 = vpop.f32.mrb[101].mxu0  ;;  %v11068_v11 = vadd.f32 %v18682_v57, %v8589_v46 }
 0x8b5   :  { %v8702_v55 = vrot.slane %v11068_v11, 2 }
 0x8c2   :  { %v11772_v48 = vpop.permute.xlu0 %11771 }
 0x8c3   :  { %v19106_v31 = vpop.f32.mrb[90].mxu1  ;;  %v11773_v18 = vunpack.i.l.bf16 %v11772_v48  ;;  %v11774_v30 = vunpack.i.h.bf16 %v11772_v48 }
 0x8c4   :  { %v7123_v36 = vrot.slane %v19106_v31, 2  ;;  %v7060_v7 = vpop.f32.mrb[91].mxu1 }
 0x8c5   :  { %v7122_v62 = vrot.slane %v7060_v7, 2  ;;  %v11767_v21 = vpop.permute.xlu1 %11766 }
 0x8c6   :  { %v11769_v47 = vunpack.i.h.bf16 %v11767_v21  ;;  %v11768_v4 = vunpack.i.l.bf16 %v11767_v21 }
 0x8c7   :  { %v7124_v39 = vsel %vm5248_vm13, %v7122_v62, %v7123_v36 }
 0x8c8   :  { %v19116_v54 = vadd.f32 %v7124_v39, %v7060_v7  ;;  %v9275_v38 = vsel %vm8303_vm4, %v9259_v1, %v11768_v4  ;;  %v9276_v13 = vsel %vm8303_vm4, %v9260_v60, %v11769_v47 }
 0x8c9   :  { %v9291_v42 = vsel %vm8336_vm6, %v9275_v38, %v11773_v18  ;;  %v9292_v20 = vsel %vm8336_vm6, %v9276_v13, %v11774_v30  ;;  %v11777_v60 = vpop.permute.xlu1 %11776  ;;  %v11782_v13 = vpop.permute.xlu0 %11781 }
 0x8ca   :  { %9410 = vmatmul.mubr.f32.gmra.mrb[96].mxu1 %v9291_v42  ;;  %v11778_v30 = vunpack.i.l.bf16 %v11777_v60 }
 0x8cb   :  { %10139 = vmatprep.mubr.msk.f32.mxu1 %vm3765_vm10, %v18989_v34 }
 0x8cc   :  { %v8594_v45 = vpop.f32.mrb[102].mxu0 }
 0x8cd   :  { %v11070_v5 = vadd.f32 %v18682_v57, %v8594_v45  ;;  %v8596_v53 = vpop.f32.mrb[103].mxu0  ;;  %v11779_v45 = vunpack.i.h.bf16 %v11777_v60 }
 0x8ce   :  { %9415 = vmatmul.mubr.f32.gmra.mrb[98].mxu1 %v9292_v20  ;;  %v9203_v20 = vsel %vm3765_vm10, %v18883_v44, %v11778_v30 }
 0x8cf   :  { %v8703_v7 = vrot.slane %v11070_v5, 2  ;;  %10140 = vmatprep.mubr.msk.f32.mxu1 %vm3765_vm10, %v19068_v28 }
 0x8d1   :  { %v8704_v46 = vsel %vm5248_vm13, %v8702_v55, %v8703_v7  ;;  %v8734_v52 = vsel %vm5248_vm13, %v8703_v7, 0.0 }
 0x8d2   :  { %v8746_v8 = vadd.f32 %v11068_v11, %v8704_v46  ;;  %v8747_v48 = vadd.f32 %v11070_v5, %v8734_v52  ;;  %v11787_v11 = vpop.permute.xlu1 %11786  ;;  %v11783_v46 = vunpack.i.l.bf16 %v11782_v13 }
 0x8d3   :  { %v11788_v55 = vunpack.i.l.bf16 %v11787_v11 }
 0x8d4   :  { %v8762_v62 = vmul.f32 0.25, %v8746_v8  ;;  %v8763_v34 = vmul.f32 0.25, %v8747_v48  ;;  %v9204_v48 = vsel %vm3765_vm10, %v18880_v6, %v11779_v45 }
 0x8d6   :  { %vm8779_vm12 = vcmp.gt.f32.partialorder %v8763_v34, 0.0  ;;  %v8794_v35 = vmul.f32 0.2, %v8762_v62  ;;  %v8795_v25 = vmul.f32 0.2, %v8763_v34  ;;  %vm8778_vm15 = vcmp.gt.f32.partialorder %v8762_v62, 0.0  ;;  %v11797_v5 = vpop.permute.xlu1 %11796 }
 0x8d7   :  { %v11798_v44 = vunpack.i.l.bf16 %v11797_v5  ;;  %v11799_v45 = vunpack.i.h.bf16 %v11797_v5 }
 0x8d8   :  { %v8811_v59 = vsel %vm8779_vm12, %v8763_v34, %v8795_v25  ;;  %v8810_v21 = vsel %vm8778_vm15, %v8762_v62, %v8794_v35  ;;  %v11792_v62 = vpop.permute.xlu0 %11791  ;;  %v11789_v34 = vunpack.i.h.bf16 %v11787_v11  ;;  %v11784_v35 = vunpack.i.h.bf16 %v11782_v13 }
 0x8d9   :  { %v8848_v39 = vrot.slane %v8811_v59, 4  ;;  %v19133_v47 = vpack.i.bf16 %v8811_v59, %v8810_v21  ;;  %v8847_v4 = vrot.slane %v8810_v21, 4  ;;  %v9215_v25 = vsel %vm3892_vm1, %v9203_v20, %v11783_v46 }
 0x8da   :  { %v11794_v30 = vunpack.i.h.bf16 %v11792_v62 }
 0x8db   :  { %11841 = vrot.lane.b32.xlu0 %v19133_v47, %s11975_s29  ;;  %v19138_v28 = vsel %vm8834_vm11, %v8847_v4, %v8848_v39  ;;  %v19141_v49 = vsel %vm8834_vm11, 0.0, %v8847_v4  ;;  %v8893_v1 = vsel %vm8834_vm11, %v8848_v39, 0.0  ;;  %v9229_v4 = vsel %vm4022_vm5, %v9215_v25, %v11788_v55 }
 0x8dc   :  { %v11835_v18 = vpack.i.bf16 %v19138_v28, %v19141_v49  ;;  %v19148_v38 = vpack.i.bf16 %v8893_v1, %v19138_v28  ;;  %v9216_v1 = vsel %vm3892_vm1, %v9204_v48, %v11784_v35 }
 0x8dd   :  { %v9230_v6 = vsel %vm4022_vm5, %v9216_v1, %v11789_v34 }
 0x8de   :  { %11836 = vrot.lane.b32.xlu1 %v11835_v18, %s11973_s27  ;;  %v11793_v18 = vunpack.i.l.bf16 %v11792_v62 }
 0x8e2   :  { %11846 = vrot.lane.b32.xlu1 %v19148_v38, %s11978_s8 }
 0x8f2   :  { %v8609_v32 = vpop.f32.mrb[104].mxu0 }
 0x8f3   :  { %v8611_v42 = vpop.f32.mrb[105].mxu0  ;;  %v11072_v53 = vadd.f32 %v18682_v57, %v8609_v32 }
 0x8f5   :  { %v8705_v59 = vrot.slane %v11072_v53, 2 }
 0x90c   :  { %v8614_v7 = vpop.f32.mrb[106].mxu0 }
 0x90d   :  { %v11074_v52 = vadd.f32 %v18682_v57, %v8614_v7  ;;  %v8616_v8 = vpop.f32.mrb[107].mxu0  ;;  %v9245_v7 = vsel %vm4152_vm8, %v9229_v4, %v11793_v18 }
 0x90e   :  { %v9261_v25 = vsel %vm8270_vm3, %v9245_v7, %v11798_v44 }
 0x90f   :  { %v8706_v21 = vrot.slane %v11074_v52, 2 }
 0x910   :  { %v11807_v39 = vpop.permute.xlu1 %11806 }
 0x911   :  { %v8707_v32 = vsel %vm5248_vm13, %v8705_v59, %v8706_v21  ;;  %v8735_v42 = vsel %vm5248_vm13, %v8706_v21, 0.0  ;;  %v11808_v48 = vunpack.i.l.bf16 %v11807_v39  ;;  %v9246_v21 = vsel %vm4152_vm8, %v9230_v6, %v11794_v30 }
 0x912   :  { %v8748_v60 = vadd.f32 %v11072_v53, %v8707_v32  ;;  %v8749_v11 = vadd.f32 %v11074_v52, %v8735_v42  ;;  %v9262_v18 = vsel %vm8270_vm3, %v9246_v21, %v11799_v45  ;;  %v11809_v32 = vunpack.i.h.bf16 %v11807_v39 }
 0x913   :  { %v11802_v13 = vpop.permute.xlu0 %11801 }
 0x914   :  { %v11803_v20 = vunpack.i.l.bf16 %v11802_v13  ;;  %v8764_v46 = vmul.f32 0.25, %v8748_v60  ;;  %v8765_v55 = vmul.f32 0.25, %v8749_v11  ;;  %v11804_v8 = vunpack.i.h.bf16 %v11802_v13  ;;  %v11817_v35 = vpop.permute.xlu1 %11816 }
 0x915   :  { %v11819_v30 = vunpack.i.h.bf16 %v11817_v35  ;;  %v11818_v45 = vunpack.i.l.bf16 %v11817_v35 }
 0x916   :  { %v9277_v59 = vsel %vm8303_vm4, %v9261_v25, %v11803_v20  ;;  %vm8780_vm7 = vcmp.gt.f32.partialorder %v8764_v46, 0.0  ;;  %vm8781_vm0 = vcmp.gt.f32.partialorder %v8765_v55, 0.0  ;;  %v8796_v53 = vmul.f32 0.2, %v8764_v46 }
 0x917   :  { %v8797_v52 = vmul.f32 0.2, %v8765_v55  ;;  %v11812_v62 = vpop.permute.xlu0 %11811  ;;  %v9293_v4 = vsel %vm8336_vm6, %v9277_v59, %v11808_v48  ;;  %v9278_v44 = vsel %vm8303_vm4, %v9262_v18, %v11804_v8 }
 0x918   :  { %v11814_v5 = vunpack.i.h.bf16 %v11812_v62  ;;  %v11813_v34 = vunpack.i.l.bf16 %v11812_v62  ;;  %9420 = vmatmul.mubr.f32.gmra.mrb[100].mxu1 %v9293_v4  ;;  %v8812_v42 = vsel %vm8780_vm7, %v8764_v46, %v8796_v53  ;;  %v11827_v7 = vpop.permute.xlu1 %11826  ;;  %v9294_v46 = vsel %vm8336_vm6, %v9278_v44, %v11809_v32 }
 0x919   :  { %v8813_v1 = vsel %vm8781_vm0, %v8765_v55, %v8797_v52  ;;  %10141 = vmatprep.mubr.msk.f32.mxu1 %vm3765_vm10, %v19089_v50  ;;  %v8850_v39 = vrot.slane %v8812_v42, 4  ;;  %v11829_v21 = vunpack.i.h.bf16 %v11827_v7  ;;  %v11828_v53 = vunpack.i.l.bf16 %v11827_v7 }
 0x91a   :  { %v8851_v60 = vrot.slane %v8813_v1, 4  ;;  %v9206_v6 = vsel %vm3765_vm10, %v18961_v41, %v11814_v5  ;;  %v9205_v11 = vsel %vm3765_vm10, %v18964_v63, %v11813_v34  ;;  %v19177_v13 = vpack.i.bf16 %v8813_v1, %v8812_v42 }
 0x91b   :  { %v11822_v20 = vpop.permute.xlu0 %11821  ;;  %v9217_v41 = vsel %vm3892_vm1, %v9205_v11, %v11818_v45  ;;  %v9218_v63 = vsel %vm3892_vm1, %v9206_v6, %v11819_v30  ;;  %v19188_v25 = vsel %vm8834_vm11, 0.0, %v8850_v39 }
 0x91c   :  { %v11824_v55 = vunpack.i.h.bf16 %v11822_v20  ;;  %v11823_v8 = vunpack.i.l.bf16 %v11822_v20  ;;  %11856 = vrot.lane.b32.xlu1 %v19177_v13, %s11979_s22  ;;  %9425 = vmatmul.mubr.f32.gmra.mrb[102].mxu1 %v9294_v46  ;;  %v19185_v50 = vsel %vm8834_vm11, %v8850_v39, %v8851_v60  ;;  %v19214_v42 = vsel %vm8834_vm11, %v8851_v60, 0.0 }
 0x91d   :  { %v11850_v59 = vpack.i.bf16 %v19185_v50, %v19188_v25  ;;  %9429 = vmatprep.mubr.f32.mxu1 %v20792_v43  ;;  %v11880_v6 = vpack.i.bf16 %v19214_v42, %v19185_v50 }
 0x91e   :  { %v9231_v48 = vsel %vm4022_vm5, %v9217_v41, %v11823_v8  ;;  %v9232_v35 = vsel %vm4022_vm5, %v9218_v63, %v11824_v55 }
 0x91f   :  { %v11832_v52 = vpop.permute.xlu0 %11831  ;;  %11851 = vrot.lane.b32.xlu0 %v11850_v59, %s11977_s2  ;;  %v9247_v34 = vsel %vm4152_vm8, %v9231_v48, %v11828_v53  ;;  %v9248_v4 = vsel %vm4152_vm8, %v9232_v35, %v11829_v21 }
 0x920   :  { %v11834_v62 = vunpack.i.h.bf16 %v11832_v52  ;;  %v11833_v5 = vunpack.i.l.bf16 %v11832_v52  ;;  %11866 = vrot.lane.b32.xlu1 %v19148_v38, %s11971_s30 }
 0x922   :  { %v9263_v18 = vsel %vm8270_vm3, %v9247_v34, %v11833_v5  ;;  %v9264_v1 = vsel %vm8270_vm3, %v9248_v4, %v11834_v62 }
 0x923   :  { %v9279_v32 = vsel %vm8303_vm4, %v9263_v18, %v18433_v2  ;;  %11861 = vrot.lane.b32.xlu0 %v19133_v47, %s11968_s24  ;;  %v9280_v44 = vsel %vm8303_vm4, %v9264_v1, %v18433_v2 }
 0x924   :  { %11876 = vrot.lane.b32.xlu1 %v19177_v13, %s11975_s29  ;;  %v9295_v38 = vsel %vm8336_vm6, %v9279_v32, %v18436_v29  ;;  %v9296_v47 = vsel %vm8336_vm6, %v9280_v44, %v18436_v29 }
 0x925   :  { %9430 = vmatmul.mubr.f32.gmra.mrb[104].mxu1 %v9295_v38 }
 0x926   :  { %9434 = vmatprep.mubr.f32.mxu1 %v20792_v43 }
 0x927   :  { %11871 = vrot.lane.b32.xlu0 %v11850_v59, %s11973_s27 }
 0x929   :  { %9435 = vmatmul.mubr.f32.gmra.mrb[106].mxu1 %v9296_v47 }
 0x92a   :  { %10142 = vmatprep.mubr.msk.f32.mxu1 %vm3765_vm10, %v19185_v50 }
 0x92b   :  { %11881 = vrot.lane.b32.xlu0 %v11880_v6, %s11978_s8 }
 0x932   :  { %v8629_v11 = vpop.f32.mrb[108].mxu0 }
 0x933   :  { %v8631_v30 = vpop.f32.mrb[109].mxu0  ;;  %v11076_v45 = vadd.f32 %v18682_v57, %v8629_v11 }
 0x935   :  { %v8708_v7 = vrot.slane %v11076_v45, 2 }
 0x944   :  { %v8634_v60 = vpop.f32.mrb[110].mxu0 }
 0x945   :  { %v11078_v20 = vadd.f32 %v18682_v57, %v8634_v60  ;;  %v8636_v39 = vpop.f32.mrb[111].mxu0 }
 0x947   :  { %v8709_v55 = vrot.slane %v11078_v20, 2 }
 0x949   :  { %v8710_v8 = vsel %vm5248_vm13, %v8708_v7, %v8709_v55  ;;  %v8736_v46 = vsel %vm5248_vm13, %v8709_v55, 0.0 }
 0x94a   :  { %v8750_v41 = vadd.f32 %v11076_v45, %v8710_v8  ;;  %v8751_v63 = vadd.f32 %v11078_v20, %v8736_v46 }
 0x94c   :  { %v8766_v48 = vmul.f32 0.25, %v8750_v41  ;;  %v8767_v35 = vmul.f32 0.25, %v8751_v63 }
 0x94e   :  { %vm8782_vm14 = vcmp.gt.f32.partialorder %v8766_v48, 0.0  ;;  %vm8783_vm9 = vcmp.gt.f32.partialorder %v8767_v35, 0.0  ;;  %v8798_v59 = vmul.f32 0.2, %v8766_v48  ;;  %v8799_v21 = vmul.f32 0.2, %v8767_v35 }
 0x950   :  { %v8815_v53 = vsel %vm8783_vm9, %v8767_v35, %v8799_v21  ;;  %v8814_v52 = vsel %vm8782_vm14, %v8766_v48, %v8798_v59 }
 0x951   :  { %v8854_v62 = vrot.slane %v8815_v53, 4  ;;  %v11890_v5 = vpack.i.bf16 %v8815_v53, %v8814_v52  ;;  %v8853_v34 = vrot.slane %v8814_v52, 4 }
 0x953   :  { %11891 = vrot.lane.b32.xlu0 %v11890_v5, %s11979_s22  ;;  %v19230_v4 = vsel %vm8834_vm11, %v8853_v34, %v8854_v62  ;;  %v19233_v18 = vsel %vm8834_vm11, 0.0, %v8853_v34  ;;  %v19245_v45 = vsel %vm8834_vm11, %v8854_v62, 0.0  ;;  %v7141_v34 = vsel %vm5248_vm13, %v7102_v12, 0.0 }
 0x954   :  { %v11885_v32 = vpack.i.bf16 %v19230_v4, %v19233_v18 }
 0x955   :  { %v8649_v1 = vpop.f32.mrb[112].mxu0 }
 0x956   :  { %v8651_v38 = vpop.f32.mrb[113].mxu0  ;;  %11886 = vrot.lane.b32.xlu1 %v11885_v32, %s11977_s2  ;;  %v11080_v44 = vadd.f32 %v18682_v57, %v8649_v1  ;;  %v19272_v1 = vld [vmem:[%s19543_s11] ss:$0 sm:$0xff] }
 0x957   :  { %11901 = vrot.lane.b32.xlu0 %v11880_v6, %s11971_s30  ;;  %v11915_v6 = vpack.i.bf16 %v19245_v45, %v19230_v4  ;;  %v7150_v38 = vadd.f32 %v18623_v17, %v7141_v34  ;;  %v9512_v34 = vlaneseq }
 0x958   :  { %v8711_v60 = vrot.slane %v11080_v44, 2 }
 0x95a   :  { %11896 = vrot.lane.b32.xlu1 %v19177_v13, %s11968_s24 }
 0x95b   :  { %11911 = vrot.lane.b32.xlu0 %v11890_v5, %s11975_s29 }
 0x95d   :  { %v8654_v47 = vpop.f32.mrb[114].mxu0 }
 0x95e   :  { %v11082_v11 = vadd.f32 %v18682_v57, %v8654_v47  ;;  %v8656_v30 = vpop.f32.mrb[115].mxu0  ;;  %11906 = vrot.lane.b32.xlu1 %v11885_v32, %s11973_s27 }
 0x960   :  { %v8712_v20 = vrot.slane %v11082_v11, 2 }
 0x962   :  { %v8713_v13 = vsel %vm5248_vm13, %v8711_v60, %v8712_v20  ;;  %v8737_v39 = vsel %vm5248_vm13, %v8712_v20, 0.0  ;;  %11916 = vrot.lane.b32.xlu1 %v11915_v6, %s11978_s8  ;;  %v7166_v60 = vmul.f32 0.25, %v7150_v38 }
 0x963   :  { %v8752_v7 = vadd.f32 %v11080_v44, %v8713_v13  ;;  %v8753_v55 = vadd.f32 %v11082_v11, %v8737_v39  ;;  %v7165_v44 = vmul.f32 0.25, %v18656_v23  ;;  %v11837_v39 = vpop.permute.xlu1 %11836 }
 0x964   :  { %v11839_v23 = vunpack.i.h.bf16 %v11837_v39 }
 0x965   :  { %v8768_v57 = vmul.f32 0.25, %v8752_v7  ;;  %v8769_v8 = vmul.f32 0.25, %v8753_v55  ;;  %v11838_v7 = vunpack.i.l.bf16 %v11837_v39  ;;  %v11842_v55 = vpop.permute.xlu0 %11841  ;;  %v7142_v39 = vsel %vm5248_vm13, %v7105_v56, 0.0 }
 0x967   :  { %vm8785_vm12 = vcmp.gt.f32.partialorder %v8769_v8, 0.0  ;;  %v8800_v46 = vmul.f32 0.2, %v8768_v57  ;;  %v8801_v41 = vmul.f32 0.2, %v8769_v8  ;;  %vm8784_vm15 = vcmp.gt.f32.partialorder %v8768_v57, 0.0  ;;  %v11847_v17 = vpop.permute.xlu1 %11846 }
 0x969   :  { %v8817_v63 = vsel %vm8785_vm12, %v8769_v8, %v8801_v41  ;;  %v8816_v48 = vsel %vm8784_vm15, %v8768_v57, %v8800_v46  ;;  %v9233_v57 = vsel %vm4022_vm5, %v17960_v14, %v11838_v7  ;;  %v11848_v8 = vunpack.i.l.bf16 %v11847_v17 }
 0x96a   :  { %v8857_v35 = vrot.slane %v8817_v63, 4  ;;  %v11925_v59 = vpack.i.bf16 %v8817_v63, %v8816_v48  ;;  %v8856_v21 = vrot.slane %v8816_v48, 4  ;;  %v11843_v46 = vunpack.i.l.bf16 %v11842_v55 }
 0x96c   :  { %11926 = vrot.lane.b32.xlu1 %v11925_v59, %s11979_s22  ;;  %v19255_v53 = vsel %vm8834_vm11, %v8856_v21, %v8857_v35  ;;  %v8880_v52 = vsel %vm8834_vm11, 0.0, %v8856_v21  ;;  %v19277_v32 = vsel %vm8834_vm11, %v8857_v35, 0.0  ;;  %v11844_v59 = vunpack.i.h.bf16 %v11842_v55 }
 0x96d   :  { %v11920_v62 = vpack.i.bf16 %v19255_v53, %v8880_v52  ;;  %v7152_v55 = vadd.f32 %v18685_v16, %v7142_v39 }
 0x96f   :  { %11921 = vrot.lane.b32.xlu0 %v11920_v62, %s11977_s2  ;;  %v9249_v62 = vsel %vm4152_vm8, %v9233_v57, %v11843_v46  ;;  %v7167_v57 = vmul.f32 0.25, %v18699_v0 }
 0x970   :  { %11936 = vrot.lane.b32.xlu1 %v11915_v6, %s11971_s30  ;;  %v9265_v38 = vsel %vm8270_vm3, %v9249_v62, %v11848_v8 }
 0x973   :  { %11931 = vrot.lane.b32.xlu0 %v11890_v5, %s11968_s24 }
 0x974   :  { %9059 = vrot.lane.b32.xlu1 %v8816_v48, %s11975_s29  ;;  %v11849_v48 = vunpack.i.h.bf16 %v11847_v17 }
 0x977   :  { %9011 = vrot.lane.b32.xlu0 %v8880_v52, %s11973_s27 }
 0x978   :  { %9013 = vrot.lane.b32.xlu1 %v19255_v53, %s11973_s27 }
 0x97b   :  { %9109 = vrot.lane.b32.xlu0 %v19255_v53, %s11978_s8  ;;  %v9401_v5 = vpop.f32.mrb[92].mxu1 }
 0x97c   :  { %v9402_v47 = vadd.f32 %v19272_v1, %v9401_v5  ;;  %9111 = vrot.lane.b32.xlu1 %v19277_v32, %s11978_s8  ;;  %v9403_v12 = vpop.f32.mrb[93].mxu1 }
 0x97e   :  { %v9480_v11 = vadd.f32 %v9402_v47, %v7165_v44 }
 0x97f   :  { %9061 = vrot.lane.b32.xlu0 %v8817_v63, %s11975_s29  ;;  %v9406_v30 = vpop.f32.mrb[94].mxu1  ;;  %v9234_v63 = vsel %vm4022_vm5, %v17960_v14, %v11839_v23 }
 0x980   :  { %v9407_v20 = vadd.f32 %v19272_v1, %v9406_v30  ;;  %v9408_v6 = vpop.f32.mrb[95].mxu1  ;;  %v9250_v47 = vsel %vm4152_vm8, %v9234_v63, %v11844_v59  ;;  %v9496_v8 = vmul.f32 0.70710677, %v9480_v11 }
 0x981   :  { %v9266_v30 = vsel %vm8270_vm3, %v9250_v47, %v11849_v48  ;;  %v7168_v48 = vmul.f32 0.25, %v7152_v55 }
 0x982   :  { %v9481_v13 = vadd.f32 %v9407_v20, %v7166_v60  ;;  %v9513_v60 = vshrl.u32 %v9512_v34, 7 }
 0x984   :  { %v9515_v7 = vand.u32 3, %v9513_v60  ;;  %v9514_v17 = vadd.s32 8, %v9513_v60 }
 0x986   :  { %vm19308_vm7 = vcmp.eq.s32.totalorder %v9515_v7, 0  ;;  %v9516_v56 = vand.u32 3, %v9514_v17 }
 0x987   :  { %v9523_v59 = vsel %vm19308_vm7, %v9496_v8, 0.0 }
 0x988   :  { %vm19315_vm0 = vcmp.eq.s32.totalorder %v9516_v56, 0 }
 0x98e   :  { %v11857_v41 = vpop.permute.xlu1 %11856 }
 0x98f   :  { %v11858_v5 = vunpack.i.l.bf16 %v11857_v41  ;;  %v11859_v20 = vunpack.i.h.bf16 %v11857_v41 }
 0x991   :  { %v11852_v35 = vpop.permute.xlu0 %11851 }
 0x992   :  { %v11854_v21 = vunpack.i.h.bf16 %v11852_v35  ;;  %v11853_v52 = vunpack.i.l.bf16 %v11852_v35  ;;  %v11867_v39 = vpop.permute.xlu1 %11866 }
 0x994   :  { %v9281_v44 = vsel %vm8303_vm4, %v9265_v38, %v11853_v52  ;;  %v9282_v14 = vsel %vm8303_vm4, %v9266_v30, %v11854_v21  ;;  %v9497_v21 = vmul.f32 0.70710677, %v9481_v13 }
 0x995   :  { %v9297_v12 = vsel %vm8336_vm6, %v9281_v44, %v11858_v5  ;;  %v9298_v6 = vsel %vm8336_vm6, %v9282_v14, %v11859_v20  ;;  %v9539_v5 = vsel %vm3892_vm1, %v9523_v59, 0.0  ;;  %v11862_v20 = vpop.permute.xlu0 %11861 }
 0x996   :  { %9440 = vmatmul.mubr.f32.gmra.mrb[108].mxu1 %v9297_v12  ;;  %v9524_v44 = vsel %vm19315_vm0, %v9497_v21, 0.0  ;;  %v11863_v7 = vunpack.i.l.bf16 %v11862_v20  ;;  %v11864_v17 = vunpack.i.h.bf16 %v11862_v20 }
 0x997   :  { %10143 = vmatprep.mubr.msk.f32.mxu1 %vm3765_vm10, %v19214_v42  ;;  %v9546_v30 = vsel %vm3892_vm1, %v9524_v44, 0.0 }
 0x998   :  { %v9207_v55 = vsel %vm3765_vm10, %v19141_v49, %v11863_v7 }
 0x99a   :  { %9445 = vmatmul.mubr.f32.gmra.mrb[110].mxu1 %v9298_v6  ;;  %v11872_v6 = vpop.permute.xlu0 %11871 }
 0x99b   :  { %10144 = vmatprep.mubr.msk.f32.mxu1 %vm3765_vm10, %v19230_v4  ;;  %v11874_v56 = vunpack.i.h.bf16 %v11872_v6 }
 0x99d   :  { %v9411_v23 = vpop.f32.mrb[96].mxu1 }
 0x99e   :  { %v9412_v42 = vadd.f32 %v19272_v1, %v9411_v23  ;;  %v9413_v46 = vpop.f32.mrb[97].mxu1  ;;  %v11873_v23 = vunpack.i.l.bf16 %v11872_v6  ;;  %v11882_v8 = vpop.permute.xlu0 %11881 }
 0x99f   :  { %v11877_v46 = vpop.permute.xlu1 %11876  ;;  %v11883_v59 = vunpack.i.l.bf16 %v11882_v8 }
 0x9a0   :  { %v9482_v63 = vadd.f32 %v9412_v42, %v7167_v57  ;;  %v11868_v57 = vunpack.i.l.bf16 %v11867_v39  ;;  %v9208_v42 = vsel %vm3765_vm10, %v19138_v28, %v11864_v17  ;;  %v11878_v21 = vunpack.i.l.bf16 %v11877_v46 }
 0x9a1   :  { %v9416_v35 = vpop.f32.mrb[98].mxu1 }
 0x9a2   :  { %v9498_v16 = vmul.f32 0.70710677, %v9482_v63  ;;  %v9417_v52 = vadd.f32 %v19272_v1, %v9416_v35  ;;  %v9418_v0 = vpop.f32.mrb[99].mxu1  ;;  %v11869_v63 = vunpack.i.h.bf16 %v11867_v39 }
 0x9a3   :  { %v11884_v0 = vunpack.i.h.bf16 %v11882_v8 }
 0x9a4   :  { %v9525_v62 = vsel %vm19308_vm7, %v9498_v16, 0.0  ;;  %v9483_v34 = vadd.f32 %v9417_v52, %v7168_v48  ;;  %v9219_v48 = vsel %vm3892_vm1, %v9207_v55, %v11868_v57  ;;  %v9220_v16 = vsel %vm3892_vm1, %v9208_v42, %v11869_v63 }
 0x9a5   :  { %v9540_v38 = vsel %vm3892_vm1, %v9525_v62, 0.0  ;;  %v9235_v35 = vsel %vm4022_vm5, %v9219_v48, %v11873_v23  ;;  %v9236_v49 = vsel %vm4022_vm5, %v9220_v16, %v11874_v56 }
 0x9a6   :  { %v19325_v13 = vadd.f32 %v9540_v38, %v9539_v5  ;;  %v9499_v47 = vmul.f32 0.70710677, %v9483_v34  ;;  %v11879_v34 = vunpack.i.h.bf16 %v11877_v46  ;;  %v9251_v28 = vsel %vm4152_vm8, %v9235_v35, %v11878_v21 }
 0x9a8   :  { %v9526_v12 = vsel %vm19315_vm0, %v9499_v47, 0.0  ;;  %v9267_v47 = vsel %vm8270_vm3, %v9251_v28, %v11883_v59 }
 0x9a9   :  { %v9547_v14 = vsel %vm3892_vm1, %v9526_v12, 0.0 }
 0x9aa   :  { %v19331_v60 = vadd.f32 %v9547_v14, %v9546_v30  ;;  %v9252_v30 = vsel %vm4152_vm8, %v9236_v49, %v11879_v34 }
 0x9ab   :  { %v9268_v20 = vsel %vm8270_vm3, %v9252_v30, %v11884_v0 }
 0x9c5   :  { %v11892_v52 = vpop.permute.xlu0 %11891 }
 0x9c6   :  { %v11893_v44 = vunpack.i.l.bf16 %v11892_v52  ;;  %v11894_v7 = vunpack.i.h.bf16 %v11892_v52 }
 0x9c8   :  { %v11887_v62 = vpop.permute.xlu1 %11886 }
 0x9c9   :  { %v11889_v5 = vunpack.i.h.bf16 %v11887_v62  ;;  %v11888_v38 = vunpack.i.l.bf16 %v11887_v62  ;;  %v11902_v23 = vpop.permute.xlu0 %11901 }
 0x9ca   :  { %v11903_v63 = vunpack.i.l.bf16 %v11902_v23  ;;  %v11904_v59 = vunpack.i.h.bf16 %v11902_v23 }
 0x9cb   :  { %v9283_v12 = vsel %vm8303_vm4, %v9267_v47, %v11888_v38  ;;  %v9284_v39 = vsel %vm8303_vm4, %v9268_v20, %v11889_v5 }
 0x9cc   :  { %v9299_v14 = vsel %vm8336_vm6, %v9283_v12, %v11893_v44  ;;  %v11897_v6 = vpop.permute.xlu1 %11896  ;;  %v9300_v17 = vsel %vm8336_vm6, %v9284_v39, %v11894_v7 }
 0x9cd   :  { %9450 = vmatmul.mubr.f32.gmra.mrb[112].mxu1 %v9299_v14  ;;  %v11898_v57 = vunpack.i.l.bf16 %v11897_v6  ;;  %v11899_v8 = vunpack.i.h.bf16 %v11897_v6 }
 0x9ce   :  { %10145 = vmatprep.mubr.msk.f32.mxu1 %vm3765_vm10, %v19245_v45  ;;  %v11912_v45 = vpop.permute.xlu0 %11911 }
 0x9cf   :  { %v9209_v46 = vsel %vm3765_vm10, %v19188_v25, %v11898_v57  ;;  %v9210_v48 = vsel %vm3765_vm10, %v19185_v50, %v11899_v8  ;;  %v11913_v49 = vunpack.i.l.bf16 %v11912_v45  ;;  %v11914_v5 = vunpack.i.h.bf16 %v11912_v45 }
 0x9d0   :  { %v11907_v55 = vpop.permute.xlu1 %11906  ;;  %v9221_v21 = vsel %vm3892_vm1, %v9209_v46, %v11903_v63  ;;  %v9222_v0 = vsel %vm3892_vm1, %v9210_v48, %v11904_v59  ;;  %v7143_v48 = vsel %vm5248_vm13, %v7108_v9, 0.0 }
 0x9d1   :  { %9455 = vmatmul.mubr.f32.gmra.mrb[114].mxu1 %v9300_v17  ;;  %v11908_v56 = vunpack.i.l.bf16 %v11907_v55  ;;  %v11909_v35 = vunpack.i.h.bf16 %v11907_v55 }
 0x9d2   :  { %10146 = vmatprep.mubr.msk.f32.mxu1 %vm3765_vm10, %v19255_v53 }
 0x9d3   :  { %v9237_v53 = vsel %vm4022_vm5, %v9221_v21, %v11908_v56  ;;  %v9238_v62 = vsel %vm4022_vm5, %v9222_v0, %v11909_v35  ;;  %v7154_v21 = vadd.f32 %v18728_v51, %v7143_v48 }
 0x9d4   :  { %v11917_v42 = vpop.permute.xlu1 %11916  ;;  %v9253_v44 = vsel %vm4152_vm8, %v9237_v53, %v11913_v49  ;;  %v9254_v14 = vsel %vm4152_vm8, %v9238_v62, %v11914_v5 }
 0x9d5   :  { %v11918_v52 = vunpack.i.l.bf16 %v11917_v42  ;;  %v11919_v25 = vunpack.i.h.bf16 %v11917_v42  ;;  %v7170_v5 = vmul.f32 0.25, %v7154_v21 }
 0x9d7   :  { %v9269_v12 = vsel %vm8270_vm3, %v9253_v44, %v11918_v52  ;;  %v9270_v39 = vsel %vm8270_vm3, %v9254_v14, %v11919_v25 }
 0x9de   :  { %v11927_v16 = vpop.permute.xlu1 %11926 }
 0x9df   :  { %v11928_v47 = vunpack.i.l.bf16 %v11927_v16  ;;  %v11929_v23 = vunpack.i.h.bf16 %v11927_v16  ;;  %v7169_v16 = vmul.f32 0.25, %v18756_v27 }
 0x9e1   :  { %v11922_v34 = vpop.permute.xlu0 %11921 }
 0x9e2   :  { %v11924_v38 = vunpack.i.h.bf16 %v11922_v34  ;;  %v11923_v28 = vunpack.i.l.bf16 %v11922_v34  ;;  %v11937_v50 = vpop.permute.xlu1 %11936 }
 0x9e3   :  { %v11938_v57 = vunpack.i.l.bf16 %v11937_v50 }
 0x9e4   :  { %v9285_v30 = vsel %vm8303_vm4, %v9269_v12, %v11923_v28  ;;  %v9286_v55 = vsel %vm8303_vm4, %v9270_v39, %v11924_v38 }
 0x9e5   :  { %v11932_v20 = vpop.permute.xlu0 %11931  ;;  %v9301_v6 = vsel %vm8336_vm6, %v9285_v30, %v11928_v47  ;;  %v9302_v63 = vsel %vm8336_vm6, %v9286_v55, %v11929_v23  ;;  %v7144_v23 = vsel %vm5248_vm13, %v7111_v10, 0.0 }
 0x9e6   :  { %v11933_v7 = vunpack.i.l.bf16 %v11932_v20  ;;  %v9060_v17 = vpop.permute.xlu1 %9059  ;;  %9460 = vmatmul.mubr.f32.gmra.mrb[116].mxu1 %v9301_v6  ;;  %v11934_v8 = vunpack.i.h.bf16 %v11932_v20 }
 0x9e7   :  { %10147 = vmatprep.mubr.msk.f32.mxu1 %vm3765_vm10, %v19277_v32  ;;  %v11939_v32 = vunpack.i.h.bf16 %v11937_v50 }
 0x9e8   :  { %v9211_v42 = vsel %vm3765_vm10, %v19233_v18, %v11933_v7  ;;  %v9212_v35 = vsel %vm3765_vm10, %v19230_v4, %v11934_v8  ;;  %vm11980_vm10 = vmmov 0  }
 0x9e9   :  { %v9012_v46 = vpop.permute.xlu0 %9011  ;;  %v9223_v56 = vsel %vm3892_vm1, %v9211_v42, %v11938_v57  ;;  %v9224_v0 = vsel %vm3892_vm1, %v9212_v35, %v11939_v32  ;;  %v9592_v57 = vld [vmem:[%s19548_s16] sm:$0xff]  ;;  %v7171_v42 = vmul.f32 0.25, %v18811_v40 }
 0x9ea   :  { %v9239_v45 = vsel %vm4022_vm5, %v9223_v56, %v9012_v46  ;;  %9465 = vmatmul.mubr.f32.gmra.mrb[118].mxu1 %v9302_v63  ;;  %v9014_v59 = vpop.permute.xlu1 %9013 }
 0x9eb   :  { %9469 = vmatprep.mubr.f32.mxu1 %v20792_v43  ;;  %v9421_v18 = vpop.f32.mrb[100].mxu1  ;;  %v9255_v9 = vsel %vm4152_vm8, %v9239_v45, %v9060_v17  ;;  %v9240_v27 = vsel %vm4022_vm5, %v9224_v0, %v9014_v59  ;;  %10869 = vmatpush3.msra.mxu1 %v9592_v57  ;;  %vm9744_vm5 = vcmask 31744  }
 0x9ec   :  { %v9422_v53 = vadd.f32 %v19272_v1, %v9421_v18  ;;  %v9423_v52 = vpop.f32.mrb[101].mxu1  ;;  %10979 = vmatprep.subr.bf16.mxu1 %v20845_v61 }
 0x9ed   :  { %v9110_v49 = vpop.permute.xlu0 %9109 }
 0x9ee   :  { %v9271_v62 = vsel %vm8270_vm3, %v9255_v9, %v9110_v49  ;;  %v9484_v4 = vadd.f32 %v9422_v53, %v7169_v16  ;;  %v9112_v47 = vpop.permute.xlu1 %9111 }
 0x9ef   :  { %v9287_v25 = vsel %vm8303_vm4, %v9271_v62, %v18433_v2  ;;  %v9426_v34 = vpop.f32.mrb[102].mxu1  ;;  %v9591_v62 = vld [vmem:[%s19545_s13] sm:$0x3] }
 0x9f0   :  { %v9303_v51 = vsel %vm8336_vm6, %v9287_v25, %v18436_v29  ;;  %v9500_v38 = vmul.f32 0.70710677, %v9484_v4  ;;  %v9427_v28 = vadd.f32 %v19272_v1, %v9426_v34  ;;  %v9428_v50 = vpop.f32.mrb[103].mxu1  ;;  %v9587_v4 = vld [vmem:[%s19547_s15] sm:$0xff]  ;;  %v9588_v25 = vld [vmem:[%s19547_s15 + $0x8] sm:$0xff] }
 0x9f1   :  { %v9062_v44 = vpop.permute.xlu0 %9061  ;;  %9470 = vmatmul.mubr.f32.gmra.mrb[120].mxu1 %v9303_v51  ;;  %v10980_v34 = vpack.c.bf16 %v9588_v25, %v9587_v4  ;;  %v9589_v51 = vld [vmem:[%s19547_s15 + $0x10] sm:$0xff] }
 0x9f2   :  { %v9256_v12 = vsel %vm4152_vm8, %v9240_v27, %v9062_v44  ;;  %9474 = vmatprep.mubr.f32.mxu1 %v20792_v43  ;;  %v9527_v30 = vsel %vm19308_vm7, %v9500_v38, 0.0  ;;  %v9485_v14 = vadd.f32 %v9427_v28, %v7170_v5  ;;  %v9590_v5 = vld [vmem:[%s19547_s15 + $0x18] sm:$0xff]  ;;  %v7145_v38 = vsel %vm5248_vm13, %v7114_v19, 0.0 }
 0x9f3   :  { %v9272_v20 = vsel %vm8270_vm3, %v9256_v12, %v9112_v47  ;;  %v9542_v6 = vsel %vm3892_vm1, %v9527_v30, 0.0  ;;  %v10983_v27 = vpack.c.bf16 %v9590_v5, %v9589_v51  ;;  %v7158_v50 = vadd.f32 %v18839_v15, %v7145_v38 }
 0x9f4   :  { %v9288_v39 = vsel %vm8303_vm4, %v9272_v20, %v18433_v2  ;;  %v9543_v7 = vadd.f32 %v9542_v6, %v19325_v13  ;;  %v9501_v17 = vmul.f32 0.70710677, %v9485_v14  ;;  %v7173_v44 = vmul.f32 0.25, %v18854_v26 }
 0x9f5   :  { %v9304_v55 = vsel %vm8336_vm6, %v9288_v39, %v18436_v29  ;;  %v7156_v29 = vadd.f32 %v18789_v58, %v7144_v23  ;;  %v7174_v20 = vmul.f32 0.25, %v7158_v50  ;;  %v7175_v15 = vmul.f32 0.25, %v18958_v37 }
 0x9f6   :  { %9475 = vmatmul.mubr.f32.gmra.mrb[122].mxu1 %v9304_v55  ;;  %v9528_v8 = vsel %vm19315_vm0, %v9501_v17, 0.0 }
 0x9f7   :  { %v9549_v2 = vsel %vm3892_vm1, %v9528_v8, 0.0  ;;  %v7172_v45 = vmul.f32 0.25, %v7156_v29  ;;  %10870 = vmatprep.mubr.msk.f32.mxu1 %vm11980_vm10, %v20792_v43 }
 0x9f8   :  { %v9431_v13 = vpop.f32.mrb[104].mxu1  ;;  %v9550_v10 = vadd.f32 %v9549_v2, %v19331_v60 }
 0x9f9   :  { %v9432_v46 = vadd.f32 %v19272_v1, %v9431_v13  ;;  %v9433_v56 = vpop.f32.mrb[105].mxu1 }
 0x9fa   :  { %10871 = vmatmul.mubr.msk.f32.vlgmr.msra.gmra.mrb[124].mxu1 %vm738_vm2, %v9591_v62  ;;  %vm9668_vm2 = vcmask 1041409  }
 0x9fb   :  { %v9486_v63 = vadd.f32 %v9432_v46, %v7171_v42  ;;  %10981 = vmatpush3.bf16.msra.mxu1 %v10980_v34  ;;  %10881 = vmatprep.mubr.msk.f32.mxu1 %vm11980_vm10, %v20792_v43 }
 0x9fc   :  { %v9436_v48 = vpop.f32.mrb[106].mxu1  ;;  %10982 = vmatprep.subr.bf16.mxu1 %v20845_v61 }
 0x9fd   :  { %v9502_v35 = vmul.f32 0.70710677, %v9486_v63  ;;  %v9437_v32 = vadd.f32 %v19272_v1, %v9436_v48  ;;  %v9438_v59 = vpop.f32.mrb[107].mxu1 }
 0x9ff   :  { %v9529_v18 = vsel %vm19308_vm7, %v9502_v35, 0.0  ;;  %v9487_v21 = vadd.f32 %v9437_v32, %v7172_v45  ;;  %10984 = vmatpush3.bf16.msra.mxu1 %v10983_v27 }
 0xa00   :  { %v9544_v58 = vsel %vm3892_vm1, %v9529_v18, 0.0  ;;  %10884 = vmatprep.subr.mxu1 %v20792_v43 }
 0xa01   :  { %v9545_v16 = vadd.f32 %v9544_v58, %v9543_v7  ;;  %v9503_v40 = vmul.f32 0.70710677, %v9487_v21  ;;  %v20850_v7 = vrot.slane %v18945_v22, 2 }
 0xa03   :  { %v9530_v60 = vsel %vm19315_vm0, %v9503_v40, 0.0  ;;  %v9567_v49 = vsel %vm3892_vm1, %v9545_v16, 0.0  ;;  %v7146_v17 = vsel %vm5248_vm13, %v20850_v7, 0.0  ;;  %v7147_v16 = vsel %vm5248_vm13, %v7120_v33, 0.0 }
 0xa04   :  { %v9551_v53 = vsel %vm3892_vm1, %v9530_v60, 0.0  ;;  %v7160_v19 = vadd.f32 %v18945_v22, %v7146_v17  ;;  %v7162_v60 = vadd.f32 %v19054_v24, %v7147_v16 }
 0xa05   :  { %v9552_v52 = vadd.f32 %v9551_v53, %v9550_v10  ;;  %v7177_v53 = vmul.f32 0.25, %v19061_v3  ;;  %v7148_v3 = vsel %vm5248_vm13, %v7123_v36, 0.0 }
 0xa06   :  { %v7176_v2 = vmul.f32 0.25, %v7160_v19  ;;  %v7178_v4 = vmul.f32 0.25, %v7162_v60 }
 0xa07   :  { %v9568_v9 = vsel %vm3892_vm1, %v9552_v52, 0.0 }
 0xa08   :  { %v19427_v0 = vadd.f32 %v9568_v9, %v9567_v49 }
 0xa0a   :  { %v9570_v19 = vrot.slane %v19427_v0, 4 }
 0xa69   :  { %v9441_v28 = vpop.f32.mrb[108].mxu1 }
 0xa6a   :  { %v9442_v47 = vadd.f32 %v19272_v1, %v9441_v28  ;;  %v9443_v12 = vpop.f32.mrb[109].mxu1 }
 0xa6c   :  { %v9488_v30 = vadd.f32 %v9442_v47, %v7173_v44  ;;  %v7179_v44 = vmul.f32 0.25, %v19116_v54 }
 0xa6d   :  { %v9446_v14 = vpop.f32.mrb[110].mxu1 }
 0xa6e   :  { %v9447_v61 = vadd.f32 %v19272_v1, %v9446_v14  ;;  %v9448_v6 = vpop.f32.mrb[111].mxu1  ;;  %v9504_v26 = vmul.f32 0.70710677, %v9488_v30  ;;  %v7164_v14 = vadd.f32 %v19106_v31, %v7148_v3  ;;  %v9571_v31 = vadd.f32 %v9570_v19, %v19427_v0 }
 0xa70   :  { %v9489_v39 = vadd.f32 %v9447_v61, %v7174_v20  ;;  %v9531_v29 = vsel %vm19308_vm7, %v9504_v26, 0.0  ;;  %v7180_v7 = vmul.f32 0.25, %v7164_v14 }
 0xa71   :  { %v9553_v37 = vsel %vm3892_vm1, %v9531_v29, 0.0 }
 0xa72   :  { %v9505_v42 = vmul.f32 0.70710677, %v9489_v39 }
 0xa74   :  { %v9532_v45 = vsel %vm19315_vm0, %v9505_v42, 0.0 }
 0xa75   :  { %v9560_v18 = vsel %vm3892_vm1, %v9532_v45, 0.0 }
 0xaa0   :  { %v9451_v55 = vpop.f32.mrb[112].mxu1 }
 0xaa1   :  { %v9452_v23 = vadd.f32 %v19272_v1, %v9451_v55  ;;  %v9453_v57 = vpop.f32.mrb[113].mxu1 }
 0xaa3   :  { %v9490_v8 = vadd.f32 %v9452_v23, %v7175_v15 }
 0xaa4   :  { %v9456_v13 = vpop.f32.mrb[114].mxu1 }
 0xaa5   :  { %v9506_v10 = vmul.f32 0.70710677, %v9490_v8  ;;  %v9457_v46 = vadd.f32 %v19272_v1, %v9456_v13  ;;  %v9458_v56 = vpop.f32.mrb[115].mxu1 }
 0xaa7   :  { %v9533_v22 = vsel %vm19308_vm7, %v9506_v10, 0.0  ;;  %v9491_v63 = vadd.f32 %v9457_v46, %v7176_v2 }
 0xaa8   :  { %v9554_v48 = vsel %vm3892_vm1, %v9533_v22, 0.0 }
 0xaa9   :  { %v9555_v35 = vadd.f32 %v9554_v48, %v9553_v37  ;;  %v9507_v32 = vmul.f32 0.70710677, %v9491_v63 }
 0xaab   :  { %v9534_v59 = vsel %vm19315_vm0, %v9507_v32, 0.0 }
 0xaac   :  { %v9561_v21 = vsel %vm3892_vm1, %v9534_v59, 0.0  ;;  %v9742_v59 = vld [vmem:[%s19546_s14] sm:$0x3]  ;;  %s11943_s14 = scalar_lea.vmem %s9839_s26, 32 }
 0xaad   :  { %v9562_v58 = vadd.f32 %v9561_v21, %v9560_v18  ;;  %p11944_p0 = scmp.ne.s32.totalorder %s9839_s26, %s11943_s14  ;;  %p11949_p2 = scmp.lt.s32.totalorder %s11943_s14, %s11943_s14 }
 0xaaf   :  { %p11950_p3 = por %p11949_p2, %p11948_p1 }
 0xab1   :  { %p11951_p4 = pnand %p11950_p3, %p11944_p0 }
 0xab9   :  { %v9461_v40 = vpop.f32.mrb[116].mxu1 }
 0xaba   :  { %v9462_v52 = vadd.f32 %v19272_v1, %v9461_v40  ;;  %v9463_v49 = vpop.f32.mrb[117].mxu1 }
 0xabc   :  { %v9492_v9 = vadd.f32 %v9462_v52, %v7177_v53  ;;  %v10152_v53 = vld [vmem:[%s19550_s18] ss:$0 sm:$0xff] }
 0xabd   :  { %v9466_v62 = vpop.f32.mrb[118].mxu1 }
 0xabe   :  { %v9508_v25 = vmul.f32 0.70710677, %v9492_v9  ;;  %v9467_v34 = vadd.f32 %v19272_v1, %v9466_v62  ;;  %v9468_v51 = vpop.f32.mrb[119].mxu1 }
 0xac0   :  { %v9535_v5 = vsel %vm19308_vm7, %v9508_v25, 0.0  ;;  %v9493_v27 = vadd.f32 %v9467_v34, %v7178_v4 }
 0xac1   :  { %v9556_v33 = vsel %vm3892_vm1, %v9535_v5, 0.0 }
 0xac2   :  { %v9557_v38 = vadd.f32 %v9556_v33, %v9555_v35  ;;  %v9509_v24 = vmul.f32 0.70710677, %v9493_v27  ;;  %v9743_v35 = vld [vmem:[%s19549_s17] sm:$0xf] }
 0xac4   :  { %v9536_v28 = vsel %vm19315_vm0, %v9509_v24, 0.0  ;;  %v9471_v50 = vpop.f32.mrb[120].mxu1 }
 0xac5   :  { %v9563_v47 = vsel %vm3892_vm1, %v9536_v28, 0.0  ;;  %v9472_v12 = vadd.f32 %v19272_v1, %v9471_v50  ;;  %v9473_v30 = vpop.f32.mrb[121].mxu1 }
 0xac6   :  { %v9564_v20 = vadd.f32 %v9563_v47, %v9562_v58 }
 0xac7   :  { %v9494_v61 = vadd.f32 %v9472_v12, %v7179_v44 }
 0xac9   :  { %v9510_v6 = vmul.f32 0.70710677, %v9494_v61  ;;  %v9476_v39 = vpop.f32.mrb[122].mxu1 }
 0xaca   :  { %v9477_v36 = vadd.f32 %v19272_v1, %v9476_v39  ;;  %v9478_v17 = vpop.f32.mrb[123].mxu1  ;;  %v9572_v1 = vrot.slane %v9571_v31, 2 }
 0xacb   :  { %v9537_v54 = vsel %vm19308_vm7, %v9510_v6, 0.0 }
 0xacc   :  { %v9558_v55 = vsel %vm3892_vm1, %v9537_v54, 0.0  ;;  %v9495_v15 = vadd.f32 %v9477_v36, %v7180_v7  ;;  %v9573_v10 = vadd.f32 %v9572_v1, %v9571_v31 }
 0xacd   :  { %v9559_v26 = vadd.f32 %v9558_v55, %v9557_v38  ;;  %v9662_v18 = vpop.f32.mrb[124].mxu1 }
 0xace   :  { %v9511_v23 = vmul.f32 0.70710677, %v9495_v15  ;;  %v9574_v22 = vrot.slane %v9573_v10, 1  ;;  %v10872_v21 = vpop.f32.mrb[125].mxu1 }
 0xacf   :  { %v9576_v13 = vsel %vm3892_vm1, %v9559_v26, 0.0 }
 0xad0   :  { %v9538_v57 = vsel %vm19315_vm0, %v9511_v23, 0.0  ;;  %v9575_v37 = vadd.f32 %v9574_v22, %v9573_v10 }
 0xad1   :  { %v9565_v8 = vsel %vm3892_vm1, %v9538_v57, 0.0 }
 0xad2   :  { %v9566_v2 = vadd.f32 %v9565_v8, %v9564_v20  ;;  %v9585_v11 = vmul.f32 0.0625, %v9575_v37 }
 0xad4   :  { %v9577_v29 = vsel %vm3892_vm1, %v9566_v2, 0.0 }
 0xad5   :  { %v9578_v41 = vadd.f32 %v9577_v29, %v9576_v13 }
 0xad7   :  { %v9579_v42 = vrot.slane %v9578_v41, 4 }
 0xad9   :  { %v9580_v46 = vadd.f32 %v9579_v42, %v9578_v41 }
 0xadb   :  { %v9581_v56 = vrot.slane %v9580_v46, 2 }
 0xadd   :  { %v9582_v63 = vadd.f32 %v9581_v56, %v9580_v46 }
 0xadf   :  { %v9583_v0 = vrot.slane %v9582_v63, 1 }
 0xae1   :  { %v9584_v48 = vadd.f32 %v9583_v0, %v9582_v63 }
 0xae3   :  { %v9586_v45 = vmul.f32 0.0625, %v9584_v48 }
 0xae5   :  { %v9669_v32 = vsel %vm9668_vm2, %v9586_v45, %v9585_v11 }
 0xae6   :  { %10882 = vmatmul.mubr.msk.f32.vlgmr.msra.gmra.mrb[126].mxu1 %vm3892_vm1, %v9669_v32  ;;  %vm9830_vm1 = vcmask 41984  }
 0xae7   :  { %10885 = vmatpush3.msk.msra.mxu1 %vm8834_vm11, %v9743_v35  ;;  %10886 = vmatprep.mubr.msk.f32.mxu1 %vm11980_vm10, %v20792_v43 }
 0xaea   :  { %10887 = vmatmul.mubr.msk.f32.vlgmr.msra.gmra.mrb[128].mxu1 %vm9744_vm5, %v9742_v59 }
 0xbb9   :  { %v9738_v58 = vpop.f32.mrb[126].mxu1 }
 0xbba   :  { %v9739_v16 = vadd.f32 %v9738_v58, %v9662_v18  ;;  %v10883_v40 = vpop.f32.mrb[127].mxu1 }
 0xbbd   :  { %v9817_v60 = vpop.f32.mrb[128].mxu1 }
 0xbbe   :  { %v9821_v52 = vadd.f32 %v9817_v60, %v9739_v16  ;;  %v10888_v43 = vpop.f32.mrb[129].mxu1 }
 0xbc0   :  { %v9829_v49 = vadd.f32 %v10152_v53, %v9821_v52 }
 0xbc2   :  { %9831 = vst.msk [vmem:[#allocation2] sm:$0x3] %vm9830_vm1, %v9829_v49 }
 0xbc3   :  { %11954 = shalt.err (!%p11951_p4)
}
 0xbc4   :  { %s11955_s21 = scalar_lea.hbm %s19551_s19, 32 }
 0xbc5   :  { %p11956_p5 = scmp.ne.s32.totalorder %s19551_s19, %s11955_s21  ;;  %p11959_p6 = scmp.lt.u32.totalorder %s11955_s21, %s19551_s19 }
 0xbc7   :  { %p11961_p7 = pnand %p11959_p6, %p11956_p5 }
 0xbc9   :  { %11964 = shalt.err (!%p11961_p7)
}
 0xbca   :  { %9841 = dma.vmem_to_hbm [thread:$0]  %s9839_s26, 32, %s19551_s19, [#allocation3]  }
 0xbcb   :  { %11965 = dma.done.wait [#allocation3], 32  }
 0xbcc   :  { %11966 = vsyncadd [#allocation3], 4294967264 }
 0xbcd   :  { %9845 = vsyncpa [#allocation3], 1 }

</bundles_post_ra>
